<compile_context>
chip_gen: v6e
topology: v6e:2x2x1
jax: 0.10.0
libtpu: 0.0.40
codegen_flags: <defaults>
</compile_context>

<pallas_src>
import functools

import jax
import jax.numpy as jnp
from jax.experimental import pallas as pl
from jax.experimental.pallas import tpu as pltpu

F32 = jnp.float32
BF16 = jnp.bfloat16


def _mm(a, w, bias=None):
    # bf16 operands, f32 accumulation on the MXU.
    out = jnp.dot(a.astype(BF16), w.astype(BF16), preferred_element_type=F32)
    if bias is not None:
        out = out + bias
    return out


def _layer_norm(v, g, b, eps):
    mu = jnp.mean(v, axis=-1, keepdims=True)
    var = jnp.mean(jnp.square(v - mu), axis=-1, keepdims=True)
    return (v - mu) * jax.lax.rsqrt(var + eps) * g + b


# ----------------------------------------------------------------------------
# Kernel 1: patch projection + pos emb + cls prepend  ->  x0 [B*S_pad, D]
# ----------------------------------------------------------------------------
def _patch_embed_kernel(patches_ref, pw_ref, pb_ref, cls_ref, pos_ref, out_ref,
                        *, B, N, S_pad, D):
    # One-time matmul with the largest contraction -> keep it in f32.
    pe = jnp.dot(patches_ref[...], pw_ref[...],
                 preferred_element_type=F32) + pb_ref[...]          # [B*N, D]
    pos = pos_ref[...]                                              # [N, D]
    cls_row = cls_ref[...]                                          # [1, D]
    n_pad = S_pad - (N + 1)
    slabs = []
    for b in range(B):
        slabs.append(cls_row)                                       # row 0: cls
        slabs.append(pe[b * N:(b + 1) * N, :] + pos)                # rows 1..N
        if n_pad:
            slabs.append(jnp.zeros((n_pad, D), F32))                # zero padding
    out_ref[...] = jnp.concatenate(slabs, axis=0)                   # one dense store


# ----------------------------------------------------------------------------
# Kernel 2: all transformer layers + classification head, grid=(L,)
# ----------------------------------------------------------------------------
def _vit_layers_kernel(
        x0_ref,
        ln1_g_ref, ln1_b_ref, wqkv_ref, bqkv_ref, wo_ref, bo_ref,
        ln2_g_ref, ln2_b_ref, w1_ref, b1_ref, w2_ref, b2_ref,
        head_w_ref, head_b_ref,
        out_ref,
        x_scr,
        *, B, N, S_pad, D, H, eps):
    l = pl.program_id(0)
    n_layers = pl.num_programs(0)
    Dh = D // H
    S = N + 1
    scale = 1.0 / float(Dh) ** 0.5

    # ---- grid step 0: load the assembled token slab into the VMEM scratch ----
    @pl.when(l == 0)
    def _init():
        x_scr[...] = x0_ref[...]

    x = x_scr[...]                                                  # [B*S_pad, D] f32

    # ----------------- multi-head self-attention (pre-LN) -----------------
    h = _layer_norm(x, ln1_g_ref[0], ln1_b_ref[0], eps)
    qkv = _mm(h, wqkv_ref[0], bqkv_ref[0])                          # [B*S_pad, 3D]

    kpos = jax.lax.broadcasted_iota(jnp.int32, (S_pad, S_pad), 1)
    key_valid = kpos < S                                            # mask padded keys

    o_slabs = []
    for b in range(B):                                              # tiny static B
        r0 = b * S_pad
        qkv_b = qkv[r0:r0 + S_pad, :]
        heads = []
        for hh in range(H):                                         # tiny static H
            c = hh * Dh
            q = qkv_b[:, c:c + Dh]
            k = qkv_b[:, D + c:D + c + Dh]
            v = qkv_b[:, 2 * D + c:2 * D + c + Dh]
            s = jax.lax.dot_general(
                q.astype(BF16), k.astype(BF16),
                (((1,), (1,)), ((), ())),
                preferred_element_type=F32) * scale                 # [S_pad, S_pad]
            s = jnp.where(key_valid, s, -1e30)
            p = jnp.exp(s - jnp.max(s, axis=-1, keepdims=True))
            p = p * pl.reciprocal(jnp.sum(p, axis=-1, keepdims=True), approx=True)
            heads.append(jnp.dot(p.astype(BF16), v.astype(BF16),
                                 preferred_element_type=F32))       # [S_pad, Dh]
        o_slabs.append(jnp.concatenate(heads, axis=-1))             # [S_pad, D]
    o_all = jnp.concatenate(o_slabs, axis=0)                        # [B*S_pad, D]

    # Single full-width (K = D) output projection instead of H rank-Dh matmuls.
    x = x + _mm(o_all, wo_ref[0], bo_ref[0])

    # ------------------------------ MLP (pre-LN) ------------------------------
    h2 = _layer_norm(x, ln2_g_ref[0], ln2_b_ref[0], eps)
    m1 = jax.nn.gelu(_mm(h2, w1_ref[0], b1_ref[0]), approximate=True)
    x = x + _mm(m1, w2_ref[0], b2_ref[0])

    # Skip the redundant scratch writeback on the final layer.
    @pl.when(l < n_layers - 1)
    def _writeback():
        x_scr[...] = x

    # ---- last grid step: classification head on the B cls rows only ----
    @pl.when(l == n_layers - 1)
    def _head():
        cls_rows = jnp.concatenate(
            [x[b * S_pad:b * S_pad + 1, :] for b in range(B)], axis=0)   # [B, D]
        out_ref[...] = _mm(cls_rows, head_w_ref[...], head_b_ref[...])   # [B, C_pad]


# ----------------------------------------------------------------------------
# Model glue
# ----------------------------------------------------------------------------
def patchify(x, patch_size):
    # x: [B, C, H, W] -> [B, N, C*p*p], pixels flattened in (c, ki, kj) order
    # (matches a Conv2d weight [D, C, p, p] flattened to [C*p*p, D]).
    B, C, Hh, Ww = x.shape
    p = patch_size
    gh, gw = Hh // p, Ww // p
    x = x.reshape(B, C, gh, p, gw, p)
    x = jnp.transpose(x, (0, 2, 4, 1, 3, 5))
    return x.reshape(B, gh * gw, C * p * p)


def vit_forward(params, x, *, patch_size, num_heads):
    B = x.shape[0]
    N, D = params["pos_emb"].shape
    L = params["wqkv"].shape[0]
    Mdim = params["w1"].shape[2]
    C = params["head_w"].shape[1]
    S = N + 1
    S_pad = ((S + 7) // 8) * 8
    C_pad = ((C + 127) // 128) * 128

    patches = patchify(x, patch_size).reshape(B * N, -1)            # [B*N, Kp]

    # ---- stage 1: patch embedding + cls/pos assembly (separate small call) ----
    x0 = pl.pallas_call(
        functools.partial(_patch_embed_kernel, B=B, N=N, S_pad=S_pad, D=D),
        out_shape=jax.ShapeDtypeStruct((B * S_pad, D), jnp.float32),
    )(patches, params["patch_w"], params["patch_b"].reshape(1, D),
      params["cls_token"].reshape(1, D), params["pos_emb"])

    # ---- stage 2: transformer stack + head, single launch, grid=(L,) ----
    bf = jnp.bfloat16
    # All large matmul weights (incl. wo) ship as bf16; LN params/biases f32.
    wqkv = params["wqkv"].astype(bf)
    wo = params["wo"].astype(bf)
    w1 = params["w1"].astype(bf)
    w2 = params["w2"].astype(bf)
    head_w = (jnp.zeros((D, C_pad), jnp.float32)
              .at[:, :C].set(params["head_w"]).astype(bf))          # lane-padded
    head_b = jnp.zeros((1, C_pad), jnp.float32).at[:, :C].set(params["head_b"])

    ln1_g = params["ln1_g"].reshape(L, 1, D)
    ln1_b = params["ln1_b"].reshape(L, 1, D)
    ln2_g = params["ln2_g"].reshape(L, 1, D)
    ln2_b = params["ln2_b"].reshape(L, 1, D)
    bqkv = params["bqkv"].reshape(L, 1, 3 * D)
    bo = params["bo"].reshape(L, 1, D)
    b1 = params["b1"].reshape(L, 1, Mdim)
    b2 = params["b2"].reshape(L, 1, D)

    # VMEM budget: double-buffered per-layer weights + resident buffers, with
    # 2x headroom, capped at 64 MiB (v7x physical VMEM).
    def nbytes(a):
        return a.size * a.dtype.itemsize
    per_layer_w = sum(nbytes(a) for a in (wqkv, wo, w1, w2, bqkv, bo, b1, b2,
                                          ln1_g, ln1_b, ln2_g, ln2_b)) // L
    resident = (nbytes(x0) + nbytes(head_w) + nbytes(head_b)
                + B * S_pad * D * 4 + B * C_pad * 4)
    vmem_limit = int(min(max(2 * (2 * per_layer_w + resident), 16 * 2 ** 20),
                         64 * 2 ** 20))

    kernel = functools.partial(
        _vit_layers_kernel, B=B, N=N, S_pad=S_pad, D=D, H=num_heads, eps=1e-5)

    def const_spec(shape):
        nd = len(shape)
        return pl.BlockSpec(tuple(shape), lambda l, _nd=nd: (0,) * _nd)

    def layer_spec(shape):
        nd = len(shape)
        return pl.BlockSpec((1,) + tuple(shape),
                            lambda l, _nd=nd: (l,) + (0,) * _nd)

    grid_spec = pltpu.PrefetchScalarGridSpec(
        num_scalar_prefetch=0,
        grid=(L,),
        in_specs=[
            const_spec((B * S_pad, D)),     # x0
            layer_spec((1, D)),             # ln1_g
            layer_spec((1, D)),             # ln1_b
            layer_spec((D, 3 * D)),         # wqkv
            layer_spec((1, 3 * D)),         # bqkv
            layer_spec((D, D)),             # wo (bf16)
            layer_spec((1, D)),             # bo
            layer_spec((1, D)),             # ln2_g
            layer_spec((1, D)),             # ln2_b
            layer_spec((D, Mdim)),          # w1
            layer_spec((1, Mdim)),          # b1
            layer_spec((Mdim, D)),          # w2
            layer_spec((1, D)),             # b2
            const_spec((D, C_pad)),         # head_w (lane-padded)
            const_spec((1, C_pad)),         # head_b (lane-padded)
        ],
        out_specs=pl.BlockSpec((B, C_pad), lambda l: (0, 0)),
        scratch_shapes=[pltpu.VMEM((B * S_pad, D), jnp.float32)],
    )

    logits_pad = pl.pallas_call(
        kernel,
        out_shape=jax.ShapeDtypeStruct((B, C_pad), jnp.float32),
        grid_spec=grid_spec,
        compiler_params=pltpu.CompilerParams(
            dimension_semantics=("arbitrary",),
            vmem_limit_bytes=vmem_limit,
        ),
    )(x0, ln1_g, ln1_b, wqkv, bqkv, wo, bo, ln2_g, ln2_b,
      w1, b1, w2, b2, head_w, head_b)

    return logits_pad[:, :C]


# ----------------------------------------------------------------------------
# Pure-JAX reference (f32, unpadded) for a correctness check.
# ----------------------------------------------------------------------------
def vit_reference(params, x, *, patch_size, num_heads):
    B = x.shape[0]
    N, D = params["pos_emb"].shape
    H = num_heads
    Dh = D // H
    patches = patchify(x, patch_size).reshape(B * N, -1)
    pe = patches @ params["patch_w"] + params["patch_b"]
    pe = pe.reshape(B, N, D) + params["pos_emb"][None]
    cls = jnp.broadcast_to(params["cls_token"][None, None, :], (B, 1, D))
    seq = jnp.concatenate([cls, pe], axis=1)

    def ln(v, g, b, eps=1e-5):
        mu = v.mean(-1, keepdims=True)
        var = ((v - mu) ** 2).mean(-1, keepdims=True)
        return (v - mu) / jnp.sqrt(var + eps) * g + b

    L = params["wqkv"].shape[0]
    for i in range(L):
        h = ln(seq, params["ln1_g"][i], params["ln1_b"][i])
        qkv = h @ params["wqkv"][i] + params["bqkv"][i]
        q, k, v = jnp.split(qkv, 3, axis=-1)
        q = q.reshape(B, -1, H, Dh).transpose(0, 2, 1, 3)
        k = k.reshape(B, -1, H, Dh).transpose(0, 2, 1, 3)
        v = v.reshape(B, -1, H, Dh).transpose(0, 2, 1, 3)
        s = (q @ k.transpose(0, 1, 3, 2)) / (Dh ** 0.5)
        p = jax.nn.softmax(s, axis=-1)
        o = (p @ v).transpose(0, 2, 1, 3).reshape(B, -1, D)
        seq = seq + (o @ params["wo"][i] + params["bo"][i])
        h2 = ln(seq, params["ln2_g"][i], params["ln2_b"][i])
        m = jax.nn.gelu(h2 @ params["w1"][i] + params["b1"][i], approximate=True)
        seq = seq + (m @ params["w2"][i] + params["b2"][i])
    return seq[:, 0, :] @ params["head_w"] + params["head_b"]


# ----------------------------------------------------------------------------
# Deterministic parameter init (stacked per-layer weights)
# ----------------------------------------------------------------------------
def init_params(key, *, patch_size, num_layers, hidden_dim, mlp_size,
                num_classes, num_patches, in_chans=3):
    D, M, L = hidden_dim, mlp_size, num_layers
    Kp = in_chans * patch_size * patch_size

    def nrm(k, shape, scale=0.02):
        return scale * jax.random.normal(k, shape, dtype=jnp.float32)

    ks = jax.random.split(key, 14)
    return {
        "patch_w": nrm(ks[0], (Kp, D)),        # Conv2d [D,C,p,p] -> [C*p*p, D]
        "patch_b": nrm(ks[1], (D,)),
        "cls_token": nrm(ks[2], (D,)),
        "pos_emb": nrm(ks[3], (num_patches, D)),
        "head_w": nrm(ks[4], (D, num_classes)),
        "head_b": nrm(ks[5], (num_classes,)),
        "ln1_g": jnp.ones((L, D), jnp.float32),
        "ln1_b": jnp.zeros((L, D), jnp.float32),
        "ln2_g": jnp.ones((L, D), jnp.float32),
        "ln2_b": jnp.zeros((L, D), jnp.float32),
        "wqkv": nrm(ks[6], (L, D, 3 * D)),
        "bqkv": nrm(ks[7], (L, 3 * D)),
        "wo": nrm(ks[8], (L, D, D)),
        "bo": nrm(ks[9], (L, D)),
        "w1": nrm(ks[10], (L, D, M)),
        "b1": nrm(ks[11], (L, M)),
        "w2": nrm(ks[12], (L, M, D)),
        "b2": nrm(ks[13], (L, D)),
    }


# ----------------------------------------------------------------------------
if __name__ == "__main__":
    # ViT config (img_size is hard-coded to 224 in the reference __init__).
    patch_size = 32          # -> 7x7 = 49 patches, Kp = 3*32*32 = 3072 (lane-aligned)
    num_layers = 2
    hidden_dim = 32
    num_heads = 4
    mlp_size = 64
    num_classes = 10
    img_size = 224
    num_patches = (img_size // patch_size) ** 2

    key = jax.random.PRNGKey(0)
    kp, kx = jax.random.split(key)
    params = init_params(kp, patch_size=patch_size, num_layers=num_layers,
                         hidden_dim=hidden_dim, mlp_size=mlp_size,
                         num_classes=num_classes, num_patches=num_patches)

    x = jax.random.normal(kx, (2, 3, img_size, img_size), dtype=jnp.float32)

    fwd = jax.jit(functools.partial(vit_forward, patch_size=patch_size,
                                    num_heads=num_heads))
    logits = fwd(params, x)
    jax.block_until_ready(logits)
    assert logits.shape == (2, num_classes)

    ref = jax.jit(functools.partial(vit_reference, patch_size=patch_size,
                                    num_heads=num_heads))(params, x)
    jax.block_until_ready(ref)
    max_err = float(jnp.max(jnp.abs(logits - ref)))
    assert bool(jnp.all(jnp.isfinite(logits)))
    # bf16 matmuls + approximate reciprocal -> loose but meaningful tolerance.
    assert max_err < 5e-3, f"max abs error vs reference: {max_err}"

    print("KERNEL_OK")
</pallas_src>

<mosaic_0001>
module attributes {stable_mosaic.version = 11 : i64} {
  func.func @_patch_embed_kernel(%arg0: memref<98x3072xf32, #tpu.memory_space<vmem>>, %arg1: memref<3072x32xf32, #tpu.memory_space<vmem>>, %arg2: memref<1x32xf32, #tpu.memory_space<vmem>>, %arg3: memref<1x32xf32, #tpu.memory_space<vmem>>, %arg4: memref<49x32xf32, #tpu.memory_space<vmem>>, %arg5: memref<112x32xf32, #tpu.memory_space<vmem>>) attributes {dimension_semantics = [], scalar_prefetch = 0 : i64, scratch_operands = 0 : i64, tpu.core_type = #tpu.core_type<tc>} {
    %c0 = arith.constant 0 : index
    %c0_0 = arith.constant 0 : index
    %0 = vector.load %arg0[%c0, %c0_0] : memref<98x3072xf32, #tpu.memory_space<vmem>>, vector<98x3072xf32>
    %c0_1 = arith.constant 0 : index
    %c0_2 = arith.constant 0 : index
    %1 = vector.load %arg1[%c0_1, %c0_2] : memref<3072x32xf32, #tpu.memory_space<vmem>>, vector<3072x32xf32>
    %cst = arith.constant dense<0.000000e+00> : vector<98x32xf32>
    %2 = tpu.matmul %0, %1, %cst {dimension_numbers = #tpu.dot_dimension_numbers<[1], [0], [0], [1], [0, 0, 1, 1], [], []>} : vector<98x3072xf32>, vector<3072x32xf32>, vector<98x32xf32> -> vector<98x32xf32>
    %c0_3 = arith.constant 0 : index
    %c0_4 = arith.constant 0 : index
    %3 = vector.load %arg2[%c0_3, %c0_4] : memref<1x32xf32, #tpu.memory_space<vmem>>, vector<1x32xf32>
    %4 = vector.broadcast %3 : vector<1x32xf32> to vector<98x32xf32>
    %5 = arith.addf %2, %4 : vector<98x32xf32>
    %c0_5 = arith.constant 0 : index
    %c0_6 = arith.constant 0 : index
    %6 = vector.load %arg4[%c0_5, %c0_6] : memref<49x32xf32, #tpu.memory_space<vmem>>, vector<49x32xf32>
    %c0_7 = arith.constant 0 : index
    %c0_8 = arith.constant 0 : index
    %7 = vector.load %arg3[%c0_7, %c0_8] : memref<1x32xf32, #tpu.memory_space<vmem>>, vector<1x32xf32>
    %8 = vector.extract_strided_slice %5 {offsets = [0, 0], sizes = [49, 32], strides = [1, 1]} : vector<98x32xf32> to vector<49x32xf32>
    %9 = arith.addf %8, %6 : vector<49x32xf32>
    %cst_9 = arith.constant 0.000000e+00 : f32
    %10 = vector.broadcast %cst_9 : f32 to vector<6x32xf32>
    %11 = vector.extract_strided_slice %5 {offsets = [49, 0], sizes = [49, 32], strides = [1, 1]} : vector<98x32xf32> to vector<49x32xf32>
    %12 = arith.addf %11, %6 : vector<49x32xf32>
    %cst_10 = arith.constant 0.000000e+00 : f32
    %13 = vector.broadcast %cst_10 : f32 to vector<6x32xf32>
    %14 = tpu.concatenate %7, %9, %10, %7, %12, %13 in 0 : vector<1x32xf32>, vector<49x32xf32>, vector<6x32xf32>, vector<1x32xf32>, vector<49x32xf32>, vector<6x32xf32> -> vector<112x32xf32>
    %c0_11 = arith.constant 0 : index
    %c0_12 = arith.constant 0 : index
    %15 = vector.load %arg5[%c0_11, %c0_12] : memref<112x32xf32, #tpu.memory_space<vmem>>, vector<112x32xf32>
    tpu.vector_store %arg5[%c0_11, %c0_12], %14 {strides = array<i32>} : memref<112x32xf32, #tpu.memory_space<vmem>>, vector<112x32xf32>,
    return
  }
}

module attributes {stable_mosaic.version = 11 : i64} {
  func.func @_vit_layers_kernel(%arg0: i32, %arg1: memref<112x32xf32, #tpu.memory_space<vmem>>, %arg2: memref<1x1x32xf32, #tpu.memory_space<vmem>>, %arg3: memref<1x1x32xf32, #tpu.memory_space<vmem>>, %arg4: memref<1x32x96xbf16, #tpu.memory_space<vmem>>, %arg5: memref<1x1x96xf32, #tpu.memory_space<vmem>>, %arg6: memref<1x32x32xbf16, #tpu.memory_space<vmem>>, %arg7: memref<1x1x32xf32, #tpu.memory_space<vmem>>, %arg8: memref<1x1x32xf32, #tpu.memory_space<vmem>>, %arg9: memref<1x1x32xf32, #tpu.memory_space<vmem>>, %arg10: memref<1x32x64xbf16, #tpu.memory_space<vmem>>, %arg11: memref<1x1x64xf32, #tpu.memory_space<vmem>>, %arg12: memref<1x64x32xbf16, #tpu.memory_space<vmem>>, %arg13: memref<1x1x32xf32, #tpu.memory_space<vmem>>, %arg14: memref<32x128xbf16, #tpu.memory_space<vmem>>, %arg15: memref<1x128xf32, #tpu.memory_space<vmem>>, %arg16: memref<2x128xf32, #tpu.memory_space<vmem>>, %arg17: memref<112x32xf32, #tpu.memory_space<vmem>>) attributes {dimension_semantics = [#tpu.dimension_semantics<arbitrary>], iteration_bounds = array<i64: 2>, scalar_prefetch = 0 : i64, scratch_operands = 1 : i64, tpu.core_type = #tpu.core_type<tc>, window_params = [{pipeline_mode = #tpu.pipeline_mode<synchronous>, transform_indices = @transform_0, window_bounds = array<i64: 112, 32>}, {transform_indices = @transform_1, window_bounds = array<i64: 1, 1, 32>}, {transform_indices = @transform_2, window_bounds = array<i64: 1, 1, 32>}, {transform_indices = @transform_3, window_bounds = array<i64: 1, 32, 96>}, {transform_indices = @transform_4, window_bounds = array<i64: 1, 1, 96>}, {transform_indices = @transform_5, window_bounds = array<i64: 1, 32, 32>}, {transform_indices = @transform_6, window_bounds = array<i64: 1, 1, 32>}, {transform_indices = @transform_7, window_bounds = array<i64: 1, 1, 32>}, {transform_indices = @transform_8, window_bounds = array<i64: 1, 1, 32>}, {transform_indices = @transform_9, window_bounds = array<i64: 1, 32, 64>}, {transform_indices = @transform_10, window_bounds = array<i64: 1, 1, 64>}, {transform_indices = @transform_11, window_bounds = array<i64: 1, 64, 32>}, {transform_indices = @transform_12, window_bounds = array<i64: 1, 1, 32>}, {pipeline_mode = #tpu.pipeline_mode<synchronous>, transform_indices = @transform_13, window_bounds = array<i64: 32, 128>}, {pipeline_mode = #tpu.pipeline_mode<synchronous>, transform_indices = @transform_14, window_bounds = array<i64: 1, 128>}, {pipeline_mode = #tpu.pipeline_mode<synchronous>, transform_indices = @transform_15, window_bounds = array<i64: 2, 128>}]} {
    %c0_i32 = arith.constant 0 : i32
    %0 = arith.cmpi eq, %arg0, %c0_i32 : i32
    %1 = arith.extui %0 : i1 to i32
    %c0_i32_0 = arith.constant 0 : i32
    %2 = arith.cmpi ne, %1, %c0_i32_0 : i32
    scf.if %2 {
      %c0_106 = arith.constant 0 : index
      %c0_107 = arith.constant 0 : index
      %301 = vector.load %arg1[%c0_106, %c0_107] : memref<112x32xf32, #tpu.memory_space<vmem>>, vector<112x32xf32>
      %c0_108 = arith.constant 0 : index
      %c0_109 = arith.constant 0 : index
      %302 = vector.load %arg17[%c0_108, %c0_109] : memref<112x32xf32, #tpu.memory_space<vmem>>, vector<112x32xf32>
      tpu.vector_store %arg17[%c0_108, %c0_109], %301 {strides = array<i32>} : memref<112x32xf32, #tpu.memory_space<vmem>>, vector<112x32xf32>,
    } else {
    }
    %c0 = arith.constant 0 : index
    %c0_1 = arith.constant 0 : index
    %3 = vector.load %arg17[%c0, %c0_1] : memref<112x32xf32, #tpu.memory_space<vmem>>, vector<112x32xf32>
    %c0_2 = arith.constant 0 : index
    %c0_3 = arith.constant 0 : index
    %c0_4 = arith.constant 0 : index
    %4 = vector.load %arg2[%c0_2, %c0_3, %c0_4] : memref<1x1x32xf32, #tpu.memory_space<vmem>>, vector<1x1x32xf32>
    %5 = vector.shape_cast %4 : vector<1x1x32xf32> to vector<1x32xf32>
    %c0_5 = arith.constant 0 : index
    %c0_6 = arith.constant 0 : index
    %c0_7 = arith.constant 0 : index
    %6 = vector.load %arg3[%c0_5, %c0_6, %c0_7] : memref<1x1x32xf32, #tpu.memory_space<vmem>>, vector<1x1x32xf32>
    %7 = vector.shape_cast %6 : vector<1x1x32xf32> to vector<1x32xf32>
    %cst = arith.constant dense<0.000000e+00> : vector<112xf32>
    %8 = vector.multi_reduction <add>, %3, %cst [1] : vector<112x32xf32> to vector<112xf32>
    %9 = vector.shape_cast %8 : vector<112xf32> to vector<112x1xf32>
    %cst_8 = arith.constant 3.200000e+01 : f32
    %10 = vector.broadcast %cst_8 : f32 to vector<112x1xf32>
    %11 = arith.divf %9, %10 : vector<112x1xf32>
    %12 = vector.broadcast %11 : vector<112x1xf32> to vector<112x32xf32>
    %13 = arith.subf %3, %12 : vector<112x32xf32>
    %14 = arith.mulf %13, %13 : vector<112x32xf32>
    %cst_9 = arith.constant dense<0.000000e+00> : vector<112xf32>
    %15 = vector.multi_reduction <add>, %14, %cst_9 [1] : vector<112x32xf32> to vector<112xf32>
    %16 = vector.shape_cast %15 : vector<112xf32> to vector<112x1xf32>
    %cst_10 = arith.constant 3.200000e+01 : f32
    %17 = vector.broadcast %cst_10 : f32 to vector<112x1xf32>
    %18 = arith.divf %16, %17 : vector<112x1xf32>
    %19 = vector.broadcast %11 : vector<112x1xf32> to vector<112x32xf32>
    %20 = arith.subf %3, %19 : vector<112x32xf32>
    %cst_11 = arith.constant 9.99999974E-6 : f32
    %21 = vector.broadcast %cst_11 : f32 to vector<112x1xf32>
    %22 = arith.addf %18, %21 : vector<112x1xf32>
    %23 = math.rsqrt %22 : vector<112x1xf32>
    %24 = vector.broadcast %23 : vector<112x1xf32> to vector<112x32xf32>
    %25 = arith.mulf %20, %24 : vector<112x32xf32>
    %26 = vector.broadcast %5 : vector<1x32xf32> to vector<112x32xf32>
    %27 = arith.mulf %25, %26 : vector<112x32xf32>
    %28 = vector.broadcast %7 : vector<1x32xf32> to vector<112x32xf32>
    %29 = arith.addf %27, %28 : vector<112x32xf32>
    %c0_12 = arith.constant 0 : index
    %c0_13 = arith.constant 0 : index
    %c0_14 = arith.constant 0 : index
    %30 = vector.load %arg4[%c0_12, %c0_13, %c0_14] : memref<1x32x96xbf16, #tpu.memory_space<vmem>>, vector<1x32x96xbf16>
    %31 = vector.shape_cast %30 : vector<1x32x96xbf16> to vector<32x96xbf16>
    %c0_15 = arith.constant 0 : index
    %c0_16 = arith.constant 0 : index
    %c0_17 = arith.constant 0 : index
    %32 = vector.load %arg5[%c0_15, %c0_16, %c0_17] : memref<1x1x96xf32, #tpu.memory_space<vmem>>, vector<1x1x96xf32>
    %33 = vector.shape_cast %32 : vector<1x1x96xf32> to vector<1x96xf32>
    %34 = arith.truncf %29 : vector<112x32xf32> to vector<112x32xbf16>
    %cst_18 = arith.constant dense<0.000000e+00> : vector<112x96xf32>
    %35 = tpu.matmul %34, %31, %cst_18 {dimension_numbers = #tpu.dot_dimension_numbers<[1], [0], [0], [1], [0, 0, 1, 1], [], []>} : vector<112x32xbf16>, vector<32x96xbf16>, vector<112x96xf32> -> vector<112x96xf32>
    %36 = vector.broadcast %33 : vector<1x96xf32> to vector<112x96xf32>
    %37 = arith.addf %35, %36 : vector<112x96xf32>
    %38 = tpu.iota {dimensions = array<i32: 1>} : vector<56x56xi32>
    %c50_i32 = arith.constant 50 : i32
    %39 = vector.broadcast %c50_i32 : i32 to vector<56x56xi32>
    %40 = arith.cmpi slt, %38, %39 : vector<56x56xi32>
    %41 = vector.extract_strided_slice %37 {offsets = [0, 0], sizes = [56, 96], strides = [1, 1]} : vector<112x96xf32> to vector<56x96xf32>
    %42 = vector.extract_strided_slice %41 {offsets = [0, 0], sizes = [56, 8], strides = [1, 1]} : vector<56x96xf32> to vector<56x8xf32>
    %43 = vector.extract_strided_slice %41 {offsets = [0, 32], sizes = [56, 8], strides = [1, 1]} : vector<56x96xf32> to vector<56x8xf32>
    %44 = vector.extract_strided_slice %41 {offsets = [0, 64], sizes = [56, 8], strides = [1, 1]} : vector<56x96xf32> to vector<56x8xf32>
    %45 = arith.truncf %42 : vector<56x8xf32> to vector<56x8xbf16>
    %46 = arith.truncf %43 : vector<56x8xf32> to vector<56x8xbf16>
    %cst_19 = arith.constant dense<0.000000e+00> : vector<56x56xf32>
    %47 = tpu.matmul %45, %46, %cst_19 {dimension_numbers = #tpu.dot_dimension_numbers<[1], [1], [0], [0], [0, 0, 1, 0], [], []>} : vector<56x8xbf16>, vector<56x8xbf16>, vector<56x56xf32> -> vector<56x56xf32>
    %cst_20 = arith.constant 0.353553385 : f32
    %48 = vector.broadcast %cst_20 : f32 to vector<56x56xf32>
    %49 = arith.mulf %47, %48 : vector<56x56xf32>
    %cst_21 = arith.constant -1.000000e+30 : f32
    %50 = vector.broadcast %cst_21 : f32 to vector<56x56xf32>
    %51 = arith.select %40, %49, %50 : vector<56x56xi1>, vector<56x56xf32>
    %cst_22 = arith.constant dense<0xFF800000> : vector<56xf32>
    %52 = vector.multi_reduction <maximumf>, %51, %cst_22 [1] : vector<56x56xf32> to vector<56xf32>
    %53 = vector.shape_cast %52 : vector<56xf32> to vector<56x1xf32>
    %54 = vector.broadcast %53 : vector<56x1xf32> to vector<56x56xf32>
    %55 = arith.subf %51, %54 : vector<56x56xf32>
    %56 = math.exp %55 : vector<56x56xf32>
    %cst_23 = arith.constant dense<0.000000e+00> : vector<56xf32>
    %57 = vector.multi_reduction <add>, %56, %cst_23 [1] : vector<56x56xf32> to vector<56xf32>
    %58 = vector.shape_cast %57 : vector<56xf32> to vector<56x1xf32>
    %59 = tpu.reciprocal %58 {approx = true} : vector<56x1xf32> -> vector<56x1xf32>
    %60 = vector.broadcast %59 : vector<56x1xf32> to vector<56x56xf32>
    %61 = arith.mulf %56, %60 : vector<56x56xf32>
    %62 = arith.truncf %61 : vector<56x56xf32> to vector<56x56xbf16>
    %63 = arith.truncf %44 : vector<56x8xf32> to vector<56x8xbf16>
    %cst_24 = arith.constant dense<0.000000e+00> : vector<56x8xf32>
    %64 = tpu.matmul %62, %63, %cst_24 {dimension_numbers = #tpu.dot_dimension_numbers<[1], [0], [0], [1], [0, 0, 1, 1], [], []>} : vector<56x56xbf16>, vector<56x8xbf16>, vector<56x8xf32> -> vector<56x8xf32>
    %65 = vector.extract_strided_slice %41 {offsets = [0, 8], sizes = [56, 8], strides = [1, 1]} : vector<56x96xf32> to vector<56x8xf32>
    %66 = vector.extract_strided_slice %41 {offsets = [0, 40], sizes = [56, 8], strides = [1, 1]} : vector<56x96xf32> to vector<56x8xf32>
    %67 = vector.extract_strided_slice %41 {offsets = [0, 72], sizes = [56, 8], strides = [1, 1]} : vector<56x96xf32> to vector<56x8xf32>
    %68 = arith.truncf %65 : vector<56x8xf32> to vector<56x8xbf16>
    %69 = arith.truncf %66 : vector<56x8xf32> to vector<56x8xbf16>
    %cst_25 = arith.constant dense<0.000000e+00> : vector<56x56xf32>
    %70 = tpu.matmul %68, %69, %cst_25 {dimension_numbers = #tpu.dot_dimension_numbers<[1], [1], [0], [0], [0, 0, 1, 0], [], []>} : vector<56x8xbf16>, vector<56x8xbf16>, vector<56x56xf32> -> vector<56x56xf32>
    %cst_26 = arith.constant 0.353553385 : f32
    %71 = vector.broadcast %cst_26 : f32 to vector<56x56xf32>
    %72 = arith.mulf %70, %71 : vector<56x56xf32>
    %cst_27 = arith.constant -1.000000e+30 : f32
    %73 = vector.broadcast %cst_27 : f32 to vector<56x56xf32>
    %74 = arith.select %40, %72, %73 : vector<56x56xi1>, vector<56x56xf32>
    %cst_28 = arith.constant dense<0xFF800000> : vector<56xf32>
    %75 = vector.multi_reduction <maximumf>, %74, %cst_28 [1] : vector<56x56xf32> to vector<56xf32>
    %76 = vector.shape_cast %75 : vector<56xf32> to vector<56x1xf32>
    %77 = vector.broadcast %76 : vector<56x1xf32> to vector<56x56xf32>
    %78 = arith.subf %74, %77 : vector<56x56xf32>
    %79 = math.exp %78 : vector<56x56xf32>
    %cst_29 = arith.constant dense<0.000000e+00> : vector<56xf32>
    %80 = vector.multi_reduction <add>, %79, %cst_29 [1] : vector<56x56xf32> to vector<56xf32>
    %81 = vector.shape_cast %80 : vector<56xf32> to vector<56x1xf32>
    %82 = tpu.reciprocal %81 {approx = true} : vector<56x1xf32> -> vector<56x1xf32>
    %83 = vector.broadcast %82 : vector<56x1xf32> to vector<56x56xf32>
    %84 = arith.mulf %79, %83 : vector<56x56xf32>
    %85 = arith.truncf %84 : vector<56x56xf32> to vector<56x56xbf16>
    %86 = arith.truncf %67 : vector<56x8xf32> to vector<56x8xbf16>
    %cst_30 = arith.constant dense<0.000000e+00> : vector<56x8xf32>
    %87 = tpu.matmul %85, %86, %cst_30 {dimension_numbers = #tpu.dot_dimension_numbers<[1], [0], [0], [1], [0, 0, 1, 1], [], []>} : vector<56x56xbf16>, vector<56x8xbf16>, vector<56x8xf32> -> vector<56x8xf32>
    %88 = vector.extract_strided_slice %41 {offsets = [0, 16], sizes = [56, 8], strides = [1, 1]} : vector<56x96xf32> to vector<56x8xf32>
    %89 = vector.extract_strided_slice %41 {offsets = [0, 48], sizes = [56, 8], strides = [1, 1]} : vector<56x96xf32> to vector<56x8xf32>
    %90 = vector.extract_strided_slice %41 {offsets = [0, 80], sizes = [56, 8], strides = [1, 1]} : vector<56x96xf32> to vector<56x8xf32>
    %91 = arith.truncf %88 : vector<56x8xf32> to vector<56x8xbf16>
    %92 = arith.truncf %89 : vector<56x8xf32> to vector<56x8xbf16>
    %cst_31 = arith.constant dense<0.000000e+00> : vector<56x56xf32>
    %93 = tpu.matmul %91, %92, %cst_31 {dimension_numbers = #tpu.dot_dimension_numbers<[1], [1], [0], [0], [0, 0, 1, 0], [], []>} : vector<56x8xbf16>, vector<56x8xbf16>, vector<56x56xf32> -> vector<56x56xf32>
    %cst_32 = arith.constant 0.353553385 : f32
    %94 = vector.broadcast %cst_32 : f32 to vector<56x56xf32>
    %95 = arith.mulf %93, %94 : vector<56x56xf32>
    %cst_33 = arith.constant -1.000000e+30 : f32
    %96 = vector.broadcast %cst_33 : f32 to vector<56x56xf32>
    %97 = arith.select %40, %95, %96 : vector<56x56xi1>, vector<56x56xf32>
    %cst_34 = arith.constant dense<0xFF800000> : vector<56xf32>
    %98 = vector.multi_reduction <maximumf>, %97, %cst_34 [1] : vector<56x56xf32> to vector<56xf32>
    %99 = vector.shape_cast %98 : vector<56xf32> to vector<56x1xf32>
    %100 = vector.broadcast %99 : vector<56x1xf32> to vector<56x56xf32>
    %101 = arith.subf %97, %100 : vector<56x56xf32>
    %102 = math.exp %101 : vector<56x56xf32>
    %cst_35 = arith.constant dense<0.000000e+00> : vector<56xf32>
    %103 = vector.multi_reduction <add>, %102, %cst_35 [1] : vector<56x56xf32> to vector<56xf32>
    %104 = vector.shape_cast %103 : vector<56xf32> to vector<56x1xf32>
    %105 = tpu.reciprocal %104 {approx = true} : vector<56x1xf32> -> vector<56x1xf32>
    %106 = vector.broadcast %105 : vector<56x1xf32> to vector<56x56xf32>
    %107 = arith.mulf %102, %106 : vector<56x56xf32>
    %108 = arith.truncf %107 : vector<56x56xf32> to vector<56x56xbf16>
    %109 = arith.truncf %90 : vector<56x8xf32> to vector<56x8xbf16>
    %cst_36 = arith.constant dense<0.000000e+00> : vector<56x8xf32>
    %110 = tpu.matmul %108, %109, %cst_36 {dimension_numbers = #tpu.dot_dimension_numbers<[1], [0], [0], [1], [0, 0, 1, 1], [], []>} : vector<56x56xbf16>, vector<56x8xbf16>, vector<56x8xf32> -> vector<56x8xf32>
    %111 = vector.extract_strided_slice %41 {offsets = [0, 24], sizes = [56, 8], strides = [1, 1]} : vector<56x96xf32> to vector<56x8xf32>
    %112 = vector.extract_strided_slice %41 {offsets = [0, 56], sizes = [56, 8], strides = [1, 1]} : vector<56x96xf32> to vector<56x8xf32>
    %113 = vector.extract_strided_slice %41 {offsets = [0, 88], sizes = [56, 8], strides = [1, 1]} : vector<56x96xf32> to vector<56x8xf32>
    %114 = arith.truncf %111 : vector<56x8xf32> to vector<56x8xbf16>
    %115 = arith.truncf %112 : vector<56x8xf32> to vector<56x8xbf16>
    %cst_37 = arith.constant dense<0.000000e+00> : vector<56x56xf32>
    %116 = tpu.matmul %114, %115, %cst_37 {dimension_numbers = #tpu.dot_dimension_numbers<[1], [1], [0], [0], [0, 0, 1, 0], [], []>} : vector<56x8xbf16>, vector<56x8xbf16>, vector<56x56xf32> -> vector<56x56xf32>
    %cst_38 = arith.constant 0.353553385 : f32
    %117 = vector.broadcast %cst_38 : f32 to vector<56x56xf32>
    %118 = arith.mulf %116, %117 : vector<56x56xf32>
    %cst_39 = arith.constant -1.000000e+30 : f32
    %119 = vector.broadcast %cst_39 : f32 to vector<56x56xf32>
    %120 = arith.select %40, %118, %119 : vector<56x56xi1>, vector<56x56xf32>
    %cst_40 = arith.constant dense<0xFF800000> : vector<56xf32>
    %121 = vector.multi_reduction <maximumf>, %120, %cst_40 [1] : vector<56x56xf32> to vector<56xf32>
    %122 = vector.shape_cast %121 : vector<56xf32> to vector<56x1xf32>
    %123 = vector.broadcast %122 : vector<56x1xf32> to vector<56x56xf32>
    %124 = arith.subf %120, %123 : vector<56x56xf32>
    %125 = math.exp %124 : vector<56x56xf32>
    %cst_41 = arith.constant dense<0.000000e+00> : vector<56xf32>
    %126 = vector.multi_reduction <add>, %125, %cst_41 [1] : vector<56x56xf32> to vector<56xf32>
    %127 = vector.shape_cast %126 : vector<56xf32> to vector<56x1xf32>
    %128 = tpu.reciprocal %127 {approx = true} : vector<56x1xf32> -> vector<56x1xf32>
    %129 = vector.broadcast %128 : vector<56x1xf32> to vector<56x56xf32>
    %130 = arith.mulf %125, %129 : vector<56x56xf32>
    %131 = arith.truncf %130 : vector<56x56xf32> to vector<56x56xbf16>
    %132 = arith.truncf %113 : vector<56x8xf32> to vector<56x8xbf16>
    %cst_42 = arith.constant dense<0.000000e+00> : vector<56x8xf32>
    %133 = tpu.matmul %131, %132, %cst_42 {dimension_numbers = #tpu.dot_dimension_numbers<[1], [0], [0], [1], [0, 0, 1, 1], [], []>} : vector<56x56xbf16>, vector<56x8xbf16>, vector<56x8xf32> -> vector<56x8xf32>
    %134 = tpu.concatenate %64, %87, %110, %133 in 1 : vector<56x8xf32>, vector<56x8xf32>, vector<56x8xf32>, vector<56x8xf32> -> vector<56x32xf32>
    %135 = vector.extract_strided_slice %37 {offsets = [56, 0], sizes = [56, 96], strides = [1, 1]} : vector<112x96xf32> to vector<56x96xf32>
    %136 = vector.extract_strided_slice %135 {offsets = [0, 0], sizes = [56, 8], strides = [1, 1]} : vector<56x96xf32> to vector<56x8xf32>
    %137 = vector.extract_strided_slice %135 {offsets = [0, 32], sizes = [56, 8], strides = [1, 1]} : vector<56x96xf32> to vector<56x8xf32>
    %138 = vector.extract_strided_slice %135 {offsets = [0, 64], sizes = [56, 8], strides = [1, 1]} : vector<56x96xf32> to vector<56x8xf32>
    %139 = arith.truncf %136 : vector<56x8xf32> to vector<56x8xbf16>
    %140 = arith.truncf %137 : vector<56x8xf32> to vector<56x8xbf16>
    %cst_43 = arith.constant dense<0.000000e+00> : vector<56x56xf32>
    %141 = tpu.matmul %139, %140, %cst_43 {dimension_numbers = #tpu.dot_dimension_numbers<[1], [1], [0], [0], [0, 0, 1, 0], [], []>} : vector<56x8xbf16>, vector<56x8xbf16>, vector<56x56xf32> -> vector<56x56xf32>
    %cst_44 = arith.constant 0.353553385 : f32
    %142 = vector.broadcast %cst_44 : f32 to vector<56x56xf32>
    %143 = arith.mulf %141, %142 : vector<56x56xf32>
    %cst_45 = arith.constant -1.000000e+30 : f32
    %144 = vector.broadcast %cst_45 : f32 to vector<56x56xf32>
    %145 = arith.select %40, %143, %144 : vector<56x56xi1>, vector<56x56xf32>
    %cst_46 = arith.constant dense<0xFF800000> : vector<56xf32>
    %146 = vector.multi_reduction <maximumf>, %145, %cst_46 [1] : vector<56x56xf32> to vector<56xf32>
    %147 = vector.shape_cast %146 : vector<56xf32> to vector<56x1xf32>
    %148 = vector.broadcast %147 : vector<56x1xf32> to vector<56x56xf32>
    %149 = arith.subf %145, %148 : vector<56x56xf32>
    %150 = math.exp %149 : vector<56x56xf32>
    %cst_47 = arith.constant dense<0.000000e+00> : vector<56xf32>
    %151 = vector.multi_reduction <add>, %150, %cst_47 [1] : vector<56x56xf32> to vector<56xf32>
    %152 = vector.shape_cast %151 : vector<56xf32> to vector<56x1xf32>
    %153 = tpu.reciprocal %152 {approx = true} : vector<56x1xf32> -> vector<56x1xf32>
    %154 = vector.broadcast %153 : vector<56x1xf32> to vector<56x56xf32>
    %155 = arith.mulf %150, %154 : vector<56x56xf32>
    %156 = arith.truncf %155 : vector<56x56xf32> to vector<56x56xbf16>
    %157 = arith.truncf %138 : vector<56x8xf32> to vector<56x8xbf16>
    %cst_48 = arith.constant dense<0.000000e+00> : vector<56x8xf32>
    %158 = tpu.matmul %156, %157, %cst_48 {dimension_numbers = #tpu.dot_dimension_numbers<[1], [0], [0], [1], [0, 0, 1, 1], [], []>} : vector<56x56xbf16>, vector<56x8xbf16>, vector<56x8xf32> -> vector<56x8xf32>
    %159 = vector.extract_strided_slice %135 {offsets = [0, 8], sizes = [56, 8], strides = [1, 1]} : vector<56x96xf32> to vector<56x8xf32>
    %160 = vector.extract_strided_slice %135 {offsets = [0, 40], sizes = [56, 8], strides = [1, 1]} : vector<56x96xf32> to vector<56x8xf32>
    %161 = vector.extract_strided_slice %135 {offsets = [0, 72], sizes = [56, 8], strides = [1, 1]} : vector<56x96xf32> to vector<56x8xf32>
    %162 = arith.truncf %159 : vector<56x8xf32> to vector<56x8xbf16>
    %163 = arith.truncf %160 : vector<56x8xf32> to vector<56x8xbf16>
    %cst_49 = arith.constant dense<0.000000e+00> : vector<56x56xf32>
    %164 = tpu.matmul %162, %163, %cst_49 {dimension_numbers = #tpu.dot_dimension_numbers<[1], [1], [0], [0], [0, 0, 1, 0], [], []>} : vector<56x8xbf16>, vector<56x8xbf16>, vector<56x56xf32> -> vector<56x56xf32>
    %cst_50 = arith.constant 0.353553385 : f32
    %165 = vector.broadcast %cst_50 : f32 to vector<56x56xf32>
    %166 = arith.mulf %164, %165 : vector<56x56xf32>
    %cst_51 = arith.constant -1.000000e+30 : f32
    %167 = vector.broadcast %cst_51 : f32 to vector<56x56xf32>
    %168 = arith.select %40, %166, %167 : vector<56x56xi1>, vector<56x56xf32>
    %cst_52 = arith.constant dense<0xFF800000> : vector<56xf32>
    %169 = vector.multi_reduction <maximumf>, %168, %cst_52 [1] : vector<56x56xf32> to vector<56xf32>
    %170 = vector.shape_cast %169 : vector<56xf32> to vector<56x1xf32>
    %171 = vector.broadcast %170 : vector<56x1xf32> to vector<56x56xf32>
    %172 = arith.subf %168, %171 : vector<56x56xf32>
    %173 = math.exp %172 : vector<56x56xf32>
    %cst_53 = arith.constant dense<0.000000e+00> : vector<56xf32>
    %174 = vector.multi_reduction <add>, %173, %cst_53 [1] : vector<56x56xf32> to vector<56xf32>
    %175 = vector.shape_cast %174 : vector<56xf32> to vector<56x1xf32>
    %176 = tpu.reciprocal %175 {approx = true} : vector<56x1xf32> -> vector<56x1xf32>
    %177 = vector.broadcast %176 : vector<56x1xf32> to vector<56x56xf32>
    %178 = arith.mulf %173, %177 : vector<56x56xf32>
    %179 = arith.truncf %178 : vector<56x56xf32> to vector<56x56xbf16>
    %180 = arith.truncf %161 : vector<56x8xf32> to vector<56x8xbf16>
    %cst_54 = arith.constant dense<0.000000e+00> : vector<56x8xf32>
    %181 = tpu.matmul %179, %180, %cst_54 {dimension_numbers = #tpu.dot_dimension_numbers<[1], [0], [0], [1], [0, 0, 1, 1], [], []>} : vector<56x56xbf16>, vector<56x8xbf16>, vector<56x8xf32> -> vector<56x8xf32>
    %182 = vector.extract_strided_slice %135 {offsets = [0, 16], sizes = [56, 8], strides = [1, 1]} : vector<56x96xf32> to vector<56x8xf32>
    %183 = vector.extract_strided_slice %135 {offsets = [0, 48], sizes = [56, 8], strides = [1, 1]} : vector<56x96xf32> to vector<56x8xf32>
    %184 = vector.extract_strided_slice %135 {offsets = [0, 80], sizes = [56, 8], strides = [1, 1]} : vector<56x96xf32> to vector<56x8xf32>
    %185 = arith.truncf %182 : vector<56x8xf32> to vector<56x8xbf16>
    %186 = arith.truncf %183 : vector<56x8xf32> to vector<56x8xbf16>
    %cst_55 = arith.constant dense<0.000000e+00> : vector<56x56xf32>
    %187 = tpu.matmul %185, %186, %cst_55 {dimension_numbers = #tpu.dot_dimension_numbers<[1], [1], [0], [0], [0, 0, 1, 0], [], []>} : vector<56x8xbf16>, vector<56x8xbf16>, vector<56x56xf32> -> vector<56x56xf32>
    %cst_56 = arith.constant 0.353553385 : f32
    %188 = vector.broadcast %cst_56 : f32 to vector<56x56xf32>
    %189 = arith.mulf %187, %188 : vector<56x56xf32>
    %cst_57 = arith.constant -1.000000e+30 : f32
    %190 = vector.broadcast %cst_57 : f32 to vector<56x56xf32>
    %191 = arith.select %40, %189, %190 : vector<56x56xi1>, vector<56x56xf32>
    %cst_58 = arith.constant dense<0xFF800000> : vector<56xf32>
    %192 = vector.multi_reduction <maximumf>, %191, %cst_58 [1] : vector<56x56xf32> to vector<56xf32>
    %193 = vector.shape_cast %192 : vector<56xf32> to vector<56x1xf32>
    %194 = vector.broadcast %193 : vector<56x1xf32> to vector<56x56xf32>
    %195 = arith.subf %191, %194 : vector<56x56xf32>
    %196 = math.exp %195 : vector<56x56xf32>
    %cst_59 = arith.constant dense<0.000000e+00> : vector<56xf32>
    %197 = vector.multi_reduction <add>, %196, %cst_59 [1] : vector<56x56xf32> to vector<56xf32>
    %198 = vector.shape_cast %197 : vector<56xf32> to vector<56x1xf32>
    %199 = tpu.reciprocal %198 {approx = true} : vector<56x1xf32> -> vector<56x1xf32>
    %200 = vector.broadcast %199 : vector<56x1xf32> to vector<56x56xf32>
    %201 = arith.mulf %196, %200 : vector<56x56xf32>
    %202 = arith.truncf %201 : vector<56x56xf32> to vector<56x56xbf16>
    %203 = arith.truncf %184 : vector<56x8xf32> to vector<56x8xbf16>
    %cst_60 = arith.constant dense<0.000000e+00> : vector<56x8xf32>
    %204 = tpu.matmul %202, %203, %cst_60 {dimension_numbers = #tpu.dot_dimension_numbers<[1], [0], [0], [1], [0, 0, 1, 1], [], []>} : vector<56x56xbf16>, vector<56x8xbf16>, vector<56x8xf32> -> vector<56x8xf32>
    %205 = vector.extract_strided_slice %135 {offsets = [0, 24], sizes = [56, 8], strides = [1, 1]} : vector<56x96xf32> to vector<56x8xf32>
    %206 = vector.extract_strided_slice %135 {offsets = [0, 56], sizes = [56, 8], strides = [1, 1]} : vector<56x96xf32> to vector<56x8xf32>
    %207 = vector.extract_strided_slice %135 {offsets = [0, 88], sizes = [56, 8], strides = [1, 1]} : vector<56x96xf32> to vector<56x8xf32>
    %208 = arith.truncf %205 : vector<56x8xf32> to vector<56x8xbf16>
    %209 = arith.truncf %206 : vector<56x8xf32> to vector<56x8xbf16>
    %cst_61 = arith.constant dense<0.000000e+00> : vector<56x56xf32>
    %210 = tpu.matmul %208, %209, %cst_61 {dimension_numbers = #tpu.dot_dimension_numbers<[1], [1], [0], [0], [0, 0, 1, 0], [], []>} : vector<56x8xbf16>, vector<56x8xbf16>, vector<56x56xf32> -> vector<56x56xf32>
    %cst_62 = arith.constant 0.353553385 : f32
    %211 = vector.broadcast %cst_62 : f32 to vector<56x56xf32>
    %212 = arith.mulf %210, %211 : vector<56x56xf32>
    %cst_63 = arith.constant -1.000000e+30 : f32
    %213 = vector.broadcast %cst_63 : f32 to vector<56x56xf32>
    %214 = arith.select %40, %212, %213 : vector<56x56xi1>, vector<56x56xf32>
    %cst_64 = arith.constant dense<0xFF800000> : vector<56xf32>
    %215 = vector.multi_reduction <maximumf>, %214, %cst_64 [1] : vector<56x56xf32> to vector<56xf32>
    %216 = vector.shape_cast %215 : vector<56xf32> to vector<56x1xf32>
    %217 = vector.broadcast %216 : vector<56x1xf32> to vector<56x56xf32>
    %218 = arith.subf %214, %217 : vector<56x56xf32>
    %219 = math.exp %218 : vector<56x56xf32>
    %cst_65 = arith.constant dense<0.000000e+00> : vector<56xf32>
    %220 = vector.multi_reduction <add>, %219, %cst_65 [1] : vector<56x56xf32> to vector<56xf32>
    %221 = vector.shape_cast %220 : vector<56xf32> to vector<56x1xf32>
    %222 = tpu.reciprocal %221 {approx = true} : vector<56x1xf32> -> vector<56x1xf32>
    %223 = vector.broadcast %222 : vector<56x1xf32> to vector<56x56xf32>
    %224 = arith.mulf %219, %223 : vector<56x56xf32>
    %225 = arith.truncf %224 : vector<56x56xf32> to vector<56x56xbf16>
    %226 = arith.truncf %207 : vector<56x8xf32> to vector<56x8xbf16>
    %cst_66 = arith.constant dense<0.000000e+00> : vector<56x8xf32>
    %227 = tpu.matmul %225, %226, %cst_66 {dimension_numbers = #tpu.dot_dimension_numbers<[1], [0], [0], [1], [0, 0, 1, 1], [], []>} : vector<56x56xbf16>, vector<56x8xbf16>, vector<56x8xf32> -> vector<56x8xf32>
    %228 = tpu.concatenate %158, %181, %204, %227 in 1 : vector<56x8xf32>, vector<56x8xf32>, vector<56x8xf32>, vector<56x8xf32> -> vector<56x32xf32>
    %229 = tpu.concatenate %134, %228 in 0 : vector<56x32xf32>, vector<56x32xf32> -> vector<112x32xf32>
    %c0_67 = arith.constant 0 : index
    %c0_68 = arith.constant 0 : index
    %c0_69 = arith.constant 0 : index
    %230 = vector.load %arg6[%c0_67, %c0_68, %c0_69] : memref<1x32x32xbf16, #tpu.memory_space<vmem>>, vector<1x32x32xbf16>
    %231 = vector.shape_cast %230 : vector<1x32x32xbf16> to vector<32x32xbf16>
    %c0_70 = arith.constant 0 : index
    %c0_71 = arith.constant 0 : index
    %c0_72 = arith.constant 0 : index
    %232 = vector.load %arg7[%c0_70, %c0_71, %c0_72] : memref<1x1x32xf32, #tpu.memory_space<vmem>>, vector<1x1x32xf32>
    %233 = vector.shape_cast %232 : vector<1x1x32xf32> to vector<1x32xf32>
    %234 = arith.truncf %229 : vector<112x32xf32> to vector<112x32xbf16>
    %cst_73 = arith.constant dense<0.000000e+00> : vector<112x32xf32>
    %235 = tpu.matmul %234, %231, %cst_73 {dimension_numbers = #tpu.dot_dimension_numbers<[1], [0], [0], [1], [0, 0, 1, 1], [], []>} : vector<112x32xbf16>, vector<32x32xbf16>, vector<112x32xf32> -> vector<112x32xf32>
    %236 = vector.broadcast %233 : vector<1x32xf32> to vector<112x32xf32>
    %237 = arith.addf %235, %236 : vector<112x32xf32>
    %238 = arith.addf %3, %237 : vector<112x32xf32>
    %c0_74 = arith.constant 0 : index
    %c0_75 = arith.constant 0 : index
    %c0_76 = arith.constant 0 : index
    %239 = vector.load %arg8[%c0_74, %c0_75, %c0_76] : memref<1x1x32xf32, #tpu.memory_space<vmem>>, vector<1x1x32xf32>
    %240 = vector.shape_cast %239 : vector<1x1x32xf32> to vector<1x32xf32>
    %c0_77 = arith.constant 0 : index
    %c0_78 = arith.constant 0 : index
    %c0_79 = arith.constant 0 : index
    %241 = vector.load %arg9[%c0_77, %c0_78, %c0_79] : memref<1x1x32xf32, #tpu.memory_space<vmem>>, vector<1x1x32xf32>
    %242 = vector.shape_cast %241 : vector<1x1x32xf32> to vector<1x32xf32>
    %cst_80 = arith.constant dense<0.000000e+00> : vector<112xf32>
    %243 = vector.multi_reduction <add>, %238, %cst_80 [1] : vector<112x32xf32> to vector<112xf32>
    %244 = vector.shape_cast %243 : vector<112xf32> to vector<112x1xf32>
    %cst_81 = arith.constant 3.200000e+01 : f32
    %245 = vector.broadcast %cst_81 : f32 to vector<112x1xf32>
    %246 = arith.divf %244, %245 : vector<112x1xf32>
    %247 = vector.broadcast %246 : vector<112x1xf32> to vector<112x32xf32>
    %248 = arith.subf %238, %247 : vector<112x32xf32>
    %249 = arith.mulf %248, %248 : vector<112x32xf32>
    %cst_82 = arith.constant dense<0.000000e+00> : vector<112xf32>
    %250 = vector.multi_reduction <add>, %249, %cst_82 [1] : vector<112x32xf32> to vector<112xf32>
    %251 = vector.shape_cast %250 : vector<112xf32> to vector<112x1xf32>
    %cst_83 = arith.constant 3.200000e+01 : f32
    %252 = vector.broadcast %cst_83 : f32 to vector<112x1xf32>
    %253 = arith.divf %251, %252 : vector<112x1xf32>
    %254 = vector.broadcast %246 : vector<112x1xf32> to vector<112x32xf32>
    %255 = arith.subf %238, %254 : vector<112x32xf32>
    %cst_84 = arith.constant 9.99999974E-6 : f32
    %256 = vector.broadcast %cst_84 : f32 to vector<112x1xf32>
    %257 = arith.addf %253, %256 : vector<112x1xf32>
    %258 = math.rsqrt %257 : vector<112x1xf32>
    %259 = vector.broadcast %258 : vector<112x1xf32> to vector<112x32xf32>
    %260 = arith.mulf %255, %259 : vector<112x32xf32>
    %261 = vector.broadcast %240 : vector<1x32xf32> to vector<112x32xf32>
    %262 = arith.mulf %260, %261 : vector<112x32xf32>
    %263 = vector.broadcast %242 : vector<1x32xf32> to vector<112x32xf32>
    %264 = arith.addf %262, %263 : vector<112x32xf32>
    %c0_85 = arith.constant 0 : index
    %c0_86 = arith.constant 0 : index
    %c0_87 = arith.constant 0 : index
    %265 = vector.load %arg10[%c0_85, %c0_86, %c0_87] : memref<1x32x64xbf16, #tpu.memory_space<vmem>>, vector<1x32x64xbf16>
    %266 = vector.shape_cast %265 : vector<1x32x64xbf16> to vector<32x64xbf16>
    %c0_88 = arith.constant 0 : index
    %c0_89 = arith.constant 0 : index
    %c0_90 = arith.constant 0 : index
    %267 = vector.load %arg11[%c0_88, %c0_89, %c0_90] : memref<1x1x64xf32, #tpu.memory_space<vmem>>, vector<1x1x64xf32>
    %268 = vector.shape_cast %267 : vector<1x1x64xf32> to vector<1x64xf32>
    %269 = arith.truncf %264 : vector<112x32xf32> to vector<112x32xbf16>
    %cst_91 = arith.constant dense<0.000000e+00> : vector<112x64xf32>
    %270 = tpu.matmul %269, %266, %cst_91 {dimension_numbers = #tpu.dot_dimension_numbers<[1], [0], [0], [1], [0, 0, 1, 1], [], []>} : vector<112x32xbf16>, vector<32x64xbf16>, vector<112x64xf32> -> vector<112x64xf32>
    %271 = vector.broadcast %268 : vector<1x64xf32> to vector<112x64xf32>
    %272 = arith.addf %270, %271 : vector<112x64xf32>
    %273 = arith.mulf %272, %272 : vector<112x64xf32>
    %274 = arith.mulf %272, %273 : vector<112x64xf32>
    %cst_92 = arith.constant 4.471500e-02 : f32
    %275 = vector.broadcast %cst_92 : f32 to vector<112x64xf32>
    %276 = arith.mulf %275, %274 : vector<112x64xf32>
    %277 = arith.addf %272, %276 : vector<112x64xf32>
    %cst_93 = arith.constant 0.797884583 : f32
    %278 = vector.broadcast %cst_93 : f32 to vector<112x64xf32>
    %279 = arith.mulf %278, %277 : vector<112x64xf32>
    %280 = math.tanh %279 : vector<112x64xf32>
    %cst_94 = arith.constant 1.000000e+00 : f32
    %281 = vector.broadcast %cst_94 : f32 to vector<112x64xf32>
    %282 = arith.addf %281, %280 : vector<112x64xf32>
    %cst_95 = arith.constant 5.000000e-01 : f32
    %283 = vector.broadcast %cst_95 : f32 to vector<112x64xf32>
    %284 = arith.mulf %283, %282 : vector<112x64xf32>
    %285 = arith.mulf %272, %284 : vector<112x64xf32>
    %c0_96 = arith.constant 0 : index
    %c0_97 = arith.constant 0 : index
    %c0_98 = arith.constant 0 : index
    %286 = vector.load %arg12[%c0_96, %c0_97, %c0_98] : memref<1x64x32xbf16, #tpu.memory_space<vmem>>, vector<1x64x32xbf16>
    %287 = vector.shape_cast %286 : vector<1x64x32xbf16> to vector<64x32xbf16>
    %c0_99 = arith.constant 0 : index
    %c0_100 = arith.constant 0 : index
    %c0_101 = arith.constant 0 : index
    %288 = vector.load %arg13[%c0_99, %c0_100, %c0_101] : memref<1x1x32xf32, #tpu.memory_space<vmem>>, vector<1x1x32xf32>
    %289 = vector.shape_cast %288 : vector<1x1x32xf32> to vector<1x32xf32>
    %290 = arith.truncf %285 : vector<112x64xf32> to vector<112x64xbf16>
    %cst_102 = arith.constant dense<0.000000e+00> : vector<112x32xf32>
    %291 = tpu.matmul %290, %287, %cst_102 {dimension_numbers = #tpu.dot_dimension_numbers<[1], [0], [0], [1], [0, 0, 1, 1], [], []>} : vector<112x64xbf16>, vector<64x32xbf16>, vector<112x32xf32> -> vector<112x32xf32>
    %292 = vector.broadcast %289 : vector<1x32xf32> to vector<112x32xf32>
    %293 = arith.addf %291, %292 : vector<112x32xf32>
    %294 = arith.addf %238, %293 : vector<112x32xf32>
    %c1_i32 = arith.constant 1 : i32
    %295 = arith.cmpi slt, %arg0, %c1_i32 : i32
    %296 = arith.extui %295 : i1 to i32
    %c0_i32_103 = arith.constant 0 : i32
    %297 = arith.cmpi ne, %296, %c0_i32_103 : i32
    scf.if %297 {
      %c0_106 = arith.constant 0 : index
      %c0_107 = arith.constant 0 : index
      %301 = vector.load %arg17[%c0_106, %c0_107] : memref<112x32xf32, #tpu.memory_space<vmem>>, vector<112x32xf32>
      tpu.vector_store %arg17[%c0_106, %c0_107], %294 {strides = array<i32>} : memref<112x32xf32, #tpu.memory_space<vmem>>, vector<112x32xf32>,
    } else {
    }
    %c1_i32_104 = arith.constant 1 : i32
    %298 = arith.cmpi eq, %arg0, %c1_i32_104 : i32
    %299 = arith.extui %298 : i1 to i32
    %c0_i32_105 = arith.constant 0 : i32
    %300 = arith.cmpi ne, %299, %c0_i32_105 : i32
    scf.if %300 {
      %301 = vector.extract_strided_slice %294 {offsets = [0, 0], sizes = [1, 32], strides = [1, 1]} : vector<112x32xf32> to vector<1x32xf32>
      %302 = vector.extract_strided_slice %294 {offsets = [56, 0], sizes = [1, 32], strides = [1, 1]} : vector<112x32xf32> to vector<1x32xf32>
      %303 = tpu.concatenate %301, %302 in 0 : vector<1x32xf32>, vector<1x32xf32> -> vector<2x32xf32>
      %c0_106 = arith.constant 0 : index
      %c0_107 = arith.constant 0 : index
      %304 = vector.load %arg14[%c0_106, %c0_107] : memref<32x128xbf16, #tpu.memory_space<vmem>>, vector<32x128xbf16>
      %c0_108 = arith.constant 0 : index
      %c0_109 = arith.constant 0 : index
      %305 = vector.load %arg15[%c0_108, %c0_109] : memref<1x128xf32, #tpu.memory_space<vmem>>, vector<1x128xf32>
      %306 = arith.truncf %303 : vector<2x32xf32> to vector<2x32xbf16>
      %cst_110 = arith.constant dense<0.000000e+00> : vector<2x128xf32>
      %307 = tpu.matmul %306, %304, %cst_110 {dimension_numbers = #tpu.dot_dimension_numbers<[1], [0], [0], [1], [0, 0, 1, 1], [], []>} : vector<2x32xbf16>, vector<32x128xbf16>, vector<2x128xf32> -> vector<2x128xf32>
      %308 = vector.broadcast %305 : vector<1x128xf32> to vector<2x128xf32>
      %309 = arith.addf %307, %308 : vector<2x128xf32>
      %c0_111 = arith.constant 0 : index
      %c0_112 = arith.constant 0 : index
      %310 = vector.load %arg16[%c0_111, %c0_112] : memref<2x128xf32, #tpu.memory_space<vmem>>, vector<2x128xf32>
      tpu.vector_store %arg16[%c0_111, %c0_112], %309 {strides = array<i32>} : memref<2x128xf32, #tpu.memory_space<vmem>>, vector<2x128xf32>,
    } else {
    }
    return
  }
  func.func @transform_0(%arg0: i32) -> (i32, i32) {
    %c0_i32 = arith.constant 0 : i32
    %c0_i32_0 = arith.constant 0 : i32
    %c0_i32_1 = arith.constant 0 : i32
    return %c0_i32, %c0_i32_0 : i32, i32
  }
  func.func @transform_1(%arg0: i32) -> (i32, i32, i32) {
    %c0_i32 = arith.constant 0 : i32
    %c0_i32_0 = arith.constant 0 : i32
    %c0_i32_1 = arith.constant 0 : i32
    return %arg0, %c0_i32, %c0_i32_0 : i32, i32, i32
  }
  func.func @transform_2(%arg0: i32) -> (i32, i32, i32) {
    %c0_i32 = arith.constant 0 : i32
    %c0_i32_0 = arith.constant 0 : i32
    %c0_i32_1 = arith.constant 0 : i32
    return %arg0, %c0_i32, %c0_i32_0 : i32, i32, i32
  }
  func.func @transform_3(%arg0: i32) -> (i32, i32, i32) {
    %c0_i32 = arith.constant 0 : i32
    %c0_i32_0 = arith.constant 0 : i32
    %c0_i32_1 = arith.constant 0 : i32
    return %arg0, %c0_i32, %c0_i32_0 : i32, i32, i32
  }
  func.func @transform_4(%arg0: i32) -> (i32, i32, i32) {
    %c0_i32 = arith.constant 0 : i32
    %c0_i32_0 = arith.constant 0 : i32
    %c0_i32_1 = arith.constant 0 : i32
    return %arg0, %c0_i32, %c0_i32_0 : i32, i32, i32
  }
  func.func @transform_5(%arg0: i32) -> (i32, i32, i32) {
    %c0_i32 = arith.constant 0 : i32
    %c0_i32_0 = arith.constant 0 : i32
    %c0_i32_1 = arith.constant 0 : i32
    return %arg0, %c0_i32, %c0_i32_0 : i32, i32, i32
  }
  func.func @transform_6(%arg0: i32) -> (i32, i32, i32) {
    %c0_i32 = arith.constant 0 : i32
    %c0_i32_0 = arith.constant 0 : i32
    %c0_i32_1 = arith.constant 0 : i32
    return %arg0, %c0_i32, %c0_i32_0 : i32, i32, i32
  }
  func.func @transform_7(%arg0: i32) -> (i32, i32, i32) {
    %c0_i32 = arith.constant 0 : i32
    %c0_i32_0 = arith.constant 0 : i32
    %c0_i32_1 = arith.constant 0 : i32
    return %arg0, %c0_i32, %c0_i32_0 : i32, i32, i32
  }
  func.func @transform_8(%arg0: i32) -> (i32, i32, i32) {
    %c0_i32 = arith.constant 0 : i32
    %c0_i32_0 = arith.constant 0 : i32
    %c0_i32_1 = arith.constant 0 : i32
    return %arg0, %c0_i32, %c0_i32_0 : i32, i32, i32
  }
  func.func @transform_9(%arg0: i32) -> (i32, i32, i32) {
    %c0_i32 = arith.constant 0 : i32
    %c0_i32_0 = arith.constant 0 : i32
    %c0_i32_1 = arith.constant 0 : i32
    return %arg0, %c0_i32, %c0_i32_0 : i32, i32, i32
  }
  func.func @transform_10(%arg0: i32) -> (i32, i32, i32) {
    %c0_i32 = arith.constant 0 : i32
    %c0_i32_0 = arith.constant 0 : i32
    %c0_i32_1 = arith.constant 0 : i32
    return %arg0, %c0_i32, %c0_i32_0 : i32, i32, i32
  }
  func.func @transform_11(%arg0: i32) -> (i32, i32, i32) {
    %c0_i32 = arith.constant 0 : i32
    %c0_i32_0 = arith.constant 0 : i32
    %c0_i32_1 = arith.constant 0 : i32
    return %arg0, %c0_i32, %c0_i32_0 : i32, i32, i32
  }
  func.func @transform_12(%arg0: i32) -> (i32, i32, i32) {
    %c0_i32 = arith.constant 0 : i32
    %c0_i32_0 = arith.constant 0 : i32
    %c0_i32_1 = arith.constant 0 : i32
    return %arg0, %c0_i32, %c0_i32_0 : i32, i32, i32
  }
  func.func @transform_13(%arg0: i32) -> (i32, i32) {
    %c0_i32 = arith.constant 0 : i32
    %c0_i32_0 = arith.constant 0 : i32
    %c0_i32_1 = arith.constant 0 : i32
    return %c0_i32, %c0_i32_0 : i32, i32
  }
  func.func @transform_14(%arg0: i32) -> (i32, i32) {
    %c0_i32 = arith.constant 0 : i32
    %c0_i32_0 = arith.constant 0 : i32
    %c0_i32_1 = arith.constant 0 : i32
    return %c0_i32, %c0_i32_0 : i32, i32
  }
  func.func @transform_15(%arg0: i32) -> (i32, i32) {
    %c0_i32 = arith.constant 0 : i32
    %c0_i32_0 = arith.constant 0 : i32
    %c0_i32_1 = arith.constant 0 : i32
    return %c0_i32, %c0_i32_0 : i32, i32
  }
}

</mosaic_0001>

<bundles_post_ra>
// kernel: vit_forward.2
= control target key start
LH: loop header
LB: loop body
LE: loop exit
PB: predicated region body
PF: predicated region fallthrough
CT: control target
= control target key end

     0   :  { %vm2305_vm0 = vcmask 1040384   ;;  %vm2365_vm1 = vcmask 261120   ;;  %vm2361_vm2 = vcmask 1041408   ;;  %s5777_s1 = inlined_call_operand.vmem [shape: f32[3072,32], index: 1, kind: input, shape index: {}]   ;;  %s5778_s0 = inlined_call_operand.vmem [shape: f32[98,3072], index: 0, kind: input, shape index: {}]   ;;  %s5779_s2 = inlined_call_operand.vmem [shape: f32[1,32], index: 2, kind: input, shape index: {}]   ;;  %s5780_s4 = inlined_call_operand.vmem [shape: f32[49,32], index: 4, kind: input, shape index: {}]   ;;  %s5781_s3 = inlined_call_operand.vmem [shape: f32[1,32], index: 3, kind: input, shape index: {}]   ;;  %s5782_s5 = inlined_call_operand.vmem [shape: f32[112,32], index: 5, kind: output, shape index: {}]  }
   0x1   :  { %v363_v0 = vld [vmem:[%s5777_s1 + $0xf8] sm:$0xff]  ;;  %v362_v3 = vld [vmem:[%s5777_s1 + $0xf0] sm:$0xff]  ;;  %v361_v7 = vld [vmem:[%s5777_s1 + $0xe8] sm:$0xff] }
   0x2   :  { %v347_v1 = vld [vmem:[%s5777_s1 + $0x78] sm:$0xff]  ;;  %2385 = vmatprep.subr.mxu0 %v363_v0  ;;  %v346_v5 = vld [vmem:[%s5777_s1 + $0x70] sm:$0xff]  ;;  %v345_v9 = vld [vmem:[%s5777_s1 + $0x68] sm:$0xff] }
   0x3   :  { %v395_v2 = vld [vmem:[%s5777_s1 + $0x1f8] sm:$0xff]  ;;  %2386 = vmatpush3.msra.mxu0 %v347_v1  ;;  %v394_v6 = vld [vmem:[%s5777_s1 + $0x1f0] sm:$0xff]  ;;  %v393_v10 = vld [vmem:[%s5777_s1 + $0x1e8] sm:$0xff] }
   0x4   :  { %2456 = vmatprep.subr.mxu1 %v395_v2  ;;  %v379_v4 = vld [vmem:[%s5777_s1 + $0x178] sm:$0xff]  ;;  %v378_v8 = vld [vmem:[%s5777_s1 + $0x170] sm:$0xff]  ;;  %2387 = vmatprep.subr.mxu0 %v362_v3  ;;  %v360_v11 = vld [vmem:[%s5777_s1 + $0xe0] sm:$0xff] }
   0x5   :  { %2457 = vmatpush3.msra.mxu1 %v379_v4  ;;  %2388 = vmatpush3.msra.mxu0 %v346_v5  ;;  %v377_v12 = vld [vmem:[%s5777_s1 + $0x168] sm:$0xff]  ;;  %v392_v13 = vld [vmem:[%s5777_s1 + $0x1e0] sm:$0xff]  ;;  %v359_v16 = vld [vmem:[%s5777_s1 + $0xd8] sm:$0xff] }
   0x6   :  { %2458 = vmatprep.subr.mxu1 %v394_v6  ;;  %2389 = vmatprep.subr.mxu0 %v361_v7  ;;  %v344_v14 = vld [vmem:[%s5777_s1 + $0x60] sm:$0xff]  ;;  %v391_v17 = vld [vmem:[%s5777_s1 + $0x1d8] sm:$0xff]  ;;  %v358_v20 = vld [vmem:[%s5777_s1 + $0xd0] sm:$0xff] }
   0x7   :  { %2459 = vmatpush3.msra.mxu1 %v378_v8  ;;  %v376_v15 = vld [vmem:[%s5777_s1 + $0x160] sm:$0xff]  ;;  %2390 = vmatpush3.msra.mxu0 %v345_v9  ;;  %v343_v18 = vld [vmem:[%s5777_s1 + $0x58] sm:$0xff]  ;;  %v390_v21 = vld [vmem:[%s5777_s1 + $0x1d0] sm:$0xff] }
   0x8   :  { %2460 = vmatprep.subr.mxu1 %v393_v10  ;;  %2391 = vmatprep.subr.mxu0 %v360_v11  ;;  %v375_v19 = vld [vmem:[%s5777_s1 + $0x158] sm:$0xff]  ;;  %v342_v22 = vld [vmem:[%s5777_s1 + $0x50] sm:$0xff]  ;;  %v357_v24 = vld [vmem:[%s5777_s1 + $0xc8] sm:$0xff] }
   0x9   :  { %2461 = vmatpush3.msra.mxu1 %v377_v12  ;;  %2392 = vmatpush3.msra.mxu0 %v344_v14  ;;  %v374_v23 = vld [vmem:[%s5777_s1 + $0x150] sm:$0xff]  ;;  %v389_v25 = vld [vmem:[%s5777_s1 + $0x1c8] sm:$0xff]  ;;  %v356_v28 = vld [vmem:[%s5777_s1 + $0xc0] sm:$0xff] }
   0xa   :  { %2462 = vmatprep.subr.mxu1 %v392_v13  ;;  %2393 = vmatprep.subr.mxu0 %v359_v16  ;;  %v341_v26 = vld [vmem:[%s5777_s1 + $0x48] sm:$0xff]  ;;  %v388_v29 = vld [vmem:[%s5777_s1 + $0x1c0] sm:$0xff]  ;;  %v355_v32 = vld [vmem:[%s5777_s1 + $0xb8] sm:$0xff] }
   0xb   :  { %2463 = vmatpush3.msra.mxu1 %v376_v15  ;;  %2394 = vmatpush3.msra.mxu0 %v343_v18  ;;  %v373_v27 = vld [vmem:[%s5777_s1 + $0x148] sm:$0xff]  ;;  %v340_v30 = vld [vmem:[%s5777_s1 + $0x40] sm:$0xff]  ;;  %v387_v33 = vld [vmem:[%s5777_s1 + $0x1b8] sm:$0xff] }
   0xc   :  { %2464 = vmatprep.subr.mxu1 %v391_v17  ;;  %2395 = vmatprep.subr.mxu0 %v358_v20  ;;  %v372_v31 = vld [vmem:[%s5777_s1 + $0x140] sm:$0xff]  ;;  %v339_v34 = vld [vmem:[%s5777_s1 + $0x38] sm:$0xff]  ;;  %v354_v36 = vld [vmem:[%s5777_s1 + $0xb0] sm:$0xff] }
   0xd   :  { %2465 = vmatpush3.msra.mxu1 %v375_v19  ;;  %2396 = vmatpush3.msra.mxu0 %v342_v22  ;;  %v371_v35 = vld [vmem:[%s5777_s1 + $0x138] sm:$0xff]  ;;  %v386_v37 = vld [vmem:[%s5777_s1 + $0x1b0] sm:$0xff]  ;;  %v353_v40 = vld [vmem:[%s5777_s1 + $0xa8] sm:$0xff] }
   0xe   :  { %2466 = vmatprep.subr.mxu1 %v390_v21  ;;  %2397 = vmatprep.subr.mxu0 %v357_v24  ;;  %v338_v38 = vld [vmem:[%s5777_s1 + $0x30] sm:$0xff]  ;;  %v385_v41 = vld [vmem:[%s5777_s1 + $0x1a8] sm:$0xff]  ;;  %v352_v44 = vld [vmem:[%s5777_s1 + $0xa0] sm:$0xff] }
   0xf   :  { %2467 = vmatpush3.msra.mxu1 %v374_v23  ;;  %2398 = vmatpush3.msra.mxu0 %v341_v26  ;;  %v370_v39 = vld [vmem:[%s5777_s1 + $0x130] sm:$0xff]  ;;  %v337_v42 = vld [vmem:[%s5777_s1 + $0x28] sm:$0xff]  ;;  %v384_v45 = vld [vmem:[%s5777_s1 + $0x1a0] sm:$0xff] }
  0x10   :  { %2468 = vmatprep.subr.mxu1 %v389_v25  ;;  %2399 = vmatprep.subr.mxu0 %v356_v28  ;;  %v369_v43 = vld [vmem:[%s5777_s1 + $0x128] sm:$0xff]  ;;  %v336_v46 = vld [vmem:[%s5777_s1 + $0x20] sm:$0xff]  ;;  %v351_v48 = vld [vmem:[%s5777_s1 + $0x98] sm:$0xff] }
  0x11   :  { %2469 = vmatpush3.msra.mxu1 %v373_v27  ;;  %2400 = vmatpush3.msra.mxu0 %v340_v30  ;;  %v368_v47 = vld [vmem:[%s5777_s1 + $0x120] sm:$0xff]  ;;  %v383_v49 = vld [vmem:[%s5777_s1 + $0x198] sm:$0xff]  ;;  %v350_v52 = vld [vmem:[%s5777_s1 + $0x90] sm:$0xff] }
  0x12   :  { %2470 = vmatprep.subr.mxu1 %v388_v29  ;;  %2401 = vmatprep.subr.mxu0 %v355_v32  ;;  %v335_v50 = vld [vmem:[%s5777_s1 + $0x18] sm:$0xff]  ;;  %v382_v53 = vld [vmem:[%s5777_s1 + $0x190] sm:$0xff]  ;;  %v349_v56 = vld [vmem:[%s5777_s1 + $0x88] sm:$0xff] }
  0x13   :  { %2471 = vmatpush3.msra.mxu1 %v372_v31  ;;  %2402 = vmatpush3.msra.mxu0 %v339_v34  ;;  %v367_v51 = vld [vmem:[%s5777_s1 + $0x118] sm:$0xff]  ;;  %v334_v54 = vld [vmem:[%s5777_s1 + $0x10] sm:$0xff]  ;;  %v381_v57 = vld [vmem:[%s5777_s1 + $0x188] sm:$0xff] }
  0x14   :  { %2472 = vmatprep.subr.mxu1 %v387_v33  ;;  %2403 = vmatprep.subr.mxu0 %v354_v36  ;;  %v366_v55 = vld [vmem:[%s5777_s1 + $0x110] sm:$0xff]  ;;  %v333_v58 = vld [vmem:[%s5777_s1 + $0x8] sm:$0xff]  ;;  %v348_v60 = vld [vmem:[%s5777_s1 + $0x80] sm:$0xff] }
  0x15   :  { %2473 = vmatpush3.msra.mxu1 %v371_v35  ;;  %2404 = vmatpush3.msra.mxu0 %v338_v38  ;;  %v365_v59 = vld [vmem:[%s5777_s1 + $0x108] sm:$0xff]  ;;  %v332_v62 = vld [vmem:[%s5777_s1] sm:$0xff]  ;;  %v23_v2 = vld [vmem:[%s5778_s0 + $0x18] sm:$0xff] }
  0x16   :  { %2474 = vmatprep.subr.mxu1 %v386_v37  ;;  %2405 = vmatprep.subr.mxu0 %v353_v40  ;;  %v21_v61 = vld [vmem:[%s5778_s0 + $0x8] sm:$0xff]  ;;  %v380_v63 = vld [vmem:[%s5777_s1 + $0x180] sm:$0xff]  ;;  %v427_v3 = vld [vmem:[%s5777_s1 + $0x2f8] sm:$0xff] }
  0x17   :  { %2475 = vmatpush3.msra.mxu1 %v370_v39  ;;  %2406 = vmatpush3.msra.mxu0 %v337_v42  ;;  %v20_v0 = vld [vmem:[%s5778_s0] sm:$0xff]  ;;  %v22_v4 = vld [vmem:[%s5778_s0 + $0x10] sm:$0xff]  ;;  %v411_v5 = vld [vmem:[%s5777_s1 + $0x278] sm:$0xff] }
  0x18   :  { %2476 = vmatprep.subr.mxu1 %v385_v41  ;;  %2407 = vmatprep.subr.mxu0 %v352_v44  ;;  %v364_v1 = vld [vmem:[%s5777_s1 + $0x100] sm:$0xff]  ;;  %v459_v6 = vld [vmem:[%s5777_s1 + $0x3f8] sm:$0xff]  ;;  %v45_v7 = vld [vmem:[%s5778_s0 + $0xc8] sm:$0xff] }
  0x19   :  { %2477 = vmatpush3.msra.mxu1 %v369_v43  ;;  %2408 = vmatpush3.msra.mxu0 %v336_v46  ;;  %v443_v8 = vld [vmem:[%s5777_s1 + $0x378] sm:$0xff]  ;;  %v44_v9 = vld [vmem:[%s5778_s0 + $0xc0] sm:$0xff]  ;;  %v426_v11 = vld [vmem:[%s5777_s1 + $0x2f0] sm:$0xff] }
  0x1a   :  { %2478 = vmatprep.subr.mxu1 %v384_v45  ;;  %2409 = vmatprep.subr.mxu0 %v351_v48  ;;  %v47_v10 = vld [vmem:[%s5778_s0 + $0xd8] sm:$0xff]  ;;  %v46_v12 = vld [vmem:[%s5778_s0 + $0xd0] sm:$0xff]  ;;  %v69_v15 = vld [vmem:[%s5778_s0 + $0x188] sm:$0xff] }
  0x1b   :  { %2479 = vmatpush3.msra.mxu1 %v368_v47  ;;  %2410 = vmatpush3.msra.mxu0 %v335_v50  ;;  %v410_v13 = vld [vmem:[%s5777_s1 + $0x270] sm:$0xff]  ;;  %v425_v16 = vld [vmem:[%s5777_s1 + $0x2e8] sm:$0xff]  ;;  %v68_v18 = vld [vmem:[%s5778_s0 + $0x180] sm:$0xff] }
  0x1c   :  { %2480 = vmatprep.subr.mxu1 %v383_v49  ;;  %2411 = vmatprep.subr.mxu0 %v350_v52  ;;  %v458_v14 = vld [vmem:[%s5777_s1 + $0x3f0] sm:$0xff]  ;;  %v71_v19 = vld [vmem:[%s5778_s0 + $0x198] sm:$0xff]  ;;  %v409_v20 = vld [vmem:[%s5777_s1 + $0x268] sm:$0xff] }
  0x1d   :  { %2481 = vmatpush3.msra.mxu1 %v367_v51  ;;  %2412 = vmatpush3.msra.mxu0 %v334_v54  ;;  %v442_v17 = vld [vmem:[%s5777_s1 + $0x370] sm:$0xff]  ;;  %v457_v22 = vld [vmem:[%s5777_s1 + $0x3e8] sm:$0xff]  ;;  %v424_v23 = vld [vmem:[%s5777_s1 + $0x2e0] sm:$0xff] }
  0x1e   :  { %2482 = vmatprep.subr.mxu1 %v382_v53  ;;  %2413 = vmatprep.subr.mxu0 %v349_v56  ;;  %v70_v21 = vld [vmem:[%s5778_s0 + $0x190] sm:$0xff]  ;;  %v441_v24 = vld [vmem:[%s5777_s1 + $0x368] sm:$0xff]  ;;  %v408_v26 = vld [vmem:[%s5777_s1 + $0x260] sm:$0xff] }
  0x1f   :  { %2483 = vmatpush3.msra.mxu1 %v366_v55  ;;  %2414 = vmatpush3.msra.mxu0 %v333_v58  ;;  %v93_v25 = vld [vmem:[%s5778_s0 + $0x248] sm:$0xff]  ;;  %v95_v27 = vld [vmem:[%s5778_s0 + $0x258] sm:$0xff]  ;;  %v92_v28 = vld [vmem:[%s5778_s0 + $0x240] sm:$0xff] }
  0x20   :  { %2484 = vmatprep.subr.mxu1 %v381_v57  ;;  %2415 = vmatprep.subr.mxu0 %v348_v60  ;;  %v456_v29 = vld [vmem:[%s5777_s1 + $0x3e0] sm:$0xff]  ;;  %v94_v30 = vld [vmem:[%s5778_s0 + $0x250] sm:$0xff]  ;;  %v423_v31 = vld [vmem:[%s5777_s1 + $0x2d8] sm:$0xff] }
  0x21   :  { %2485 = vmatpush3.msra.mxu1 %v365_v59  ;;  %787 = vmatprep.mubr.f32.mxu0 %v21_v61  ;;  %v440_v32 = vld [vmem:[%s5777_s1 + $0x360] sm:$0xff]  ;;  %v407_v33 = vld [vmem:[%s5777_s1 + $0x258] sm:$0xff]  ;;  %v117_v34 = vld [vmem:[%s5778_s0 + $0x308] sm:$0xff] }
  0x22   :  { %2416 = vmatpush3.msra.mxu0 %v332_v62  ;;  %2486 = vmatprep.subr.mxu1 %v380_v63  ;;  %v455_v35 = vld [vmem:[%s5777_s1 + $0x3d8] sm:$0xff]  ;;  %v116_v36 = vld [vmem:[%s5778_s0 + $0x300] sm:$0xff]  ;;  %v422_v39 = vld [vmem:[%s5777_s1 + $0x2d0] sm:$0xff] }
  0x23   :  { %788 = vmatmul.mubr.f32.vlgmr.msra.gmra.mxu0 %v20_v0  ;;  %2487 = vmatpush3.msra.mxu1 %v364_v1  ;;  %v119_v37 = vld [vmem:[%s5778_s0 + $0x318] sm:$0xff]  ;;  %v118_v40 = vld [vmem:[%s5778_s0 + $0x310] sm:$0xff]  ;;  %v141_v42 = vld [vmem:[%s5778_s0 + $0x3c8] sm:$0xff] }
  0x24   :  { %917 = vmatprep.mubr.f32.mxu1 %v23_v2  ;;  %2527 = vmatprep.subr.mxu0 %v427_v3  ;;  %v439_v38 = vld [vmem:[%s5777_s1 + $0x358] sm:$0xff]  ;;  %v406_v41 = vld [vmem:[%s5777_s1 + $0x250] sm:$0xff]  ;;  %v140_v44 = vld [vmem:[%s5778_s0 + $0x3c0] sm:$0xff] }
  0x25   :  { %918 = vmatmul.mubr.f32.vlgmr.msra.gmra.mxu1 %v22_v4  ;;  %2528 = vmatpush3.msra.mxu0 %v411_v5  ;;  %v454_v43 = vld [vmem:[%s5777_s1 + $0x3d0] sm:$0xff]  ;;  %v143_v45 = vld [vmem:[%s5778_s0 + $0x3d8] sm:$0xff]  ;;  %v421_v46 = vld [vmem:[%s5777_s1 + $0x2c8] sm:$0xff] }
  0x26   :  { %2598 = vmatprep.subr.mxu1 %v459_v6  ;;  %792 = vmatprep.mubr.f32.mxu0 %v45_v7  ;;  %v438_v47 = vld [vmem:[%s5777_s1 + $0x350] sm:$0xff]  ;;  %v405_v49 = vld [vmem:[%s5777_s1 + $0x248] sm:$0xff]  ;;  %v420_v52 = vld [vmem:[%s5777_s1 + $0x2c0] sm:$0xff] }
  0x27   :  { %2599 = vmatpush3.msra.mxu1 %v443_v8  ;;  %793 = vmatmul.mubr.f32.gmra.mxu0 %v44_v9  ;;  %v142_v48 = vld [vmem:[%s5778_s0 + $0x3d0] sm:$0xff]  ;;  %v453_v50 = vld [vmem:[%s5777_s1 + $0x3c8] sm:$0xff]  ;;  %v164_v54 = vld [vmem:[%s5778_s0 + $0x480] sm:$0xff] }
  0x28   :  { %922 = vmatprep.mubr.f32.mxu1 %v47_v10  ;;  %2529 = vmatprep.subr.mxu0 %v426_v11  ;;  %v165_v51 = vld [vmem:[%s5778_s0 + $0x488] sm:$0xff]  ;;  %v167_v55 = vld [vmem:[%s5778_s0 + $0x498] sm:$0xff]  ;;  %v404_v56 = vld [vmem:[%s5777_s1 + $0x240] sm:$0xff] }
  0x29   :  { %923 = vmatmul.mubr.f32.gmra.mxu1 %v46_v12  ;;  %2530 = vmatpush3.msra.mxu0 %v410_v13  ;;  %v437_v53 = vld [vmem:[%s5777_s1 + $0x348] sm:$0xff]  ;;  %v166_v57 = vld [vmem:[%s5778_s0 + $0x490] sm:$0xff]  ;;  %v452_v58 = vld [vmem:[%s5777_s1 + $0x3c0] sm:$0xff] }
  0x2a   :  { %2600 = vmatprep.subr.mxu1 %v458_v14  ;;  %797 = vmatprep.mubr.f32.mxu0 %v69_v15  ;;  %v419_v59 = vld [vmem:[%s5777_s1 + $0x2b8] sm:$0xff]  ;;  %v436_v60 = vld [vmem:[%s5777_s1 + $0x340] sm:$0xff]  ;;  %v189_v61 = vld [vmem:[%s5778_s0 + $0x548] sm:$0xff] }
  0x2b   :  { %2531 = vmatprep.subr.mxu0 %v425_v16  ;;  %2601 = vmatpush3.msra.mxu1 %v442_v17  ;;  %v403_v62 = vld [vmem:[%s5777_s1 + $0x238] sm:$0xff]  ;;  %v188_v0 = vld [vmem:[%s5778_s0 + $0x540] sm:$0xff]  ;;  %v190_v2 = vld [vmem:[%s5778_s0 + $0x550] sm:$0xff] }
  0x2c   :  { %798 = vmatmul.mubr.f32.gmra.mxu0 %v68_v18  ;;  %927 = vmatprep.mubr.f32.mxu1 %v71_v19  ;;  %v191_v63 = vld [vmem:[%s5778_s0 + $0x558] sm:$0xff]  ;;  %v418_v3 = vld [vmem:[%s5777_s1 + $0x2b0] sm:$0xff]  ;;  %v213_v5 = vld [vmem:[%s5778_s0 + $0x608] sm:$0xff] }
  0x2d   :  { %2532 = vmatpush3.msra.mxu0 %v409_v20  ;;  %928 = vmatmul.mubr.f32.gmra.mxu1 %v70_v21  ;;  %v451_v1 = vld [vmem:[%s5777_s1 + $0x3b8] sm:$0xff]  ;;  %v402_v6 = vld [vmem:[%s5777_s1 + $0x230] sm:$0xff]  ;;  %v212_v8 = vld [vmem:[%s5778_s0 + $0x600] sm:$0xff] }
  0x2e   :  { %2602 = vmatprep.subr.mxu1 %v457_v22  ;;  %2533 = vmatprep.subr.mxu0 %v424_v23  ;;  %v435_v4 = vld [vmem:[%s5777_s1 + $0x338] sm:$0xff]  ;;  %v450_v9 = vld [vmem:[%s5777_s1 + $0x3b0] sm:$0xff]  ;;  %v417_v11 = vld [vmem:[%s5777_s1 + $0x2a8] sm:$0xff] }
  0x2f   :  { %2603 = vmatpush3.msra.mxu1 %v441_v24  ;;  %802 = vmatprep.mubr.f32.mxu0 %v93_v25  ;;  %v215_v7 = vld [vmem:[%s5778_s0 + $0x618] sm:$0xff]  ;;  %v214_v10 = vld [vmem:[%s5778_s0 + $0x610] sm:$0xff]  ;;  %v401_v13 = vld [vmem:[%s5777_s1 + $0x228] sm:$0xff] }
  0x30   :  { %2534 = vmatpush3.msra.mxu0 %v408_v26  ;;  %932 = vmatprep.mubr.f32.mxu1 %v95_v27  ;;  %v434_v12 = vld [vmem:[%s5777_s1 + $0x330] sm:$0xff]  ;;  %v237_v14 = vld [vmem:[%s5778_s0 + $0x6c8] sm:$0xff]  ;;  %v236_v16 = vld [vmem:[%s5778_s0 + $0x6c0] sm:$0xff] }
  0x31   :  { %803 = vmatmul.mubr.f32.gmra.mxu0 %v92_v28  ;;  %2604 = vmatprep.subr.mxu1 %v456_v29  ;;  %v449_v15 = vld [vmem:[%s5777_s1 + $0x3a8] sm:$0xff]  ;;  %v239_v17 = vld [vmem:[%s5778_s0 + $0x6d8] sm:$0xff]  ;;  %v416_v18 = vld [vmem:[%s5777_s1 + $0x2a0] sm:$0xff] }
  0x32   :  { %933 = vmatmul.mubr.f32.gmra.mxu1 %v94_v30  ;;  %2535 = vmatprep.subr.mxu0 %v423_v31  ;;  %v433_v19 = vld [vmem:[%s5777_s1 + $0x328] sm:$0xff]  ;;  %v238_v20 = vld [vmem:[%s5778_s0 + $0x6d0] sm:$0xff]  ;;  %v400_v21 = vld [vmem:[%s5777_s1 + $0x220] sm:$0xff] }
  0x33   :  { %2605 = vmatpush3.msra.mxu1 %v440_v32  ;;  %2536 = vmatpush3.msra.mxu0 %v407_v33  ;;  %v448_v22 = vld [vmem:[%s5777_s1 + $0x3a0] sm:$0xff]  ;;  %v261_v23 = vld [vmem:[%s5778_s0 + $0x788] sm:$0xff]  ;;  %v415_v24 = vld [vmem:[%s5777_s1 + $0x298] sm:$0xff] }
  0x34   :  { %807 = vmatprep.mubr.f32.mxu0 %v117_v34  ;;  %2606 = vmatprep.subr.mxu1 %v455_v35  ;;  %v432_v25 = vld [vmem:[%s5777_s1 + $0x320] sm:$0xff]  ;;  %v263_v27 = vld [vmem:[%s5778_s0 + $0x798] sm:$0xff]  ;;  %v262_v29 = vld [vmem:[%s5778_s0 + $0x790] sm:$0xff] }
  0x35   :  { %808 = vmatmul.mubr.f32.gmra.mxu0 %v116_v36  ;;  %937 = vmatprep.mubr.f32.mxu1 %v119_v37  ;;  %v260_v26 = vld [vmem:[%s5778_s0 + $0x780] sm:$0xff]  ;;  %v399_v28 = vld [vmem:[%s5777_s1 + $0x218] sm:$0xff]  ;;  %v285_v31 = vld [vmem:[%s5778_s0 + $0x848] sm:$0xff] }
  0x36   :  { %2607 = vmatpush3.msra.mxu1 %v439_v38  ;;  %2537 = vmatprep.subr.mxu0 %v422_v39  ;;  %v447_v30 = vld [vmem:[%s5777_s1 + $0x398] sm:$0xff]  ;;  %v414_v33 = vld [vmem:[%s5777_s1 + $0x290] sm:$0xff]  ;;  %v284_v34 = vld [vmem:[%s5778_s0 + $0x840] sm:$0xff] }
  0x37   :  { %938 = vmatmul.mubr.f32.gmra.mxu1 %v118_v40  ;;  %2538 = vmatpush3.msra.mxu0 %v406_v41  ;;  %v431_v32 = vld [vmem:[%s5777_s1 + $0x318] sm:$0xff]  ;;  %v398_v36 = vld [vmem:[%s5777_s1 + $0x210] sm:$0xff]  ;;  %v413_v39 = vld [vmem:[%s5777_s1 + $0x288] sm:$0xff] }
  0x38   :  { %812 = vmatprep.mubr.f32.mxu0 %v141_v42  ;;  %2608 = vmatprep.subr.mxu1 %v454_v43  ;;  %v287_v35 = vld [vmem:[%s5778_s0 + $0x858] sm:$0xff]  ;;  %v286_v37 = vld [vmem:[%s5778_s0 + $0x850] sm:$0xff]  ;;  %v309_v41 = vld [vmem:[%s5778_s0 + $0x908] sm:$0x3] }
  0x39   :  { %813 = vmatmul.mubr.f32.gmra.mxu0 %v140_v44  ;;  %942 = vmatprep.mubr.f32.mxu1 %v143_v45  ;;  %v446_v38 = vld [vmem:[%s5777_s1 + $0x390] sm:$0xff]  ;;  %v397_v42 = vld [vmem:[%s5777_s1 + $0x208] sm:$0xff]  ;;  %v311_v43 = vld [vmem:[%s5778_s0 + $0x918] sm:$0x3] }
  0x3a   :  { %2539 = vmatprep.subr.mxu0 %v421_v46  ;;  %2609 = vmatpush3.msra.mxu1 %v438_v47  ;;  %v430_v40 = vld [vmem:[%s5777_s1 + $0x310] sm:$0xff]  ;;  %v308_v44 = vld [vmem:[%s5778_s0 + $0x900] sm:$0x3]  ;;  %v445_v45 = vld [vmem:[%s5777_s1 + $0x388] sm:$0xff] }
  0x3b   :  { %943 = vmatmul.mubr.f32.gmra.mxu1 %v142_v48  ;;  %2540 = vmatpush3.msra.mxu0 %v405_v49  ;;  %v310_v46 = vld [vmem:[%s5778_s0 + $0x910] sm:$0x3]  ;;  %v412_v47 = vld [vmem:[%s5777_s1 + $0x280] sm:$0xff]  ;;  %v429_v48 = vld [vmem:[%s5777_s1 + $0x308] sm:$0xff] }
  0x3c   :  { %2610 = vmatprep.subr.mxu1 %v453_v50  ;;  %817 = vmatprep.mubr.f32.mxu0 %v165_v51  ;;  %v396_v49 = vld [vmem:[%s5777_s1 + $0x200] sm:$0xff]  ;;  %v25_v50 = vld [vmem:[%s5778_s0 + $0x28] sm:$0xff] }
  0x3d   :  { %2541 = vmatprep.subr.mxu0 %v420_v52  ;;  %2611 = vmatpush3.msra.mxu1 %v437_v53  ;;  %v444_v51 = vld [vmem:[%s5777_s1 + $0x380] sm:$0xff] }
  0x3e   :  { %818 = vmatmul.mubr.f32.gmra.mxu0 %v164_v54  ;;  %947 = vmatprep.mubr.f32.mxu1 %v167_v55  ;;  %v24_v52 = vld [vmem:[%s5778_s0 + $0x20] sm:$0xff]  ;;  %v27_v54 = vld [vmem:[%s5778_s0 + $0x38] sm:$0xff] }
  0x3f   :  { %2542 = vmatpush3.msra.mxu0 %v404_v56  ;;  %948 = vmatmul.mubr.f32.gmra.mxu1 %v166_v57  ;;  %v428_v53 = vld [vmem:[%s5777_s1 + $0x300] sm:$0xff]  ;;  %v491_v55 = vld [vmem:[%s5777_s1 + $0x4f8] sm:$0xff]  ;;  %v26_v56 = vld [vmem:[%s5778_s0 + $0x30] sm:$0xff] }
  0x40   :  { %2612 = vmatprep.subr.mxu1 %v452_v58  ;;  %2543 = vmatprep.subr.mxu0 %v419_v59  ;;  %v475_v57 = vld [vmem:[%s5777_s1 + $0x478] sm:$0xff]  ;;  %v49_v59 = vld [vmem:[%s5778_s0 + $0xe8] sm:$0xff] }
  0x41   :  { %2613 = vmatpush3.msra.mxu1 %v436_v60  ;;  %822 = vmatprep.mubr.f32.mxu0 %v189_v61  ;;  %v523_v58 = vld [vmem:[%s5777_s1 + $0x5f8] sm:$0xff]  ;;  %v48_v61 = vld [vmem:[%s5778_s0 + $0xe0] sm:$0xff] }
  0x42   :  { %2544 = vmatpush3.msra.mxu0 %v403_v62  ;;  %952 = vmatprep.mubr.f32.mxu1 %v191_v63  ;;  %v507_v60 = vld [vmem:[%s5777_s1 + $0x578] sm:$0xff]  ;;  %v490_v63 = vld [vmem:[%s5777_s1 + $0x4f0] sm:$0xff] }
  0x43   :  { %823 = vmatmul.mubr.f32.gmra.mxu0 %v188_v0  ;;  %2614 = vmatprep.subr.mxu1 %v451_v1  ;;  %v51_v62 = vld [vmem:[%s5778_s0 + $0xf8] sm:$0xff]  ;;  %v50_v0 = vld [vmem:[%s5778_s0 + $0xf0] sm:$0xff] }
  0x44   :  { %953 = vmatmul.mubr.f32.gmra.mxu1 %v190_v2  ;;  %2545 = vmatprep.subr.mxu0 %v418_v3  ;;  %v474_v1 = vld [vmem:[%s5777_s1 + $0x470] sm:$0xff]  ;;  %v73_v3 = vld [vmem:[%s5778_s0 + $0x1a8] sm:$0xff] }
  0x45   :  { %2615 = vmatpush3.msra.mxu1 %v435_v4  ;;  %827 = vmatprep.mubr.f32.mxu0 %v213_v5  ;;  %v522_v2 = vld [vmem:[%s5777_s1 + $0x5f0] sm:$0xff]  ;;  %v489_v4 = vld [vmem:[%s5777_s1 + $0x4e8] sm:$0xff] }
  0x46   :  { %2546 = vmatpush3.msra.mxu0 %v402_v6  ;;  %957 = vmatprep.mubr.f32.mxu1 %v215_v7  ;;  %v506_v5 = vld [vmem:[%s5777_s1 + $0x570] sm:$0xff]  ;;  %v72_v6 = vld [vmem:[%s5778_s0 + $0x1a0] sm:$0xff]  ;;  %v75_v7 = vld [vmem:[%s5778_s0 + $0x1b8] sm:$0xff] }
  0x47   :  { %828 = vmatmul.mubr.f32.gmra.mxu0 %v212_v8  ;;  %2616 = vmatprep.subr.mxu1 %v450_v9  ;;  %v473_v8 = vld [vmem:[%s5777_s1 + $0x468] sm:$0xff]  ;;  %v74_v9 = vld [vmem:[%s5778_s0 + $0x1b0] sm:$0xff] }
  0x48   :  { %958 = vmatmul.mubr.f32.gmra.mxu1 %v214_v10  ;;  %2547 = vmatprep.subr.mxu0 %v417_v11  ;;  %v521_v10 = vld [vmem:[%s5777_s1 + $0x5e8] sm:$0xff]  ;;  %v488_v11 = vld [vmem:[%s5777_s1 + $0x4e0] sm:$0xff] }
  0x49   :  { %2617 = vmatpush3.msra.mxu1 %v434_v12  ;;  %2548 = vmatpush3.msra.mxu0 %v401_v13  ;;  %v505_v12 = vld [vmem:[%s5777_s1 + $0x568] sm:$0xff] }
  0x4a   :  { %832 = vmatprep.mubr.f32.mxu0 %v237_v14  ;;  %2618 = vmatprep.subr.mxu1 %v449_v15  ;;  %v97_v13 = vld [vmem:[%s5778_s0 + $0x268] sm:$0xff]  ;;  %v472_v14 = vld [vmem:[%s5777_s1 + $0x460] sm:$0xff]  ;;  %v99_v15 = vld [vmem:[%s5778_s0 + $0x278] sm:$0xff] }
  0x4b   :  { %833 = vmatmul.mubr.f32.gmra.mxu0 %v236_v16  ;;  %962 = vmatprep.mubr.f32.mxu1 %v239_v17  ;;  %v96_v16 = vld [vmem:[%s5778_s0 + $0x260] sm:$0xff] }
  0x4c   :  { %2549 = vmatprep.subr.mxu0 %v416_v18  ;;  %2619 = vmatpush3.msra.mxu1 %v433_v19  ;;  %v520_v17 = vld [vmem:[%s5777_s1 + $0x5e0] sm:$0xff]  ;;  %v98_v18 = vld [vmem:[%s5778_s0 + $0x270] sm:$0xff]  ;;  %v487_v19 = vld [vmem:[%s5777_s1 + $0x4d8] sm:$0xff] }
  0x4d   :  { %963 = vmatmul.mubr.f32.gmra.mxu1 %v238_v20  ;;  %2550 = vmatpush3.msra.mxu0 %v400_v21  ;;  %v504_v20 = vld [vmem:[%s5777_s1 + $0x560] sm:$0xff]  ;;  %v471_v21 = vld [vmem:[%s5777_s1 + $0x458] sm:$0xff] }
  0x4e   :  { %2620 = vmatprep.subr.mxu1 %v448_v22  ;;  %837 = vmatprep.mubr.f32.mxu0 %v261_v23  ;;  %v121_v22 = vld [vmem:[%s5778_s0 + $0x328] sm:$0xff]  ;;  %v519_v23 = vld [vmem:[%s5777_s1 + $0x5d8] sm:$0xff] }
  0x4f   :  { %2551 = vmatprep.subr.mxu0 %v415_v24  ;;  %2621 = vmatpush3.msra.mxu1 %v432_v25  ;;  %v120_v24 = vld [vmem:[%s5778_s0 + $0x320] sm:$0xff]  ;;  %v123_v25 = vld [vmem:[%s5778_s0 + $0x338] sm:$0xff] }
  0x50   :  { %838 = vmatmul.mubr.f32.gmra.mxu0 %v260_v26  ;;  %967 = vmatprep.mubr.f32.mxu1 %v263_v27  ;;  %v503_v26 = vld [vmem:[%s5777_s1 + $0x558] sm:$0xff]  ;;  %v486_v27 = vld [vmem:[%s5777_s1 + $0x4d0] sm:$0xff] }
  0x51   :  { %2552 = vmatpush3.msra.mxu0 %v399_v28  ;;  %968 = vmatmul.mubr.f32.gmra.mxu1 %v262_v29  ;;  %v122_v28 = vld [vmem:[%s5778_s0 + $0x330] sm:$0xff] }
  0x52   :  { %2622 = vmatprep.subr.mxu1 %v447_v30  ;;  %842 = vmatprep.mubr.f32.mxu0 %v285_v31  ;;  %v470_v29 = vld [vmem:[%s5777_s1 + $0x450] sm:$0xff]  ;;  %v145_v30 = vld [vmem:[%s5778_s0 + $0x3e8] sm:$0xff] }
  0x53   :  { %2623 = vmatpush3.msra.mxu1 %v431_v32  ;;  %2553 = vmatprep.subr.mxu0 %v414_v33  ;;  %v518_v31 = vld [vmem:[%s5777_s1 + $0x5d0] sm:$0xff]  ;;  %v144_v32 = vld [vmem:[%s5778_s0 + $0x3e0] sm:$0xff]  ;;  %v147_v33 = vld [vmem:[%s5778_s0 + $0x3f8] sm:$0xff] }
  0x54   :  { %843 = vmatmul.mubr.f32.gmra.mxu0 %v284_v34  ;;  %972 = vmatprep.mubr.f32.mxu1 %v287_v35  ;;  %v485_v34 = vld [vmem:[%s5777_s1 + $0x4c8] sm:$0xff]  ;;  %v502_v35 = vld [vmem:[%s5777_s1 + $0x550] sm:$0xff] }
  0x55   :  { %2554 = vmatpush3.msra.mxu0 %v398_v36  ;;  %973 = vmatmul.mubr.f32.gmra.mxu1 %v286_v37  ;;  %v146_v36 = vld [vmem:[%s5778_s0 + $0x3f0] sm:$0xff]  ;;  %v469_v37 = vld [vmem:[%s5777_s1 + $0x448] sm:$0xff] }
  0x56   :  { %2624 = vmatprep.subr.mxu1 %v446_v38  ;;  %2555 = vmatprep.subr.mxu0 %v413_v39  ;;  %v517_v38 = vld [vmem:[%s5777_s1 + $0x5c8] sm:$0xff] }
  0x57   :  { %2625 = vmatpush3.msra.mxu1 %v430_v40  ;;  %847 = vmatprep.mubr.f32.mxu0 %v309_v41  ;;  %v169_v39 = vld [vmem:[%s5778_s0 + $0x4a8] sm:$0xff]  ;;  %v484_v40 = vld [vmem:[%s5777_s1 + $0x4c0] sm:$0xff] }
  0x58   :  { %2556 = vmatpush3.msra.mxu0 %v397_v42  ;;  %977 = vmatprep.mubr.f32.mxu1 %v311_v43  ;;  %v501_v41 = vld [vmem:[%s5777_s1 + $0x548] sm:$0xff]  ;;  %v168_v42 = vld [vmem:[%s5778_s0 + $0x4a0] sm:$0xff]  ;;  %v171_v43 = vld [vmem:[%s5778_s0 + $0x4b8] sm:$0xff] }
  0x59   :  { %848 = vmatmul.mubr.f32.gmra.mxu0 %v308_v44  ;;  %2626 = vmatprep.subr.mxu1 %v445_v45  ;;  %v468_v44 = vld [vmem:[%s5777_s1 + $0x440] sm:$0xff]  ;;  %v170_v45 = vld [vmem:[%s5778_s0 + $0x4b0] sm:$0xff] }
  0x5a   :  { %978 = vmatmul.mubr.f32.gmra.mxu1 %v310_v46  ;;  %2557 = vmatprep.subr.mxu0 %v412_v47  ;;  %v516_v46 = vld [vmem:[%s5777_s1 + $0x5c0] sm:$0xff]  ;;  %v483_v47 = vld [vmem:[%s5777_s1 + $0x4b8] sm:$0xff] }
  0x5b   :  { %2627 = vmatpush3.msra.mxu1 %v429_v48  ;;  %2558 = vmatpush3.msra.mxu0 %v396_v49  ;;  %v500_v48 = vld [vmem:[%s5777_s1 + $0x540] sm:$0xff]  ;;  %v193_v49 = vld [vmem:[%s5778_s0 + $0x568] sm:$0xff] }
  0x5c   :  { %1047 = vmatprep.mubr.f32.mxu0 %v25_v50  ;;  %2628 = vmatprep.subr.mxu1 %v444_v51  ;;  %v467_v50 = vld [vmem:[%s5777_s1 + $0x438] sm:$0xff] }
  0x5d   :  { %1048 = vmatmul.mubr.f32.vlgmr.msra.gmra.mxu0 %v24_v52  ;;  %2629 = vmatpush3.msra.mxu1 %v428_v53  ;;  %v195_v51 = vld [vmem:[%s5778_s0 + $0x578] sm:$0xff]  ;;  %v192_v52 = vld [vmem:[%s5778_s0 + $0x560] sm:$0xff] }
  0x5e   :  { %1177 = vmatprep.mubr.f32.mxu1 %v27_v54  ;;  %2669 = vmatprep.subr.mxu0 %v491_v55  ;;  %v515_v53 = vld [vmem:[%s5777_s1 + $0x5b8] sm:$0xff]  ;;  %v194_v54 = vld [vmem:[%s5778_s0 + $0x570] sm:$0xff] }
  0x5f   :  { %1178 = vmatmul.mubr.f32.vlgmr.msra.gmra.mxu1 %v26_v56  ;;  %2670 = vmatpush3.msra.mxu0 %v475_v57  ;;  %v482_v55 = vld [vmem:[%s5777_s1 + $0x4b0] sm:$0xff]  ;;  %v499_v56 = vld [vmem:[%s5777_s1 + $0x538] sm:$0xff]  ;;  %v217_v57 = vld [vmem:[%s5778_s0 + $0x628] sm:$0xff] }
  0x60   :  { %2740 = vmatprep.subr.mxu1 %v523_v58  ;;  %1052 = vmatprep.mubr.f32.mxu0 %v49_v59  ;;  %v466_v58 = vld [vmem:[%s5777_s1 + $0x430] sm:$0xff]  ;;  %v219_v59 = vld [vmem:[%s5778_s0 + $0x638] sm:$0xff] }
  0x61   :  { %2741 = vmatpush3.msra.mxu1 %v507_v60  ;;  %1053 = vmatmul.mubr.f32.gmra.mxu0 %v48_v61  ;;  %v216_v60 = vld [vmem:[%s5778_s0 + $0x620] sm:$0xff]  ;;  %v514_v61 = vld [vmem:[%s5777_s1 + $0x5b0] sm:$0xff] }
  0x62   :  { %1182 = vmatprep.mubr.f32.mxu1 %v51_v62  ;;  %2671 = vmatprep.subr.mxu0 %v490_v63  ;;  %v218_v62 = vld [vmem:[%s5778_s0 + $0x630] sm:$0xff]  ;;  %v481_v63 = vld [vmem:[%s5777_s1 + $0x4a8] sm:$0xff] }
  0x63   :  { %1183 = vmatmul.mubr.f32.gmra.mxu1 %v50_v0  ;;  %2672 = vmatpush3.msra.mxu0 %v474_v1  ;;  %v498_v0 = vld [vmem:[%s5777_s1 + $0x530] sm:$0xff]  ;;  %v465_v1 = vld [vmem:[%s5777_s1 + $0x428] sm:$0xff] }
  0x64   :  { %2742 = vmatprep.subr.mxu1 %v522_v2  ;;  %1057 = vmatprep.mubr.f32.mxu0 %v73_v3  ;;  %v241_v2 = vld [vmem:[%s5778_s0 + $0x6e8] sm:$0xff] }
  0x65   :  { %2673 = vmatprep.subr.mxu0 %v489_v4  ;;  %2743 = vmatpush3.msra.mxu1 %v506_v5  ;;  %v513_v3 = vld [vmem:[%s5777_s1 + $0x5a8] sm:$0xff]  ;;  %v240_v4 = vld [vmem:[%s5778_s0 + $0x6e0] sm:$0xff]  ;;  %v243_v5 = vld [vmem:[%s5778_s0 + $0x6f8] sm:$0xff] }
  0x66   :  { %1058 = vmatmul.mubr.f32.gmra.mxu0 %v72_v6  ;;  %1187 = vmatprep.mubr.f32.mxu1 %v75_v7  ;;  %v480_v6 = vld [vmem:[%s5777_s1 + $0x4a0] sm:$0xff]  ;;  %v497_v7 = vld [vmem:[%s5777_s1 + $0x528] sm:$0xff] }
  0x67   :  { %2674 = vmatpush3.msra.mxu0 %v473_v8  ;;  %1188 = vmatmul.mubr.f32.gmra.mxu1 %v74_v9  ;;  %v242_v8 = vld [vmem:[%s5778_s0 + $0x6f0] sm:$0xff]  ;;  %v464_v9 = vld [vmem:[%s5777_s1 + $0x420] sm:$0xff] }
  0x68   :  { %2744 = vmatprep.subr.mxu1 %v521_v10  ;;  %2675 = vmatprep.subr.mxu0 %v488_v11  ;;  %v512_v10 = vld [vmem:[%s5777_s1 + $0x5a0] sm:$0xff]  ;;  %v265_v11 = vld [vmem:[%s5778_s0 + $0x7a8] sm:$0xff] }
  0x69   :  { %2745 = vmatpush3.msra.mxu1 %v505_v12  ;;  %1062 = vmatprep.mubr.f32.mxu0 %v97_v13  ;;  %v479_v12 = vld [vmem:[%s5777_s1 + $0x498] sm:$0xff]  ;;  %v496_v13 = vld [vmem:[%s5777_s1 + $0x520] sm:$0xff] }
  0x6a   :  { %2676 = vmatpush3.msra.mxu0 %v472_v14  ;;  %1192 = vmatprep.mubr.f32.mxu1 %v99_v15  ;;  %v264_v14 = vld [vmem:[%s5778_s0 + $0x7a0] sm:$0xff]  ;;  %v267_v15 = vld [vmem:[%s5778_s0 + $0x7b8] sm:$0xff] }
  0x6b   :  { %1063 = vmatmul.mubr.f32.gmra.mxu0 %v96_v16  ;;  %2746 = vmatprep.subr.mxu1 %v520_v17  ;;  %v463_v16 = vld [vmem:[%s5777_s1 + $0x418] sm:$0xff]  ;;  %v266_v17 = vld [vmem:[%s5778_s0 + $0x7b0] sm:$0xff] }
  0x6c   :  { %1193 = vmatmul.mubr.f32.gmra.mxu1 %v98_v18  ;;  %2677 = vmatprep.subr.mxu0 %v487_v19  ;;  %v511_v18 = vld [vmem:[%s5777_s1 + $0x598] sm:$0xff]  ;;  %v289_v19 = vld [vmem:[%s5778_s0 + $0x868] sm:$0xff] }
  0x6d   :  { %2747 = vmatpush3.msra.mxu1 %v504_v20  ;;  %2678 = vmatpush3.msra.mxu0 %v471_v21  ;;  %v495_v20 = vld [vmem:[%s5777_s1 + $0x518] sm:$0xff]  ;;  %v478_v21 = vld [vmem:[%s5777_s1 + $0x490] sm:$0xff] }
  0x6e   :  { %1067 = vmatprep.mubr.f32.mxu0 %v121_v22  ;;  %2748 = vmatprep.subr.mxu1 %v519_v23  ;;  %v288_v22 = vld [vmem:[%s5778_s0 + $0x860] sm:$0xff]  ;;  %v291_v23 = vld [vmem:[%s5778_s0 + $0x878] sm:$0xff] }
  0x6f   :  { %1068 = vmatmul.mubr.f32.gmra.mxu0 %v120_v24  ;;  %1197 = vmatprep.mubr.f32.mxu1 %v123_v25  ;;  %v462_v24 = vld [vmem:[%s5777_s1 + $0x410] sm:$0xff] }
  0x70   :  { %2749 = vmatpush3.msra.mxu1 %v503_v26  ;;  %2679 = vmatprep.subr.mxu0 %v486_v27  ;;  %v290_v25 = vld [vmem:[%s5778_s0 + $0x870] sm:$0xff]  ;;  %v477_v27 = vld [vmem:[%s5777_s1 + $0x488] sm:$0xff] }
  0x71   :  { %1198 = vmatmul.mubr.f32.gmra.mxu1 %v122_v28  ;;  %2680 = vmatpush3.msra.mxu0 %v470_v29  ;;  %v510_v26 = vld [vmem:[%s5777_s1 + $0x590] sm:$0xff]  ;;  %v313_v29 = vld [vmem:[%s5778_s0 + $0x928] sm:$0x3] }
  0x72   :  { %1072 = vmatprep.mubr.f32.mxu0 %v145_v30  ;;  %2750 = vmatprep.subr.mxu1 %v518_v31  ;;  %v494_v28 = vld [vmem:[%s5777_s1 + $0x510] sm:$0xff]  ;;  %v461_v30 = vld [vmem:[%s5777_s1 + $0x408] sm:$0xff]  ;;  %v315_v31 = vld [vmem:[%s5778_s0 + $0x938] sm:$0x3] }
  0x73   :  { %1073 = vmatmul.mubr.f32.gmra.mxu0 %v144_v32  ;;  %1202 = vmatprep.mubr.f32.mxu1 %v147_v33  ;;  %v312_v32 = vld [vmem:[%s5778_s0 + $0x920] sm:$0x3]  ;;  %v509_v33 = vld [vmem:[%s5777_s1 + $0x588] sm:$0xff] }
  0x74   :  { %2681 = vmatprep.subr.mxu0 %v485_v34  ;;  %2751 = vmatpush3.msra.mxu1 %v502_v35  ;;  %v314_v34 = vld [vmem:[%s5778_s0 + $0x930] sm:$0x3]  ;;  %v476_v35 = vld [vmem:[%s5777_s1 + $0x480] sm:$0xff] }
  0x75   :  { %1203 = vmatmul.mubr.f32.gmra.mxu1 %v146_v36  ;;  %2682 = vmatpush3.msra.mxu0 %v469_v37  ;;  %v493_v36 = vld [vmem:[%s5777_s1 + $0x508] sm:$0xff]  ;;  %v460_v37 = vld [vmem:[%s5777_s1 + $0x400] sm:$0xff] }
  0x76   :  { %2752 = vmatprep.subr.mxu1 %v517_v38  ;;  %1077 = vmatprep.mubr.f32.mxu0 %v169_v39  ;;  %v29_v38 = vld [vmem:[%s5778_s0 + $0x48] sm:$0xff]  ;;  %v508_v39 = vld [vmem:[%s5777_s1 + $0x580] sm:$0xff] }
  0x77   :  { %2683 = vmatprep.subr.mxu0 %v484_v40  ;;  %2753 = vmatpush3.msra.mxu1 %v501_v41  ;;  %v28_v40 = vld [vmem:[%s5778_s0 + $0x40] sm:$0xff] }
  0x78   :  { %1078 = vmatmul.mubr.f32.gmra.mxu0 %v168_v42  ;;  %1207 = vmatprep.mubr.f32.mxu1 %v171_v43  ;;  %v492_v41 = vld [vmem:[%s5777_s1 + $0x500] sm:$0xff]  ;;  %v31_v42 = vld [vmem:[%s5778_s0 + $0x58] sm:$0xff] }
  0x79   :  { %2684 = vmatpush3.msra.mxu0 %v468_v44  ;;  %1208 = vmatmul.mubr.f32.gmra.mxu1 %v170_v45  ;;  %v555_v43 = vld [vmem:[%s5777_s1 + $0x6f8] sm:$0xff]  ;;  %v30_v44 = vld [vmem:[%s5778_s0 + $0x50] sm:$0xff] }
  0x7a   :  { %2754 = vmatprep.subr.mxu1 %v516_v46  ;;  %2685 = vmatprep.subr.mxu0 %v483_v47  ;;  %v539_v45 = vld [vmem:[%s5777_s1 + $0x678] sm:$0xff]  ;;  %v53_v47 = vld [vmem:[%s5778_s0 + $0x108] sm:$0xff] }
  0x7b   :  { %2755 = vmatpush3.msra.mxu1 %v500_v48  ;;  %1082 = vmatprep.mubr.f32.mxu0 %v193_v49  ;;  %v587_v46 = vld [vmem:[%s5777_s1 + $0x7f8] sm:$0xff]  ;;  %v52_v49 = vld [vmem:[%s5778_s0 + $0x100] sm:$0xff] }
  0x7c   :  { %2686 = vmatpush3.msra.mxu0 %v467_v50  ;;  %1212 = vmatprep.mubr.f32.mxu1 %v195_v51  ;;  %v571_v48 = vld [vmem:[%s5777_s1 + $0x778] sm:$0xff]  ;;  %v554_v51 = vld [vmem:[%s5777_s1 + $0x6f0] sm:$0xff] }
  0x7d   :  { %1083 = vmatmul.mubr.f32.gmra.mxu0 %v192_v52  ;;  %2756 = vmatprep.subr.mxu1 %v515_v53  ;;  %v55_v50 = vld [vmem:[%s5778_s0 + $0x118] sm:$0xff]  ;;  %v54_v52 = vld [vmem:[%s5778_s0 + $0x110] sm:$0xff] }
  0x7e   :  { %1213 = vmatmul.mubr.f32.gmra.mxu1 %v194_v54  ;;  %2687 = vmatprep.subr.mxu0 %v482_v55  ;;  %v538_v53 = vld [vmem:[%s5777_s1 + $0x670] sm:$0xff]  ;;  %v77_v55 = vld [vmem:[%s5778_s0 + $0x1c8] sm:$0xff] }
  0x7f   :  { %2757 = vmatpush3.msra.mxu1 %v499_v56  ;;  %1087 = vmatprep.mubr.f32.mxu0 %v217_v57  ;;  %v586_v54 = vld [vmem:[%s5777_s1 + $0x7f0] sm:$0xff]  ;;  %v553_v56 = vld [vmem:[%s5777_s1 + $0x6e8] sm:$0xff] }
  0x80   :  { %2688 = vmatpush3.msra.mxu0 %v466_v58  ;;  %1217 = vmatprep.mubr.f32.mxu1 %v219_v59  ;;  %v570_v57 = vld [vmem:[%s5777_s1 + $0x770] sm:$0xff]  ;;  %v76_v58 = vld [vmem:[%s5778_s0 + $0x1c0] sm:$0xff]  ;;  %v79_v59 = vld [vmem:[%s5778_s0 + $0x1d8] sm:$0xff] }
  0x81   :  { %1088 = vmatmul.mubr.f32.gmra.mxu0 %v216_v60  ;;  %2758 = vmatprep.subr.mxu1 %v514_v61  ;;  %v537_v60 = vld [vmem:[%s5777_s1 + $0x668] sm:$0xff]  ;;  %v78_v61 = vld [vmem:[%s5778_s0 + $0x1d0] sm:$0xff] }
  0x82   :  { %1218 = vmatmul.mubr.f32.gmra.mxu1 %v218_v62  ;;  %2689 = vmatprep.subr.mxu0 %v481_v63  ;;  %v585_v62 = vld [vmem:[%s5777_s1 + $0x7e8] sm:$0xff]  ;;  %v552_v63 = vld [vmem:[%s5777_s1 + $0x6e0] sm:$0xff] }
  0x83   :  { %2759 = vmatpush3.msra.mxu1 %v498_v0  ;;  %2690 = vmatpush3.msra.mxu0 %v465_v1  ;;  %v569_v0 = vld [vmem:[%s5777_s1 + $0x768] sm:$0xff] }
  0x84   :  { %1092 = vmatprep.mubr.f32.mxu0 %v241_v2  ;;  %2760 = vmatprep.subr.mxu1 %v513_v3  ;;  %v101_v1 = vld [vmem:[%s5778_s0 + $0x288] sm:$0xff]  ;;  %v536_v2 = vld [vmem:[%s5777_s1 + $0x660] sm:$0xff]  ;;  %v103_v3 = vld [vmem:[%s5778_s0 + $0x298] sm:$0xff] }
  0x85   :  { %1093 = vmatmul.mubr.f32.gmra.mxu0 %v240_v4  ;;  %1222 = vmatprep.mubr.f32.mxu1 %v243_v5  ;;  %v100_v4 = vld [vmem:[%s5778_s0 + $0x280] sm:$0xff] }
  0x86   :  { %2691 = vmatprep.subr.mxu0 %v480_v6  ;;  %2761 = vmatpush3.msra.mxu1 %v497_v7  ;;  %v584_v5 = vld [vmem:[%s5777_s1 + $0x7e0] sm:$0xff]  ;;  %v102_v6 = vld [vmem:[%s5778_s0 + $0x290] sm:$0xff]  ;;  %v551_v7 = vld [vmem:[%s5777_s1 + $0x6d8] sm:$0xff] }
  0x87   :  { %1223 = vmatmul.mubr.f32.gmra.mxu1 %v242_v8  ;;  %2692 = vmatpush3.msra.mxu0 %v464_v9  ;;  %v568_v8 = vld [vmem:[%s5777_s1 + $0x760] sm:$0xff]  ;;  %v535_v9 = vld [vmem:[%s5777_s1 + $0x658] sm:$0xff] }
  0x88   :  { %2762 = vmatprep.subr.mxu1 %v512_v10  ;;  %1097 = vmatprep.mubr.f32.mxu0 %v265_v11  ;;  %v125_v10 = vld [vmem:[%s5778_s0 + $0x348] sm:$0xff]  ;;  %v583_v11 = vld [vmem:[%s5777_s1 + $0x7d8] sm:$0xff] }
  0x89   :  { %2693 = vmatprep.subr.mxu0 %v479_v12  ;;  %2763 = vmatpush3.msra.mxu1 %v496_v13  ;;  %v124_v12 = vld [vmem:[%s5778_s0 + $0x340] sm:$0xff]  ;;  %v127_v13 = vld [vmem:[%s5778_s0 + $0x358] sm:$0xff] }
  0x8a   :  { %1098 = vmatmul.mubr.f32.gmra.mxu0 %v264_v14  ;;  %1227 = vmatprep.mubr.f32.mxu1 %v267_v15  ;;  %v567_v14 = vld [vmem:[%s5777_s1 + $0x758] sm:$0xff]  ;;  %v550_v15 = vld [vmem:[%s5777_s1 + $0x6d0] sm:$0xff] }
  0x8b   :  { %2694 = vmatpush3.msra.mxu0 %v463_v16  ;;  %1228 = vmatmul.mubr.f32.gmra.mxu1 %v266_v17  ;;  %v126_v16 = vld [vmem:[%s5778_s0 + $0x350] sm:$0xff] }
  0x8c   :  { %2764 = vmatprep.subr.mxu1 %v511_v18  ;;  %1102 = vmatprep.mubr.f32.mxu0 %v289_v19  ;;  %v534_v17 = vld [vmem:[%s5777_s1 + $0x650] sm:$0xff]  ;;  %v149_v18 = vld [vmem:[%s5778_s0 + $0x408] sm:$0xff] }
  0x8d   :  { %2765 = vmatpush3.msra.mxu1 %v495_v20  ;;  %2695 = vmatprep.subr.mxu0 %v478_v21  ;;  %v582_v19 = vld [vmem:[%s5777_s1 + $0x7d0] sm:$0xff]  ;;  %v148_v20 = vld [vmem:[%s5778_s0 + $0x400] sm:$0xff]  ;;  %v151_v21 = vld [vmem:[%s5778_s0 + $0x418] sm:$0xff] }
  0x8e   :  { %1103 = vmatmul.mubr.f32.gmra.mxu0 %v288_v22  ;;  %1232 = vmatprep.mubr.f32.mxu1 %v291_v23  ;;  %v549_v22 = vld [vmem:[%s5777_s1 + $0x6c8] sm:$0xff]  ;;  %v566_v23 = vld [vmem:[%s5777_s1 + $0x750] sm:$0xff] }
  0x8f   :  { %2696 = vmatpush3.msra.mxu0 %v462_v24  ;;  %1233 = vmatmul.mubr.f32.gmra.mxu1 %v290_v25  ;;  %v150_v24 = vld [vmem:[%s5778_s0 + $0x410] sm:$0xff]  ;;  %v533_v25 = vld [vmem:[%s5777_s1 + $0x648] sm:$0xff] }
  0x90   :  { %2766 = vmatprep.subr.mxu1 %v510_v26  ;;  %2697 = vmatprep.subr.mxu0 %v477_v27  ;;  %v581_v26 = vld [vmem:[%s5777_s1 + $0x7c8] sm:$0xff] }
  0x91   :  { %2767 = vmatpush3.msra.mxu1 %v494_v28  ;;  %1107 = vmatprep.mubr.f32.mxu0 %v313_v29  ;;  %v173_v27 = vld [vmem:[%s5778_s0 + $0x4c8] sm:$0xff]  ;;  %v548_v28 = vld [vmem:[%s5777_s1 + $0x6c0] sm:$0xff] }
  0x92   :  { %2698 = vmatpush3.msra.mxu0 %v461_v30  ;;  %1237 = vmatprep.mubr.f32.mxu1 %v315_v31  ;;  %v565_v29 = vld [vmem:[%s5777_s1 + $0x748] sm:$0xff]  ;;  %v172_v30 = vld [vmem:[%s5778_s0 + $0x4c0] sm:$0xff]  ;;  %v175_v31 = vld [vmem:[%s5778_s0 + $0x4d8] sm:$0xff] }
  0x93   :  { %1108 = vmatmul.mubr.f32.gmra.mxu0 %v312_v32  ;;  %2768 = vmatprep.subr.mxu1 %v509_v33  ;;  %v532_v32 = vld [vmem:[%s5777_s1 + $0x640] sm:$0xff]  ;;  %v174_v33 = vld [vmem:[%s5778_s0 + $0x4d0] sm:$0xff] }
  0x94   :  { %1238 = vmatmul.mubr.f32.gmra.mxu1 %v314_v34  ;;  %2699 = vmatprep.subr.mxu0 %v476_v35  ;;  %v580_v34 = vld [vmem:[%s5777_s1 + $0x7c0] sm:$0xff]  ;;  %v547_v35 = vld [vmem:[%s5777_s1 + $0x6b8] sm:$0xff] }
  0x95   :  { %2769 = vmatpush3.msra.mxu1 %v493_v36  ;;  %2700 = vmatpush3.msra.mxu0 %v460_v37  ;;  %v564_v36 = vld [vmem:[%s5777_s1 + $0x740] sm:$0xff]  ;;  %v197_v37 = vld [vmem:[%s5778_s0 + $0x588] sm:$0xff] }
  0x96   :  { %1307 = vmatprep.mubr.f32.mxu0 %v29_v38  ;;  %2770 = vmatprep.subr.mxu1 %v508_v39  ;;  %v531_v38 = vld [vmem:[%s5777_s1 + $0x638] sm:$0xff] }
  0x97   :  { %1308 = vmatmul.mubr.f32.vlgmr.msra.gmra.mxu0 %v28_v40  ;;  %2771 = vmatpush3.msra.mxu1 %v492_v41  ;;  %v199_v39 = vld [vmem:[%s5778_s0 + $0x598] sm:$0xff]  ;;  %v196_v40 = vld [vmem:[%s5778_s0 + $0x580] sm:$0xff] }
  0x98   :  { %1437 = vmatprep.mubr.f32.mxu1 %v31_v42  ;;  %2811 = vmatprep.subr.mxu0 %v555_v43  ;;  %v579_v41 = vld [vmem:[%s5777_s1 + $0x7b8] sm:$0xff]  ;;  %v198_v42 = vld [vmem:[%s5778_s0 + $0x590] sm:$0xff] }
  0x99   :  { %1438 = vmatmul.mubr.f32.vlgmr.msra.gmra.mxu1 %v30_v44  ;;  %2812 = vmatpush3.msra.mxu0 %v539_v45  ;;  %v546_v43 = vld [vmem:[%s5777_s1 + $0x6b0] sm:$0xff]  ;;  %v563_v44 = vld [vmem:[%s5777_s1 + $0x738] sm:$0xff]  ;;  %v221_v45 = vld [vmem:[%s5778_s0 + $0x648] sm:$0xff] }
  0x9a   :  { %2882 = vmatprep.subr.mxu1 %v587_v46  ;;  %1312 = vmatprep.mubr.f32.mxu0 %v53_v47  ;;  %v530_v46 = vld [vmem:[%s5777_s1 + $0x630] sm:$0xff]  ;;  %v223_v47 = vld [vmem:[%s5778_s0 + $0x658] sm:$0xff] }
  0x9b   :  { %2883 = vmatpush3.msra.mxu1 %v571_v48  ;;  %1313 = vmatmul.mubr.f32.gmra.mxu0 %v52_v49  ;;  %v220_v48 = vld [vmem:[%s5778_s0 + $0x640] sm:$0xff]  ;;  %v578_v49 = vld [vmem:[%s5777_s1 + $0x7b0] sm:$0xff] }
  0x9c   :  { %1442 = vmatprep.mubr.f32.mxu1 %v55_v50  ;;  %2813 = vmatprep.subr.mxu0 %v554_v51  ;;  %v222_v50 = vld [vmem:[%s5778_s0 + $0x650] sm:$0xff]  ;;  %v545_v51 = vld [vmem:[%s5777_s1 + $0x6a8] sm:$0xff] }
  0x9d   :  { %1443 = vmatmul.mubr.f32.gmra.mxu1 %v54_v52  ;;  %2814 = vmatpush3.msra.mxu0 %v538_v53  ;;  %v562_v52 = vld [vmem:[%s5777_s1 + $0x730] sm:$0xff]  ;;  %v529_v53 = vld [vmem:[%s5777_s1 + $0x628] sm:$0xff] }
  0x9e   :  { %2884 = vmatprep.subr.mxu1 %v586_v54  ;;  %1317 = vmatprep.mubr.f32.mxu0 %v77_v55  ;;  %v245_v54 = vld [vmem:[%s5778_s0 + $0x708] sm:$0xff] }
  0x9f   :  { %2815 = vmatprep.subr.mxu0 %v553_v56  ;;  %2885 = vmatpush3.msra.mxu1 %v570_v57  ;;  %v577_v55 = vld [vmem:[%s5777_s1 + $0x7a8] sm:$0xff]  ;;  %v244_v56 = vld [vmem:[%s5778_s0 + $0x700] sm:$0xff]  ;;  %v247_v57 = vld [vmem:[%s5778_s0 + $0x718] sm:$0xff] }
  0xa0   :  { %1318 = vmatmul.mubr.f32.gmra.mxu0 %v76_v58  ;;  %1447 = vmatprep.mubr.f32.mxu1 %v79_v59  ;;  %v544_v58 = vld [vmem:[%s5777_s1 + $0x6a0] sm:$0xff]  ;;  %v561_v59 = vld [vmem:[%s5777_s1 + $0x728] sm:$0xff] }
  0xa1   :  { %2816 = vmatpush3.msra.mxu0 %v537_v60  ;;  %1448 = vmatmul.mubr.f32.gmra.mxu1 %v78_v61  ;;  %v246_v60 = vld [vmem:[%s5778_s0 + $0x710] sm:$0xff]  ;;  %v528_v61 = vld [vmem:[%s5777_s1 + $0x620] sm:$0xff] }
  0xa2   :  { %2886 = vmatprep.subr.mxu1 %v585_v62  ;;  %2817 = vmatprep.subr.mxu0 %v552_v63  ;;  %v576_v62 = vld [vmem:[%s5777_s1 + $0x7a0] sm:$0xff]  ;;  %v269_v63 = vld [vmem:[%s5778_s0 + $0x7c8] sm:$0xff] }
  0xa3   :  { %2887 = vmatpush3.msra.mxu1 %v569_v0  ;;  %1322 = vmatprep.mubr.f32.mxu0 %v101_v1  ;;  %v543_v0 = vld [vmem:[%s5777_s1 + $0x698] sm:$0xff]  ;;  %v560_v1 = vld [vmem:[%s5777_s1 + $0x720] sm:$0xff] }
  0xa4   :  { %2818 = vmatpush3.msra.mxu0 %v536_v2  ;;  %1452 = vmatprep.mubr.f32.mxu1 %v103_v3  ;;  %v268_v2 = vld [vmem:[%s5778_s0 + $0x7c0] sm:$0xff]  ;;  %v271_v3 = vld [vmem:[%s5778_s0 + $0x7d8] sm:$0xff] }
  0xa5   :  { %1323 = vmatmul.mubr.f32.gmra.mxu0 %v100_v4  ;;  %2888 = vmatprep.subr.mxu1 %v584_v5  ;;  %v527_v4 = vld [vmem:[%s5777_s1 + $0x618] sm:$0xff]  ;;  %v270_v5 = vld [vmem:[%s5778_s0 + $0x7d0] sm:$0xff] }
  0xa6   :  { %1453 = vmatmul.mubr.f32.gmra.mxu1 %v102_v6  ;;  %2819 = vmatprep.subr.mxu0 %v551_v7  ;;  %v575_v6 = vld [vmem:[%s5777_s1 + $0x798] sm:$0xff]  ;;  %v293_v7 = vld [vmem:[%s5778_s0 + $0x888] sm:$0xff] }
  0xa7   :  { %2889 = vmatpush3.msra.mxu1 %v568_v8  ;;  %2820 = vmatpush3.msra.mxu0 %v535_v9  ;;  %v559_v8 = vld [vmem:[%s5777_s1 + $0x718] sm:$0xff]  ;;  %v542_v9 = vld [vmem:[%s5777_s1 + $0x690] sm:$0xff] }
  0xa8   :  { %1327 = vmatprep.mubr.f32.mxu0 %v125_v10  ;;  %2890 = vmatprep.subr.mxu1 %v583_v11  ;;  %v292_v10 = vld [vmem:[%s5778_s0 + $0x880] sm:$0xff]  ;;  %v295_v11 = vld [vmem:[%s5778_s0 + $0x898] sm:$0xff] }
  0xa9   :  { %1328 = vmatmul.mubr.f32.gmra.mxu0 %v124_v12  ;;  %1457 = vmatprep.mubr.f32.mxu1 %v127_v13  ;;  %v526_v12 = vld [vmem:[%s5777_s1 + $0x610] sm:$0xff] }
  0xaa   :  { %2891 = vmatpush3.msra.mxu1 %v567_v14  ;;  %2821 = vmatprep.subr.mxu0 %v550_v15  ;;  %v294_v13 = vld [vmem:[%s5778_s0 + $0x890] sm:$0xff]  ;;  %v541_v15 = vld [vmem:[%s5777_s1 + $0x688] sm:$0xff] }
  0xab   :  { %1458 = vmatmul.mubr.f32.gmra.mxu1 %v126_v16  ;;  %2822 = vmatpush3.msra.mxu0 %v534_v17  ;;  %v574_v14 = vld [vmem:[%s5777_s1 + $0x790] sm:$0xff]  ;;  %v317_v17 = vld [vmem:[%s5778_s0 + $0x948] sm:$0x3] }
  0xac   :  { %1332 = vmatprep.mubr.f32.mxu0 %v149_v18  ;;  %2892 = vmatprep.subr.mxu1 %v582_v19  ;;  %v558_v16 = vld [vmem:[%s5777_s1 + $0x710] sm:$0xff]  ;;  %v525_v18 = vld [vmem:[%s5777_s1 + $0x608] sm:$0xff]  ;;  %v319_v19 = vld [vmem:[%s5778_s0 + $0x958] sm:$0x3] }
  0xad   :  { %1333 = vmatmul.mubr.f32.gmra.mxu0 %v148_v20  ;;  %1462 = vmatprep.mubr.f32.mxu1 %v151_v21  ;;  %v316_v20 = vld [vmem:[%s5778_s0 + $0x940] sm:$0x3]  ;;  %v573_v21 = vld [vmem:[%s5777_s1 + $0x788] sm:$0xff] }
  0xae   :  { %2823 = vmatprep.subr.mxu0 %v549_v22  ;;  %2893 = vmatpush3.msra.mxu1 %v566_v23  ;;  %v318_v22 = vld [vmem:[%s5778_s0 + $0x950] sm:$0x3]  ;;  %v540_v23 = vld [vmem:[%s5777_s1 + $0x680] sm:$0xff] }
  0xaf   :  { %1463 = vmatmul.mubr.f32.gmra.mxu1 %v150_v24  ;;  %2824 = vmatpush3.msra.mxu0 %v533_v25  ;;  %v557_v24 = vld [vmem:[%s5777_s1 + $0x708] sm:$0xff]  ;;  %v524_v25 = vld [vmem:[%s5777_s1 + $0x600] sm:$0xff] }
  0xb0   :  { %2894 = vmatprep.subr.mxu1 %v581_v26  ;;  %1337 = vmatprep.mubr.f32.mxu0 %v173_v27  ;;  %v33_v26 = vld [vmem:[%s5778_s0 + $0x68] sm:$0xff]  ;;  %v572_v27 = vld [vmem:[%s5777_s1 + $0x780] sm:$0xff] }
  0xb1   :  { %2825 = vmatprep.subr.mxu0 %v548_v28  ;;  %2895 = vmatpush3.msra.mxu1 %v565_v29  ;;  %v32_v28 = vld [vmem:[%s5778_s0 + $0x60] sm:$0xff] }
  0xb2   :  { %1338 = vmatmul.mubr.f32.gmra.mxu0 %v172_v30  ;;  %1467 = vmatprep.mubr.f32.mxu1 %v175_v31  ;;  %v556_v29 = vld [vmem:[%s5777_s1 + $0x700] sm:$0xff]  ;;  %v35_v30 = vld [vmem:[%s5778_s0 + $0x78] sm:$0xff] }
  0xb3   :  { %2826 = vmatpush3.msra.mxu0 %v532_v32  ;;  %1468 = vmatmul.mubr.f32.gmra.mxu1 %v174_v33  ;;  %v619_v31 = vld [vmem:[%s5777_s1 + $0x8f8] sm:$0xff]  ;;  %v34_v32 = vld [vmem:[%s5778_s0 + $0x70] sm:$0xff] }
  0xb4   :  { %2896 = vmatprep.subr.mxu1 %v580_v34  ;;  %2827 = vmatprep.subr.mxu0 %v547_v35  ;;  %v603_v33 = vld [vmem:[%s5777_s1 + $0x878] sm:$0xff]  ;;  %v57_v35 = vld [vmem:[%s5778_s0 + $0x128] sm:$0xff] }
  0xb5   :  { %2897 = vmatpush3.msra.mxu1 %v564_v36  ;;  %1342 = vmatprep.mubr.f32.mxu0 %v197_v37  ;;  %v651_v34 = vld [vmem:[%s5777_s1 + $0x9f8] sm:$0xff]  ;;  %v56_v37 = vld [vmem:[%s5778_s0 + $0x120] sm:$0xff] }
  0xb6   :  { %2828 = vmatpush3.msra.mxu0 %v531_v38  ;;  %1472 = vmatprep.mubr.f32.mxu1 %v199_v39  ;;  %v635_v36 = vld [vmem:[%s5777_s1 + $0x978] sm:$0xff]  ;;  %v618_v39 = vld [vmem:[%s5777_s1 + $0x8f0] sm:$0xff] }
  0xb7   :  { %1343 = vmatmul.mubr.f32.gmra.mxu0 %v196_v40  ;;  %2898 = vmatprep.subr.mxu1 %v579_v41  ;;  %v59_v38 = vld [vmem:[%s5778_s0 + $0x138] sm:$0xff]  ;;  %v58_v40 = vld [vmem:[%s5778_s0 + $0x130] sm:$0xff] }
  0xb8   :  { %1473 = vmatmul.mubr.f32.gmra.mxu1 %v198_v42  ;;  %2829 = vmatprep.subr.mxu0 %v546_v43  ;;  %v602_v41 = vld [vmem:[%s5777_s1 + $0x870] sm:$0xff]  ;;  %v81_v43 = vld [vmem:[%s5778_s0 + $0x1e8] sm:$0xff] }
  0xb9   :  { %2899 = vmatpush3.msra.mxu1 %v563_v44  ;;  %1347 = vmatprep.mubr.f32.mxu0 %v221_v45  ;;  %v650_v42 = vld [vmem:[%s5777_s1 + $0x9f0] sm:$0xff]  ;;  %v617_v44 = vld [vmem:[%s5777_s1 + $0x8e8] sm:$0xff] }
  0xba   :  { %2830 = vmatpush3.msra.mxu0 %v530_v46  ;;  %1477 = vmatprep.mubr.f32.mxu1 %v223_v47  ;;  %v634_v45 = vld [vmem:[%s5777_s1 + $0x970] sm:$0xff]  ;;  %v80_v46 = vld [vmem:[%s5778_s0 + $0x1e0] sm:$0xff]  ;;  %v83_v47 = vld [vmem:[%s5778_s0 + $0x1f8] sm:$0xff] }
  0xbb   :  { %1348 = vmatmul.mubr.f32.gmra.mxu0 %v220_v48  ;;  %2900 = vmatprep.subr.mxu1 %v578_v49  ;;  %v601_v48 = vld [vmem:[%s5777_s1 + $0x868] sm:$0xff]  ;;  %v82_v49 = vld [vmem:[%s5778_s0 + $0x1f0] sm:$0xff] }
  0xbc   :  { %1478 = vmatmul.mubr.f32.gmra.mxu1 %v222_v50  ;;  %2831 = vmatprep.subr.mxu0 %v545_v51  ;;  %v649_v50 = vld [vmem:[%s5777_s1 + $0x9e8] sm:$0xff]  ;;  %v616_v51 = vld [vmem:[%s5777_s1 + $0x8e0] sm:$0xff] }
  0xbd   :  { %2901 = vmatpush3.msra.mxu1 %v562_v52  ;;  %2832 = vmatpush3.msra.mxu0 %v529_v53  ;;  %v633_v52 = vld [vmem:[%s5777_s1 + $0x968] sm:$0xff] }
  0xbe   :  { %1352 = vmatprep.mubr.f32.mxu0 %v245_v54  ;;  %2902 = vmatprep.subr.mxu1 %v577_v55  ;;  %v105_v53 = vld [vmem:[%s5778_s0 + $0x2a8] sm:$0xff]  ;;  %v600_v54 = vld [vmem:[%s5777_s1 + $0x860] sm:$0xff]  ;;  %v107_v55 = vld [vmem:[%s5778_s0 + $0x2b8] sm:$0xff] }
  0xbf   :  { %1353 = vmatmul.mubr.f32.gmra.mxu0 %v244_v56  ;;  %1482 = vmatprep.mubr.f32.mxu1 %v247_v57  ;;  %v104_v56 = vld [vmem:[%s5778_s0 + $0x2a0] sm:$0xff] }
  0xc0   :  { %2833 = vmatprep.subr.mxu0 %v544_v58  ;;  %2903 = vmatpush3.msra.mxu1 %v561_v59  ;;  %v648_v57 = vld [vmem:[%s5777_s1 + $0x9e0] sm:$0xff]  ;;  %v106_v58 = vld [vmem:[%s5778_s0 + $0x2b0] sm:$0xff]  ;;  %v615_v59 = vld [vmem:[%s5777_s1 + $0x8d8] sm:$0xff] }
  0xc1   :  { %1483 = vmatmul.mubr.f32.gmra.mxu1 %v246_v60  ;;  %2834 = vmatpush3.msra.mxu0 %v528_v61  ;;  %v632_v60 = vld [vmem:[%s5777_s1 + $0x960] sm:$0xff]  ;;  %v599_v61 = vld [vmem:[%s5777_s1 + $0x858] sm:$0xff] }
  0xc2   :  { %2904 = vmatprep.subr.mxu1 %v576_v62  ;;  %1357 = vmatprep.mubr.f32.mxu0 %v269_v63  ;;  %v129_v62 = vld [vmem:[%s5778_s0 + $0x368] sm:$0xff]  ;;  %v647_v63 = vld [vmem:[%s5777_s1 + $0x9d8] sm:$0xff] }
  0xc3   :  { %2835 = vmatprep.subr.mxu0 %v543_v0  ;;  %2905 = vmatpush3.msra.mxu1 %v560_v1  ;;  %v128_v0 = vld [vmem:[%s5778_s0 + $0x360] sm:$0xff]  ;;  %v131_v1 = vld [vmem:[%s5778_s0 + $0x378] sm:$0xff] }
  0xc4   :  { %1358 = vmatmul.mubr.f32.gmra.mxu0 %v268_v2  ;;  %1487 = vmatprep.mubr.f32.mxu1 %v271_v3  ;;  %v631_v2 = vld [vmem:[%s5777_s1 + $0x958] sm:$0xff]  ;;  %v614_v3 = vld [vmem:[%s5777_s1 + $0x8d0] sm:$0xff] }
  0xc5   :  { %2836 = vmatpush3.msra.mxu0 %v527_v4  ;;  %1488 = vmatmul.mubr.f32.gmra.mxu1 %v270_v5  ;;  %v130_v4 = vld [vmem:[%s5778_s0 + $0x370] sm:$0xff] }
  0xc6   :  { %2906 = vmatprep.subr.mxu1 %v575_v6  ;;  %1362 = vmatprep.mubr.f32.mxu0 %v293_v7  ;;  %v598_v5 = vld [vmem:[%s5777_s1 + $0x850] sm:$0xff]  ;;  %v153_v6 = vld [vmem:[%s5778_s0 + $0x428] sm:$0xff] }
  0xc7   :  { %2907 = vmatpush3.msra.mxu1 %v559_v8  ;;  %2837 = vmatprep.subr.mxu0 %v542_v9  ;;  %v646_v7 = vld [vmem:[%s5777_s1 + $0x9d0] sm:$0xff]  ;;  %v152_v9 = vld [vmem:[%s5778_s0 + $0x420] sm:$0xff] }
  0xc8   :  { %1363 = vmatmul.mubr.f32.gmra.mxu0 %v292_v10  ;;  %1492 = vmatprep.mubr.f32.mxu1 %v295_v11  ;;  %v155_v10 = vld [vmem:[%s5778_s0 + $0x438] sm:$0xff]  ;;  %v613_v11 = vld [vmem:[%s5777_s1 + $0x8c8] sm:$0xff] }
  0xc9   :  { %2838 = vmatpush3.msra.mxu0 %v526_v12  ;;  %1493 = vmatmul.mubr.f32.gmra.mxu1 %v294_v13  ;;  %v630_v12 = vld [vmem:[%s5777_s1 + $0x950] sm:$0xff] }
  0xca   :  { %2908 = vmatprep.subr.mxu1 %v574_v14  ;;  %2839 = vmatprep.subr.mxu0 %v541_v15  ;;  %v4650_v14 = vld [vmem:[%s5779_s2] ss:$0 sm:$0xff] }
  0xcb   :  { %2909 = vmatpush3.msra.mxu1 %v558_v16  ;;  %1367 = vmatprep.mubr.f32.mxu0 %v317_v17  ;;  %v154_v16 = vld [vmem:[%s5778_s0 + $0x430] sm:$0xff]  ;;  %v597_v17 = vld [vmem:[%s5777_s1 + $0x848] sm:$0xff] }
  0xcc   :  { %2840 = vmatpush3.msra.mxu0 %v525_v18  ;;  %1497 = vmatprep.mubr.f32.mxu1 %v319_v19  ;;  %v645_v19 = vld [vmem:[%s5777_s1 + $0x9c8] sm:$0xff] }
  0xcd   :  { %1368 = vmatmul.mubr.f32.gmra.mxu0 %v316_v20  ;;  %2910 = vmatprep.subr.mxu1 %v573_v21  ;;  %v177_v20 = vld [vmem:[%s5778_s0 + $0x4e8] sm:$0xff] }
  0xce   :  { %1498 = vmatmul.mubr.f32.gmra.mxu1 %v318_v22  ;;  %2841 = vmatprep.subr.mxu0 %v540_v23  ;;  %v612_v23 = vld [vmem:[%s5777_s1 + $0x8c0] sm:$0xff] }
  0xcf   :  { %2911 = vmatpush3.msra.mxu1 %v557_v24  ;;  %2842 = vmatpush3.msra.mxu0 %v524_v25  ;;  %v629_v24 = vld [vmem:[%s5777_s1 + $0x948] sm:$0xff] }
  0xd0   :  { %1567 = vmatprep.mubr.f32.mxu0 %v33_v26  ;;  %2912 = vmatprep.subr.mxu1 %v572_v27  ;;  %v176_v27 = vld [vmem:[%s5778_s0 + $0x4e0] sm:$0xff] }
  0xd1   :  { %1568 = vmatmul.mubr.f32.vlgmr.msra.gmra.mxu0 %v32_v28  ;;  %2913 = vmatpush3.msra.mxu1 %v556_v29  ;;  %v179_v28 = vld [vmem:[%s5778_s0 + $0x4f8] sm:$0xff] }
  0xd2   :  { %1697 = vmatprep.mubr.f32.mxu1 %v35_v30  ;;  %2953 = vmatprep.subr.mxu0 %v619_v31  ;;  %v596_v31 = vld [vmem:[%s5777_s1 + $0x840] sm:$0xff] }
  0xd3   :  { %1698 = vmatmul.mubr.f32.vlgmr.msra.gmra.mxu1 %v34_v32  ;;  %2954 = vmatpush3.msra.mxu0 %v603_v33  ;;  %v178_v32 = vld [vmem:[%s5778_s0 + $0x4f0] sm:$0xff] }
  0xd4   :  { %3024 = vmatprep.subr.mxu1 %v651_v34  ;;  %1572 = vmatprep.mubr.f32.mxu0 %v57_v35  ;;  %v644_v35 = vld [vmem:[%s5777_s1 + $0x9c0] sm:$0xff] }
  0xd5   :  { %3025 = vmatpush3.msra.mxu1 %v635_v36  ;;  %1573 = vmatmul.mubr.f32.gmra.mxu0 %v56_v37  ;;  %v611_v36 = vld [vmem:[%s5777_s1 + $0x8b8] sm:$0xff] }
  0xd6   :  { %1702 = vmatprep.mubr.f32.mxu1 %v59_v38  ;;  %2955 = vmatprep.subr.mxu0 %v618_v39  ;;  %v628_v38 = vld [vmem:[%s5777_s1 + $0x940] sm:$0xff]  ;;  %v201_v39 = vld [vmem:[%s5778_s0 + $0x5a8] sm:$0xff] }
  0xd7   :  { %1703 = vmatmul.mubr.f32.gmra.mxu1 %v58_v40  ;;  %2956 = vmatpush3.msra.mxu0 %v602_v41 }
  0xd8   :  { %3026 = vmatprep.subr.mxu1 %v650_v42  ;;  %1577 = vmatprep.mubr.f32.mxu0 %v81_v43  ;;  %v595_v43 = vld [vmem:[%s5777_s1 + $0x838] sm:$0xff] }
  0xd9   :  { %2957 = vmatprep.subr.mxu0 %v617_v44  ;;  %3027 = vmatpush3.msra.mxu1 %v634_v45  ;;  %v203_v44 = vld [vmem:[%s5778_s0 + $0x5b8] sm:$0xff] }
  0xda   :  { %1578 = vmatmul.mubr.f32.gmra.mxu0 %v80_v46  ;;  %1707 = vmatprep.mubr.f32.mxu1 %v83_v47  ;;  %v200_v46 = vld [vmem:[%s5778_s0 + $0x5a0] sm:$0xff]  ;;  %v643_v47 = vld [vmem:[%s5777_s1 + $0x9b8] sm:$0xff] }
  0xdb   :  { %2958 = vmatpush3.msra.mxu0 %v601_v48  ;;  %1708 = vmatmul.mubr.f32.gmra.mxu1 %v82_v49 }
  0xdc   :  { %3028 = vmatprep.subr.mxu1 %v649_v50  ;;  %2959 = vmatprep.subr.mxu0 %v616_v51  ;;  %v202_v50 = vld [vmem:[%s5778_s0 + $0x5b0] sm:$0xff] }
  0xdd   :  { %3029 = vmatpush3.msra.mxu1 %v633_v52  ;;  %1582 = vmatprep.mubr.f32.mxu0 %v105_v53  ;;  %v610_v51 = vld [vmem:[%s5777_s1 + $0x8b0] sm:$0xff] }
  0xde   :  { %2960 = vmatpush3.msra.mxu0 %v600_v54  ;;  %1712 = vmatprep.mubr.f32.mxu1 %v107_v55  ;;  %v627_v54 = vld [vmem:[%s5777_s1 + $0x938] sm:$0xff]  ;;  %v225_v55 = vld [vmem:[%s5778_s0 + $0x668] sm:$0xff] }
  0xdf   :  { %1583 = vmatmul.mubr.f32.gmra.mxu0 %v104_v56  ;;  %3030 = vmatprep.subr.mxu1 %v648_v57  ;;  %v594_v57 = vld [vmem:[%s5777_s1 + $0x830] sm:$0xff] }
  0xe0   :  { %1713 = vmatmul.mubr.f32.gmra.mxu1 %v106_v58  ;;  %2961 = vmatprep.subr.mxu0 %v615_v59  ;;  %v227_v58 = vld [vmem:[%s5778_s0 + $0x678] sm:$0xff] }
  0xe1   :  { %3031 = vmatpush3.msra.mxu1 %v632_v60  ;;  %2962 = vmatpush3.msra.mxu0 %v599_v61  ;;  %v224_v61 = vld [vmem:[%s5778_s0 + $0x660] sm:$0xff] }
  0xe2   :  { %1587 = vmatprep.mubr.f32.mxu0 %v129_v62  ;;  %3032 = vmatprep.subr.mxu1 %v647_v63  ;;  %v642_v62 = vld [vmem:[%s5777_s1 + $0x9b0] sm:$0xff] }
  0xe3   :  { %1588 = vmatmul.mubr.f32.gmra.mxu0 %v128_v0  ;;  %1717 = vmatprep.mubr.f32.mxu1 %v131_v1  ;;  %v2417_v8 = vpop.f32.mrf.mxu0  ;;  %v226_v0 = vld [vmem:[%s5778_s0 + $0x670] sm:$0xff]  ;;  %v609_v1 = vld [vmem:[%s5777_s1 + $0x8a8] sm:$0xff] }
  0xe4   :  { %3033 = vmatpush3.msra.mxu1 %v631_v2  ;;  %2963 = vmatprep.subr.mxu0 %v614_v3 }
  0xe5   :  { %1718 = vmatmul.mubr.f32.gmra.mxu1 %v130_v4  ;;  %2964 = vmatpush3.msra.mxu0 %v598_v5  ;;  %v2488_v13 = vpop.f32.mrf.mxu1  ;;  %v2418_v15 = vpop.f32.mrf.mxu0  ;;  %v626_v4 = vld [vmem:[%s5777_s1 + $0x930] sm:$0xff]  ;;  %v593_v5 = vld [vmem:[%s5777_s1 + $0x828] sm:$0xff] }
  0xe6   :  { %1592 = vmatprep.mubr.f32.mxu0 %v153_v6  ;;  %3034 = vmatprep.subr.mxu1 %v646_v7  ;;  %v2419_v18 = vadd.f32 %v2418_v15, %v2417_v8  ;;  %v249_v8 = vld [vmem:[%s5778_s0 + $0x728] sm:$0xff] }
  0xe7   :  { %1593 = vmatmul.mubr.f32.gmra.mxu0 %v152_v9  ;;  %1722 = vmatprep.mubr.f32.mxu1 %v155_v10  ;;  %v2489_v21 = vpop.f32.mrf.mxu1  ;;  %v2420_v22 = vpop.f32.mrf.mxu0  ;;  %v641_v9 = vld [vmem:[%s5777_s1 + $0x9a8] sm:$0xff] }
  0xe8   :  { %2965 = vmatprep.subr.mxu0 %v613_v11  ;;  %3035 = vmatpush3.msra.mxu1 %v630_v12  ;;  %v790_v25 = vadd.f32 %v2419_v18, %v4650_v14  ;;  %v2490_v26 = vadd.f32 %v2489_v21, %v2488_v13  ;;  %v248_v12 = vld [vmem:[%s5778_s0 + $0x720] sm:$0xff]  ;;  %v251_v13 = vld [vmem:[%s5778_s0 + $0x738] sm:$0xff] }
  0xe9   :  { %1723 = vmatmul.mubr.f32.gmra.mxu1 %v154_v16  ;;  %2966 = vmatpush3.msra.mxu0 %v597_v17  ;;  %v2491_v29 = vpop.f32.mrf.mxu1  ;;  %v2421_v30 = vpop.f32.mrf.mxu0  ;;  %v608_v16 = vld [vmem:[%s5777_s1 + $0x8a0] sm:$0xff]  ;;  %v625_v17 = vld [vmem:[%s5777_s1 + $0x928] sm:$0xff] }
  0xea   :  { %3036 = vmatprep.subr.mxu1 %v645_v19  ;;  %1597 = vmatprep.mubr.f32.mxu0 %v177_v20  ;;  %v4683_v33 = vadd.f32 %v2490_v26, %v790_v25  ;;  %v2422_v34 = vadd.f32 %v2421_v30, %v2420_v22  ;;  %v250_v20 = vld [vmem:[%s5778_s0 + $0x730] sm:$0xff]  ;;  %v592_v21 = vld [vmem:[%s5777_s1 + $0x820] sm:$0xff]  ;;  %v273_v25 = vld [vmem:[%s5778_s0 + $0x7e8] sm:$0xff] }
  0xeb   :  { %2967 = vmatprep.subr.mxu0 %v612_v23  ;;  %3037 = vmatpush3.msra.mxu1 %v629_v24  ;;  %v2492_v37 = vpop.f32.mrf.mxu1  ;;  %v640_v24 = vld [vmem:[%s5777_s1 + $0x9a0] sm:$0xff] }
  0xec   :  { %1598 = vmatmul.mubr.f32.gmra.mxu0 %v176_v27  ;;  %1727 = vmatprep.mubr.f32.mxu1 %v179_v28  ;;  %v795_v40 = vadd.f32 %v2422_v34, %v4650_v14  ;;  %v2493_v41 = vadd.f32 %v2492_v37, %v2491_v29  ;;  %v2423_v42 = vpop.f32.mrf.mxu0  ;;  %v607_v28 = vld [vmem:[%s5777_s1 + $0x898] sm:$0xff]  ;;  %v624_v29 = vld [vmem:[%s5777_s1 + $0x920] sm:$0xff] }
  0xed   :  { %2968 = vmatpush3.msra.mxu0 %v596_v31  ;;  %1728 = vmatmul.mubr.f32.gmra.mxu1 %v178_v32  ;;  %v2494_v45 = vpop.f32.mrf.mxu1  ;;  %v272_v32 = vld [vmem:[%s5778_s0 + $0x7e0] sm:$0xff]  ;;  %v275_v34 = vld [vmem:[%s5778_s0 + $0x7f8] sm:$0xff] }
  0xee   :  { %3038 = vmatprep.subr.mxu1 %v644_v35  ;;  %2969 = vmatprep.subr.mxu0 %v611_v36  ;;  %v4710_v48 = vadd.f32 %v2493_v41, %v795_v40  ;;  %v2424_v49 = vpop.f32.mrf.mxu0  ;;  %v591_v37 = vld [vmem:[%s5777_s1 + $0x818] sm:$0xff] }
  0xef   :  { %3039 = vmatpush3.msra.mxu1 %v628_v38  ;;  %1602 = vmatprep.mubr.f32.mxu0 %v201_v39  ;;  %v2425_v52 = vadd.f32 %v2424_v49, %v2423_v42  ;;  %v2495_v53 = vpop.f32.mrf.mxu1  ;;  %v274_v38 = vld [vmem:[%s5778_s0 + $0x7f0] sm:$0xff]  ;;  %v639_v41 = vld [vmem:[%s5777_s1 + $0x998] sm:$0xff]  ;;  %v297_v42 = vld [vmem:[%s5778_s0 + $0x8a8] sm:$0xff] }
  0xf0   :  { %2970 = vmatpush3.msra.mxu0 %v595_v43  ;;  %1732 = vmatprep.mubr.f32.mxu1 %v203_v44  ;;  %v2496_v56 = vadd.f32 %v2495_v53, %v2494_v45  ;;  %v623_v44 = vld [vmem:[%s5777_s1 + $0x918] sm:$0xff]  ;;  %v606_v45 = vld [vmem:[%s5777_s1 + $0x890] sm:$0xff] }
  0xf1   :  { %1603 = vmatmul.mubr.f32.gmra.mxu0 %v200_v46  ;;  %3040 = vmatprep.subr.mxu1 %v643_v47  ;;  %v800_v59 = vadd.f32 %v2425_v52, %v4650_v14  ;;  %v2426_v60 = vpop.f32.mrf.mxu0  ;;  %v590_v53 = vld [vmem:[%s5777_s1 + $0x810] sm:$0xff] }
  0xf2   :  { %1733 = vmatmul.mubr.f32.gmra.mxu1 %v202_v50  ;;  %2971 = vmatprep.subr.mxu0 %v610_v51  ;;  %v2497_v63 = vpop.f32.mrf.mxu1  ;;  %v296_v50 = vld [vmem:[%s5778_s0 + $0x8a0] sm:$0xff]  ;;  %v299_v51 = vld [vmem:[%s5778_s0 + $0x8b8] sm:$0xff] }
  0xf3   :  { %3041 = vmatpush3.msra.mxu1 %v627_v54  ;;  %1607 = vmatprep.mubr.f32.mxu0 %v225_v55  ;;  %v4743_v2 = vadd.f32 %v2496_v56, %v800_v59  ;;  %v2427_v3 = vpop.f32.mrf.mxu0  ;;  %v298_v54 = vld [vmem:[%s5778_s0 + $0x8b0] sm:$0xff] }
  0xf4   :  { %2972 = vmatpush3.msra.mxu0 %v594_v57  ;;  %1737 = vmatprep.mubr.f32.mxu1 %v227_v58  ;;  %v2428_v6 = vadd.f32 %v2427_v3, %v2426_v60  ;;  %v2498_v7 = vpop.f32.mrf.mxu1  ;;  %v638_v57 = vld [vmem:[%s5777_s1 + $0x990] sm:$0xff]  ;;  %v605_v58 = vld [vmem:[%s5777_s1 + $0x888] sm:$0xff] }
  0xf5   :  { %1608 = vmatmul.mubr.f32.gmra.mxu0 %v224_v61  ;;  %3042 = vmatprep.subr.mxu1 %v642_v62  ;;  %v2499_v10 = vadd.f32 %v2498_v7, %v2497_v63  ;;  %v2429_v11 = vpop.f32.mrf.mxu0  ;;  %v622_v61 = vld [vmem:[%s5777_s1 + $0x910] sm:$0xff]  ;;  %v321_v62 = vld [vmem:[%s5778_s0 + $0x968] sm:$0x3] }
  0xf6   :  { %1738 = vmatmul.mubr.f32.gmra.mxu1 %v226_v0  ;;  %2973 = vmatprep.subr.mxu0 %v609_v1  ;;  %v805_v15 = vadd.f32 %v2428_v6, %v4650_v14  ;;  %v589_v0 = vld [vmem:[%s5777_s1 + $0x808] sm:$0xff]  ;;  %v323_v1 = vld [vmem:[%s5778_s0 + $0x978] sm:$0x3] }
  0xf7   :  { %3043 = vmatpush3.msra.mxu1 %v626_v4  ;;  %2974 = vmatpush3.msra.mxu0 %v593_v5  ;;  %v2500_v18 = vpop.f32.mrf.mxu1  ;;  %v2430_v19 = vpop.f32.mrf.mxu0  ;;  %v320_v5 = vld [vmem:[%s5778_s0 + $0x960] sm:$0x3]  ;;  %v637_v6 = vld [vmem:[%s5777_s1 + $0x988] sm:$0xff] }
  0xf8   :  { %1612 = vmatprep.mubr.f32.mxu0 %v249_v8  ;;  %3044 = vmatprep.subr.mxu1 %v641_v9  ;;  %v4776_v22 = vadd.f32 %v2499_v10, %v805_v15  ;;  %v2431_v23 = vadd.f32 %v2430_v19, %v2429_v11  ;;  %v322_v8 = vld [vmem:[%s5778_s0 + $0x970] sm:$0x3]  ;;  %v604_v9 = vld [vmem:[%s5777_s1 + $0x880] sm:$0xff] }
  0xf9   :  { %1613 = vmatmul.mubr.f32.gmra.mxu0 %v248_v12  ;;  %1742 = vmatprep.mubr.f32.mxu1 %v251_v13  ;;  %v2501_v26 = vpop.f32.mrf.mxu1  ;;  %v2432_v27 = vpop.f32.mrf.mxu0  ;;  %v621_v12 = vld [vmem:[%s5777_s1 + $0x908] sm:$0xff]  ;;  %v588_v13 = vld [vmem:[%s5777_s1 + $0x800] sm:$0xff] }
  0xfa   :  { %2975 = vmatprep.subr.mxu0 %v608_v16  ;;  %3045 = vmatpush3.msra.mxu1 %v625_v17  ;;  %v810_v30 = vadd.f32 %v2431_v23, %v4650_v14  ;;  %v2502_v31 = vadd.f32 %v2501_v26, %v2500_v18  ;;  %v37_v17 = vld [vmem:[%s5778_s0 + $0x88] sm:$0xff]  ;;  %v636_v18 = vld [vmem:[%s5777_s1 + $0x980] sm:$0xff]  ;;  %v39_v26 = vld [vmem:[%s5778_s0 + $0x98] sm:$0xff] }
  0xfb   :  { %1743 = vmatmul.mubr.f32.gmra.mxu1 %v250_v20  ;;  %2976 = vmatpush3.msra.mxu0 %v592_v21  ;;  %v2503_v35 = vpop.f32.mrf.mxu1  ;;  %v2433_v36 = vpop.f32.mrf.mxu0  ;;  %v36_v21 = vld [vmem:[%s5778_s0 + $0x80] sm:$0xff] }
  0xfc   :  { %3046 = vmatprep.subr.mxu1 %v640_v24  ;;  %1617 = vmatprep.mubr.f32.mxu0 %v273_v25  ;;  %v4803_v39 = vadd.f32 %v2502_v31, %v810_v30  ;;  %v2434_v40 = vadd.f32 %v2433_v36, %v2432_v27  ;;  %v620_v23 = vld [vmem:[%s5777_s1 + $0x900] sm:$0xff]  ;;  %v683_v27 = vld [vmem:[%s5777_s1 + $0xaf8] sm:$0xff]  ;;  %v61_v36 = vld [vmem:[%s5778_s0 + $0x148] sm:$0xff] }
  0xfd   :  { %2977 = vmatprep.subr.mxu0 %v607_v28  ;;  %3047 = vmatpush3.msra.mxu1 %v624_v29  ;;  %v2504_v43 = vpop.f32.mrf.mxu1  ;;  %v38_v29 = vld [vmem:[%s5778_s0 + $0x90] sm:$0xff]  ;;  %v667_v30 = vld [vmem:[%s5777_s1 + $0xa78] sm:$0xff] }
  0xfe   :  { %1618 = vmatmul.mubr.f32.gmra.mxu0 %v272_v32  ;;  %1747 = vmatprep.mubr.f32.mxu1 %v275_v34  ;;  %v815_v46 = vadd.f32 %v2434_v40, %v4650_v14  ;;  %v2505_v47 = vadd.f32 %v2504_v43, %v2503_v35  ;;  %v2435_v49 = vpop.f32.mrf.mxu0  ;;  %v715_v35 = vld [vmem:[%s5777_s1 + $0xbf8] sm:$0xff] }
  0xff   :  { %2978 = vmatpush3.msra.mxu0 %v591_v37  ;;  %1748 = vmatmul.mubr.f32.gmra.mxu1 %v274_v38  ;;  %v2506_v52 = vpop.f32.mrf.mxu1  ;;  %v699_v40 = vld [vmem:[%s5777_s1 + $0xb78] sm:$0xff] }
 0x100   :  { %3048 = vmatprep.subr.mxu1 %v639_v41  ;;  %1622 = vmatprep.mubr.f32.mxu0 %v297_v42  ;;  %v4830_v55 = vadd.f32 %v2505_v47, %v815_v46  ;;  %v2436_v56 = vpop.f32.mrf.mxu0  ;;  %v60_v41 = vld [vmem:[%s5778_s0 + $0x140] sm:$0xff]  ;;  %v63_v43 = vld [vmem:[%s5778_s0 + $0x158] sm:$0xff]  ;;  %v62_v47 = vld [vmem:[%s5778_s0 + $0x150] sm:$0xff] }
 0x101   :  { %3049 = vmatpush3.msra.mxu1 %v623_v44  ;;  %2979 = vmatprep.subr.mxu0 %v606_v45  ;;  %v2437_v59 = vadd.f32 %v2436_v56, %v2435_v49  ;;  %v2507_v60 = vpop.f32.mrf.mxu1  ;;  %v682_v44 = vld [vmem:[%s5777_s1 + $0xaf0] sm:$0xff]  ;;  %v681_v56 = vld [vmem:[%s5777_s1 + $0xae8] sm:$0xff] }
 0x102   :  { %1623 = vmatmul.mubr.f32.gmra.mxu0 %v296_v50  ;;  %1752 = vmatprep.mubr.f32.mxu1 %v299_v51  ;;  %v2508_v63 = vadd.f32 %v2507_v60, %v2506_v52  ;;  %v666_v49 = vld [vmem:[%s5777_s1 + $0xa70] sm:$0xff] }
 0x103   :  { %2980 = vmatpush3.msra.mxu0 %v590_v53  ;;  %1753 = vmatmul.mubr.f32.gmra.mxu1 %v298_v54  ;;  %v820_v3 = vadd.f32 %v2437_v59, %v4650_v14  ;;  %v2438_v4 = vpop.f32.mrf.mxu0  ;;  %v714_v52 = vld [vmem:[%s5777_s1 + $0xbf0] sm:$0xff]  ;;  %v85_v53 = vld [vmem:[%s5778_s0 + $0x208] sm:$0xff] }
 0x104   :  { %3050 = vmatprep.subr.mxu1 %v638_v57  ;;  %2981 = vmatprep.subr.mxu0 %v605_v58  ;;  %v2509_v7 = vpop.f32.mrf.mxu1  ;;  %v698_v57 = vld [vmem:[%s5777_s1 + $0xb70] sm:$0xff] }
 0x105   :  { %3051 = vmatpush3.msra.mxu1 %v622_v61  ;;  %1627 = vmatprep.mubr.f32.mxu0 %v321_v62  ;;  %v4863_v10 = vadd.f32 %v2508_v63, %v820_v3  ;;  %v2439_v11 = vpop.f32.mrf.mxu0  ;;  %v84_v61 = vld [vmem:[%s5778_s0 + $0x200] sm:$0xff]  ;;  %v87_v62 = vld [vmem:[%s5778_s0 + $0x218] sm:$0xff] }
 0x106   :  { %2982 = vmatpush3.msra.mxu0 %v589_v0  ;;  %1757 = vmatprep.mubr.f32.mxu1 %v323_v1  ;;  %v2440_v15 = vadd.f32 %v2439_v11, %v2438_v4  ;;  %v2510_v16 = vpop.f32.mrf.mxu1  ;;  %v665_v0 = vld [vmem:[%s5777_s1 + $0xa68] sm:$0xff]  ;;  %v86_v1 = vld [vmem:[%s5778_s0 + $0x210] sm:$0xff] }
 0x107   :  { %1628 = vmatmul.mubr.f32.gmra.mxu0 %v320_v5  ;;  %3052 = vmatprep.subr.mxu1 %v637_v6  ;;  %v2511_v19 = vadd.f32 %v2510_v16, %v2509_v7  ;;  %v2441_v20 = vpop.f32.mrf.mxu0  ;;  %v713_v5 = vld [vmem:[%s5777_s1 + $0xbe8] sm:$0xff]  ;;  %v680_v6 = vld [vmem:[%s5777_s1 + $0xae0] sm:$0xff]  ;;  %v111_v16 = vld [vmem:[%s5778_s0 + $0x2d8] sm:$0xff] }
 0x108   :  { %1758 = vmatmul.mubr.f32.gmra.mxu1 %v322_v8  ;;  %2983 = vmatprep.subr.mxu0 %v604_v9  ;;  %v825_v24 = vadd.f32 %v2440_v15, %v4650_v14  ;;  %v2512_v25 = vpop.f32.mrf.mxu1  ;;  %v697_v9 = vld [vmem:[%s5777_s1 + $0xb68] sm:$0xff]  ;;  %v664_v15 = vld [vmem:[%s5777_s1 + $0xa60] sm:$0xff] }
 0x109   :  { %3053 = vmatpush3.msra.mxu1 %v621_v12  ;;  %2984 = vmatpush3.msra.mxu0 %v588_v13  ;;  %v2442_v28 = vpop.f32.mrf.mxu0  ;;  %v109_v11 = vld [vmem:[%s5778_s0 + $0x2c8] sm:$0xff] }
 0x10a   :  { %1827 = vmatprep.mubr.f32.mxu0 %v37_v17  ;;  %3054 = vmatprep.subr.mxu1 %v636_v18  ;;  %v4896_v31 = vadd.f32 %v2511_v19, %v825_v24  ;;  %v2443_v32 = vadd.f32 %v2442_v28, %v2441_v20  ;;  %v2513_v34 = vpop.f32.mrf.mxu1  ;;  %v108_v19 = vld [vmem:[%s5778_s0 + $0x2c0] sm:$0xff]  ;;  %v679_v24 = vld [vmem:[%s5777_s1 + $0xad8] sm:$0xff] }
 0x10b   :  { %1828 = vmatmul.mubr.f32.vlgmr.msra.gmra.mxu0 %v36_v21  ;;  %3055 = vmatpush3.msra.mxu1 %v620_v23  ;;  %v2514_v37 = vadd.f32 %v2513_v34, %v2512_v25  ;;  %v2444_v38 = vpop.f32.mrf.mxu0  ;;  %v712_v20 = vld [vmem:[%s5777_s1 + $0xbe0] sm:$0xff]  ;;  %v110_v23 = vld [vmem:[%s5778_s0 + $0x2d0] sm:$0xff]  ;;  %v711_v34 = vld [vmem:[%s5777_s1 + $0xbd8] sm:$0xff] }
 0x10c   :  { %1957 = vmatprep.mubr.f32.mxu1 %v39_v26  ;;  %3095 = vmatprep.subr.mxu0 %v683_v27  ;;  %v830_v42 = vadd.f32 %v2443_v32, %v4650_v14  ;;  %v696_v28 = vld [vmem:[%s5777_s1 + $0xb60] sm:$0xff]  ;;  %v133_v32 = vld [vmem:[%s5778_s0 + $0x388] sm:$0xff] }
 0x10d   :  { %1958 = vmatmul.mubr.f32.vlgmr.msra.gmra.mxu1 %v38_v29  ;;  %3096 = vmatpush3.msra.mxu0 %v667_v30  ;;  %v2515_v45 = vpop.f32.mrf.mxu1  ;;  %v2445_v46 = vpop.f32.mrf.mxu0  ;;  %v663_v29 = vld [vmem:[%s5777_s1 + $0xa58] sm:$0xff] }
 0x10e   :  { %3166 = vmatprep.subr.mxu1 %v715_v35  ;;  %1832 = vmatprep.mubr.f32.mxu0 %v61_v36  ;;  %v4923_v50 = vadd.f32 %v2514_v37, %v830_v42  ;;  %v2446_v51 = vadd.f32 %v2445_v46, %v2444_v38  ;;  %v132_v37 = vld [vmem:[%s5778_s0 + $0x380] sm:$0xff]  ;;  %v135_v38 = vld [vmem:[%s5778_s0 + $0x398] sm:$0xff]  ;;  %v678_v42 = vld [vmem:[%s5777_s1 + $0xad0] sm:$0xff] }
 0x10f   :  { %3167 = vmatpush3.msra.mxu1 %v699_v40  ;;  %1833 = vmatmul.mubr.f32.gmra.mxu0 %v60_v41  ;;  %v2516_v54 = vpop.f32.mrf.mxu1  ;;  %v695_v41 = vld [vmem:[%s5777_s1 + $0xb58] sm:$0xff]  ;;  %v662_v46 = vld [vmem:[%s5777_s1 + $0xa50] sm:$0xff] }
 0x110   :  { %1962 = vmatprep.mubr.f32.mxu1 %v63_v43  ;;  %3097 = vmatprep.subr.mxu0 %v682_v44  ;;  %v835_v58 = vadd.f32 %v2446_v51, %v4650_v14  ;;  %v2517_v59 = vadd.f32 %v2516_v54, %v2515_v45  ;;  %v2447_v60 = vpop.f32.mrf.mxu0  ;;  %v134_v45 = vld [vmem:[%s5778_s0 + $0x390] sm:$0xff]  ;;  %v157_v51 = vld [vmem:[%s5778_s0 + $0x448] sm:$0xff] }
 0x111   :  { %1963 = vmatmul.mubr.f32.gmra.mxu1 %v62_v47  ;;  %3098 = vmatpush3.msra.mxu0 %v666_v49  ;;  %v2518_v63 = vpop.f32.mrf.mxu1 }
 0x112   :  { %3168 = vmatprep.subr.mxu1 %v714_v52  ;;  %1837 = vmatprep.mubr.f32.mxu0 %v85_v53  ;;  %v4950_v3 = vadd.f32 %v2517_v59, %v835_v58  ;;  %v2448_v4 = vpop.f32.mrf.mxu0  ;;  %v710_v52 = vld [vmem:[%s5777_s1 + $0xbd0] sm:$0xff]  ;;  %v677_v59 = vld [vmem:[%s5777_s1 + $0xac8] sm:$0xff] }
 0x113   :  { %3099 = vmatprep.subr.mxu0 %v681_v56  ;;  %3169 = vmatpush3.msra.mxu1 %v698_v57  ;;  %v2449_v7 = vadd.f32 %v2448_v4, %v2447_v60  ;;  %v2519_v8 = vpop.f32.mrf.mxu1  ;;  %v156_v56 = vld [vmem:[%s5778_s0 + $0x440] sm:$0xff]  ;;  %v159_v57 = vld [vmem:[%s5778_s0 + $0x458] sm:$0xff]  ;;  %v694_v60 = vld [vmem:[%s5777_s1 + $0xb50] sm:$0xff] }
 0x114   :  { %1838 = vmatmul.mubr.f32.gmra.mxu0 %v84_v61  ;;  %1967 = vmatprep.mubr.f32.mxu1 %v87_v62  ;;  %v2520_v12 = vadd.f32 %v2519_v8, %v2518_v63  ;;  %v2450_v13 = vpop.f32.mrf.mxu0  ;;  %v158_v63 = vld [vmem:[%s5778_s0 + $0x450] sm:$0xff]  ;;  %v709_v4 = vld [vmem:[%s5777_s1 + $0xbc8] sm:$0xff]  ;;  %v676_v8 = vld [vmem:[%s5777_s1 + $0xac0] sm:$0xff] }
 0x115   :  { %3100 = vmatpush3.msra.mxu0 %v665_v0  ;;  %1968 = vmatmul.mubr.f32.gmra.mxu1 %v86_v1  ;;  %v840_v17 = vadd.f32 %v2449_v7, %v4650_v14  ;;  %v2521_v18 = vpop.f32.mrf.mxu1 }
 0x116   :  { %3170 = vmatprep.subr.mxu1 %v713_v5  ;;  %3101 = vmatprep.subr.mxu0 %v680_v6  ;;  %v2451_v21 = vpop.f32.mrf.mxu0  ;;  %v181_v5 = vld [vmem:[%s5778_s0 + $0x508] sm:$0xff] }
 0x117   :  { %3171 = vmatpush3.msra.mxu1 %v697_v9  ;;  %1842 = vmatprep.mubr.f32.mxu0 %v109_v11  ;;  %v4983_v25 = vadd.f32 %v2520_v12, %v840_v17  ;;  %v2452_v26 = vadd.f32 %v2451_v21, %v2450_v13  ;;  %v2522_v27 = vpop.f32.mrf.mxu1  ;;  %v693_v9 = vld [vmem:[%s5777_s1 + $0xb48] sm:$0xff]  ;;  %v180_v13 = vld [vmem:[%s5778_s0 + $0x500] sm:$0xff] }
 0x118   :  { %3102 = vmatpush3.msra.mxu0 %v664_v15  ;;  %1972 = vmatprep.mubr.f32.mxu1 %v111_v16  ;;  %v2523_v30 = vadd.f32 %v2522_v27, %v2521_v18  ;;  %v183_v15 = vld [vmem:[%s5778_s0 + $0x518] sm:$0xff]  ;;  %v660_v18 = vld [vmem:[%s5777_s1 + $0xa40] sm:$0xff]  ;;  %v205_v27 = vld [vmem:[%s5778_s0 + $0x5c8] sm:$0xff] }
 0x119   :  { %1843 = vmatmul.mubr.f32.gmra.mxu0 %v108_v19  ;;  %3172 = vmatprep.subr.mxu1 %v712_v20  ;;  %v845_v35 = vadd.f32 %v2452_v26, %v4650_v14  ;;  %v2453_v36 = vpop.f32.mrf.mxu0  ;;  %v708_v21 = vld [vmem:[%s5777_s1 + $0xbc0] sm:$0xff] }
 0x11a   :  { %1973 = vmatmul.mubr.f32.gmra.mxu1 %v110_v23  ;;  %3103 = vmatprep.subr.mxu0 %v679_v24  ;;  %v2524_v40 = vpop.f32.mrf.mxu1  ;;  %v675_v23 = vld [vmem:[%s5777_s1 + $0xab8] sm:$0xff]  ;;  %v692_v26 = vld [vmem:[%s5777_s1 + $0xb40] sm:$0xff] }
 0x11b   :  { %3173 = vmatpush3.msra.mxu1 %v696_v28  ;;  %3104 = vmatpush3.msra.mxu0 %v663_v29  ;;  %v5010_v43 = vadd.f32 %v2523_v30, %v845_v35  ;;  %v2454_v44 = vpop.f32.mrf.mxu0 }
 0x11c   :  { %1847 = vmatprep.mubr.f32.mxu0 %v133_v32  ;;  %3174 = vmatprep.subr.mxu1 %v711_v34  ;;  %v2455_v47 = vadd.f32 %v2454_v44, %v2453_v36  ;;  %v2525_v49 = vpop.f32.mrf.mxu1  ;;  %v659_v32 = vld [vmem:[%s5777_s1 + $0xa38] sm:$0xff]  ;;  %v204_v36 = vld [vmem:[%s5778_s0 + $0x5c0] sm:$0xff] }
 0x11d   :  { %1848 = vmatmul.mubr.f32.gmra.mxu0 %v132_v37  ;;  %1977 = vmatprep.mubr.f32.mxu1 %v135_v38  ;;  %v2526_v53 = vadd.f32 %v2525_v49, %v2524_v40  ;;  %v2559_v54 = vpop.f32.mrf.mxu0  ;;  %v207_v34 = vld [vmem:[%s5778_s0 + $0x5d8] sm:$0xff]  ;;  %v206_v40 = vld [vmem:[%s5778_s0 + $0x5d0] sm:$0xff] }
 0x11e   :  { %3175 = vmatpush3.msra.mxu1 %v695_v41  ;;  %3105 = vmatprep.subr.mxu0 %v678_v42  ;;  %v850_v58 = vadd.f32 %v2455_v47, %v4650_v14  ;;  %v661_v14 = vld [vmem:[%s5777_s1 + $0xa48] sm:$0xff]  ;;  %v674_v41 = vld [vmem:[%s5777_s1 + $0xab0] sm:$0xff] }
 0x11f   :  { %1978 = vmatmul.mubr.f32.gmra.mxu1 %v134_v45  ;;  %3106 = vmatpush3.msra.mxu0 %v662_v46  ;;  %v2630_v61 = vpop.f32.mrf.mxu1  ;;  %v2560_v62 = vpop.f32.mrf.mxu0  ;;  %v691_v45 = vld [vmem:[%s5777_s1 + $0xb38] sm:$0xff]  ;;  %v229_v46 = vld [vmem:[%s5778_s0 + $0x688] sm:$0xff]  ;;  %v658_v49 = vld [vmem:[%s5777_s1 + $0xa30] sm:$0xff] }
 0x120   :  { %1852 = vmatprep.mubr.f32.mxu0 %v157_v51  ;;  %3176 = vmatprep.subr.mxu1 %v710_v52  ;;  %v5043_v0 = vadd.f32 %v2526_v53, %v850_v58  ;;  %v2561_v1 = vadd.f32 %v2560_v62, %v2559_v54  ;;  %v231_v51 = vld [vmem:[%s5778_s0 + $0x698] sm:$0xff]  ;;  %v228_v54 = vld [vmem:[%s5778_s0 + $0x680] sm:$0xff]  ;;  %v230_v58 = vld [vmem:[%s5778_s0 + $0x690] sm:$0xff] }
 0x121   :  { %1853 = vmatmul.mubr.f32.gmra.mxu0 %v156_v56  ;;  %1982 = vmatprep.mubr.f32.mxu1 %v159_v57  ;;  %v2631_v6 = vpop.f32.mrf.mxu1  ;;  %v2562_v7 = vpop.f32.mrf.mxu0  ;;  %v706_v56 = vld [vmem:[%s5777_s1 + $0xbb0] sm:$0xff]  ;;  %v657_v62 = vld [vmem:[%s5777_s1 + $0xa28] sm:$0xff] }
 0x122   :  { %3107 = vmatprep.subr.mxu0 %v677_v59  ;;  %3177 = vmatpush3.msra.mxu1 %v694_v60  ;;  %v1050_v11 = vadd.f32 %v2561_v1, %v4683_v33  ;;  %v2632_v12 = vadd.f32 %v2631_v6, %v2630_v61  ;;  %v182_v33 = vld [vmem:[%s5778_s0 + $0x510] sm:$0xff]  ;;  %v253_v1 = vld [vmem:[%s5778_s0 + $0x748] sm:$0xff] }
 0x123   :  { %1983 = vmatmul.mubr.f32.gmra.mxu1 %v158_v63  ;;  %3108 = vmatpush3.msra.mxu0 %v661_v14  ;;  %v2633_v16 = vpop.f32.mrf.mxu1  ;;  %v2563_v17 = vpop.f32.mrf.mxu0  ;;  %v690_v61 = vld [vmem:[%s5777_s1 + $0xb30] sm:$0xff] }
 0x124   :  { %3178 = vmatprep.subr.mxu1 %v709_v4  ;;  %1857 = vmatprep.mubr.f32.mxu0 %v181_v5  ;;  %v5070_v19 = vadd.f32 %v2632_v12, %v1050_v11  ;;  %v2564_v20 = vadd.f32 %v2563_v17, %v2562_v7  ;;  %v705_v4 = vld [vmem:[%s5777_s1 + $0xba8] sm:$0xff]  ;;  %v252_v7 = vld [vmem:[%s5778_s0 + $0x740] sm:$0xff] }
 0x125   :  { %3109 = vmatprep.subr.mxu0 %v676_v8  ;;  %3179 = vmatpush3.msra.mxu1 %v693_v9  ;;  %v2634_v24 = vpop.f32.mrf.mxu1  ;;  %v255_v8 = vld [vmem:[%s5778_s0 + $0x758] sm:$0xff]  ;;  %v672_v11 = vld [vmem:[%s5777_s1 + $0xaa0] sm:$0xff]  ;;  %v689_v12 = vld [vmem:[%s5777_s1 + $0xb28] sm:$0xff] }
 0x126   :  { %1858 = vmatmul.mubr.f32.gmra.mxu0 %v180_v13  ;;  %1987 = vmatprep.mubr.f32.mxu1 %v183_v15  ;;  %v1055_v28 = vadd.f32 %v2564_v20, %v4710_v48  ;;  %v2635_v29 = vadd.f32 %v2634_v24, %v2633_v16  ;;  %v2565_v30 = vpop.f32.mrf.mxu0  ;;  %v707_v48 = vld [vmem:[%s5777_s1 + $0xbb8] sm:$0xff]  ;;  %v254_v16 = vld [vmem:[%s5778_s0 + $0x750] sm:$0xff]  ;;  %v277_v20 = vld [vmem:[%s5778_s0 + $0x808] sm:$0xff] }
 0x127   :  { %3110 = vmatpush3.msra.mxu0 %v660_v18  ;;  %1988 = vmatmul.mubr.f32.gmra.mxu1 %v182_v33  ;;  %v2636_v35 = vpop.f32.mrf.mxu1  ;;  %v704_v33 = vld [vmem:[%s5777_s1 + $0xba0] sm:$0xff]  ;;  %v671_v24 = vld [vmem:[%s5777_s1 + $0xa98] sm:$0xff] }
 0x128   :  { %3180 = vmatprep.subr.mxu1 %v708_v21  ;;  %3111 = vmatprep.subr.mxu0 %v675_v23  ;;  %v5097_v37 = vadd.f32 %v2635_v29, %v1055_v28  ;;  %v2566_v38 = vpop.f32.mrf.mxu0  ;;  %v276_v29 = vld [vmem:[%s5778_s0 + $0x800] sm:$0xff] }
 0x129   :  { %3181 = vmatpush3.msra.mxu1 %v692_v26  ;;  %1862 = vmatprep.mubr.f32.mxu0 %v205_v27  ;;  %v2567_v42 = vadd.f32 %v2566_v38, %v2565_v30  ;;  %v2637_v44 = vpop.f32.mrf.mxu1  ;;  %v688_v26 = vld [vmem:[%s5777_s1 + $0xb20] sm:$0xff]  ;;  %v279_v30 = vld [vmem:[%s5778_s0 + $0x818] sm:$0xff] }
 0x12a   :  { %3112 = vmatpush3.msra.mxu0 %v659_v32  ;;  %1992 = vmatprep.mubr.f32.mxu1 %v207_v34  ;;  %v2638_v47 = vadd.f32 %v2637_v44, %v2636_v35  ;;  %v655_v35 = vld [vmem:[%s5777_s1 + $0xa18] sm:$0xff]  ;;  %v670_v44 = vld [vmem:[%s5777_s1 + $0xa90] sm:$0xff] }
 0x12b   :  { %1863 = vmatmul.mubr.f32.gmra.mxu0 %v204_v36  ;;  %3182 = vmatprep.subr.mxu1 %v707_v48  ;;  %v1060_v52 = vadd.f32 %v2567_v42, %v4743_v2  ;;  %v2568_v53 = vpop.f32.mrf.mxu0  ;;  %v673_v2 = vld [vmem:[%s5777_s1 + $0xaa8] sm:$0xff]  ;;  %v703_v38 = vld [vmem:[%s5777_s1 + $0xb98] sm:$0xff] }
 0x12c   :  { %1993 = vmatmul.mubr.f32.gmra.mxu1 %v206_v40  ;;  %3113 = vmatprep.subr.mxu0 %v674_v41  ;;  %v2639_v57 = vpop.f32.mrf.mxu1  ;;  %v301_v40 = vld [vmem:[%s5778_s0 + $0x8c8] sm:$0xff]  ;;  %v687_v42 = vld [vmem:[%s5777_s1 + $0xb18] sm:$0xff] }
 0x12d   :  { %3183 = vmatpush3.msra.mxu1 %v691_v45  ;;  %1867 = vmatprep.mubr.f32.mxu0 %v229_v46  ;;  %v5130_v59 = vadd.f32 %v2638_v47, %v1060_v52  ;;  %v2569_v60 = vpop.f32.mrf.mxu0 }
 0x12e   :  { %3114 = vmatpush3.msra.mxu0 %v658_v49  ;;  %1997 = vmatprep.mubr.f32.mxu1 %v231_v51  ;;  %v2570_v63 = vadd.f32 %v2569_v60, %v2568_v53  ;;  %v2640_v14 = vpop.f32.mrf.mxu1  ;;  %v300_v49 = vld [vmem:[%s5778_s0 + $0x8c0] sm:$0xff]  ;;  %v303_v51 = vld [vmem:[%s5778_s0 + $0x8d8] sm:$0xff]  ;;  %v654_v53 = vld [vmem:[%s5777_s1 + $0xa10] sm:$0xff] }
 0x12f   :  { %1868 = vmatmul.mubr.f32.gmra.mxu0 %v228_v54  ;;  %3184 = vmatprep.subr.mxu1 %v706_v56  ;;  %v2641_v5 = vadd.f32 %v2640_v14, %v2639_v57  ;;  %v2571_v6 = vpop.f32.mrf.mxu0  ;;  %v702_v57 = vld [vmem:[%s5777_s1 + $0xb90] sm:$0xff]  ;;  %v653_v14 = vld [vmem:[%s5777_s1 + $0xa08] sm:$0xff] }
 0x130   :  { %1998 = vmatmul.mubr.f32.gmra.mxu1 %v230_v58  ;;  %3115 = vmatprep.subr.mxu0 %v673_v2  ;;  %v1065_v9 = vadd.f32 %v2570_v63, %v4776_v22  ;;  %v656_v22 = vld [vmem:[%s5777_s1 + $0xa20] sm:$0xff]  ;;  %v669_v58 = vld [vmem:[%s5777_s1 + $0xa88] sm:$0xff] }
 0x131   :  { %3185 = vmatpush3.msra.mxu1 %v690_v61  ;;  %3116 = vmatpush3.msra.mxu0 %v657_v62  ;;  %v2642_v13 = vpop.f32.mrf.mxu1  ;;  %v2572_v15 = vpop.f32.mrf.mxu0  ;;  %v686_v61 = vld [vmem:[%s5777_s1 + $0xb10] sm:$0xff]  ;;  %v325_v62 = vld [vmem:[%s5778_s0 + $0x988] sm:$0x3] }
 0x132   :  { %1872 = vmatprep.mubr.f32.mxu0 %v253_v1  ;;  %3186 = vmatprep.subr.mxu1 %v705_v4  ;;  %v5163_v17 = vadd.f32 %v2641_v5, %v1065_v9  ;;  %v2573_v18 = vadd.f32 %v2572_v15, %v2571_v6  ;;  %v327_v1 = vld [vmem:[%s5778_s0 + $0x998] sm:$0x3]  ;;  %v324_v6 = vld [vmem:[%s5778_s0 + $0x980] sm:$0x3]  ;;  %v326_v9 = vld [vmem:[%s5778_s0 + $0x990] sm:$0x3] }
 0x133   :  { %1873 = vmatmul.mubr.f32.gmra.mxu0 %v252_v7  ;;  %2002 = vmatprep.mubr.f32.mxu1 %v255_v8  ;;  %v2643_v21 = vpop.f32.mrf.mxu1  ;;  %v2574_v23 = vpop.f32.mrf.mxu0  ;;  %v701_v7 = vld [vmem:[%s5777_s1 + $0xb88] sm:$0xff]  ;;  %v652_v15 = vld [vmem:[%s5777_s1 + $0xa00] sm:$0xff] }
 0x134   :  { %3117 = vmatprep.subr.mxu0 %v672_v11  ;;  %3187 = vmatpush3.msra.mxu1 %v689_v12  ;;  %v1070_v27 = vadd.f32 %v2573_v18, %v4803_v39  ;;  %v2644_v28 = vadd.f32 %v2643_v21, %v2642_v13  ;;  %v278_v39 = vld [vmem:[%s5778_s0 + $0x810] sm:$0xff]  ;;  %v685_v13 = vld [vmem:[%s5777_s1 + $0xb08] sm:$0xff] }
 0x135   :  { %2003 = vmatmul.mubr.f32.gmra.mxu1 %v254_v16  ;;  %3118 = vmatpush3.msra.mxu0 %v656_v22  ;;  %v2645_v32 = vpop.f32.mrf.mxu1  ;;  %v2575_v34 = vpop.f32.mrf.mxu0  ;;  %v41_v18 = vld [vmem:[%s5778_s0 + $0xa8] sm:$0xff] }
 0x136   :  { %3188 = vmatprep.subr.mxu1 %v704_v33  ;;  %1877 = vmatprep.mubr.f32.mxu0 %v277_v20  ;;  %v5190_v36 = vadd.f32 %v2644_v28, %v1070_v27  ;;  %v2576_v48 = vadd.f32 %v2575_v34, %v2574_v23  ;;  %v700_v33 = vld [vmem:[%s5777_s1 + $0xb80] sm:$0xff]  ;;  %v43_v28 = vld [vmem:[%s5778_s0 + $0xb8] sm:$0xff] }
 0x137   :  { %3119 = vmatprep.subr.mxu0 %v671_v24  ;;  %3189 = vmatpush3.msra.mxu1 %v688_v26  ;;  %v2646_v41 = vpop.f32.mrf.mxu1  ;;  %v40_v23 = vld [vmem:[%s5778_s0 + $0xa0] sm:$0xff] }
 0x138   :  { %1878 = vmatmul.mubr.f32.gmra.mxu0 %v276_v29  ;;  %2007 = vmatprep.mubr.f32.mxu1 %v279_v30  ;;  %v1075_v45 = vadd.f32 %v2576_v48, %v4830_v55  ;;  %v2647_v46 = vadd.f32 %v2646_v41, %v2645_v32  ;;  %v2577_v47 = vpop.f32.mrf.mxu0  ;;  %v302_v55 = vld [vmem:[%s5778_s0 + $0x8d0] sm:$0xff]  ;;  %v684_v24 = vld [vmem:[%s5777_s1 + $0xb00] sm:$0xff]  ;;  %v65_v29 = vld [vmem:[%s5778_s0 + $0x168] sm:$0xff] }
 0x139   :  { %3120 = vmatpush3.msra.mxu0 %v655_v35  ;;  %2008 = vmatmul.mubr.f32.gmra.mxu1 %v278_v39  ;;  %v2648_v52 = vpop.f32.mrf.mxu1  ;;  %v42_v32 = vld [vmem:[%s5778_s0 + $0xb0] sm:$0xff]  ;;  %v67_v39 = vld [vmem:[%s5778_s0 + $0x178] sm:$0xff] }
 0x13a   :  { %3190 = vmatprep.subr.mxu1 %v703_v38  ;;  %1882 = vmatprep.mubr.f32.mxu0 %v301_v40  ;;  %v5217_v54 = vadd.f32 %v2647_v46, %v1075_v45  ;;  %v2578_v56 = vpop.f32.mrf.mxu0  ;;  %v64_v40 = vld [vmem:[%s5778_s0 + $0x160] sm:$0xff]  ;;  %v66_v46 = vld [vmem:[%s5778_s0 + $0x170] sm:$0xff] }
 0x13b   :  { %3191 = vmatpush3.msra.mxu1 %v687_v42  ;;  %3121 = vmatprep.subr.mxu0 %v670_v44  ;;  %v2579_v2 = vadd.f32 %v2578_v56, %v2577_v47  ;;  %v2649_v60 = vpop.f32.mrf.mxu1  ;;  %v89_v42 = vld [vmem:[%s5778_s0 + $0x228] sm:$0xff] }
 0x13c   :  { %1883 = vmatmul.mubr.f32.gmra.mxu0 %v300_v49  ;;  %2012 = vmatprep.mubr.f32.mxu1 %v303_v51  ;;  %v2650_v63 = vadd.f32 %v2649_v60, %v2648_v52  ;;  %v88_v52 = vld [vmem:[%s5778_s0 + $0x220] sm:$0xff] }
 0x13d   :  { %3122 = vmatpush3.msra.mxu0 %v654_v53  ;;  %2013 = vmatmul.mubr.f32.gmra.mxu1 %v302_v55  ;;  %v1080_v4 = vadd.f32 %v2579_v2, %v4863_v10  ;;  %v2580_v5 = vpop.f32.mrf.mxu0  ;;  %v668_v10 = vld [vmem:[%s5777_s1 + $0xa80] sm:$0xff]  ;;  %v90_v2 = vld [vmem:[%s5778_s0 + $0x230] sm:$0xff] }
 0x13e   :  { %3192 = vmatprep.subr.mxu1 %v702_v57  ;;  %3123 = vmatprep.subr.mxu0 %v669_v58  ;;  %v2651_v8 = vpop.f32.mrf.mxu1  ;;  %v113_v57 = vld [vmem:[%s5778_s0 + $0x2e8] sm:$0xff] }
 0x13f   :  { %3193 = vmatpush3.msra.mxu1 %v686_v61  ;;  %1887 = vmatprep.mubr.f32.mxu0 %v325_v62  ;;  %v5250_v11 = vadd.f32 %v2650_v63, %v1080_v4  ;;  %v2581_v12 = vpop.f32.mrf.mxu0 }
 0x140   :  { %3124 = vmatpush3.msra.mxu0 %v653_v14  ;;  %2017 = vmatprep.mubr.f32.mxu1 %v327_v1  ;;  %v2582_v16 = vadd.f32 %v2581_v12, %v2580_v5  ;;  %v2652_v22 = vpop.f32.mrf.mxu1  ;;  %v112_v14 = vld [vmem:[%s5778_s0 + $0x2e0] sm:$0xff]  ;;  %v137_v5 = vld [vmem:[%s5778_s0 + $0x3a8] sm:$0xff] }
 0x141   :  { %1888 = vmatmul.mubr.f32.gmra.mxu0 %v324_v6  ;;  %3194 = vmatprep.subr.mxu1 %v701_v7  ;;  %v2653_v20 = vadd.f32 %v2652_v22, %v2651_v8  ;;  %v2583_v21 = vpop.f32.mrf.mxu0  ;;  %v114_v8 = vld [vmem:[%s5778_s0 + $0x2f0] sm:$0xff]  ;;  %v161_v22 = vld [vmem:[%s5778_s0 + $0x468] sm:$0xff] }
 0x142   :  { %2018 = vmatmul.mubr.f32.gmra.mxu1 %v326_v9  ;;  %3125 = vmatprep.subr.mxu0 %v668_v10  ;;  %v1085_v26 = vadd.f32 %v2582_v16, %v4896_v31  ;;  %v2654_v27 = vpop.f32.mrf.mxu1  ;;  %v139_v10 = vld [vmem:[%s5778_s0 + $0x3b8] sm:$0xff] }
 0x143   :  { %3195 = vmatpush3.msra.mxu1 %v685_v13  ;;  %3126 = vmatpush3.msra.mxu0 %v652_v15  ;;  %v2584_v30 = vpop.f32.mrf.mxu0 }
 0x144   :  { %2087 = vmatprep.mubr.f32.mxu0 %v41_v18  ;;  %3196 = vmatprep.subr.mxu1 %v700_v33  ;;  %v5280_v34 = vadd.f32 %v2653_v20, %v1085_v26  ;;  %v2585_v31 = vadd.f32 %v2584_v30, %v2583_v21  ;;  %v2655_v35 = vpop.f32.mrf.mxu1  ;;  %v138_v20 = vld [vmem:[%s5778_s0 + $0x3b0] sm:$0xff] }
 0x145   :  { %2088 = vmatmul.mubr.f32.vlgmr.msra.gmra.mxu0 %v40_v23  ;;  %3197 = vmatpush3.msra.mxu1 %v684_v24  ;;  %v2656_v48 = vadd.f32 %v2655_v35, %v2654_v27  ;;  %v2586_v38 = vpop.f32.mrf.mxu0  ;;  %v163_v23 = vld [vmem:[%s5778_s0 + $0x478] sm:$0xff] }
 0x146   :  { %2217 = vmatprep.mubr.f32.mxu1 %v43_v28  ;;  %2092 = vmatprep.mubr.f32.mxu0 %v65_v29  ;;  %v1090_v41 = vadd.f32 %v2585_v31, %v4923_v50  ;;  %v91_v50 = vld [vmem:[%s5778_s0 + $0x238] sm:$0xff]  ;;  %v185_v29 = vld [vmem:[%s5778_s0 + $0x528] sm:$0xff]  ;;  %v162_v31 = vld [vmem:[%s5778_s0 + $0x470] sm:$0xff] }
 0x147   :  { %2218 = vmatmul.mubr.f32.vlgmr.msra.gmra.mxu1 %v42_v32  ;;  %v2657_v44 = vpop.f32.mrf.mxu1  ;;  %v2587_v45 = vpop.f32.mrf.mxu0 }
 0x148   :  { %2222 = vmatprep.mubr.f32.mxu1 %v67_v39  ;;  %v5295_v47 = vadd.f32 %v2656_v48, %v1090_v41  ;;  %v2588_v49 = vadd.f32 %v2587_v45, %v2586_v38  ;;  %v187_v39 = vld [vmem:[%s5778_s0 + $0x538] sm:$0xff] }
 0x149   :  { %2093 = vmatmul.mubr.f32.gmra.mxu0 %v64_v40  ;;  %v2658_v51 = vpop.f32.mrf.mxu1  ;;  %v184_v40 = vld [vmem:[%s5778_s0 + $0x520] sm:$0xff] }
 0x14a   :  { %2097 = vmatprep.mubr.f32.mxu0 %v89_v42  ;;  %v1095_v53 = vadd.f32 %v2588_v49, %v4950_v3  ;;  %v2659_v55 = vadd.f32 %v2658_v51, %v2657_v44  ;;  %v2589_v56 = vpop.f32.mrf.mxu0  ;;  %v115_v3 = vld [vmem:[%s5778_s0 + $0x2f8] sm:$0xff] }
 0x14b   :  { %2223 = vmatmul.mubr.f32.gmra.mxu1 %v66_v46  ;;  %v2660_v58 = vpop.f32.mrf.mxu1  ;;  %v186_v46 = vld [vmem:[%s5778_s0 + $0x530] sm:$0xff]  ;;  %v211_v51 = vld [vmem:[%s5778_s0 + $0x5f8] sm:$0xff] }
 0x14c   :  { %2227 = vmatprep.mubr.f32.mxu1 %v91_v50  ;;  %v5310_v60 = vadd.f32 %v2659_v55, %v1095_v53  ;;  %v2590_v61 = vpop.f32.mrf.mxu0  ;;  %v208_v55 = vld [vmem:[%s5778_s0 + $0x5e0] sm:$0xff] }
 0x14d   :  { %2098 = vmatmul.mubr.f32.gmra.mxu0 %v88_v52  ;;  %v2591_v62 = vadd.f32 %v2590_v61, %v2589_v56  ;;  %v2661_v63 = vpop.f32.mrf.mxu1 }
 0x14e   :  { %2102 = vmatprep.mubr.f32.mxu0 %v113_v57  ;;  %v2662_v1 = vadd.f32 %v2661_v63, %v2660_v58  ;;  %v2592_v4 = vpop.f32.mrf.mxu0  ;;  %v235_v63 = vld [vmem:[%s5778_s0 + $0x6b8] sm:$0xff] }
 0x14f   :  { %2228 = vmatmul.mubr.f32.gmra.mxu1 %v90_v2  ;;  %v1100_v6 = vadd.f32 %v2591_v62, %v4983_v25  ;;  %v2663_v7 = vpop.f32.mrf.mxu1  ;;  %v136_v25 = vld [vmem:[%s5778_s0 + $0x3a0] sm:$0xff]  ;;  %v210_v2 = vld [vmem:[%s5778_s0 + $0x5f0] sm:$0xff] }
 0x150   :  { %2232 = vmatprep.mubr.f32.mxu1 %v115_v3  ;;  %v2593_v9 = vpop.f32.mrf.mxu0 }
 0x151   :  { %2103 = vmatmul.mubr.f32.gmra.mxu0 %v112_v14  ;;  %v5328_v12 = vadd.f32 %v2662_v1, %v1100_v6  ;;  %v2594_v13 = vadd.f32 %v2593_v9, %v2592_v4  ;;  %v2664_v15 = vpop.f32.mrf.mxu1  ;;  %v232_v1 = vld [vmem:[%s5778_s0 + $0x6a0] sm:$0xff] }
 0x152   :  { %2107 = vmatprep.mubr.f32.mxu0 %v137_v5  ;;  %v2665_v16 = vadd.f32 %v2664_v15, %v2663_v7 }
 0x153   :  { %2233 = vmatmul.mubr.f32.gmra.mxu1 %v114_v8  ;;  %v1105_v18 = vadd.f32 %v2594_v13, %v5010_v43  ;;  %v2595_v33 = vpop.f32.mrf.mxu0  ;;  %v160_v43 = vld [vmem:[%s5778_s0 + $0x460] sm:$0xff]  ;;  %v234_v8 = vld [vmem:[%s5778_s0 + $0x6b0] sm:$0xff] }
 0x154   :  { %2237 = vmatprep.mubr.f32.mxu1 %v139_v10  ;;  %v2666_v21 = vpop.f32.mrf.mxu1  ;;  %v259_v10 = vld [vmem:[%s5778_s0 + $0x778] sm:$0xff] }
 0x155   :  { %2108 = vmatmul.mubr.f32.gmra.mxu0 %v136_v25  ;;  %v5343_v24 = vadd.f32 %v2665_v16, %v1105_v18  ;;  %v2596_v26 = vpop.f32.mrf.mxu0  ;;  %v256_v25 = vld [vmem:[%s5778_s0 + $0x760] sm:$0xff] }
 0x156   :  { %2112 = vmatprep.mubr.f32.mxu0 %v161_v22  ;;  %v2597_v27 = vadd.f32 %v2596_v26, %v2595_v33  ;;  %v2667_v28 = vpop.f32.mrf.mxu1  ;;  %v281_v22 = vld [vmem:[%s5778_s0 + $0x828] sm:$0xff] }
 0x157   :  { %2238 = vmatmul.mubr.f32.gmra.mxu1 %v138_v20  ;;  %v2668_v30 = vadd.f32 %v2667_v28, %v2666_v21  ;;  %v2701_v32 = vpop.f32.mrf.mxu0 }
 0x158   :  { %2242 = vmatprep.mubr.f32.mxu1 %v163_v23  ;;  %v1110_v35 = vadd.f32 %v2597_v27, %v5043_v0  ;;  %v209_v0 = vld [vmem:[%s5778_s0 + $0x5e8] sm:$0xff]  ;;  %v283_v23 = vld [vmem:[%s5778_s0 + $0x838] sm:$0xff]  ;;  %v280_v27 = vld [vmem:[%s5778_s0 + $0x820] sm:$0xff] }
 0x159   :  { %2113 = vmatmul.mubr.f32.gmra.mxu0 %v160_v43  ;;  %v2772_v48 = vpop.f32.mrf.mxu1  ;;  %v2702_v38 = vpop.f32.mrf.mxu0 }
 0x15a   :  { %2117 = vmatprep.mubr.f32.mxu0 %v185_v29  ;;  %v5361_v41 = vadd.f32 %v2668_v30, %v1110_v35  ;;  %v2703_v42 = vadd.f32 %v2702_v38, %v2701_v32  ;;  %v305_v29 = vld [vmem:[%s5778_s0 + $0x8e8] sm:$0xff] }
 0x15b   :  { %2243 = vmatmul.mubr.f32.gmra.mxu1 %v162_v31  ;;  %v2773_v44 = vpop.f32.mrf.mxu1  ;;  %v2704_v45 = vpop.f32.mrf.mxu0  ;;  %v282_v31 = vld [vmem:[%s5778_s0 + $0x830] sm:$0xff] }
 0x15c   :  { %2247 = vmatprep.mubr.f32.mxu1 %v187_v39  ;;  %v1310_v49 = vadd.f32 %v2703_v42, %v5070_v19  ;;  %v2774_v50 = vadd.f32 %v2773_v44, %v2772_v48  ;;  %v233_v19 = vld [vmem:[%s5778_s0 + $0x6a8] sm:$0xff] }
 0x15d   :  { %2118 = vmatmul.mubr.f32.gmra.mxu0 %v184_v40  ;;  %v2775_v52 = vpop.f32.mrf.mxu1  ;;  %v2705_v53 = vpop.f32.mrf.mxu0  ;;  %v304_v40 = vld [vmem:[%s5778_s0 + $0x8e0] sm:$0xff]  ;;  %v329_v44 = vld [vmem:[%s5778_s0 + $0x9a8] sm:$0x3] }
 0x15e   :  { %2122 = vmatprep.mubr.f32.mxu0 %v209_v0  ;;  %v5376_v56 = vadd.f32 %v2774_v50, %v1310_v49  ;;  %v2706_v57 = vadd.f32 %v2705_v53, %v2704_v45  ;;  %v306_v49 = vld [vmem:[%s5778_s0 + $0x8f0] sm:$0xff]  ;;  %v328_v53 = vld [vmem:[%s5778_s0 + $0x9a0] sm:$0x3] }
 0x15f   :  { %2248 = vmatmul.mubr.f32.gmra.mxu1 %v186_v46  ;;  %v2776_v58 = vpop.f32.mrf.mxu1 }
 0x160   :  { %2252 = vmatprep.mubr.f32.mxu1 %v211_v51  ;;  %v1315_v61 = vadd.f32 %v2706_v57, %v5097_v37  ;;  %v2777_v3 = vadd.f32 %v2776_v58, %v2775_v52  ;;  %v2707_v62 = vpop.f32.mrf.mxu0  ;;  %v257_v37 = vld [vmem:[%s5778_s0 + $0x768] sm:$0xff] }
 0x161   :  { %2123 = vmatmul.mubr.f32.gmra.mxu0 %v208_v55  ;;  %v2778_v14 = vpop.f32.mrf.mxu1 }
 0x162   :  { %2127 = vmatprep.mubr.f32.mxu0 %v233_v19  ;;  %v5391_v4 = vadd.f32 %v2777_v3, %v1315_v61  ;;  %v2708_v5 = vpop.f32.mrf.mxu0 }
 0x163   :  { %2253 = vmatmul.mubr.f32.gmra.mxu1 %v210_v2  ;;  %v2709_v6 = vadd.f32 %v2708_v5, %v2707_v62  ;;  %v2779_v7 = vpop.f32.mrf.mxu1  ;;  %v330_v2 = vld [vmem:[%s5778_s0 + $0x9b0] sm:$0x3] }
 0x164   :  { %2257 = vmatprep.mubr.f32.mxu1 %v235_v63  ;;  %v2780_v9 = vadd.f32 %v2779_v7, %v2778_v14 }
 0x165   :  { %2128 = vmatmul.mubr.f32.gmra.mxu0 %v232_v1  ;;  %v1320_v13 = vadd.f32 %v2709_v6, %v5130_v59  ;;  %v2710_v15 = vpop.f32.mrf.mxu0  ;;  %v258_v59 = vld [vmem:[%s5778_s0 + $0x770] sm:$0xff] }
 0x166   :  { %2132 = vmatprep.mubr.f32.mxu0 %v257_v37  ;;  %v2781_v16 = vpop.f32.mrf.mxu1 }
 0x167   :  { %2258 = vmatmul.mubr.f32.gmra.mxu1 %v234_v8  ;;  %v5409_v18 = vadd.f32 %v2780_v9, %v1320_v13  ;;  %v2711_v33 = vpop.f32.mrf.mxu0 }
 0x168   :  { %2262 = vmatprep.mubr.f32.mxu1 %v259_v10  ;;  %v2712_v20 = vadd.f32 %v2711_v33, %v2710_v15  ;;  %v2782_v21 = vpop.f32.mrf.mxu1 }
 0x169   :  { %2133 = vmatmul.mubr.f32.gmra.mxu0 %v256_v25  ;;  %v2783_v26 = vadd.f32 %v2782_v21, %v2781_v16  ;;  %v2713_v43 = vpop.f32.mrf.mxu0 }
 0x16a   :  { %2137 = vmatprep.mubr.f32.mxu0 %v281_v22  ;;  %v1325_v28 = vadd.f32 %v2712_v20, %v5163_v17  ;;  %v307_v17 = vld [vmem:[%s5778_s0 + $0x8f8] sm:$0xff] }
 0x16b   :  { %2263 = vmatmul.mubr.f32.gmra.mxu1 %v258_v59  ;;  %v2784_v30 = vpop.f32.mrf.mxu1  ;;  %v2714_v32 = vpop.f32.mrf.mxu0 }
 0x16c   :  { %2267 = vmatprep.mubr.f32.mxu1 %v283_v23  ;;  %v5427_v35 = vadd.f32 %v2783_v26, %v1325_v28  ;;  %v2715_v39 = vadd.f32 %v2714_v32, %v2713_v43 }
 0x16d   :  { %2138 = vmatmul.mubr.f32.gmra.mxu0 %v280_v27  ;;  %v2785_v48 = vpop.f32.mrf.mxu1  ;;  %v2716_v38 = vpop.f32.mrf.mxu0 }
 0x16e   :  { %2142 = vmatprep.mubr.f32.mxu0 %v305_v29  ;;  %v1330_v42 = vadd.f32 %v2715_v39, %v5190_v36  ;;  %v2786_v0 = vadd.f32 %v2785_v48, %v2784_v30  ;;  %v331_v36 = vld [vmem:[%s5778_s0 + $0x9b8] sm:$0x3] }
 0x16f   :  { %2268 = vmatmul.mubr.f32.gmra.mxu1 %v282_v31  ;;  %v2787_v45 = vpop.f32.mrf.mxu1  ;;  %v2717_v46 = vpop.f32.mrf.mxu0 }
 0x170   :  { %2272 = vmatprep.mubr.f32.mxu1 %v307_v17  ;;  %v5442_v50 = vadd.f32 %v2786_v0, %v1330_v42  ;;  %v2718_v51 = vadd.f32 %v2717_v46, %v2716_v38 }
 0x171   :  { %2143 = vmatmul.mubr.f32.gmra.mxu0 %v304_v40  ;;  %v2788_v52 = vpop.f32.mrf.mxu1 }
 0x172   :  { %2147 = vmatprep.mubr.f32.mxu0 %v329_v44  ;;  %v1335_v55 = vadd.f32 %v2718_v51, %v5217_v54  ;;  %v2789_v57 = vadd.f32 %v2788_v52, %v2787_v45  ;;  %v2719_v19 = vpop.f32.mrf.mxu0 }
 0x173   :  { %2273 = vmatmul.mubr.f32.gmra.mxu1 %v306_v49  ;;  %v2790_v58 = vpop.f32.mrf.mxu1 }
 0x174   :  { %2277 = vmatprep.mubr.f32.mxu1 %v331_v36  ;;  %v5454_v61 = vadd.f32 %v2789_v57, %v1335_v55  ;;  %v2720_v3 = vpop.f32.mrf.mxu0 }
 0x175   :  { %2148 = vmatmul.mubr.f32.gmra.mxu0 %v328_v53  ;;  %v2721_v62 = vadd.f32 %v2720_v3, %v2719_v19  ;;  %v2791_v63 = vpop.f32.mrf.mxu1 }
 0x176   :  { %v2792_v14 = vadd.f32 %v2791_v63, %v2790_v58 }
 0x177   :  { %2278 = vmatmul.mubr.f32.gmra.mxu1 %v330_v2  ;;  %v1340_v1 = vadd.f32 %v2721_v62, %v5250_v11  ;;  %v2722_v54 = vpop.f32.mrf.mxu0 }
 0x178   :  { %v2793_v5 = vpop.f32.mrf.mxu1 }
 0x179   :  { %v5457_v37 = vadd.f32 %v2792_v14, %v1340_v1  ;;  %v2723_v6 = vpop.f32.mrf.mxu0 }
 0x17a   :  { %v2724_v7 = vadd.f32 %v2723_v6, %v2722_v54  ;;  %v2794_v8 = vpop.f32.mrf.mxu1 }
 0x17b   :  { %v2795_v9 = vadd.f32 %v2794_v8, %v2793_v5  ;;  %v2725_v10 = vpop.f32.mrf.mxu0 }
 0x17c   :  { %v1345_v13 = vadd.f32 %v2724_v7, %v5280_v34  ;;  %v2796_v15 = vpop.f32.mrf.mxu1 }
 0x17d   :  { %v2726_v25 = vpop.f32.mrf.mxu0 }
 0x17e   :  { %v5460_v16 = vadd.f32 %v2795_v9, %v1345_v13  ;;  %v2727_v22 = vadd.f32 %v2726_v25, %v2725_v10  ;;  %v2797_v33 = vpop.f32.mrf.mxu1 }
 0x17f   :  { %v2798_v59 = vadd.f32 %v2797_v33, %v2796_v15  ;;  %v2728_v20 = vpop.f32.mrf.mxu0 }
 0x180   :  { %v1350_v11 = vadd.f32 %v2727_v22, %v5295_v47 }
 0x181   :  { %v2799_v21 = vpop.f32.mrf.mxu1  ;;  %v2729_v23 = vpop.f32.mrf.mxu0 }
 0x182   :  { %v5463_v26 = vadd.f32 %v2798_v59, %v1350_v11  ;;  %v2730_v43 = vadd.f32 %v2729_v23, %v2728_v20 }
 0x183   :  { %v2800_v27 = vpop.f32.mrf.mxu1 }
 0x184   :  { %v1355_v28 = vadd.f32 %v2730_v43, %v5310_v60  ;;  %v2801_v29 = vadd.f32 %v2800_v27, %v2799_v21  ;;  %v2731_v34 = vpop.f32.mrf.mxu0 }
 0x185   :  { %v2802_v30 = vpop.f32.mrf.mxu1 }
 0x186   :  { %v5466_v32 = vadd.f32 %v2801_v29, %v1355_v28  ;;  %v2732_v31 = vpop.f32.mrf.mxu0 }
 0x187   :  { %v2733_v39 = vadd.f32 %v2732_v31, %v2731_v34  ;;  %v2803_v17 = vpop.f32.mrf.mxu1 }
 0x188   :  { %v2804_v48 = vadd.f32 %v2803_v17, %v2802_v30  ;;  %v2734_v38 = vpop.f32.mrf.mxu0 }
 0x189   :  { %v1360_v47 = vadd.f32 %v2733_v39, %v5328_v12  ;;  %v2805_v40 = vpop.f32.mrf.mxu1 }
 0x18a   :  { %v2735_v42 = vpop.f32.mrf.mxu0 }
 0x18b   :  { %v5469_v0 = vadd.f32 %v2804_v48, %v1360_v47  ;;  %v2736_v44 = vadd.f32 %v2735_v42, %v2734_v38  ;;  %v2806_v45 = vpop.f32.mrf.mxu1 }
 0x18c   :  { %v2807_v46 = vadd.f32 %v2806_v45, %v2805_v40 }
 0x18d   :  { %v1365_v60 = vadd.f32 %v2736_v44, %v5343_v24  ;;  %v2737_v49 = vpop.f32.mrf.mxu0 }
 0x18e   :  { %v2808_v51 = vpop.f32.mrf.mxu1 }
 0x18f   :  { %v5472_v36 = vadd.f32 %v2807_v46, %v1365_v60  ;;  %v2738_v52 = vpop.f32.mrf.mxu0 }
 0x190   :  { %v2739_v53 = vadd.f32 %v2738_v52, %v2737_v49  ;;  %v2809_v55 = vpop.f32.mrf.mxu1 }
 0x191   :  { %v2810_v57 = vadd.f32 %v2809_v55, %v2808_v51  ;;  %v2843_v19 = vpop.f32.mrf.mxu0 }
 0x192   :  { %v1370_v12 = vadd.f32 %v2739_v53, %v5361_v41 }
 0x193   :  { %v2914_v58 = vpop.f32.mrf.mxu1  ;;  %v2844_v2 = vpop.f32.mrf.mxu0 }
 0x194   :  { %v5475_v3 = vadd.f32 %v2810_v57, %v1370_v12  ;;  %v2845_v62 = vadd.f32 %v2844_v2, %v2843_v19 }
 0x195   :  { %v2915_v63 = vpop.f32.mrf.mxu1  ;;  %v2846_v14 = vpop.f32.mrf.mxu0 }
 0x196   :  { %v1570_v24 = vadd.f32 %v2845_v62, %v5376_v56  ;;  %v2916_v1 = vadd.f32 %v2915_v63, %v2914_v58 }
 0x197   :  { %v2917_v54 = vpop.f32.mrf.mxu1  ;;  %v2847_v5 = vpop.f32.mrf.mxu0 }
 0x198   :  { %v5478_v6 = vadd.f32 %v2916_v1, %v1570_v24  ;;  %v2848_v7 = vadd.f32 %v2847_v5, %v2846_v14 }
 0x199   :  { %v2918_v8 = vpop.f32.mrf.mxu1 }
 0x19a   :  { %v1575_v9 = vadd.f32 %v2848_v7, %v5391_v4  ;;  %v2919_v10 = vadd.f32 %v2918_v8, %v2917_v54  ;;  %v2849_v41 = vpop.f32.mrf.mxu0 }
 0x19b   :  { %v2920_v13 = vpop.f32.mrf.mxu1 }
 0x19c   :  { %v5481_v15 = vadd.f32 %v2919_v10, %v1575_v9  ;;  %v2850_v25 = vpop.f32.mrf.mxu0 }
 0x19d   :  { %v2851_v22 = vadd.f32 %v2850_v25, %v2849_v41  ;;  %v2921_v33 = vpop.f32.mrf.mxu1 }
 0x19e   :  { %v2922_v59 = vadd.f32 %v2921_v33, %v2920_v13 }
 0x19f   :  { %v1580_v56 = vadd.f32 %v2851_v22, %v5409_v18  ;;  %v2852_v20 = vpop.f32.mrf.mxu0 }
 0x1a0   :  { %v2923_v11 = vpop.f32.mrf.mxu1 }
 0x1a1   :  { %v5484_v21 = vadd.f32 %v2922_v59, %v1580_v56  ;;  %v2853_v23 = vpop.f32.mrf.mxu0 }
 0x1a2   :  { %v2854_v43 = vadd.f32 %v2853_v23, %v2852_v20  ;;  %v2924_v27 = vpop.f32.mrf.mxu1 }
 0x1a3   :  { %v2925_v28 = vadd.f32 %v2924_v27, %v2923_v11  ;;  %v2855_v4 = vpop.f32.mrf.mxu0 }
 0x1a4   :  { %v1585_v29 = vadd.f32 %v2854_v43, %v5427_v35 }
 0x1a5   :  { %v2926_v34 = vpop.f32.mrf.mxu1  ;;  %v2856_v30 = vpop.f32.mrf.mxu0 }
 0x1a6   :  { %v5487_v31 = vadd.f32 %v2925_v28, %v1585_v29  ;;  %v2857_v39 = vadd.f32 %v2856_v30, %v2855_v4 }
 0x1a7   :  { %v2927_v17 = vpop.f32.mrf.mxu1  ;;  %v2858_v48 = vpop.f32.mrf.mxu0 }
 0x1a8   :  { %v1590_v18 = vadd.f32 %v2857_v39, %v5442_v50  ;;  %v2928_v38 = vadd.f32 %v2927_v17, %v2926_v34 }
 0x1a9   :  { %v2929_v47 = vpop.f32.mrf.mxu1  ;;  %v2859_v40 = vpop.f32.mrf.mxu0 }
 0x1aa   :  { %v5490_v42 = vadd.f32 %v2928_v38, %v1590_v18  ;;  %v2860_v44 = vadd.f32 %v2859_v40, %v2858_v48 }
 0x1ab   :  { %v2930_v45 = vpop.f32.mrf.mxu1 }
 0x1ac   :  { %v1595_v46 = vadd.f32 %v2860_v44, %v5454_v61  ;;  %v2931_v60 = vadd.f32 %v2930_v45, %v2929_v47  ;;  %v2861_v35 = vpop.f32.mrf.mxu0 }
 0x1ad   :  { %v2932_v49 = vpop.f32.mrf.mxu1 }
 0x1ae   :  { %v5493_v51 = vadd.f32 %v2931_v60, %v1595_v46  ;;  %v2862_v52 = vpop.f32.mrf.mxu0 }
 0x1af   :  { %v2863_v53 = vadd.f32 %v2862_v52, %v2861_v35  ;;  %v2933_v55 = vpop.f32.mrf.mxu1 }
 0x1b0   :  { %v2934_v57 = vadd.f32 %v2933_v55, %v2932_v49 }
 0x1b1   :  { %v1600_v50 = vadd.f32 %v2863_v53, %v5457_v37  ;;  %v2864_v19 = vpop.f32.mrf.mxu0 }
 0x1b2   :  { %v2935_v12 = vpop.f32.mrf.mxu1 }
 0x1b3   :  { %v5496_v58 = vadd.f32 %v2934_v57, %v1600_v50  ;;  %v2865_v2 = vpop.f32.mrf.mxu0 }
 0x1b4   :  { %v2866_v62 = vadd.f32 %v2865_v2, %v2864_v19  ;;  %v2936_v63 = vpop.f32.mrf.mxu1 }
 0x1b5   :  { %v2937_v14 = vadd.f32 %v2936_v63, %v2935_v12  ;;  %v2867_v61 = vpop.f32.mrf.mxu0 }
 0x1b6   :  { %v1605_v24 = vadd.f32 %v2866_v62, %v5460_v16  ;;  %v2938_v1 = vpop.f32.mrf.mxu1 }
 0x1b7   :  { %v2868_v54 = vpop.f32.mrf.mxu0 }
 0x1b8   :  { %v5499_v5 = vadd.f32 %v2937_v14, %v1605_v24  ;;  %v2869_v7 = vadd.f32 %v2868_v54, %v2867_v61  ;;  %v2939_v8 = vpop.f32.mrf.mxu1 }
 0x1b9   :  { %v2940_v9 = vadd.f32 %v2939_v8, %v2938_v1  ;;  %v2870_v10 = vpop.f32.mrf.mxu0 }
 0x1ba   :  { %v1610_v37 = vadd.f32 %v2869_v7, %v5463_v26 }
 0x1bb   :  { %v2941_v41 = vpop.f32.mrf.mxu1  ;;  %v2871_v13 = vpop.f32.mrf.mxu0 }
 0x1bc   :  { %v5502_v25 = vadd.f32 %v2940_v9, %v1610_v37  ;;  %v2872_v22 = vadd.f32 %v2871_v13, %v2870_v10 }
 0x1bd   :  { %v2942_v33 = vpop.f32.mrf.mxu1 }
 0x1be   :  { %v1615_v59 = vadd.f32 %v2872_v22, %v5466_v32  ;;  %v2943_v56 = vadd.f32 %v2942_v33, %v2941_v41  ;;  %v2873_v16 = vpop.f32.mrf.mxu0 }
 0x1bf   :  { %v2944_v20 = vpop.f32.mrf.mxu1 }
 0x1c0   :  { %v5505_v11 = vadd.f32 %v2943_v56, %v1615_v59  ;;  %v2874_v23 = vpop.f32.mrf.mxu0 }
 0x1c1   :  { %v2875_v43 = vadd.f32 %v2874_v23, %v2873_v16  ;;  %v2945_v27 = vpop.f32.mrf.mxu1 }
 0x1c2   :  { %5783 = vst [vmem:[#allocation2_spill] sm:$0xff] %v5505_v11  ;;  %v2946_v28 = vadd.f32 %v2945_v27, %v2944_v20  ;;  %v2876_v4 = vpop.f32.mrf.mxu0 }
 0x1c3   :  { %v1620_v26 = vadd.f32 %v2875_v43, %v5469_v0  ;;  %v2947_v29 = vpop.f32.mrf.mxu1 }
 0x1c4   :  { %v2877_v34 = vpop.f32.mrf.mxu0 }
 0x1c5   :  { %v5508_v30 = vadd.f32 %v2946_v28, %v1620_v26  ;;  %v2878_v39 = vadd.f32 %v2877_v34, %v2876_v4  ;;  %v2948_v17 = vpop.f32.mrf.mxu1 }
 0x1c6   :  { %v2949_v48 = vadd.f32 %v2948_v17, %v2947_v29 }
 0x1c7   :  { %5784 = vst [vmem:[#allocation3_spill] sm:$0xff] %v5508_v30  ;;  %v1625_v32 = vadd.f32 %v2878_v39, %v5472_v36  ;;  %v2879_v18 = vpop.f32.mrf.mxu0 }
 0x1c8   :  { %v2950_v38 = vpop.f32.mrf.mxu1 }
 0x1c9   :  { %v5511_v47 = vadd.f32 %v2949_v48, %v1625_v32  ;;  %v2880_v40 = vpop.f32.mrf.mxu0 }
 0x1ca   :  { %v2881_v44 = vadd.f32 %v2880_v40, %v2879_v18  ;;  %v2951_v45 = vpop.f32.mrf.mxu1 }
 0x1cb   :  { %5785 = vst [vmem:[#allocation4_spill] sm:$0xff] %v5511_v47  ;;  %v2952_v46 = vadd.f32 %v2951_v45, %v2950_v38  ;;  %v2985_v60 = vpop.f32.mrf.mxu0 }
 0x1cc   :  { %v1630_v0 = vadd.f32 %v2881_v44, %v5475_v3 }
 0x1cd   :  { %v3056_v35 = vpop.f32.mrf.mxu1  ;;  %v2986_v49 = vpop.f32.mrf.mxu0 }
 0x1ce   :  { %v5514_v52 = vadd.f32 %v2952_v46, %v1630_v0  ;;  %v2987_v45 = vadd.f32 %v2986_v49, %v2985_v60 }
 0x1cf   :  { %v3057_v53 = vpop.f32.mrf.mxu1  ;;  %v2988_v55 = vpop.f32.mrf.mxu0 }
 0x1d0   :  { %5786 = vst [vmem:[#allocation5_spill] sm:$0xff] %v5514_v52  ;;  %v1830_v47 = vadd.f32 %v2987_v45, %v5478_v6  ;;  %v5602_v6 = vld [vmem:[%s5780_s4] sm:$0xff] }
 0x1d1   :  { %v3059_v57 = vpop.f32.mrf.mxu1  ;;  %v2989_v50 = vpop.f32.mrf.mxu0 }
 0x1d3   :  { %v3060_v36 = vpop.f32.mrf.mxu1 }
 0x1d4   :  { %v2991_v19 = vpop.f32.mrf.mxu0  ;;  %v3061_v11 = vadd.f32 %v3060_v36, %v3059_v57 }
 0x1d5   :  { %v5516_v12 = vpop.f32.mrf.mxu1 }
 0x1d6   :  { %v2992_v2 = vpop.f32.mrf.mxu0 }
 0x1d7   :  { %v5518_v62 = vpop.f32.mrf.mxu1 }
 0x1d9   :  { %v2994_v63 = vpop.f32.mrf.mxu0 }
 0x1da   :  { %v5520_v14 = vpop.f32.mrf.mxu1 }
 0x1db   :  { %v2995_v61 = vpop.f32.mrf.mxu0 }
 0x1dc   :  { %v5522_v3 = vpop.f32.mrf.mxu1 }
 0x1dd   :  { %v5524_v24 = vpop.f32.mrf.mxu0 }
 0x1df   :  { %v5526_v1 = vpop.f32.mrf.mxu1  ;;  %v5528_v54 = vpop.f32.mrf.mxu0 }
 0x1e1   :  { %v5530_v7 = vpop.f32.mrf.mxu1  ;;  %v5532_v8 = vpop.f32.mrf.mxu0 }
 0x1e3   :  { %v5534_v9 = vpop.f32.mrf.mxu1  ;;  %v5536_v10 = vpop.f32.mrf.mxu0 }
 0x1e5   :  { %v5538_v37 = vpop.f32.mrf.mxu1 }
 0x1e6   :  { %v5540_v41 = vpop.f32.mrf.mxu0 }
 0x1e7   :  { %v5542_v13 = vpop.f32.mrf.mxu1 }
 0x1e8   :  { %v5544_v22 = vpop.f32.mrf.mxu0 }
 0x1e9   :  { %v5546_v33 = vpop.f32.mrf.mxu1 }
 0x1eb   :  { %v5548_v59 = vpop.f32.mrf.mxu0 }
 0x1ec   :  { %v5550_v56 = vpop.f32.mrf.mxu1 }
 0x1ed   :  { %v5552_v16 = vpop.f32.mrf.mxu0 }
 0x1ee   :  { %v5554_v20 = vpop.f32.mrf.mxu1 }
 0x1ef   :  { %v5556_v23 = vpop.f32.mrf.mxu0 }
 0x1f0   :  { %v5558_v43 = vpop.f32.mrf.mxu1 }
 0x1f1   :  { %v5560_v27 = vpop.f32.mrf.mxu0 }
 0x1f2   :  { %v5562_v28 = vpop.f32.mrf.mxu1 }
 0x1f3   :  { %v5564_v4 = vpop.f32.mrf.mxu0 }
 0x1f5   :  { %v5566_v26 = vpop.f32.mrf.mxu1  ;;  %v5568_v29 = vpop.f32.mrf.mxu0 }
 0x1f6   :  { %5787 = vst [vmem:[#allocation6_spill] sm:$0xff] %v5566_v26 }
 0x1f7   :  { %v5570_v34 = vpop.f32.mrf.mxu1 }
 0x1f8   :  { %5788 = vst [vmem:[#allocation7_spill] sm:$0xff] %v5570_v34  ;;  %v5572_v39 = vpop.f32.mrf.mxu0  ;;  %v2993_v34 = vadd.f32 %v2992_v2, %v2991_v19 }
 0x1f9   :  { %v5574_v17 = vpop.f32.mrf.mxu1 }
 0x1fa   :  { %5789 = vst [vmem:[#allocation8_spill] sm:$0xff] %v5574_v17  ;;  %v5576_v48 = vpop.f32.mrf.mxu0  ;;  %v2990_v17 = vadd.f32 %v2989_v50, %v2988_v55  ;;  %v2996_v50 = vadd.f32 %v2995_v61, %v2994_v63 }
 0x1fb   :  { %5790 = vst [vmem:[#allocation9_spill] sm:$0xff] %v5576_v48  ;;  %v5578_v32 = vpop.f32.mrf.mxu1 }
 0x1fc   :  { %5791 = vst [vmem:[#allocation10_spill] sm:$0xff] %v5578_v32  ;;  %v5580_v18 = vpop.f32.mrf.mxu0  ;;  %v1845_v61 = vadd.f32 %v2996_v50, %v5487_v31  ;;  %v3002_v31 = vadd.f32 %v5536_v10, %v5532_v8 }
 0x1fd   :  { %5792 = vst [vmem:[#allocation11_spill] sm:$0xff] %v5580_v18  ;;  %v5582_v38 = vpop.f32.mrf.mxu1  ;;  %v3058_v18 = vadd.f32 %v3057_v53, %v3056_v35 }
 0x1fe   :  { %5793 = vst [vmem:[#allocation12_spill] sm:$0xff] %v5582_v38  ;;  %v5584_v40 = vpop.f32.mrf.mxu0 }
 0x1ff   :  { %5794 = vst [vmem:[#allocation13_spill] sm:$0xff] %v5584_v40  ;;  %v5586_v44 = vpop.f32.mrf.mxu1  ;;  %v1960_v40 = vadd.f32 %v3058_v18, %v1830_v47 }
 0x200   :  { %5795 = vst [vmem:[#allocation14_spill] sm:$0xff] %v5586_v44  ;;  %v1835_v44 = vadd.f32 %v2990_v17, %v5481_v15  ;;  %v3064_v15 = vadd.f32 %v5518_v62, %v5516_v12  ;;  %v2999_v17 = vadd.f32 %v5528_v54, %v5524_v24  ;;  %v5617_v12 = vld [vmem:[%s5780_s4 + $0x8] sm:$0xff]  ;;  %v3067_v24 = vadd.f32 %v5522_v3, %v5520_v14  ;;  %v5635_v14 = vld [vmem:[%s5780_s4 + $0x10] sm:$0xff] }
 0x201   :  { %v5588_v46 = vpop.f32.mrf.mxu0 }
 0x202   :  { %5796 = vst [vmem:[#allocation15_spill] sm:$0xff] %v5588_v46  ;;  %v5590_v0 = vpop.f32.mrf.mxu1  ;;  %v1965_v55 = vadd.f32 %v3061_v11, %v1835_v44  ;;  %v5612_v11 = vld [vmem:[%s5781_s3] sm:$0x1] }
 0x203   :  { %5797 = vst [vmem:[#allocation16_spill] sm:$0xff] %v5590_v0  ;;  %v5592_v52 = vpop.f32.mrf.mxu0 }
 0x204   :  { %5798 = vst [vmem:[#allocation17_spill] sm:$0xff] %v5592_v52  ;;  %v5595_v30 = vpop.f32.mrf.mxu1  ;;  %v1840_v52 = vadd.f32 %v2993_v34, %v5484_v21 }
 0x205   :  { %v3127_v32 = vpop.f32.mrf.mxu0 }
 0x206   :  { %v1970_v34 = vadd.f32 %v3064_v15, %v1840_v52 }
 0x207   :  { %v3198_v38 = vpop.f32.mrf.mxu1  ;;  %v3128_v26 = vpop.f32.mrf.mxu0 }
 0x208   :  { %v3129_v60 = vadd.f32 %v3128_v26, %v3127_v32 }
 0x209   :  { %v3199_v49 = vpop.f32.mrf.mxu1  ;;  %v3130_v46 = vpop.f32.mrf.mxu0 }
 0x20a   :  { %v2090_v0 = vadd.f32 %v3129_v60, %v1960_v40  ;;  %v3200_v48 = vadd.f32 %v3199_v49, %v3198_v38  ;;  %v1975_v60 = vadd.f32 %v3067_v24, %v1845_v61  ;;  %v3008_v24 = vadd.f32 %v5552_v16, %v5548_v59 }
 0x20b   :  { %v3201_v35 = vpop.f32.mrf.mxu1  ;;  %v3131_v53 = vpop.f32.mrf.mxu0  ;;  %v3076_v59 = vadd.f32 %v5546_v33, %v5542_v13 }
 0x20c   :  { %v2220_v47 = vadd.f32 %v3200_v48, %v2090_v0  ;;  %v3132_v19 = vadd.f32 %v3131_v53, %v3130_v46  ;;  %v1850_v46 = vadd.f32 %v2999_v17, %v5490_v42  ;;  %v3070_v42 = vadd.f32 %v5530_v7, %v5526_v1  ;;  %v5649_v1 = vld [vmem:[%s5780_s4 + $0x18] sm:$0xff] }
 0x20d   :  { %v3202_v2 = vpop.f32.mrf.mxu1  ;;  %v3133_v57 = vpop.f32.mrf.mxu0 }
 0x20e   :  { %v2291_v36 = vadd.f32 %v5602_v6, %v2220_v47  ;;  %v2095_v26 = vadd.f32 %v3132_v19, %v1965_v55  ;;  %v3203_v21 = vadd.f32 %v3202_v2, %v3201_v35  ;;  %v1980_v15 = vadd.f32 %v3070_v42, %v1850_v46 }
 0x20f   :  { %v3204_v62 = vpop.f32.mrf.mxu1  ;;  %v3134_v63 = vpop.f32.mrf.mxu0  ;;  %v1855_v2 = vadd.f32 %v3002_v31, %v5493_v51  ;;  %v3073_v51 = vadd.f32 %v5538_v37, %v5534_v9  ;;  %v5666_v9 = vld [vmem:[%s5780_s4 + $0x20] sm:$0xff]  ;;  %v2306_v42 = vrot.slane %v5602_v6, 7 }
 0x210   :  { %v2340_v52 = vrot.slane %v2291_v36, 7  ;;  %v2225_v48 = vadd.f32 %v3203_v21, %v2095_v26  ;;  %v3135_v32 = vadd.f32 %v3134_v63, %v3133_v57  ;;  %v3005_v36 = vadd.f32 %v5544_v22, %v5540_v41 }
 0x211   :  { %v3205_v54 = vpop.f32.mrf.mxu1  ;;  %v3136_v18 = vpop.f32.mrf.mxu0 }
 0x212   :  { %v2360_v38 = vsel %vm2305_vm0, %v5612_v11, %v2340_v52  ;;  %v2292_v40 = vadd.f32 %v5617_v12, %v2225_v48  ;;  %v2100_v44 = vadd.f32 %v3135_v32, %v1970_v34  ;;  %v3206_v45 = vadd.f32 %v3205_v54, %v3204_v62 }
 0x213   :  { %2366 = vst.msk [vmem:[%s5782_s5] sm:$0xff] %vm2365_vm1, %v2360_v38  ;;  %v3207_v3 = vpop.f32.mrf.mxu1  ;;  %v3137_v0 = vpop.f32.mrf.mxu0  ;;  %v1985_v32 = vadd.f32 %v3073_v51, %v1855_v2  ;;  %v1860_v22 = vadd.f32 %v3005_v36, %v5496_v58  ;;  %v5683_v58 = vld [vmem:[%s5780_s4 + $0x28] sm:$0xff]  ;;  %v2309_v36 = vrot.slane %v5635_v14, 7 }
 0x214   :  { %v2341_v49 = vrot.slane %v2292_v40, 7  ;;  %v2230_v35 = vadd.f32 %v3206_v45, %v2100_v44  ;;  %v3138_v53 = vadd.f32 %v3137_v0, %v3136_v18  ;;  %v3011_v0 = vadd.f32 %v5560_v27, %v5556_v23 }
 0x215   :  { %v3208_v8 = vpop.f32.mrf.mxu1  ;;  %v3139_v10 = vpop.f32.mrf.mxu0  ;;  %v2307_v23 = vrot.slane %v5617_v12, 7  ;;  %v3014_v12 = vadd.f32 %v5568_v29, %v5564_v4  ;;  %v5799_v4 = vld [vmem:[#allocation9_spill] sm:$0xff] }
 0x216   :  { %v2342_v55 = vsel %vm2305_vm0, %v2340_v52, %v2341_v49  ;;  %v2293_v50 = vadd.f32 %v5635_v14, %v2230_v35  ;;  %v2105_v47 = vadd.f32 %v3138_v53, %v1975_v60  ;;  %v3209_v19 = vadd.f32 %v3208_v8, %v3207_v3 }
 0x217   :  { %2367 = vst.msk [vmem:[%s5782_s5 + $0x8] sm:$0xff] %vm2365_vm1, %v2342_v55  ;;  %v3210_v7 = vpop.f32.mrf.mxu1  ;;  %v3140_v57 = vpop.f32.mrf.mxu0  ;;  %v1865_v3 = vadd.f32 %v3008_v24, %v5499_v5  ;;  %v1990_v60 = vadd.f32 %v3076_v59, %v1860_v22  ;;  %v3079_v5 = vadd.f32 %v5554_v20, %v5550_v56  ;;  %v5699_v56 = vld [vmem:[%s5780_s4 + $0x30] sm:$0x1]  ;;  %v3017_v29 = vadd.f32 %v5799_v4, %v5572_v39 }
 0x218   :  { %v2343_v26 = vrot.slane %v2293_v50, 7  ;;  %v2235_v21 = vadd.f32 %v3209_v19, %v2105_v47  ;;  %v3141_v34 = vadd.f32 %v3140_v57, %v3139_v10  ;;  %v2315_v4 = vrot.slane %v5683_v58, 7 }
 0x219   :  { %v3211_v17 = vpop.f32.mrf.mxu1  ;;  %v3142_v62 = vpop.f32.mrf.mxu0  ;;  %v1995_v19 = vadd.f32 %v3079_v5, %v1865_v3  ;;  %v5806_v5 = vld [vmem:[#allocation8_spill] sm:$0xff] }
 0x21a   :  { %v2344_v63 = vsel %vm2305_vm0, %v2341_v49, %v2343_v26  ;;  %v2294_v61 = vadd.f32 %v5649_v1, %v2235_v21  ;;  %v2110_v52 = vadd.f32 %v3141_v34, %v1980_v15  ;;  %v3212_v48 = vadd.f32 %v3211_v17, %v3210_v7 }
 0x21b   :  { %2368 = vst.msk [vmem:[%s5782_s5 + $0x10] sm:$0xff] %vm2365_vm1, %v2344_v63  ;;  %v3213_v37 = vpop.f32.mrf.mxu1  ;;  %v3143_v41 = vpop.f32.mrf.mxu0  ;;  %v1870_v15 = vadd.f32 %v3011_v0, %v5502_v25  ;;  %v3082_v25 = vadd.f32 %v5562_v28, %v5558_v43  ;;  %v2308_v21 = vsel %vm2305_vm0, %v2306_v42, %v2307_v23 }
 0x21c   :  { %v2345_v54 = vrot.slane %v2294_v61, 7  ;;  %v2240_v18 = vadd.f32 %v3212_v48, %v2110_v52  ;;  %v3144_v38 = vadd.f32 %v3143_v41, %v3142_v62  ;;  %v5800_v52 = vld [vmem:[#allocation2_spill] sm:$0xff]  ;;  %v2311_v41 = vrot.slane %v5649_v1, 7 }
 0x21d   :  { %v3214_v16 = vpop.f32.mrf.mxu1  ;;  %v3145_v40 = vpop.f32.mrf.mxu0  ;;  %v2000_v61 = vadd.f32 %v3082_v25, %v1870_v15  ;;  %v1875_v48 = vadd.f32 %v3014_v12, %v5800_v52  ;;  %v2310_v1 = vsel %vm2305_vm0, %v2307_v23, %v2309_v36  ;;  %v5808_v12 = vld [vmem:[#allocation4_spill] sm:$0xff]  ;;  %v5813_v52 = vld [vmem:[#allocation5_spill] sm:$0xff] }
 0x21e   :  { %v2346_v44 = vsel %vm2305_vm0, %v2343_v26, %v2345_v54  ;;  %v2295_v45 = vadd.f32 %v5666_v9, %v2240_v18  ;;  %v2115_v46 = vadd.f32 %v3144_v38, %v1985_v32  ;;  %v3215_v31 = vadd.f32 %v3214_v16, %v3213_v37  ;;  %v5801_v18 = vld [vmem:[#allocation6_spill] sm:$0xff]  ;;  %v5802_v38 = vld [vmem:[#allocation7_spill] sm:$0xff] }
 0x21f   :  { %2369 = vst.msk [vmem:[%s5782_s5 + $0x18] sm:$0xff] %vm2365_vm1, %v2346_v44  ;;  %v3216_v13 = vpop.f32.mrf.mxu1  ;;  %v3146_v33 = vpop.f32.mrf.mxu0  ;;  %v3085_v59 = vadd.f32 %v5802_v38, %v5801_v18  ;;  %v2312_v15 = vsel %vm2305_vm0, %v2309_v36, %v2311_v41  ;;  %v2317_v38 = vrot.slane %v5699_v56, 7 }
 0x220   :  { %v2347_v49 = vrot.slane %v2295_v45, 7  ;;  %v2245_v35 = vadd.f32 %v3215_v31, %v2115_v46  ;;  %v3147_v53 = vadd.f32 %v3146_v33, %v3145_v40  ;;  %v5803_v45 = vld [vmem:[#allocation3_spill] sm:$0xff] }
 0x221   :  { %v3217_v27 = vpop.f32.mrf.mxu1  ;;  %v3148_v8 = vpop.f32.mrf.mxu0  ;;  %v5804_v33 = vld [vmem:[#allocation11_spill] sm:$0xff] }
 0x222   :  { %v2348_v10 = vsel %vm2305_vm0, %v2345_v54, %v2347_v49  ;;  %v2296_v55 = vadd.f32 %v5683_v58, %v2245_v35  ;;  %v2120_v50 = vadd.f32 %v3147_v53, %v1990_v60  ;;  %v3218_v47 = vadd.f32 %v3217_v27, %v3216_v13  ;;  %v5805_v60 = vld [vmem:[#allocation13_spill] sm:$0xff]  ;;  %v5807_v27 = vld [vmem:[#allocation10_spill] sm:$0xff] }
 0x223   :  { %2370 = vst.msk [vmem:[%s5782_s5 + $0x20] sm:$0xff] %vm2365_vm1, %v2348_v10  ;;  %v3219_v20 = vpop.f32.mrf.mxu1  ;;  %v3149_v6 = vpop.f32.mrf.mxu0  ;;  %v2005_v13 = vadd.f32 %v3085_v59, %v1875_v48 }
 0x224   :  { %v2349_v2 = vrot.slane %v2296_v55, 7  ;;  %v2250_v7 = vadd.f32 %v3218_v47, %v2120_v50  ;;  %v3150_v57 = vadd.f32 %v3149_v6, %v3148_v8 }
 0x225   :  { %v3220_v26 = vpop.f32.mrf.mxu1  ;;  %v3151_v34 = vpop.f32.mrf.mxu0 }
 0x226   :  { %v2350_v51 = vsel %vm2305_vm0, %v2347_v49, %v2349_v2  ;;  %v2297_v17 = vadd.f32 %v5699_v56, %v2250_v7  ;;  %v2326_v62 = vadd.f32 %v2306_v42, %v2250_v7  ;;  %v2125_v63 = vadd.f32 %v3150_v57, %v1995_v19  ;;  %v5809_v7 = vld [vmem:[#allocation15_spill] sm:$0xff]  ;;  %v5810_v57 = vld [vmem:[#allocation17_spill] sm:$0xff] }
 0x227   :  { %2371 = vst.msk [vmem:[%s5782_s5 + $0x28] sm:$0xff] %vm2365_vm1, %v2350_v51  ;;  %v3221_v43 = vadd.f32 %v3220_v26, %v3219_v20  ;;  %v3222_v28 = vpop.f32.mrf.mxu1  ;;  %v3152_v14 = vpop.f32.mrf.mxu0  ;;  %v3020_v49 = vadd.f32 %v5805_v60, %v5804_v33  ;;  %v3088_v42 = vadd.f32 %v5807_v27, %v5806_v5  ;;  %v2313_v19 = vrot.slane %v5666_v9, 7  ;;  %v5812_v9 = vld [vmem:[#allocation14_spill] sm:$0xff] }
 0x228   :  { %v2351_v32 = vrot.slane %v2297_v17, 7  ;;  %v2363_v24 = vsel %vm2305_vm0, %v5612_v11, %v2326_v62  ;;  %v3153_v37 = vadd.f32 %v3152_v14, %v3151_v34  ;;  %v1880_v11 = vadd.f32 %v3017_v29, %v5803_v45  ;;  %v5811_v17 = vld [vmem:[#allocation12_spill] sm:$0xff] }
 0x229   :  { %2373 = vst.msk [vmem:[%s5782_s5 + $0x38] sm:$0xff] %vm2365_vm1, %v2363_v24  ;;  %v2255_v39 = vadd.f32 %v3221_v43, %v2125_v63  ;;  %v3223_v22 = vpop.f32.mrf.mxu1  ;;  %v3154_v54 = vpop.f32.mrf.mxu0  ;;  %v3023_v25 = vadd.f32 %v5810_v57, %v5809_v7  ;;  %v3091_v62 = vadd.f32 %v5812_v9, %v5811_v17  ;;  %v2314_v29 = vsel %vm2305_vm0, %v2311_v41, %v2313_v19 }
 0x22a   :  { %v2130_v16 = vadd.f32 %v3153_v37, %v2000_v61  ;;  %v3224_v40 = vadd.f32 %v3223_v22, %v3222_v28  ;;  %v2352_v44 = vsel %vm2305_vm0, %v2349_v2, %v2351_v32  ;;  %v2010_v47 = vadd.f32 %v3088_v42, %v1880_v11  ;;  %v5814_v22 = vld [vmem:[#allocation16_spill] sm:$0xff] }
 0x22b   :  { %v2327_v46 = vadd.f32 %v2308_v21, %v2255_v39  ;;  %v3225_v31 = vpop.f32.mrf.mxu1  ;;  %v3155_v3 = vpop.f32.mrf.mxu0  ;;  %v2362_v0 = vsel %vm2361_vm2, %v2352_v44, 0.0  ;;  %v1885_v2 = vadd.f32 %v3020_v49, %v5808_v12  ;;  %v1890_v48 = vadd.f32 %v3023_v25, %v5813_v52 }
 0x22c   :  { %v2260_v35 = vadd.f32 %v3224_v40, %v2130_v16  ;;  %v3156_v53 = vadd.f32 %v3155_v3, %v3154_v54  ;;  %2372 = vst.msk [vmem:[%s5782_s5 + $0x30] sm:$0xff] %vm2365_vm1, %v2362_v0  ;;  %v3094_v54 = vadd.f32 %v5595_v30, %v5814_v22  ;;  %v2316_v59 = vsel %vm2305_vm0, %v2313_v19, %v2315_v4 }
 0x22d   :  { %2374 = vst.msk [vmem:[%s5782_s5 + $0x40] sm:$0xff] %vm2365_vm1, %v2327_v46  ;;  %v3226_v23 = vpop.f32.mrf.mxu1  ;;  %v3157_v8 = vpop.f32.mrf.mxu0  ;;  %v2015_v14 = vadd.f32 %v3091_v62, %v1885_v2  ;;  %v2318_v3 = vsel %vm2305_vm0, %v2315_v4, %v2317_v38 }
 0x22e   :  { %v2328_v10 = vadd.f32 %v2310_v1, %v2260_v35  ;;  %v2135_v55 = vadd.f32 %v3156_v53, %v2005_v13  ;;  %v3227_v50 = vadd.f32 %v3226_v23, %v3225_v31  ;;  %v2020_v44 = vadd.f32 %v3094_v54, %v1890_v48 }
 0x22f   :  { %v3228_v20 = vpop.f32.mrf.mxu1  ;;  %v3158_v6 = vpop.f32.mrf.mxu0 }
 0x230   :  { %2375 = vst.msk [vmem:[%s5782_s5 + $0x48] sm:$0xff] %vm2365_vm1, %v2328_v10  ;;  %v2265_v26 = vadd.f32 %v3227_v50, %v2135_v55  ;;  %v3159_v21 = vadd.f32 %v3158_v6, %v3157_v8 }
 0x231   :  { %v3229_v34 = vpop.f32.mrf.mxu1  ;;  %v3160_v51 = vpop.f32.mrf.mxu0 }
 0x232   :  { %v2329_v36 = vadd.f32 %v2312_v15, %v2265_v26  ;;  %v2140_v63 = vadd.f32 %v3159_v21, %v2010_v47  ;;  %v3230_v61 = vadd.f32 %v3229_v34, %v3228_v20 }
 0x233   :  { %v3231_v43 = vpop.f32.mrf.mxu1  ;;  %v3161_v28 = vpop.f32.mrf.mxu0 }
 0x234   :  { %2376 = vst.msk [vmem:[%s5782_s5 + $0x50] sm:$0xff] %vm2365_vm1, %v2329_v36  ;;  %v2270_v32 = vadd.f32 %v3230_v61, %v2140_v63  ;;  %v3162_v24 = vadd.f32 %v3161_v28, %v3160_v51 }
 0x235   :  { %v3232_v37 = vpop.f32.mrf.mxu1  ;;  %v3163_v39 = vpop.f32.mrf.mxu0 }
 0x236   :  { %v2330_v58 = vadd.f32 %v2314_v29, %v2270_v32  ;;  %v2145_v18 = vadd.f32 %v3162_v24, %v2015_v14  ;;  %v3233_v41 = vadd.f32 %v3232_v37, %v3231_v43 }
 0x237   :  { %v3234_v16 = vpop.f32.mrf.mxu1  ;;  %v3164_v40 = vpop.f32.mrf.mxu0 }
 0x238   :  { %2377 = vst.msk [vmem:[%s5782_s5 + $0x58] sm:$0xff] %vm2365_vm1, %v2330_v58  ;;  %v2275_v45 = vadd.f32 %v3233_v41, %v2145_v18  ;;  %v3165_v11 = vadd.f32 %v3164_v40, %v3163_v39 }
 0x239   :  { %v3235_v46 = vpop.f32.mrf.mxu1 }
 0x23a   :  { %v2331_v1 = vadd.f32 %v2316_v59, %v2275_v45  ;;  %v2150_v30 = vadd.f32 %v3165_v11, %v2020_v44  ;;  %v3236_v31 = vadd.f32 %v3235_v46, %v3234_v16 }
 0x23c   :  { %2378 = vst.msk [vmem:[%s5782_s5 + $0x60] sm:$0xff] %vm2365_vm1, %v2331_v1  ;;  %v2280_v56 = vadd.f32 %v3236_v31, %v2150_v30 }
 0x23e   :  { %v2332_v0 = vadd.f32 %v2318_v3, %v2280_v56 }
 0x240   :  { %v2364_v13 = vsel %vm2361_vm2, %v2332_v0, 0.0 }
 0x241   :  { %2379 = vst.msk [vmem:[%s5782_s5 + $0x68] sm:$0xff] %vm2365_vm1, %v2364_v13 }

// kernel: vit_forward.3
= control target key start
LH: loop header
LB: loop body
LE: loop exit
PB: predicated region body
PF: predicated region fallthrough
CT: control target
= control target key end

     0   :  { %s7808_s0 = inlined_call_operand.vmem [shape: f32[112,32], index: 0, kind: input, shape index: {}]   ;;  %s7809_s1 = inlined_call_operand.vmem [shape: f32[2,1,32], index: 1, kind: input, shape index: {}]   ;;  %s7810_s2 = inlined_call_operand.vmem [shape: f32[2,1,32], index: 2, kind: input, shape index: {}]   ;;  %s7811_s3 = inlined_call_operand.vmem [shape: bf16[2,32,96], index: 3, kind: input, shape index: {}]   ;;  %s7812_s4 = inlined_call_operand.vmem [shape: f32[2,1,96], index: 4, kind: input, shape index: {}]   ;;  %s7813_s5 = inlined_call_operand.vmem [shape: bf16[2,32,32], index: 5, kind: input, shape index: {}]   ;;  %s7814_s6 = inlined_call_operand.vmem [shape: f32[2,1,32], index: 6, kind: input, shape index: {}]   ;;  %s7815_s7 = inlined_call_operand.vmem [shape: f32[2,1,32], index: 7, kind: input, shape index: {}]   ;;  %s7816_s8 = inlined_call_operand.vmem [shape: f32[2,1,32], index: 8, kind: input, shape index: {}]   ;;  %s7817_s9 = inlined_call_operand.vmem [shape: bf16[2,32,64], index: 9, kind: input, shape index: {}]   ;;  %s7818_s10 = inlined_call_operand.vmem [shape: f32[2,1,64], index: 10, kind: input, shape index: {}]   ;;  %s7819_s11 = inlined_call_operand.vmem [shape: bf16[2,64,32], index: 11, kind: input, shape index: {}]   ;;  %s7820_s12 = inlined_call_operand.vmem [shape: f32[2,1,32], index: 12, kind: input, shape index: {}]   ;;  %s7821_s13 = inlined_call_operand.vmem [shape: bf16[32,128], index: 13, kind: input, shape index: {}]   ;;  %s7822_s14 = inlined_call_operand.vmem [shape: f32[1,128], index: 14, kind: input, shape index: {}]   ;;  %s7823_s15 = inlined_call_operand.hbm [shape: f32[2,128], index: 15, kind: output, shape index: {}]  }
   0x1   :  { %7834 = sst [smem:[#allocation21_spill]] %s7811_s3 }
   0x2   :  { %7835 = sst [smem:[#allocation22_spill]] %s7812_s4 }
   0x3   :  { %7836 = sst [smem:[#allocation23_spill]] %s7813_s5 }
   0x4   :  { %7837 = sst [smem:[#allocation24_spill]] %s7821_s13 }
   0x5   :  { %7838 = sst [smem:[#allocation25_spill]] %s7822_s14 }
   0x6   :  { %7839 = sst [smem:[#allocation26_spill]] %s7823_s15 }
   0x7   :  { %20 = vsyncpa [#allocation4], 0  ;;  %s6011_s18 = smov 0  }
   0x8 LB: > { %7840 = sst [smem:[#allocation6_spill]] %s5910_s18  ;;  %s6017_s19 = sadd.s32 4294967295, %s5910_s18   ;;  %s5910_s18 = sphi %s6011_s18, %s26_s18  }
   0x9   : > { %p4664_p0 = scmp.ge.s32.totalorder %s5910_s18, 1  ;;  %p527_p1 = scmp.lt.s32.totalorder %s5910_s18, 3 }
   0xb   : > { %p528_p2 = pnand %p4664_p0, %p527_p1 }
   0xd   : > { %531 = sbr.rel (%p528_p2) target bundleno = 5667 (0x1623), region = 80 }
  0x12   : > { %p609_p3 = scmp.lt.s32.totalorder %s6017_s19, 1  ;;  %s7841_s4 = sld [smem:[#allocation22_spill]] }
  0x13   : > { %s7842_s3 = sld [smem:[#allocation21_spill]]  ;;  %p4673_p4 = scmp.ne.s32.totalorder %s6017_s19, 0 }
  0x14   : > { %s6023_s20 = scalar_select %p609_p3, %s6017_s19, 1 }
  0x15   : > { %s7843_s5 = sld [smem:[#allocation23_spill]] }
  0x16   : > { %s4794_s27 = sshll.u32 %s6023_s20, 4  ;;  %s633_s28 = scalar_lea.vmem %s7815_s7, %s6023_s20 }
  0x17   : > { %s636_s13 = scalar_lea.vmem %s7816_s8, %s6023_s20 }
  0x18   : > { %s6038_s30 = scalar_lea.vmem %s7841_s4, %s6023_s20  ;;  %s652_s4 = scalar_lea.vmem %s7820_s12, %s6023_s20 }
  0x19   : > { %s6043_s21 = scalar_lea.vmem %s7842_s3, %s4794_s27  ;;  %s6065_s3 = scalar_lea.vmem %s7817_s9, %s4794_s27 }
  0x1a   : > { %657 = sbr.rel (%p4673_p4) target bundleno = 39 (0x27), region = 84 }
  0x1b   : > { %s6048_s15 = scalar_lea.vmem %s7843_s5, %s4794_s27  ;;  %s644_s5 = scalar_lea.vmem %s7818_s10, %s6023_s20 }
  0x1c   : > { %7844 = sst [smem:[#allocation7_spill]] %s6048_s15  ;;  %s4797_s15 = sshll.u32 %s6023_s20, 5 }
  0x1d   : > { %s6075_s24 = scalar_lea.vmem %s7819_s11, %s4797_s15 }
  0x1f   : > { %v658_v0 = vld [vmem:[%s7808_s0] sm:$0xff]  ;;  %vm672_vm0 = vcmask 261120   ;;  %v659_v1 = vld [vmem:[%s7808_s0 + $0x8] sm:$0xff]  ;;  %v660_v2 = vld [vmem:[%s7808_s0 + $0x10] sm:$0xff] }
  0x20   : > { %673 = vst.msk [vmem:[#allocation2] sm:$0xff] %vm672_vm0, %v658_v0  ;;  %674 = vst.msk [vmem:[#allocation2 + $0x8] sm:$0xff] %vm672_vm0, %v659_v1  ;;  %v661_v3 = vld [vmem:[%s7808_s0 + $0x18] sm:$0xff]  ;;  %v662_v4 = vld [vmem:[%s7808_s0 + $0x20] sm:$0xff] }
  0x21   : > { %675 = vst.msk [vmem:[#allocation2 + $0x10] sm:$0xff] %vm672_vm0, %v660_v2  ;;  %v663_v5 = vld [vmem:[%s7808_s0 + $0x28] sm:$0xff]  ;;  %676 = vst.msk [vmem:[#allocation2 + $0x18] sm:$0xff] %vm672_vm0, %v661_v3  ;;  %v664_v6 = vld [vmem:[%s7808_s0 + $0x30] sm:$0xff] }
  0x22   : > { %677 = vst.msk [vmem:[#allocation2 + $0x20] sm:$0xff] %vm672_vm0, %v662_v4  ;;  %678 = vst.msk [vmem:[#allocation2 + $0x28] sm:$0xff] %vm672_vm0, %v663_v5  ;;  %v665_v7 = vld [vmem:[%s7808_s0 + $0x38] sm:$0xff]  ;;  %v666_v8 = vld [vmem:[%s7808_s0 + $0x40] sm:$0xff] }
  0x23   : > { %679 = vst.msk [vmem:[#allocation2 + $0x30] sm:$0xff] %vm672_vm0, %v664_v6  ;;  %680 = vst.msk [vmem:[#allocation2 + $0x38] sm:$0xff] %vm672_vm0, %v665_v7  ;;  %v667_v9 = vld [vmem:[%s7808_s0 + $0x48] sm:$0xff]  ;;  %v668_v10 = vld [vmem:[%s7808_s0 + $0x50] sm:$0xff] }
  0x24   : > { %681 = vst.msk [vmem:[#allocation2 + $0x40] sm:$0xff] %vm672_vm0, %v666_v8  ;;  %v669_v11 = vld [vmem:[%s7808_s0 + $0x58] sm:$0xff]  ;;  %682 = vst.msk [vmem:[#allocation2 + $0x48] sm:$0xff] %vm672_vm0, %v667_v9  ;;  %v670_v12 = vld [vmem:[%s7808_s0 + $0x60] sm:$0xff] }
  0x25   : > { %683 = vst.msk [vmem:[#allocation2 + $0x50] sm:$0xff] %vm672_vm0, %v668_v10  ;;  %684 = vst.msk [vmem:[#allocation2 + $0x58] sm:$0xff] %vm672_vm0, %v669_v11  ;;  %v671_v13 = vld [vmem:[%s7808_s0 + $0x68] sm:$0xff] }
  0x26   : > { %685 = vst.msk [vmem:[#allocation2 + $0x60] sm:$0xff] %vm672_vm0, %v670_v12  ;;  %686 = vst.msk [vmem:[#allocation2 + $0x68] sm:$0xff] %vm672_vm0, %v671_v13 }
  0x27 PF: > { %v687_v14 = vld [vmem:[#allocation2] sm:$0xff]  ;;  %vm703_vm1 = vcmask 261120   ;;  %v688_v16 = vld [vmem:[#allocation2 + $0x8] sm:$0xff]  ;;  %vm5913_vm2 = vmmov 0   ;;  %s7845_s14 = scalar_lea.vmem %s7809_s1, %s6023_s20  ;;  %s7846_s25 = scalar_lea.vmem %s7810_s2, %s6023_s20  ;;  %vm1086_vm3 = vcmask 64512   ;;  %vm1294_vm4 = vcmask 1043456  }
  0x28   : > { %v689_v15 = vld [vmem:[#allocation2 + $0x10] sm:$0xff]  ;;  %v704_v17 = vsel %vm703_vm1, %v687_v14, 0.0  ;;  %v690_v19 = vld [vmem:[#allocation2 + $0x18] sm:$0xff]  ;;  %v707_v22 = vsel %vm703_vm1, %v688_v16, 0.0  ;;  %s5914_s29 = smov 88   ;;  %s5915_s27 = smov 96  }
  0x29   : > { %v710_v18 = vsel %vm703_vm1, %v689_v15, 0.0  ;;  %v691_v20 = vld [vmem:[#allocation2 + $0x20] sm:$0xff]  ;;  %v692_v21 = vld [vmem:[#allocation2 + $0x28] sm:$0xff]  ;;  %705 = vadd.xlane.f32.xlu0 %v704_v17  ;;  %v713_v23 = vsel %vm703_vm1, %v690_v19, 0.0  ;;  %s5916_s16 = smov 120   ;;  %s5917_s17 = smov 80  }
  0x2a   : > { %711 = vadd.xlane.f32.xlu1 %v710_v18  ;;  %v716_v24 = vsel %vm703_vm1, %v691_v20, 0.0  ;;  %v719_v25 = vsel %vm703_vm1, %v692_v21, 0.0  ;;  %v693_v26 = vld [vmem:[#allocation2 + $0x30] sm:$0xff]  ;;  %v694_v27 = vld [vmem:[#allocation2 + $0x38] sm:$0xff]  ;;  %v5541_v18 = vld [vmem:[%s6043_s21 + $0x8] sm:$0xff]   ;;  %s5918_s18 = smov 112  }
  0x2b   : > { %v722_v28 = vsel %vm703_vm1, %v693_v26, 0.0  ;;  %v725_v29 = vsel %vm703_vm1, %v694_v27, 0.0  ;;  %v6184_v4 = vld [vmem:[#allocation2 + $0x40] sm:$0xff]  ;;  %v6190_v8 = vld [vmem:[#allocation2 + $0x48] sm:$0xff]  ;;  %s5919_s22 = smov 64   ;;  %s5921_s15 = smov 48  }
  0x2c   : > { %v728_v7 = vsel %vm703_vm1, %v6184_v4, 0.0  ;;  %v6192_v9 = vld [vmem:[#allocation2 + $0x50] sm:$0xff]  ;;  %v731_v10 = vsel %vm703_vm1, %v6190_v8, 0.0  ;;  %v6198_v12 = vld [vmem:[#allocation2 + $0x58] sm:$0xff]  ;;  %vm1189_vm6 = vcmask 457728   ;;  %s5923_s23 = smov 104  }
  0x2d   : > { %708 = vadd.xlane.f32.xlu0 %v707_v22  ;;  %v734_v11 = vsel %vm703_vm1, %v6192_v9, 0.0  ;;  %v6200_v13 = vld [vmem:[#allocation2 + $0x60] sm:$0xff]  ;;  %s5924_s26 = smov 40   ;;  %vm2320_vm7 = vcmask 130048   ;;  %vm2328_vm8 = vcmask 195584   ;;  %vm4287_vm9 = vcmask 523264  }
  0x2e   : > { %714 = vadd.xlane.f32.xlu1 %v713_v23  ;;  %p4784_p5 = scmp.ge.s32.totalorder %s6017_s19, 1 }
  0x31   : > { %717 = vadd.xlane.f32.xlu0 %v716_v24 }
  0x32   : > { %720 = vadd.xlane.f32.xlu1 %v719_v25 }
  0x35   : > { %723 = vadd.xlane.f32.xlu0 %v722_v28 }
  0x36   : > { %726 = vadd.xlane.f32.xlu1 %v725_v29 }
  0xb2   : > { %v706_v30 = vpop.xlane.xlu0 %705 }
  0xb3   : > { %v712_v31 = vpop.xlane.xlu1 %711  ;;  %v747_v32 = vmul.f32 0.03125, %v706_v30 }
  0xb4   : > { %v749_v33 = vmul.f32 0.03125, %v712_v31 }
  0xb5   : > { %v6146_v34 = vsub.f32 %v687_v14, %v747_v32  ;;  %v737_v14 = vsel %vm703_vm1, %v6198_v12, 0.0 }
  0xb6   : > { %v6148_v35 = vsub.f32 %v689_v15, %v749_v33  ;;  %v709_v36 = vpop.xlane.xlu0 %708  ;;  %v740_v15 = vsel %vm703_vm1, %v6200_v13, 0.0 }
  0xb7   : > { %v715_v37 = vpop.xlane.xlu1 %714  ;;  %v748_v38 = vmul.f32 0.03125, %v709_v36  ;;  %v775_v40 = vmul.f32 %v6146_v34, %v6146_v34 }
  0xb8   : > { %v750_v39 = vmul.f32 0.03125, %v715_v37  ;;  %v777_v41 = vmul.f32 %v6148_v35, %v6148_v35 }
  0xb9   : > { %v6154_v42 = vsub.f32 %v688_v16, %v748_v38  ;;  %v789_v44 = vsel %vm703_vm1, %v775_v40, 0.0  ;;  %v6206_v16 = vld [vmem:[#allocation2 + $0x68] sm:$0xff] }
  0xba   : > { %v6156_v43 = vsub.f32 %v690_v19, %v750_v39  ;;  %790 = vadd.xlane.f32.xlu0 %v789_v44  ;;  %v718_v45 = vpop.xlane.xlu0 %717  ;;  %v795_v47 = vsel %vm703_vm1, %v777_v41, 0.0  ;;  %v743_v17 = vsel %vm703_vm1, %v6206_v16, 0.0  ;;  %v7827_v19 = vmov 0.0  }
  0xbb   : > { %v721_v46 = vpop.xlane.xlu1 %720  ;;  %v751_v48 = vmul.f32 0.03125, %v718_v45  ;;  %v776_v50 = vmul.f32 %v6154_v42, %v6154_v42  ;;  %4967 = vmatprep.subr.bf16.mxu1 %v7827_v19  ;;  %4971 = vmatprep.mubr.msk.bf16.mxu1 %vm5913_vm2, %v7827_v19 }
  0xbc   : > { %v752_v49 = vmul.f32 0.03125, %v721_v46  ;;  %v778_v51 = vmul.f32 %v6156_v43, %v6156_v43  ;;  %4968 = vmatpush3.bf16.msra.mxu1 %v5541_v18 }
  0xbd   : > { %v6164_v52 = vsub.f32 %v691_v20, %v751_v48  ;;  %v792_v54 = vsel %vm703_vm1, %v776_v50, 0.0  ;;  %v5542_v20 = vld [vmem:[%s6043_s21] sm:$0xff]   ;;  %4969 = vmatprep.subr.bf16.mxu1 %v7827_v19  ;;  %s5920_s21 = smov 56  }
  0xbe   : > { %v6166_v53 = vsub.f32 %v692_v21, %v752_v49  ;;  %796 = vadd.xlane.f32.xlu0 %v795_v47  ;;  %793 = vadd.xlane.f32.xlu1 %v792_v54  ;;  %v724_v55 = vpop.xlane.xlu0 %723  ;;  %v798_v57 = vsel %vm703_vm1, %v778_v51, 0.0  ;;  %v6224_v51 = vld [vmem:[%s7845_s14] ss:$0 sm:$0xff]  ;;  %s5922_s14 = smov 72  }
  0xbf   : > { %v727_v56 = vpop.xlane.xlu1 %726  ;;  %v753_v58 = vmul.f32 0.03125, %v724_v55  ;;  %v779_v60 = vmul.f32 %v6164_v52, %v6164_v52 }
  0xc0   : > { %v754_v59 = vmul.f32 0.03125, %v727_v56  ;;  %v780_v61 = vmul.f32 %v6166_v53, %v6166_v53  ;;  %4970 = vmatpush3.bf16.msra.mxu1 %v5542_v20 }
  0xc1   : > { %v6174_v62 = vsub.f32 %v693_v26, %v753_v58  ;;  %v801_v0 = vsel %vm703_vm1, %v779_v60, 0.0 }
  0xc2   : > { %v6176_v63 = vsub.f32 %v694_v27, %v754_v59  ;;  %799 = vadd.xlane.f32.xlu1 %v798_v57  ;;  %802 = vadd.xlane.f32.xlu0 %v801_v0  ;;  %v804_v1 = vsel %vm703_vm1, %v780_v61, 0.0 }
  0xc3   : > { %v781_v2 = vmul.f32 %v6174_v62, %v6174_v62 }
  0xc4   : > { %v782_v3 = vmul.f32 %v6176_v63, %v6176_v63 }
  0xc5   : > { %v807_v5 = vsel %vm703_vm1, %v781_v2, 0.0 }
  0xc6   : > { %805 = vadd.xlane.f32.xlu1 %v804_v1  ;;  %808 = vadd.xlane.f32.xlu0 %v807_v5  ;;  %v810_v6 = vsel %vm703_vm1, %v782_v3, 0.0 }
  0xca   : > { %811 = vadd.xlane.f32.xlu1 %v810_v6  ;;  %729 = vadd.xlane.f32.xlu0 %v728_v7 }
  0xce   : > { %732 = vadd.xlane.f32.xlu1 %v731_v10  ;;  %735 = vadd.xlane.f32.xlu0 %v734_v11 }
  0xd2   : > { %738 = vadd.xlane.f32.xlu1 %v737_v14  ;;  %741 = vadd.xlane.f32.xlu0 %v740_v15 }
  0xd6   : > { %744 = vadd.xlane.f32.xlu1 %v743_v17 }
 0x143   : > { %v791_v21 = vpop.xlane.xlu0 %790 }
 0x144   : > { %v831_v22 = vmul.f32 0.03125, %v791_v21 }
 0x146   : > { %v845_v23 = vadd.f32 1e-05, %v831_v22 }
 0x147   : > { %v794_v24 = vpop.xlane.xlu1 %793  ;;  %v797_v25 = vpop.xlane.xlu0 %796 }
 0x148   : > { %5551 = vrsqrt.f32 %v845_v23  ;;  %v832_v26 = vmul.f32 0.03125, %v794_v24  ;;  %v833_v27 = vmul.f32 0.03125, %v797_v25 }
 0x14a   : > { %v846_v28 = vadd.f32 1e-05, %v832_v26  ;;  %v847_v29 = vadd.f32 1e-05, %v833_v27 }
 0x14b   : > { %v800_v30 = vpop.xlane.xlu1 %799  ;;  %v803_v31 = vpop.xlane.xlu0 %802 }
 0x14c   : > { %5553 = vrsqrt.f32 %v846_v28  ;;  %v834_v32 = vmul.f32 0.03125, %v800_v30  ;;  %v835_v36 = vmul.f32 0.03125, %v803_v31 }
 0x14d   : > { %5555 = vrsqrt.f32 %v847_v29 }
 0x14e   : > { %v848_v33 = vadd.f32 1e-05, %v834_v32  ;;  %v849_v40 = vadd.f32 1e-05, %v835_v36 }
 0x14f   : > { %v806_v37 = vpop.xlane.xlu1 %805  ;;  %v809_v38 = vpop.xlane.xlu0 %808 }
 0x150   : > { %5557 = vrsqrt.f32 %v848_v33  ;;  %v836_v39 = vmul.f32 0.03125, %v806_v37  ;;  %v837_v49 = vmul.f32 0.03125, %v809_v38 }
 0x152   : > { %v850_v41 = vadd.f32 1e-05, %v836_v39  ;;  %v851_v61 = vadd.f32 1e-05, %v837_v49 }
 0x153   : > { %v812_v44 = vpop.xlane.xlu1 %811  ;;  %v730_v45 = vpop.xlane.xlu0 %729 }
 0x154   : > { %5559 = vrsqrt.f32 %v850_v41  ;;  %v838_v46 = vmul.f32 0.03125, %v812_v44  ;;  %v755_v47 = vmul.f32 0.03125, %v730_v45 }
 0x155   : > { %v5552_v48 = vpop.eup %5551  ;;  %5561 = vrsqrt.f32 %v849_v40 }
 0x156   : > { %v6217_v50 = vsub.f32 %v6184_v4, %v755_v47  ;;  %v873_v54 = vmul.f32 %v5552_v48, %v6146_v34  ;;  %v852_v55 = vadd.f32 1e-05, %v838_v46  ;;  %v6239_v34 = vld [vmem:[%s7846_s25] ss:$0 sm:$0xff]  ;;  %s5926_s25 = smov 16  }
 0x157   : > { %v733_v56 = vpop.xlane.xlu1 %732  ;;  %v736_v57 = vpop.xlane.xlu0 %735 }
 0x158   : > { %v756_v58 = vmul.f32 0.03125, %v733_v56  ;;  %v783_v59 = vmul.f32 %v6217_v50, %v6217_v50  ;;  %v893_v0 = vmul.f32 %v6224_v51, %v873_v54  ;;  %v757_v1 = vmul.f32 0.03125, %v736_v57 }
 0x159   : > { %v5554_v60 = vpop.eup %5553  ;;  %5563 = vrsqrt.f32 %v852_v55 }
 0x15a   : > { %v5556_v2 = vpop.eup %5555  ;;  %v6231_v3 = vsub.f32 %v6190_v8, %v756_v58  ;;  %v813_v4 = vsel %vm703_vm1, %v783_v59, 0.0  ;;  %v874_v5 = vmul.f32 %v5554_v60, %v6154_v42  ;;  %v6243_v7 = vsub.f32 %v6192_v9, %v757_v1 }
 0x15b   : > { %814 = vadd.xlane.f32.xlu0 %v813_v4  ;;  %v739_v6 = vpop.xlane.xlu1 %738  ;;  %v742_v10 = vpop.xlane.xlu0 %741  ;;  %5565 = vrsqrt.f32 %v851_v61  ;;  %v913_v18 = vadd.f32 %v6239_v34, %v893_v0  ;;  %v875_v42 = vmul.f32 %v5556_v2, %v6148_v35 }
 0x15c   : > { %v784_v8 = vmul.f32 %v6231_v3, %v6231_v3  ;;  %v894_v11 = vmul.f32 %v6224_v51, %v874_v5  ;;  %v758_v14 = vmul.f32 0.03125, %v739_v6  ;;  %v759_v15 = vmul.f32 0.03125, %v742_v10 }
 0x15d   : > { %v5558_v17 = vpop.eup %5557  ;;  %v785_v20 = vmul.f32 %v6243_v7, %v6243_v7 }
 0x15e   : > { %v816_v9 = vsel %vm703_vm1, %v784_v8, 0.0  ;;  %v914_v21 = vadd.f32 %v6239_v34, %v894_v11  ;;  %v876_v22 = vmul.f32 %v5558_v17, %v6156_v43  ;;  %v6256_v23 = vsub.f32 %v6198_v12, %v758_v14 }
 0x15f   : > { %817 = vadd.xlane.f32.xlu1 %v816_v9  ;;  %v745_v24 = vpop.xlane.xlu1 %744  ;;  %v819_v25 = vsel %vm703_vm1, %v785_v20, 0.0  ;;  %v6260_v26 = vsub.f32 %v6200_v13, %v759_v15  ;;  %v895_v12 = vmul.f32 %v6224_v51, %v875_v42 }
 0x160   : > { %v932_v35 = vpack.c.bf16 %v914_v21, %v913_v18  ;;  %v896_v27 = vmul.f32 %v6224_v51, %v876_v22  ;;  %v786_v28 = vmul.f32 %v6256_v23, %v6256_v23  ;;  %v760_v29 = vmul.f32 0.03125, %v745_v24  ;;  %820 = vadd.xlane.f32.xlu0 %v819_v25 }
 0x161   : > { %v5560_v30 = vpop.eup %5559  ;;  %v787_v43 = vmul.f32 %v6260_v26, %v6260_v26  ;;  %v915_v39 = vadd.f32 %v6239_v34, %v895_v12 }
 0x162   : > { %4972 = vmatmul.mubr.msk.bf16.vlgmr.msra.gmra.mxu1 %vm703_vm1, %v932_v35  ;;  %v822_v31 = vsel %vm703_vm1, %v786_v28, 0.0  ;;  %v6271_v13 = vsub.f32 %v6206_v16, %v760_v29  ;;  %v5562_v32 = vpop.eup %5561  ;;  %v916_v36 = vadd.f32 %v6239_v34, %v896_v27  ;;  %v878_v37 = vmul.f32 %v5560_v30, %v6166_v53 }
 0x163   : > { %4975 = vmatprep.mubr.msk.bf16.mxu1 %vm5913_vm2, %v7827_v19  ;;  %823 = vadd.xlane.f32.xlu1 %v822_v31  ;;  %v825_v33 = vsel %vm703_vm1, %v787_v43, 0.0  ;;  %v877_v16 = vmul.f32 %v5562_v32, %v6164_v52 }
 0x164   : > { %v788_v38 = vmul.f32 %v6271_v13, %v6271_v13  ;;  %826 = vadd.xlane.f32.xlu0 %v825_v33  ;;  %v933_v44 = vpack.c.bf16 %v916_v36, %v915_v39  ;;  %v898_v45 = vmul.f32 %v6224_v51, %v878_v37 }
 0x165   : > { %v897_v53 = vmul.f32 %v6224_v51, %v877_v16 }
 0x166   : > { %v828_v40 = vsel %vm703_vm1, %v788_v38, 0.0  ;;  %v5564_v41 = vpop.eup %5563  ;;  %v918_v47 = vadd.f32 %v6239_v34, %v898_v45 }
 0x167   : > { %829 = vadd.xlane.f32.xlu1 %v828_v40  ;;  %v880_v48 = vmul.f32 %v5564_v41, %v6176_v63  ;;  %v917_v52 = vadd.f32 %v6239_v34, %v897_v53  ;;  %v6328_v41 = vld [vmem:[%s6038_s30] ss:$0 sm:$0xff] }
 0x168   : > { %v5566_v46 = vpop.eup %5565 }
 0x169   : > { %v879_v49 = vmul.f32 %v5566_v46, %v6174_v62  ;;  %v934_v54 = vpack.c.bf16 %v918_v47, %v917_v52  ;;  %v900_v55 = vmul.f32 %v6224_v51, %v880_v48 }
 0x16a   : > { %4976 = vmatmul.mubr.msk.bf16.gmra.mxu1 %vm703_vm1, %v933_v44 }
 0x16b   : > { %4979 = vmatprep.mubr.msk.bf16.mxu1 %vm5913_vm2, %v7827_v19  ;;  %v899_v56 = vmul.f32 %v6224_v51, %v879_v49  ;;  %v920_v57 = vadd.f32 %v6239_v34, %v900_v55 }
 0x16d   : > { %v919_v58 = vadd.f32 %v6239_v34, %v899_v56 }
 0x16f   : > { %v935_v59 = vpack.c.bf16 %v920_v57, %v919_v58 }
 0x172   : > { %4980 = vmatmul.mubr.msk.bf16.gmra.mxu1 %vm703_vm1, %v934_v54 }
 0x173   : > { %4983 = vmatprep.mubr.msk.bf16.mxu1 %vm5913_vm2, %v7827_v19 }
 0x17a   : > { %4984 = vmatmul.mubr.msk.bf16.gmra.mxu1 %vm703_vm1, %v935_v59 }
 0x17b   : > { %4987 = vmatprep.mubr.msk.bf16.mxu1 %vm5913_vm2, %v7827_v19 }
 0x1e4   : > { %v815_v62 = vpop.xlane.xlu0 %814 }
 0x1e5   : > { %v839_v63 = vmul.f32 0.03125, %v815_v62 }
 0x1e7   : > { %v853_v60 = vadd.f32 1e-05, %v839_v63 }
 0x1e8   : > { %v818_v61 = vpop.xlane.xlu1 %817 }
 0x1e9   : > { %v840_v0 = vmul.f32 0.03125, %v818_v61  ;;  %5567 = vrsqrt.f32 %v853_v60  ;;  %v821_v1 = vpop.xlane.xlu0 %820 }
 0x1ea   : > { %v841_v2 = vmul.f32 0.03125, %v821_v1 }
 0x1eb   : > { %v854_v4 = vadd.f32 1e-05, %v840_v0 }
 0x1ec   : > { %v824_v5 = vpop.xlane.xlu1 %823  ;;  %v855_v6 = vadd.f32 1e-05, %v841_v2 }
 0x1ed   : > { %5569 = vrsqrt.f32 %v854_v4  ;;  %v842_v10 = vmul.f32 0.03125, %v824_v5  ;;  %v827_v8 = vpop.xlane.xlu0 %826 }
 0x1ee   : > { %5571 = vrsqrt.f32 %v855_v6  ;;  %v843_v11 = vmul.f32 0.03125, %v827_v8 }
 0x1ef   : > { %v856_v14 = vadd.f32 1e-05, %v842_v10 }
 0x1f0   : > { %v830_v15 = vpop.xlane.xlu1 %829  ;;  %v857_v17 = vadd.f32 1e-05, %v843_v11 }
 0x1f1   : > { %5573 = vrsqrt.f32 %v856_v14  ;;  %v844_v18 = vmul.f32 0.03125, %v830_v15 }
 0x1f2   : > { %5575 = vrsqrt.f32 %v857_v17 }
 0x1f3   : > { %v858_v42 = vadd.f32 1e-05, %v844_v18 }
 0x1f5   : > { %5577 = vrsqrt.f32 %v858_v42 }
 0x1f6   : > { %v5568_v20 = vpop.eup %5567 }
 0x1f7   : > { %v881_v9 = vmul.f32 %v5568_v20, %v6217_v50 }
 0x1f9   : > { %v901_v21 = vmul.f32 %v6224_v51, %v881_v9 }
 0x1fa   : > { %v5570_v22 = vpop.eup %5569 }
 0x1fb   : > { %v5572_v24 = vpop.eup %5571  ;;  %v882_v25 = vmul.f32 %v5570_v22, %v6231_v3  ;;  %v921_v28 = vadd.f32 %v6239_v34, %v901_v21 }
 0x1fc   : > { %v883_v35 = vmul.f32 %v5572_v24, %v6243_v7 }
 0x1fd   : > { %v902_v27 = vmul.f32 %v6224_v51, %v882_v25 }
 0x1fe   : > { %v5574_v29 = vpop.eup %5573  ;;  %v903_v12 = vmul.f32 %v6224_v51, %v883_v35 }
 0x1ff   : > { %v922_v30 = vadd.f32 %v6239_v34, %v902_v27  ;;  %v884_v43 = vmul.f32 %v5574_v29, %v6256_v23  ;;  %v5576_v50 = vpop.eup %5575 }
 0x200   : > { %v923_v3 = vadd.f32 %v6239_v34, %v903_v12  ;;  %v885_v36 = vmul.f32 %v5576_v50, %v6260_v26 }
 0x201   : > { %v936_v31 = vpack.c.bf16 %v922_v30, %v921_v28  ;;  %v904_v32 = vmul.f32 %v6224_v51, %v884_v43 }
 0x202   : > { %v5578_v33 = vpop.eup %5577  ;;  %v905_v38 = vmul.f32 %v6224_v51, %v885_v36 }
 0x203   : > { %4988 = vmatmul.mubr.msk.bf16.gmra.mxu1 %vm703_vm1, %v936_v31  ;;  %v924_v7 = vadd.f32 %v6239_v34, %v904_v32  ;;  %v886_v37 = vmul.f32 %v5578_v33, %v6271_v13 }
 0x204   : > { %4991 = vmatprep.mubr.msk.bf16.mxu1 %vm5913_vm2, %v7827_v19  ;;  %v925_v16 = vadd.f32 %v6239_v34, %v905_v38 }
 0x205   : > { %v937_v23 = vpack.c.bf16 %v924_v7, %v923_v3  ;;  %v906_v39 = vmul.f32 %v6224_v51, %v886_v37 }
 0x207   : > { %v926_v40 = vadd.f32 %v6239_v34, %v906_v39 }
 0x209   : > { %v938_v26 = vpack.c.bf16 %v926_v40, %v925_v16 }
 0x20b   : > { %4992 = vmatmul.mubr.msk.bf16.gmra.mxu1 %vm703_vm1, %v937_v23 }
 0x20c   : > { %4995 = vmatprep.mubr.msk.bf16.mxu1 %vm5913_vm2, %v7827_v19 }
 0x213   : > { %4996 = vmatmul.mubr.msk.bf16.gmra.mxu1 %vm703_vm1, %v938_v26 }
 0x222   : > { %v1012_v13 = vpop.f32.mrf.mxu1 }
 0x223   : > { %v1013_v46 = vadd.f32 %v6328_v41, %v1012_v13 }
 0x224   : > { %v4973_v44 = vpop.f32.mrf.mxu1 }
 0x226   : > { %v1015_v45 = vpop.f32.mrf.mxu1 }
 0x227   : > { %v1016_v51 = vadd.f32 %v6328_v41, %v1015_v45 }
 0x228   : > { %v4974_v53 = vpop.f32.mrf.mxu1 }
 0x229   : > { %v6332_v47 = vpack.c.bf16 %v1016_v51, %v1013_v46 }
 0x22a   : > { %v1020_v34 = vpop.f32.mrf.mxu1 }
 0x22b   : > { %5007 = vmatprep.mubr.msk.bf16.mxu1 %vm1086_vm3, %v6332_v47  ;;  %v1021_v1 = vadd.f32 %v6328_v41, %v1020_v34 }
 0x22c   : > { %v4977_v48 = vpop.f32.mrf.mxu1 }
 0x22e   : > { %v1023_v52 = vpop.f32.mrf.mxu1 }
 0x22f   : > { %v1024_v63 = vadd.f32 %v6328_v41, %v1023_v52 }
 0x230   : > { %v4978_v49 = vpop.f32.mrf.mxu1 }
 0x231   : > { %v6349_v5 = vpack.c.bf16 %v1024_v63, %v1021_v1 }
 0x232   : > { %v1028_v54 = vpop.f32.mrf.mxu1 }
 0x233   : > { %v1029_v2 = vadd.f32 %v6328_v41, %v1028_v54 }
 0x234   : > { %v4981_v55 = vpop.f32.mrf.mxu1 }
 0x236   : > { %v1031_v56 = vpop.f32.mrf.mxu1 }
 0x237   : > { %v1032_v60 = vadd.f32 %v6328_v41, %v1031_v56 }
 0x238   : > { %v4982_v57 = vpop.f32.mrf.mxu1 }
 0x239   : > { %v6351_v6 = vpack.c.bf16 %v1032_v60, %v1029_v2 }
 0x23a   : > { %v1036_v58 = vpop.f32.mrf.mxu1 }
 0x23b   : > { %v1037_v59 = vadd.f32 %v6328_v41, %v1036_v58 }
 0x23c   : > { %v4985_v62 = vpop.f32.mrf.mxu1 }
 0x23d   : > { %v6339_v61 = vpack.c.bf16 %v1037_v59, %v1037_v59 }
 0x23e   : > { %v6341_v0 = vpop.f32.mrf.mxu1 }
 0x23f   : > { %1376 = vrot.lane.b32.xlu1 %v6339_v61, %s5914_s29  ;;  %1084 = vrot.lane.b32.xlu0 %v6339_v61, %s5915_s27  ;;  %v1040_v29 = vadd.f32 %v6328_v41, %v6341_v0 }
 0x240   : > { %v4986_v4 = vpop.f32.mrf.mxu1 }
 0x243   : > { %1082 = vrot.lane.b32.xlu1 %v6351_v6, %s5915_s27  ;;  %1080 = vrot.lane.b32.xlu0 %v6349_v5, %s5915_s27 }
 0x247   : > { %1374 = vrot.lane.b32.xlu1 %v6351_v6, %s5914_s29  ;;  %1078 = vrot.lane.b32.xlu0 %v6332_v47, %s5915_s27 }
 0x24b   : > { %1372 = vrot.lane.b32.xlu1 %v6349_v5, %s5914_s29  ;;  %1362 = vrot.lane.b32.xlu0 %v6332_v47, %s5916_s16 }
 0x24f   : > { %1370 = vrot.lane.b32.xlu1 %v6332_v47, %s5914_s29  ;;  %1364 = vrot.lane.b32.xlu0 %v6349_v5, %s5916_s16 }
 0x253   : > { %1665 = vrot.lane.b32.xlu1 %v6339_v61, %s5917_s17  ;;  %1661 = vrot.lane.b32.xlu0 %v6349_v5, %s5917_s17 }
 0x257   : > { %1663 = vrot.lane.b32.xlu1 %v6351_v6, %s5917_s17  ;;  %1368 = vrot.lane.b32.xlu0 %v6339_v61, %s5916_s16 }
 0x25b   : > { %1366 = vrot.lane.b32.xlu1 %v6351_v6, %s5916_s16  ;;  %1651 = vrot.lane.b32.xlu0 %v6332_v47, %s5918_s18 }
 0x25f   : > { %1659 = vrot.lane.b32.xlu1 %v6332_v47, %s5917_s17  ;;  %1655 = vrot.lane.b32.xlu0 %v6351_v6, %s5918_s18 }
 0x263   : > { %1653 = vrot.lane.b32.xlu1 %v6349_v5, %s5918_s18  ;;  %1273 = vrot.lane.b32.xlu0 %v6349_v5, %s5919_s22 }
 0x267   : > { %1657 = vrot.lane.b32.xlu1 %v6339_v61, %s5918_s18  ;;  %1271 = vrot.lane.b32.xlu0 %v6332_v47, %s5919_s22 }
 0x26b   : > { %1275 = vrot.lane.b32.xlu1 %v6351_v6, %s5919_s22  ;;  %1565 = vrot.lane.b32.xlu0 %v6351_v6, %s5920_s21 }
 0x26f   : > { %1563 = vrot.lane.b32.xlu1 %v6349_v5, %s5920_s21  ;;  %1277 = vrot.lane.b32.xlu0 %v6339_v61, %s5919_s22 }
 0x273   : > { %1561 = vrot.lane.b32.xlu1 %v6332_v47, %s5920_s21 }
 0x277   : > { %1567 = vrot.lane.b32.xlu1 %v6339_v61, %s5920_s21 }
 0x27b   : > { %1856 = vrot.lane.b32.xlu1 %v6339_v61, %s5921_s15 }
 0x2b1   : > { %v1377_v10 = vpop.permute.xlu1 %1376  ;;  %v1085_v8 = vpop.permute.xlu0 %1084 }
 0x2b2   : > { %5363 = vmatprep.subr.msk.bf16.mxu1 %vm1086_vm3, %v1085_v8  ;;  %5368 = vmatprep.subr.msk.bf16.mxu0 %vm1086_vm3, %v1377_v10  ;;  %v1109_v11 = vsel %vm1086_vm3, %v1085_v8, 0  ;;  %v1400_v14 = vsel %vm1086_vm3, %v1377_v10, 0 }
 0x2b3   : > { %5000 = vmatpush3.bf16.xpose.msra.mxu1 %v1109_v11  ;;  %5032 = vmatpush3.bf16.xpose.msra.mxu0 %v1400_v14  ;;  %v1067_v14 = vlaneseq }
 0x2b5   : > { %v1083_v15 = vpop.permute.xlu1 %1082  ;;  %v1081_v17 = vpop.permute.xlu0 %1080 }
 0x2b6   : > { %5364 = vmatprep.subr.msk.bf16.mxu1 %vm1086_vm3, %v1083_v15  ;;  %v1106_v20 = vsel %vm1086_vm3, %v1083_v15, 0  ;;  %v1103_v35 = vsel %vm1086_vm3, %v1081_v17, 0  ;;  %v6472_v15 = vand.u32 127, %v1067_v14 }
 0x2b8   : > { %vm1069_vm5 = vcmp.lt.s32.totalorder %v6472_v15, 50 }
 0x2b9   : > { %v1375_v18 = vpop.permute.xlu1 %1374  ;;  %v1079_v42 = vpop.permute.xlu0 %1078 }
 0x2ba   : > { %5369 = vmatprep.subr.msk.bf16.mxu0 %vm1086_vm3, %v1375_v18  ;;  %v1397_v9 = vsel %vm1086_vm3, %v1375_v18, 0  ;;  %v1100_v7 = vsel %vm1086_vm3, %v1079_v42, 0 }
 0x2bb   : > { %5002 = vmatpush3.bf16.xpose.msra.mxu1 %v1106_v20  ;;  %5034 = vmatpush3.bf16.xpose.msra.mxu0 %v1397_v9 }
 0x2bc   : > { %5365 = vmatprep.subr.msk.bf16.mxu1 %vm1086_vm3, %v1081_v17 }
 0x2bd   : > { %v1373_v21 = vpop.permute.xlu1 %1372  ;;  %v1363_v22 = vpop.permute.xlu0 %1362 }
 0x2be   : > { %5370 = vmatprep.subr.msk.bf16.mxu0 %vm1086_vm3, %v1373_v21  ;;  %5039 = vmatprep.mubr.msk.bf16.mxu0 %vm1086_vm3, %v1363_v22  ;;  %v1394_v27 = vsel %vm1086_vm3, %v1373_v21, 0 }
 0x2c1   : > { %v1371_v24 = vpop.permute.xlu1 %1370  ;;  %v1365_v25 = vpop.permute.xlu0 %1364 }
 0x2c2   : > { %v1391_v36 = vsel %vm1086_vm3, %v1371_v24, 0 }
 0x2c3   : > { %v1044_v28 = vpop.f32.mrf.mxu1  ;;  %5004 = vmatpush3.bf16.xpose.msra.mxu1 %v1103_v35  ;;  %5036 = vmatpush3.bf16.xpose.msra.mxu0 %v1394_v27 }
 0x2c4   : > { %v1045_v30 = vadd.f32 %v6328_v41, %v1044_v28  ;;  %5366 = vmatprep.subr.msk.bf16.mxu1 %vm1086_vm3, %v1079_v42  ;;  %5371 = vmatprep.subr.msk.bf16.mxu0 %vm1086_vm3, %v1371_v24 }
 0x2c5   : > { %v1666_v43 = vpop.permute.xlu1 %1665  ;;  %v1662_v12 = vpop.permute.xlu0 %1661 }
 0x2c6   : > { %v6425_v50 = vpack.c.bf16 %v1045_v30, %v1040_v29  ;;  %v4989_v31 = vpop.f32.mrf.mxu1  ;;  %v1689_v53 = vsel %vm1086_vm3, %v1666_v43, 0  ;;  %v1683_v4 = vsel %vm1086_vm3, %v1662_v12, 0 }
 0x2c8   : > { %v1047_v32 = vpop.f32.mrf.mxu1 }
 0x2c9   : > { %v1664_v33 = vpop.permute.xlu1 %1663  ;;  %v1369_v3 = vpop.permute.xlu0 %1368  ;;  %v1048_v23 = vadd.f32 %v6328_v41, %v1047_v32 }
 0x2ca   : > { %v4990_v37 = vpop.f32.mrf.mxu1  ;;  %v1686_v63 = vsel %vm1086_vm3, %v1664_v33, 0 }
 0x2cb   : > { %5006 = vmatpush3.bf16.xpose.msra.mxu1 %v1100_v7  ;;  %5038 = vmatpush3.bf16.xpose.msra.mxu0 %v1391_v36 }
 0x2cc   : > { %5373 = vmatprep.subr.msk.bf16.mxu0 %vm1086_vm3, %v1666_v43  ;;  %v1052_v38 = vpop.f32.mrf.mxu1 }
 0x2cd   : > { %v1367_v39 = vpop.permute.xlu1 %1366  ;;  %v1652_v16 = vpop.permute.xlu0 %1651  ;;  %v1053_v40 = vadd.f32 %v6328_v41, %v1052_v38 }
 0x2ce   : > { %v4993_v26 = vpop.f32.mrf.mxu1 }
 0x2cf   : > { %v6432_v13 = vpack.c.bf16 %v1053_v40, %v1048_v23 }
 0x2d0   : > { %v1055_v44 = vpop.f32.mrf.mxu1 }
 0x2d1   : > { %v1660_v45 = vpop.permute.xlu1 %1659  ;;  %v1656_v46 = vpop.permute.xlu0 %1655  ;;  %v1056_v34 = vadd.f32 %v6328_v41, %v1055_v44 }
 0x2d2   : > { %5008 = vmatmul.mubr.msk.bf16.vlgmr.msra.gmra.mxu1 %vm1086_vm3, %v6349_v5  ;;  %5040 = vmatmul.mubr.msk.bf16.vlgmr.msra.gmra.mxu0 %vm1086_vm3, %v1365_v25  ;;  %v4994_v51 = vpop.f32.mrf.mxu1  ;;  %v1680_v8 = vsel %vm1086_vm3, %v1660_v45, 0 }
 0x2d3   : > { %5011 = vmatprep.mubr.msk.bf16.mxu1 %vm1086_vm3, %v6351_v6  ;;  %5043 = vmatprep.mubr.msk.bf16.mxu0 %vm1086_vm3, %v1367_v39 }
 0x2d4   : > { %5064 = vmatpush3.bf16.xpose.msra.mxu0 %v1689_v53  ;;  %v1060_v48 = vpop.f32.mrf.mxu1 }
 0x2d5   : > { %5374 = vmatprep.subr.msk.bf16.mxu0 %vm1086_vm3, %v1664_v33  ;;  %v1654_v52 = vpop.permute.xlu1 %1653  ;;  %v1274_v49 = vpop.permute.xlu0 %1273  ;;  %v1061_v54 = vadd.f32 %v6328_v41, %v1060_v48 }
 0x2d6   : > { %v4997_v55 = vpop.f32.mrf.mxu1 }
 0x2d7   : > { %v6444_v56 = vpack.c.bf16 %v1061_v54, %v1056_v34 }
 0x2d8   : > { %v6446_v57 = vpop.f32.mrf.mxu1 }
 0x2d9   : > { %v1658_v58 = vpop.permute.xlu1 %1657  ;;  %v1272_v59 = vpop.permute.xlu0 %1271 }
 0x2da   : > { %5012 = vmatmul.mubr.msk.bf16.gmra.mxu1 %vm1086_vm3, %v6339_v61  ;;  %5044 = vmatmul.mubr.msk.bf16.gmra.mxu0 %vm1086_vm3, %v1369_v3  ;;  %v4998_v62 = vpop.f32.mrf.mxu1 }
 0x2db   : > { %5071 = vmatprep.mubr.msk.bf16.mxu0 %vm1086_vm3, %v1652_v16 }
 0x2dc   : > { %5066 = vmatpush3.bf16.xpose.msra.mxu0 %v1686_v63 }
 0x2dd   : > { %5375 = vmatprep.subr.msk.bf16.mxu0 %vm1086_vm3, %v1662_v12  ;;  %v1276_v41 = vpop.permute.xlu1 %1275  ;;  %v6454_v60 = vpop.permute.xlu0 %1565 }
 0x2e1   : > { %v1278_v0 = vpop.permute.xlu0 %1277  ;;  %v6458_v2 = vpop.permute.xlu1 %1563 }
 0x2e2   : > { %5367 = vmatprep.subr.msk.bf16.mxu1 %vm1294_vm4, %v1278_v0  ;;  %v1296_v1 = vsel %vm1294_vm4, %v1278_v0, 0 }
 0x2e3   : > { %5016 = vmatpush3.bf16.msra.mxu1 %v1296_v1 }
 0x2e4   : > { %5068 = vmatpush3.bf16.xpose.msra.mxu0 %v1683_v4  ;;  %5017 = vmatprep.subr.bf16.mxu1 %v1276_v41 }
 0x2e5   : > { %5376 = vmatprep.subr.msk.bf16.mxu0 %vm1086_vm3, %v1660_v45  ;;  %v6462_v10 = vpop.permute.xlu1 %1561 }
 0x2e7   : > { %5018 = vmatpush3.bf16.msra.mxu1 %v1276_v41 }
 0x2e8   : > { %5019 = vmatprep.subr.bf16.mxu1 %v1274_v49 }
 0x2e9   : > { %v6465_v11 = vpop.permute.xlu1 %1567 }
 0x2eb   : > { %5020 = vmatpush3.bf16.msra.mxu1 %v1274_v49 }
 0x2ec   : > { %5070 = vmatpush3.bf16.xpose.msra.mxu0 %v1680_v8  ;;  %5021 = vmatprep.subr.bf16.mxu1 %v1272_v59 }
 0x2ef   : > { %5022 = vmatpush3.bf16.msra.mxu1 %v1272_v59 }
 0x2f0   : > { %5372 = vmatprep.subr.msk.bf16.mxu1 %vm1294_vm4, %v6465_v11 }
 0x2f3   : > { %5072 = vmatmul.mubr.msk.bf16.vlgmr.msra.gmra.mxu0 %vm1086_vm3, %v1654_v52 }
 0x2f4   : > { %5075 = vmatprep.mubr.msk.bf16.mxu0 %vm1086_vm3, %v1656_v46 }
 0x2fb   : > { %5076 = vmatmul.mubr.msk.bf16.gmra.mxu0 %vm1086_vm3, %v1658_v58 }
 0x392   : > { %v5009_v17 = vpop.f32.mrf.mxu1  ;;  %v5041_v18 = vpop.f32.mrf.mxu0 }
 0x393   : > { %v1177_v42 = vmul.f32 0.35355338, %v5009_v17  ;;  %v1468_v20 = vmul.f32 0.35355338, %v5041_v18 }
 0x394   : > { %v1145_v9 = vpop.f32.mrf.mxu1  ;;  %v1436_v21 = vpop.f32.mrf.mxu0 }
 0x395   : > { %v1175_v22 = vmul.f32 0.35355338, %v1145_v9  ;;  %v1466_v24 = vmul.f32 0.35355338, %v1436_v21  ;;  %v6477_v25 = vsel %vm1069_vm5, %v1177_v42, -1e+30 }
 0x396   : > { %v5010_v35 = vpop.f32.mrf.mxu1  ;;  %v5042_v27 = vpop.f32.mrf.mxu0  ;;  %v1196_v28 = vsel %vm1189_vm6, %v6477_v25, -inf  ;;  %v6483_v29 = vsel %vm1069_vm5, %v1468_v20, -1e+30 }
 0x397   : > { %v1178_v30 = vmul.f32 0.35355338, %v5010_v35  ;;  %1197 = vmax.xlane.f32.xlu0 %v1196_v28  ;;  %v1486_v43 = vsel %vm1189_vm6, %v6483_v29, -inf  ;;  %v6489_v32 = vsel %vm1069_vm5, %v1175_v22, -1e+30 }
 0x398   : > { %1487 = vmax.xlane.f32.xlu1 %v1486_v43  ;;  %v1148_v12 = vpop.f32.mrf.mxu1  ;;  %v1439_v31 = vpop.f32.mrf.mxu0  ;;  %v6493_v33 = vsel %vm1069_vm5, %v1466_v24, -1e+30  ;;  %v1190_v37 = vsel %vm1189_vm6, %v6489_v32, -inf  ;;  %v1469_v23 = vmul.f32 0.35355338, %v5042_v27 }
 0x399   : > { %v1176_v3 = vmul.f32 0.35355338, %v1148_v12  ;;  %v1480_v38 = vsel %vm1189_vm6, %v6493_v33, -inf  ;;  %v6501_v39 = vsel %vm1069_vm5, %v1178_v30, -1e+30 }
 0x39a   : > { %v5013_v7 = vpop.f32.mrf.mxu1  ;;  %v5045_v36 = vpop.f32.mrf.mxu0  ;;  %v1199_v51 = vsel %vm1189_vm6, %v6501_v39, -inf  ;;  %v1467_v53 = vmul.f32 0.35355338, %v1439_v31  ;;  %v6513_v48 = vsel %vm1069_vm5, %v1469_v23, -1e+30 }
 0x39b   : > { %1191 = vmax.xlane.f32.xlu0 %v1190_v37  ;;  %v1472_v16 = vmul.f32 0.35355338, %v5045_v36  ;;  %v6505_v44 = vsel %vm1069_vm5, %v1176_v3, -1e+30  ;;  %v1489_v55 = vsel %vm1189_vm6, %v6513_v48, -inf }
 0x39c   : > { %1481 = vmax.xlane.f32.xlu1 %v1480_v38  ;;  %v1161_v40 = vpop.f32.mrf.mxu1  ;;  %v1452_v26 = vpop.f32.mrf.mxu0  ;;  %v1193_v34 = vsel %vm1189_vm6, %v6505_v44, -inf  ;;  %v1181_v58 = vmul.f32 0.35355338, %v5013_v7  ;;  %v6525_v62 = vsel %vm1069_vm5, %v1467_v53, -1e+30 }
 0x39d   : > { %v1470_v52 = vmul.f32 0.35355338, %v1452_v26  ;;  %v6517_v49 = vsel %vm1069_vm5, %v1472_v16, -1e+30  ;;  %v1483_v0 = vsel %vm1189_vm6, %v6525_v62, -inf }
 0x39e   : > { %v5014_v45 = vpop.f32.mrf.mxu1  ;;  %v5046_v46 = vpop.f32.mrf.mxu0  ;;  %v1498_v59 = vsel %vm1189_vm6, %v6517_v49, -inf  ;;  %v1179_v1 = vmul.f32 0.35355338, %v1161_v40  ;;  %v6537_v8 = vsel %vm1069_vm5, %v1181_v58, -1e+30 }
 0x39f   : > { %1200 = vmax.xlane.f32.xlu0 %v1199_v51  ;;  %v6529_v41 = vsel %vm1069_vm5, %v1470_v52, -1e+30  ;;  %v1208_v18 = vsel %vm1189_vm6, %v6537_v8, -inf }
 0x3a0   : > { %1194 = vmax.xlane.f32.xlu1 %v1193_v34  ;;  %v1164_v54 = vpop.f32.mrf.mxu1  ;;  %v1492_v4 = vsel %vm1189_vm6, %v6529_v41, -inf  ;;  %v1455_v14 = vpop.f32.mrf.mxu0  ;;  %v6549_v9 = vsel %vm1069_vm5, %v1179_v1, -1e+30 }
 0x3a1   : > { %v1180_v63 = vmul.f32 0.35355338, %v1164_v54  ;;  %v1471_v42 = vmul.f32 0.35355338, %v1455_v14  ;;  %v1202_v21 = vsel %vm1189_vm6, %v6549_v9, -inf }
 0x3a3   : > { %1490 = vmax.xlane.f32.xlu0 %v1489_v55  ;;  %v6541_v17 = vsel %vm1069_vm5, %v1180_v63, -1e+30  ;;  %v6555_v22 = vsel %vm1069_vm5, %v1471_v42, -1e+30 }
 0x3a4   : > { %1499 = vmax.xlane.f32.xlu1 %v1498_v59  ;;  %v1205_v20 = vsel %vm1189_vm6, %v6541_v17, -inf  ;;  %v1495_v24 = vsel %vm1189_vm6, %v6555_v22, -inf }
 0x3a7   : > { %1484 = vmax.xlane.f32.xlu0 %v1483_v0 }
 0x3a8   : > { %1493 = vmax.xlane.f32.xlu1 %v1492_v4  ;;  %v6605_v4 = vpop.permute.xlu1 %1856 }
 0x3ab   : > { %1209 = vmax.xlane.f32.xlu0 %v1208_v18 }
 0x3ac   : > { %1206 = vmax.xlane.f32.xlu1 %v1205_v20 }
 0x3af   : > { %1203 = vmax.xlane.f32.xlu0 %v1202_v21 }
 0x3b3   : > { %v5073_v35 = vpop.f32.mrf.mxu0  ;;  %1496 = vmax.xlane.f32.xlu0 %v1495_v24 }
 0x3b4   : > { %v1757_v27 = vmul.f32 0.35355338, %v5073_v35 }
 0x3b5   : > { %v1725_v28 = vpop.f32.mrf.mxu0 }
 0x3b6   : > { %v1755_v30 = vmul.f32 0.35355338, %v1725_v28  ;;  %v6561_v43 = vsel %vm1069_vm5, %v1757_v27, -1e+30 }
 0x3b7   : > { %v5074_v12 = vpop.f32.mrf.mxu0  ;;  %v1775_v31 = vsel %vm1189_vm6, %v6561_v43, -inf }
 0x3b8   : > { %1776 = vmax.xlane.f32.xlu0 %v1775_v31  ;;  %v6567_v3 = vsel %vm1069_vm5, %v1755_v30, -1e+30  ;;  %v1758_v16 = vmul.f32 0.35355338, %v5074_v12 }
 0x3b9   : > { %v1728_v7 = vpop.f32.mrf.mxu0  ;;  %v1769_v37 = vsel %vm1189_vm6, %v6567_v3, -inf }
 0x3ba   : > { %v1756_v40 = vmul.f32 0.35355338, %v1728_v7  ;;  %v6577_v26 = vsel %vm1069_vm5, %v1758_v16, -1e+30 }
 0x3bb   : > { %v5077_v36 = vpop.f32.mrf.mxu0  ;;  %v1778_v46 = vsel %vm1189_vm6, %v6577_v26, -inf }
 0x3bc   : > { %1770 = vmax.xlane.f32.xlu0 %v1769_v37  ;;  %v6583_v53 = vsel %vm1069_vm5, %v1756_v40, -1e+30  ;;  %v1761_v55 = vmul.f32 0.35355338, %v5077_v36 }
 0x3bd   : > { %1852 = vrot.lane.b32.xlu1 %v6349_v5, %s5921_s15  ;;  %v1741_v23 = vpop.f32.mrf.mxu0  ;;  %v1772_v34 = vsel %vm1189_vm6, %v6583_v53, -inf }
 0x3be   : > { %v1759_v58 = vmul.f32 0.35355338, %v1741_v23  ;;  %v6595_v59 = vsel %vm1069_vm5, %v1761_v55, -1e+30 }
 0x3bf   : > { %v5078_v38 = vpop.f32.mrf.mxu0  ;;  %v1787_v63 = vsel %vm1189_vm6, %v6595_v59, -inf }
 0x3c0   : > { %v6601_v0 = vsel %vm1069_vm5, %v1759_v58, -1e+30 }
 0x3c1   : > { %v1744_v45 = vpop.f32.mrf.mxu0  ;;  %v1781_v1 = vsel %vm1189_vm6, %v6601_v0, -inf }
 0x3c2   : > { %v1760_v51 = vmul.f32 0.35355338, %v1744_v45 }
 0x3c4   : > { %v6589_v52 = vsel %vm1069_vm5, %v1760_v51, -1e+30 }
 0x3c5   : > { %v1784_v54 = vsel %vm1189_vm6, %v6589_v52, -inf }
 0x3d2   : > { %1854 = vrot.lane.b32.xlu0 %v6351_v6, %s5921_s15 }
 0x3e1   : > { %1779 = vmax.xlane.f32.xlu1 %v1778_v46 }
 0x3e5   : > { %1773 = vmax.xlane.f32.xlu1 %v1772_v34 }
 0x3e9   : > { %1785 = vmax.xlane.f32.xlu1 %v1784_v54 }
 0x3f1   : > { %1788 = vmax.xlane.f32.xlu0 %v1787_v63 }
 0x3f5   : > { %1782 = vmax.xlane.f32.xlu0 %v1781_v1 }
 0x420   : > { %v1198_v14 = vpop.xlane.xlu0 %1197 }
 0x421   : > { %v1488_v18 = vpop.xlane.xlu1 %1487  ;;  %v1213_v42 = vsub.f32 %v6477_v25, %v1198_v14 }
 0x422   : > { %v1503_v20 = vsub.f32 %v6483_v29, %v1488_v18 }
 0x423   : > { %v1222_v21 = vmul.f32 1.442695, %v1213_v42 }
 0x424   : > { %v1512_v24 = vmul.f32 1.442695, %v1503_v20  ;;  %v1192_v35 = vpop.xlane.xlu0 %1191 }
 0x425   : > { %5579 = vpow2.f32 %v1222_v21  ;;  %v1482_v27 = vpop.xlane.xlu1 %1481  ;;  %v1211_v28 = vsub.f32 %v6489_v32, %v1192_v35 }
 0x426   : > { %v1501_v30 = vsub.f32 %v6493_v33, %v1482_v27  ;;  %5581 = vpow2.f32 %v1512_v24 }
 0x427   : > { %v1218_v12 = vmul.f32 1.442695, %v1211_v28 }
 0x428   : > { %v1201_v31 = vpop.xlane.xlu0 %1200  ;;  %v1508_v37 = vmul.f32 1.442695, %v1501_v30 }
 0x429   : > { %v1195_v7 = vpop.xlane.xlu1 %1194  ;;  %v1214_v36 = vsub.f32 %v6501_v39, %v1201_v31  ;;  %5583 = vpow2.f32 %v1218_v12 }
 0x42a   : > { %v1212_v25 = vsub.f32 %v6505_v44, %v1195_v7 }
 0x42b   : > { %v1224_v29 = vmul.f32 1.442695, %v1214_v36 }
 0x42c   : > { %v1220_v23 = vmul.f32 1.442695, %v1212_v25  ;;  %v1491_v38 = vpop.xlane.xlu0 %1490 }
 0x42d   : > { %5585 = vpow2.f32 %v1224_v29  ;;  %v1500_v16 = vpop.xlane.xlu1 %1499  ;;  %v1504_v40 = vsub.f32 %v6513_v48, %v1491_v38 }
 0x42e   : > { %5587 = vpow2.f32 %v1508_v37  ;;  %v1507_v32 = vsub.f32 %v6517_v49, %v1500_v16 }
 0x42f   : > { %5589 = vpow2.f32 %v1220_v23  ;;  %v1514_v33 = vmul.f32 1.442695, %v1504_v40 }
 0x430   : > { %v1520_v45 = vmul.f32 1.442695, %v1507_v32  ;;  %v1485_v46 = vpop.xlane.xlu0 %1484 }
 0x431   : > { %v1494_v51 = vpop.xlane.xlu1 %1493  ;;  %v1502_v39 = vsub.f32 %v6525_v62, %v1485_v46  ;;  %5591 = vpow2.f32 %v1514_v33 }
 0x432   : > { %v6616_v34 = vpop.eup %5579  ;;  %v1505_v44 = vsub.f32 %v6529_v41, %v1494_v51  ;;  %5593 = vpow2.f32 %v1520_v45 }
 0x433   : > { %v1510_v54 = vmul.f32 1.442695, %v1502_v39  ;;  %v1238_v48 = vsel %vm1189_vm6, %v6616_v34, 0.0  ;;  %v6621_v55 = vpop.eup %5581 }
 0x434   : > { %v1516_v49 = vmul.f32 1.442695, %v1505_v44  ;;  %1239 = vadd.xlane.f32.xlu1 %v1238_v48  ;;  %v1210_v58 = vpop.xlane.xlu0 %1209  ;;  %v1528_v41 = vsel %vm1189_vm6, %v6621_v55, 0.0 }
 0x435   : > { %v1207_v63 = vpop.xlane.xlu1 %1206  ;;  %v1217_v1 = vsub.f32 %v6537_v8, %v1210_v58  ;;  %5595 = vpow2.f32 %v1510_v54 }
 0x436   : > { %v1216_v62 = vsub.f32 %v6541_v17, %v1207_v63  ;;  %5597 = vpow2.f32 %v1516_v49  ;;  %v6627_v18 = vpop.eup %5583 }
 0x437   : > { %v1230_v14 = vmul.f32 1.442695, %v1217_v1  ;;  %v1232_v17 = vsel %vm1189_vm6, %v6627_v18, 0.0 }
 0x438   : > { %v1228_v42 = vmul.f32 1.442695, %v1216_v62  ;;  %1529 = vadd.xlane.f32.xlu1 %v1528_v41  ;;  %v1204_v20 = vpop.xlane.xlu0 %1203 }
 0x439   : > { %v1215_v21 = vsub.f32 %v6549_v9, %v1204_v20  ;;  %5599 = vpow2.f32 %v1230_v14  ;;  %v6689_v41 = vpop.permute.xlu1 %1852 }
 0x43a   : > { %v6630_v24 = vpop.eup %5585  ;;  %5601 = vpow2.f32 %v1228_v42 }
 0x43b   : > { %v6632_v35 = vpop.eup %5587  ;;  %v1226_v8 = vmul.f32 1.442695, %v1215_v21  ;;  %v1241_v27 = vsel %vm1189_vm6, %v6630_v24, 0.0 }
 0x43c   : > { %v6638_v28 = vpop.eup %5589  ;;  %1233 = vadd.xlane.f32.xlu1 %v1232_v17  ;;  %1242 = vadd.xlane.f32.xlu0 %v1241_v27  ;;  %v1497_v30 = vpop.xlane.xlu0 %1496  ;;  %v1522_v7 = vsel %vm1189_vm6, %v6632_v35, 0.0 }
 0x43d   : > { %v1506_v9 = vsub.f32 %v6555_v22, %v1497_v30  ;;  %5603 = vpow2.f32 %v1226_v8  ;;  %v1235_v36 = vsel %vm1189_vm6, %v6638_v28, 0.0 }
 0x43e   : > { %v6641_v12 = vpop.eup %5591 }
 0x43f   : > { %v1518_v31 = vmul.f32 1.442695, %v1506_v9  ;;  %v6647_v37 = vpop.eup %5593  ;;  %v1531_v38 = vsel %vm1189_vm6, %v6641_v12, 0.0 }
 0x440   : > { %1523 = vadd.xlane.f32.xlu1 %v1522_v7  ;;  %1236 = vadd.xlane.f32.xlu0 %v1235_v36  ;;  %v1540_v22 = vsel %vm1189_vm6, %v6647_v37, 0.0 }
 0x441   : > { %v1777_v25 = vpop.xlane.xlu0 %1776  ;;  %5605 = vpow2.f32 %v1518_v31 }
 0x442   : > { %v1792_v29 = vsub.f32 %v6561_v43, %v1777_v25  ;;  %v6650_v23 = vpop.eup %5595 }
 0x443   : > { %v6656_v16 = vpop.eup %5597  ;;  %v1525_v46 = vsel %vm1189_vm6, %v6650_v23, 0.0 }
 0x444   : > { %v1801_v40 = vmul.f32 1.442695, %v1792_v29  ;;  %1541 = vadd.xlane.f32.xlu0 %v1540_v22  ;;  %1532 = vadd.xlane.f32.xlu1 %v1531_v38  ;;  %v1534_v43 = vsel %vm1189_vm6, %v6656_v16, 0.0 }
 0x445   : > { %v1771_v32 = vpop.xlane.xlu0 %1770 }
 0x446   : > { %5607 = vpow2.f32 %v1801_v40  ;;  %v1790_v33 = vsub.f32 %v6567_v3, %v1771_v32  ;;  %v6659_v45 = vpop.eup %5599 }
 0x447   : > { %v6665_v51 = vpop.eup %5601  ;;  %v1250_v3 = vsel %vm1189_vm6, %v6659_v45, 0.0 }
 0x448   : > { %v1797_v39 = vmul.f32 1.442695, %v1790_v33  ;;  %1535 = vadd.xlane.f32.xlu0 %v1534_v43  ;;  %1526 = vadd.xlane.f32.xlu1 %v1525_v46  ;;  %v1247_v44 = vsel %vm1189_vm6, %v6665_v51, 0.0 }
 0x44a   : > { %5609 = vpow2.f32 %v1797_v39  ;;  %v6671_v54 = vpop.eup %5603 }
 0x44b   : > { %v1244_v48 = vsel %vm1189_vm6, %v6671_v54, 0.0 }
 0x44c   : > { %1248 = vadd.xlane.f32.xlu0 %v1247_v44  ;;  %1251 = vadd.xlane.f32.xlu1 %v1250_v3 }
 0x44e   : > { %v6675_v49 = vpop.eup %5605 }
 0x44f   : > { %v1537_v63 = vsel %vm1189_vm6, %v6675_v49, 0.0 }
 0x450   : > { %1245 = vadd.xlane.f32.xlu1 %v1244_v48 }
 0x453   : > { %v6677_v58 = vpop.eup %5607 }
 0x454   : > { %1538 = vadd.xlane.f32.xlu1 %v1537_v63  ;;  %v1817_v1 = vsel %vm1189_vm6, %v6677_v58, 0.0 }
 0x455   : > { %1818 = vadd.xlane.f32.xlu0 %v1817_v1 }
 0x457   : > { %v6683_v62 = vpop.eup %5609 }
 0x458   : > { %v1811_v14 = vsel %vm1189_vm6, %v6683_v62, 0.0 }
 0x459   : > { %1812 = vadd.xlane.f32.xlu0 %v1811_v14 }
 0x465   : > { %1954 = vrot.lane.b32.xlu1 %v6339_v61, %s5922_s14 }
 0x46a   : > { %v1780_v42 = vpop.xlane.xlu1 %1779 }
 0x46b   : > { %v1793_v20 = vsub.f32 %v6577_v26, %v1780_v42  ;;  %v6701_v26 = vpop.permute.xlu0 %1854 }
 0x46d   : > { %v1803_v21 = vmul.f32 1.442695, %v1793_v20 }
 0x46e   : > { %v1774_v8 = vpop.xlane.xlu1 %1773 }
 0x46f   : > { %5611 = vpow2.f32 %v1803_v21  ;;  %v1791_v17 = vsub.f32 %v6583_v53, %v1774_v8 }
 0x471   : > { %v1799_v27 = vmul.f32 1.442695, %v1791_v17 }
 0x472   : > { %v1786_v38 = vpop.xlane.xlu1 %1785 }
 0x473   : > { %5613 = vpow2.f32 %v1799_v27  ;;  %v1795_v32 = vsub.f32 %v6589_v52, %v1786_v38 }
 0x475   : > { %v1807_v33 = vmul.f32 1.442695, %v1795_v32 }
 0x47a   : > { %v1789_v53 = vpop.xlane.xlu0 %1788 }
 0x47b   : > { %v1796_v36 = vsub.f32 %v6595_v59, %v1789_v53 }
 0x47c   : > { %v6693_v30 = vpop.eup %5611 }
 0x47d   : > { %v1820_v9 = vsel %vm1189_vm6, %v6693_v30, 0.0  ;;  %v1809_v29 = vmul.f32 1.442695, %v1796_v36 }
 0x47e   : > { %1821 = vadd.xlane.f32.xlu0 %v1820_v9  ;;  %v1783_v25 = vpop.xlane.xlu0 %1782 }
 0x47f   : > { %v1794_v22 = vsub.f32 %v6601_v0, %v1783_v25  ;;  %5615 = vpow2.f32 %v1809_v29 }
 0x480   : > { %v6697_v31 = vpop.eup %5613 }
 0x481   : > { %v1814_v7 = vsel %vm1189_vm6, %v6697_v31, 0.0  ;;  %v1805_v40 = vmul.f32 1.442695, %v1794_v22 }
 0x483   : > { %5617 = vpow2.f32 %v1805_v40 }
 0x484   : > { %5619 = vpow2.f32 %v1807_v33 }
 0x489   : > { %1815 = vadd.xlane.f32.xlu1 %v1814_v7 }
 0x48c   : > { %v6710_v43 = vpop.eup %5615 }
 0x48d   : > { %v1829_v59 = vsel %vm1189_vm6, %v6710_v43, 0.0 }
 0x490   : > { %v6714_v46 = vpop.eup %5617 }
 0x491   : > { %v1823_v39 = vsel %vm1189_vm6, %v6714_v46, 0.0  ;;  %v6718_v0 = vpop.eup %5619 }
 0x492   : > { %v1826_v52 = vsel %vm1189_vm6, %v6718_v0, 0.0 }
 0x494   : > { %1850 = vrot.lane.b32.xlu0 %v6332_v47, %s5921_s15 }
 0x49a   : > { %1952 = vrot.lane.b32.xlu1 %v6351_v6, %s5922_s14 }
 0x4b3   : > { %1830 = vadd.xlane.f32.xlu0 %v1829_v59 }
 0x4b7   : > { %1824 = vadd.xlane.f32.xlu0 %v1823_v39 }
 0x4bd   : > { %v1240_v44 = vpop.xlane.xlu1 %1239 }
 0x4be   : > { %1827 = vadd.xlane.f32.xlu1 %v1826_v52 }
 0x4c1   : > { %v1530_v3 = vpop.xlane.xlu1 %1529 }
 0x4c5   : > { %v1234_v48 = vpop.xlane.xlu1 %1233  ;;  %v1243_v63 = vpop.xlane.xlu0 %1242 }
 0x4c6   : > { %5621 = vrcp.f32 %v1243_v63 }
 0x4c7   : > { %5623 = vrcp.f32 %v1234_v48 }
 0x4c8   : > { %5625 = vrcp.f32 %v1240_v44 }
 0x4c9   : > { %v1524_v1 = vpop.xlane.xlu1 %1523  ;;  %v1237_v14 = vpop.xlane.xlu0 %1236 }
 0x4ca   : > { %5627 = vrcp.f32 %v1237_v14 }
 0x4cd   : > { %1950 = vrot.lane.b32.xlu0 %v6349_v5, %s5922_s14  ;;  %v1533_v42 = vpop.xlane.xlu1 %1532  ;;  %v1542_v20 = vpop.xlane.xlu0 %1541 }
 0x4cf   : > { %1948 = vrot.lane.b32.xlu1 %v6332_v47, %s5922_s14 }
 0x4d1   : > { %1940 = vrot.lane.b32.xlu0 %v6332_v47, %s5923_s23  ;;  %v1527_v21 = vpop.xlane.xlu1 %1526  ;;  %v1536_v8 = vpop.xlane.xlu0 %1535 }
 0x4d2   : > { %5629 = vrcp.f32 %v1527_v21 }
 0x4d3   : > { %1942 = vrot.lane.b32.xlu1 %v6349_v5, %s5923_s23  ;;  %v5622_v17 = vpop.eup %5621 }
 0x4d4   : > { %v5624_v7 = vpop.eup %5623  ;;  %v1263_v25 = vmul.f32 %v5622_v17, %v6630_v24  ;;  %v1585_v24 = vsel %vm1294_vm4, %v6465_v11, 0  ;;  %v1874_v17 = vsel %vm1294_vm4, %v6605_v4, 0 }
 0x4d5   : > { %1944 = vrot.lane.b32.xlu0 %v6351_v6, %s5923_s23  ;;  %v1252_v27 = vpop.xlane.xlu1 %1251  ;;  %v1249_v9 = vpop.xlane.xlu0 %1248  ;;  %v1260_v22 = vmul.f32 %v5624_v7, %v6627_v18 }
 0x4d6   : > { %v5626_v53 = vpop.eup %5625  ;;  %5631 = vrcp.f32 %v1252_v27 }
 0x4d7   : > { %1946 = vrot.lane.b32.xlu1 %v6339_v61, %s5923_s23  ;;  %v5628_v36 = vpop.eup %5627  ;;  %5633 = vrcp.f32 %v1249_v9  ;;  %v1262_v40 = vmul.f32 %v5626_v53, %v6616_v34 }
 0x4d8   : > { %5635 = vrcp.f32 %v1524_v1  ;;  %v1261_v38 = vmul.f32 %v5628_v36, %v6638_v28 }
 0x4d9   : > { %v1246_v29 = vpop.xlane.xlu1 %1245  ;;  %v1268_v33 = vpack.c.bf16 %v1263_v25, %v1262_v40 }
 0x4da   : > { %5637 = vrcp.f32 %v1246_v29  ;;  %v1267_v32 = vpack.c.bf16 %v1261_v38, %v1260_v22 }
 0x4db   : > { %5639 = vrcp.f32 %v1533_v42 }
 0x4dc   : > { %5023 = vmatprep.mubr.msk.bf16.mxu1 %vm1189_vm6, %v1267_v32 }
 0x4dd   : > { %v1539_v59 = vpop.xlane.xlu1 %1538  ;;  %5024 = vmatmul.mubr.msk.bf16.vlgmr.msra.gmra.mxu1 %vm1189_vm6, %v1268_v33 }
 0x4de   : > { %5048 = vmatpush3.bf16.msra.mxu1 %v1585_v24  ;;  %5641 = vrcp.f32 %v1539_v59 }
 0x4df   : > { %5049 = vmatprep.subr.bf16.mxu1 %v6454_v60  ;;  %5643 = vrcp.f32 %v1530_v3  ;;  %v5630_v18 = vpop.eup %5629 }
 0x4e0   : > { %5645 = vrcp.f32 %v1536_v8  ;;  %v1551_v48 = vmul.f32 %v5630_v18, %v6650_v23 }
 0x4e1   : > { %5647 = vrcp.f32 %v1542_v20  ;;  %v1955_v9 = vpop.permute.xlu1 %1954 }
 0x4e2   : > { %5050 = vmatpush3.bf16.msra.mxu1 %v6454_v60  ;;  %v1978_v32 = vsel %vm1086_vm3, %v1955_v9, 0 }
 0x4e3   : > { %v5632_v34 = vpop.eup %5631  ;;  %5051 = vmatprep.subr.bf16.mxu1 %v6458_v2 }
 0x4e4   : > { %v5634_v28 = vpop.eup %5633  ;;  %v1266_v11 = vmul.f32 %v5632_v34, %v6659_v45 }
 0x4e5   : > { %v5636_v39 = vpop.eup %5635  ;;  %v1265_v3 = vmul.f32 %v5634_v28, %v6665_v51 }
 0x4e6   : > { %5052 = vmatpush3.bf16.msra.mxu1 %v6458_v2  ;;  %v1550_v63 = vmul.f32 %v5636_v39, %v6632_v35  ;;  %v1270_v1 = vpack.c.bf16 %v1266_v11, %v1266_v11 }
 0x4e7   : > { %v5638_v44 = vpop.eup %5637  ;;  %5053 = vmatprep.subr.bf16.mxu1 %v6462_v10 }
 0x4e8   : > { %v1264_v52 = vmul.f32 %v5638_v44, %v6671_v54  ;;  %v5640_v14 = vpop.eup %5639  ;;  %v1557_v2 = vpack.c.bf16 %v1551_v48, %v1550_v63 }
 0x4e9   : > { %v1553_v51 = vmul.f32 %v5640_v14, %v6641_v12 }
 0x4ea   : > { %v1269_v60 = vpack.c.bf16 %v1265_v3, %v1264_v52  ;;  %5054 = vmatpush3.bf16.msra.mxu1 %v6462_v10 }
 0x4eb   : > { %5377 = vmatprep.subr.msk.bf16.mxu1 %vm1294_vm4, %v6605_v4  ;;  %v5642_v45 = vpop.eup %5641 }
 0x4ec   : > { %5027 = vmatprep.mubr.msk.bf16.mxu1 %vm1189_vm6, %v1269_v60  ;;  %v5644_v54 = vpop.eup %5643  ;;  %v1555_v35 = vmul.f32 %v5642_v45, %v6675_v49 }
 0x4ed   : > { %5028 = vmatmul.mubr.msk.bf16.gmra.mxu1 %vm1189_vm6, %v1270_v1  ;;  %v5646_v23 = vpop.eup %5645  ;;  %v1552_v10 = vmul.f32 %v5644_v54, %v6621_v55 }
 0x4ee   : > { %5055 = vmatprep.mubr.msk.bf16.mxu1 %vm1189_vm6, %v1557_v2  ;;  %v1554_v42 = vmul.f32 %v5646_v23, %v6656_v16  ;;  %v5648_v21 = vpop.eup %5647  ;;  %v1819_v16 = vpop.xlane.xlu0 %1818 }
 0x4ef   : > { %v1558_v20 = vpack.c.bf16 %v1553_v51, %v1552_v10  ;;  %v1556_v12 = vmul.f32 %v5648_v21, %v6647_v37 }
 0x4f0   : > { %v1559_v8 = vpack.c.bf16 %v1555_v35, %v1554_v42 }
 0x4f1   : > { %v1560_v55 = vpack.c.bf16 %v1556_v12, %v1556_v12 }
 0x4f2   : > { %v1813_v49 = vpop.xlane.xlu0 %1812 }
 0x4f5   : > { %5056 = vmatmul.mubr.msk.bf16.vlgmr.msra.gmra.mxu1 %vm1189_vm6, %v1558_v20 }
 0x4f6   : > { %5080 = vmatpush3.bf16.msra.mxu1 %v1874_v17  ;;  %5059 = vmatprep.mubr.msk.bf16.mxu1 %vm1189_vm6, %v1559_v8 }
 0x4f7   : > { %5081 = vmatprep.subr.bf16.mxu1 %v6701_v26 }
 0x4fa   : > { %5082 = vmatpush3.bf16.msra.mxu1 %v6701_v26 }
 0x4fb   : > { %5083 = vmatprep.subr.bf16.mxu1 %v6689_v41 }
 0x4fd   : > { %5060 = vmatmul.mubr.msk.bf16.gmra.mxu1 %vm1189_vm6, %v1560_v55 }
 0x4fe   : > { %5084 = vmatpush3.bf16.msra.mxu1 %v6689_v41 }
 0x507   : > { %v1822_v27 = vpop.xlane.xlu0 %1821 }
 0x508   : > { %5649 = vrcp.f32 %v1822_v27 }
 0x509   : > { %5651 = vrcp.f32 %v1813_v49 }
 0x50a   : > { %5653 = vrcp.f32 %v1819_v16 }
 0x50b   : > { %v1851_v4 = vpop.permute.xlu0 %1850 }
 0x50c   : > { %5085 = vmatprep.subr.bf16.mxu1 %v1851_v4 }
 0x50d   : > { %5086 = vmatpush3.bf16.msra.mxu1 %v1851_v4 }
 0x50e   : > { %5378 = vmatprep.subr.msk.bf16.mxu1 %vm1086_vm3, %v1955_v9 }
 0x512   : > { %v1816_v37 = vpop.xlane.xlu1 %1815 }
 0x513   : > { %5655 = vrcp.f32 %v1816_v37 }
 0x515   : > { %v5650_v26 = vpop.eup %5649 }
 0x516   : > { %v5652_v7 = vpop.eup %5651  ;;  %v1842_v25 = vmul.f32 %v5650_v26, %v6693_v30  ;;  %v1953_v33 = vpop.permute.xlu1 %1952 }
 0x517   : > { %v5654_v53 = vpop.eup %5653  ;;  %v1839_v41 = vmul.f32 %v5652_v7, %v6683_v62  ;;  %v1975_v30 = vsel %vm1086_vm3, %v1953_v33, 0 }
 0x518   : > { %v1841_v22 = vmul.f32 %v5654_v53, %v6677_v58 }
 0x51a   : > { %v1847_v40 = vpack.c.bf16 %v1842_v25, %v1841_v22 }
 0x520   : > { %v5656_v36 = vpop.eup %5655 }
 0x521   : > { %v1840_v29 = vmul.f32 %v5656_v36, %v6697_v31 }
 0x523   : > { %v1846_v38 = vpack.c.bf16 %v1840_v29, %v1839_v41 }
 0x525   : > { %5087 = vmatprep.mubr.msk.bf16.mxu1 %vm1189_vm6, %v1846_v38 }
 0x526   : > { %5088 = vmatmul.mubr.msk.bf16.vlgmr.msra.gmra.mxu1 %vm1189_vm6, %v1847_v40 }
 0x527   : > { %5096 = vmatpush3.bf16.xpose.msra.mxu1 %v1978_v32 }
 0x528   : > { %5379 = vmatprep.subr.msk.bf16.mxu1 %vm1086_vm3, %v1953_v33 }
 0x52f   : > { %5098 = vmatpush3.bf16.xpose.msra.mxu1 %v1975_v30 }
 0x53c   : > { %v1831_v62 = vpop.xlane.xlu0 %1830 }
 0x53d   : > { %5657 = vrcp.f32 %v1831_v62 }
 0x540   : > { %v1825_v59 = vpop.xlane.xlu0 %1824 }
 0x541   : > { %5659 = vrcp.f32 %v1825_v59 }
 0x544   : > { %v1951_v31 = vpop.permute.xlu0 %1950 }
 0x545   : > { %5380 = vmatprep.subr.msk.bf16.mxu1 %vm1086_vm3, %v1951_v31  ;;  %v1972_v58 = vsel %vm1086_vm3, %v1951_v31, 0 }
 0x546   : > { %5100 = vmatpush3.bf16.xpose.msra.mxu1 %v1972_v58 }
 0x547   : > { %v1828_v24 = vpop.xlane.xlu1 %1827 }
 0x548   : > { %5661 = vrcp.f32 %v1828_v24  ;;  %v1941_v63 = vpop.permute.xlu0 %1940 }
 0x54a   : > { %v5658_v28 = vpop.eup %5657 }
 0x54b   : > { %v1949_v18 = vpop.permute.xlu1 %1948  ;;  %v1845_v11 = vmul.f32 %v5658_v28, %v6710_v43 }
 0x54c   : > { %5381 = vmatprep.subr.msk.bf16.mxu1 %vm1086_vm3, %v1949_v18  ;;  %v1969_v34 = vsel %vm1086_vm3, %v1949_v18, 0  ;;  %v1945_v14 = vpop.permute.xlu0 %1944 }
 0x54d   : > { %v1849_v60 = vpack.c.bf16 %v1845_v11, %v1845_v11 }
 0x54e   : > { %5102 = vmatpush3.bf16.xpose.msra.mxu1 %v1969_v34  ;;  %v5660_v39 = vpop.eup %5659 }
 0x54f   : > { %v1843_v52 = vmul.f32 %v5660_v39, %v6714_v46  ;;  %v1943_v1 = vpop.permute.xlu1 %1942 }
 0x553   : > { %v1947_v43 = vpop.permute.xlu1 %1946 }
 0x555   : > { %v5662_v44 = vpop.eup %5661 }
 0x556   : > { %v1844_v3 = vmul.f32 %v5662_v44, %v6718_v0 }
 0x558   : > { %v1848_v48 = vpack.c.bf16 %v1844_v3, %v1843_v52 }
 0x55a   : > { %5091 = vmatprep.mubr.msk.bf16.mxu1 %vm1189_vm6, %v1848_v48 }
 0x55b   : > { %5092 = vmatmul.mubr.msk.bf16.gmra.mxu1 %vm1189_vm6, %v1849_v60 }
 0x55c   : > { %5103 = vmatprep.mubr.msk.bf16.mxu1 %vm1086_vm3, %v1941_v63 }
 0x563   : > { %5104 = vmatmul.mubr.msk.bf16.vlgmr.msra.gmra.mxu1 %vm1086_vm3, %v1943_v1 }
 0x564   : > { %5107 = vmatprep.mubr.msk.bf16.mxu1 %vm1086_vm3, %v1945_v14 }
 0x56b   : > { %5108 = vmatmul.mubr.msk.bf16.gmra.mxu1 %vm1086_vm3, %v1947_v43 }
 0x59d   : > { %v6795_v46 = vpop.f32.mrf.mxu1 }
 0x59f   : > { %v6797_v0 = vpop.f32.mrf.mxu1 }
 0x5a1   : > { %v6799_v2 = vpop.f32.mrf.mxu1 }
 0x5a3   : > { %v6801_v45 = vpop.f32.mrf.mxu1 }
 0x5ad   : > { %v6803_v54 = vpop.f32.mrf.mxu1 }
 0x5ae   : > { %7847 = vst [vmem:[#allocation8_spill] sm:$0xff] %v6803_v54 }
 0x5af   : > { %v6805_v23 = vpop.f32.mrf.mxu1 }
 0x5b1   : > { %v5030_v51 = vpop.f32.mrf.mxu1 }
 0x5b3   : > { %v6807_v35 = vpop.f32.mrf.mxu1 }
 0x5b5   : > { %v6809_v10 = vpop.f32.mrf.mxu1 }
 0x5b7   : > { %v6811_v42 = vpop.f32.mrf.mxu1 }
 0x5b9   : > { %v6813_v20 = vpop.f32.mrf.mxu1 }
 0x5bb   : > { %v6817_v8 = vpop.f32.mrf.mxu1 }
 0x5bd   : > { %v6821_v12 = vpop.f32.mrf.mxu1 }
 0x5bf   : > { %v6823_v55 = vpop.f32.mrf.mxu1 }
 0x5c1   : > { %v5062_v16 = vpop.f32.mrf.mxu1 }
 0x5c3   : > { %v6825_v49 = vpop.f32.mrf.mxu1 }
 0x5e6   : > { %v6829_v4 = vpop.f32.mrf.mxu1 }
 0x5e8   : > { %v6831_v9 = vpop.f32.mrf.mxu1 }
 0x5ea   : > { %v6833_v37 = vpop.f32.mrf.mxu1 }
 0x5ec   : > { %v6837_v7 = vpop.f32.mrf.mxu1 }
 0x61b   : > { %v6841_v36 = vpop.f32.mrf.mxu1 }
 0x61d   : > { %v6843_v25 = vpop.f32.mrf.mxu1 }
 0x61f   : > { %v5094_v41 = vpop.f32.mrf.mxu1 }
 0x621   : > { %v6845_v29 = vpop.f32.mrf.mxu1 }
 0x623   : > { %v5105_v38 = vpop.f32.mrf.mxu1 }
 0x624   : > { %v2046_v32 = vmul.f32 0.35355338, %v5105_v38 }
 0x625   : > { %v2014_v40 = vpop.f32.mrf.mxu1 }
 0x626   : > { %v2044_v33 = vmul.f32 0.35355338, %v2014_v40  ;;  %v2053_v58 = vsel %vm1069_vm5, %v2046_v32, -1e+30 }
 0x627   : > { %v5106_v30 = vpop.f32.mrf.mxu1  ;;  %v2064_v44 = vsel %vm1189_vm6, %v2053_v58, -inf }
 0x628   : > { %v2051_v62 = vsel %vm1069_vm5, %v2044_v33, -1e+30  ;;  %v2047_v24 = vmul.f32 0.35355338, %v5106_v30 }
 0x629   : > { %v2017_v59 = vpop.f32.mrf.mxu1  ;;  %v2058_v31 = vsel %vm1189_vm6, %v2051_v62, -inf }
 0x62a   : > { %v2045_v18 = vmul.f32 0.35355338, %v2017_v59  ;;  %2059 = vmax.xlane.f32.xlu0 %v2058_v31  ;;  %v2054_v52 = vsel %vm1069_vm5, %v2047_v24, -1e+30 }
 0x62b   : > { %v5109_v34 = vpop.f32.mrf.mxu1  ;;  %v2067_v63 = vsel %vm1189_vm6, %v2054_v52, -inf }
 0x62c   : > { %v2052_v28 = vsel %vm1069_vm5, %v2045_v18, -1e+30  ;;  %v2050_v3 = vmul.f32 0.35355338, %v5109_v34 }
 0x62d   : > { %v2030_v39 = vpop.f32.mrf.mxu1  ;;  %v2061_v11 = vsel %vm1189_vm6, %v2052_v28, -inf }
 0x62e   : > { %2065 = vmax.xlane.f32.xlu0 %v2064_v44  ;;  %2062 = vmax.xlane.f32.xlu1 %v2061_v11  ;;  %v2057_v1 = vsel %vm1069_vm5, %v2050_v3, -1e+30  ;;  %v2048_v14 = vmul.f32 0.35355338, %v2030_v39 }
 0x62f   : > { %v5110_v48 = vpop.f32.mrf.mxu1  ;;  %v2076_v16 = vsel %vm1189_vm6, %v2057_v1, -inf }
 0x630   : > { %v2055_v38 = vsel %vm1069_vm5, %v2048_v14, -1e+30 }
 0x631   : > { %v2033_v60 = vpop.f32.mrf.mxu1  ;;  %v2070_v40 = vsel %vm1189_vm6, %v2055_v38, -inf }
 0x632   : > { %v2049_v43 = vmul.f32 0.35355338, %v2033_v60  ;;  %2068 = vmax.xlane.f32.xlu0 %v2067_v63 }
 0x634   : > { %v2056_v51 = vsel %vm1069_vm5, %v2049_v43, -1e+30 }
 0x635   : > { %v2073_v41 = vsel %vm1189_vm6, %v2056_v51, -inf }
 0x636   : > { %2077 = vmax.xlane.f32.xlu0 %v2076_v16  ;;  %2074 = vmax.xlane.f32.xlu1 %v2073_v41 }
 0x63a   : > { %2071 = vmax.xlane.f32.xlu0 %v2070_v40 }
 0x647   : > { %2145 = vrot.lane.b32.xlu1 %v6339_v61, %s5924_s26 }
 0x64b   : > { %2141 = vrot.lane.b32.xlu1 %v6349_v5, %s5924_s26 }
 0x64f   : > { %2139 = vrot.lane.b32.xlu1 %v6332_v47, %s5924_s26 }
 0x650   : > { %2143 = vrot.lane.b32.xlu0 %v6351_v6, %s5924_s26 }
 0x6b3   : > { %v2060_v32 = vpop.xlane.xlu0 %2059 }
 0x6b4   : > { %v2079_v33 = vsub.f32 %v2051_v62, %v2060_v32 }
 0x6b6   : > { %v2086_v34 = vmul.f32 1.442695, %v2079_v33 }
 0x6b7   : > { %v2063_v30 = vpop.xlane.xlu1 %2062  ;;  %v2066_v59 = vpop.xlane.xlu0 %2065 }
 0x6b8   : > { %v2081_v31 = vsub.f32 %v2053_v58, %v2066_v59  ;;  %v2080_v24 = vsub.f32 %v2052_v28, %v2063_v30 }
 0x6ba   : > { %v2090_v18 = vmul.f32 1.442695, %v2081_v31  ;;  %v2088_v61 = vmul.f32 1.442695, %v2080_v24 }
 0x6bb   : > { %v2069_v39 = vpop.xlane.xlu0 %2068 }
 0x6bc   : > { %v2082_v44 = vsub.f32 %v2054_v52, %v2069_v39  ;;  %5663 = vpow2.f32 %v2090_v18 }
 0x6bd   : > { %5665 = vpow2.f32 %v2086_v34 }
 0x6be   : > { %v2092_v11 = vmul.f32 1.442695, %v2082_v44  ;;  %v5859_v44 = vld [vmem:[%s6038_s30] ss:$0 sm:$0xff]  ;;  %s5925_s30 = smov 8  }
 0x6bf   : > { %v2075_v5 = vpop.xlane.xlu1 %2074  ;;  %v2078_v3 = vpop.xlane.xlu0 %2077 }
 0x6c0   : > { %5667 = vpow2.f32 %v2092_v11  ;;  %v2085_v47 = vsub.f32 %v2057_v1, %v2078_v3  ;;  %v2084_v6 = vsub.f32 %v2056_v51, %v2075_v5 }
 0x6c1   : > { %5669 = vpow2.f32 %v2088_v61  ;;  %v1064_v61 = vadd.f32 %v5859_v44, %v6446_v57 }
 0x6c2   : > { %v2098_v48 = vmul.f32 1.442695, %v2085_v47  ;;  %v2096_v28 = vmul.f32 1.442695, %v2084_v6 }
 0x6c3   : > { %v2146_v62 = vpop.permute.xlu1 %2145  ;;  %v2072_v60 = vpop.xlane.xlu0 %2071  ;;  %v6893_v11 = vpack.c.bf16 %v1064_v61, %v1064_v61 }
 0x6c4   : > { %v2083_v63 = vsub.f32 %v2055_v38, %v2072_v60  ;;  %5382 = vmatprep.subr.msk.bf16.mxu0 %vm1294_vm4, %v2146_v62  ;;  %v2163_v58 = vsel %vm1294_vm4, %v2146_v62, 0  ;;  %5671 = vpow2.f32 %v2098_v48 }
 0x6c5   : > { %5112 = vmatpush3.bf16.msra.mxu0 %v2163_v58 }
 0x6c6   : > { %v2094_v52 = vmul.f32 1.442695, %v2083_v63 }
 0x6c7   : > { %v2142_v14 = vpop.permute.xlu1 %2141  ;;  %v2144_v43 = vpop.permute.xlu0 %2143 }
 0x6c8   : > { %5673 = vpow2.f32 %v2094_v52  ;;  %5113 = vmatprep.subr.bf16.mxu0 %v2144_v43 }
 0x6c9   : > { %5114 = vmatpush3.bf16.msra.mxu0 %v2144_v43  ;;  %v5664_v1 = vpop.eup %5663  ;;  %5675 = vpow2.f32 %v2096_v28 }
 0x6ca   : > { %5115 = vmatprep.subr.bf16.mxu0 %v2142_v14  ;;  %v2106_v51 = vsel %vm1189_vm6, %v5664_v1, 0.0  ;;  %v5666_v16 = vpop.eup %5665 }
 0x6cb   : > { %2107 = vadd.xlane.f32.xlu1 %v2106_v51  ;;  %v2140_v38 = vpop.permute.xlu1 %2139  ;;  %v2100_v33 = vsel %vm1189_vm6, %v5666_v16, 0.0 }
 0x6cd   : > { %v5668_v41 = vpop.eup %5667  ;;  %5116 = vmatpush3.bf16.msra.mxu0 %v2142_v14 }
 0x6ce   : > { %5117 = vmatprep.subr.bf16.mxu0 %v2140_v38  ;;  %v2109_v40 = vsel %vm1189_vm6, %v5668_v41, 0.0  ;;  %v5670_v32 = vpop.eup %5669 }
 0x6cf   : > { %2110 = vadd.xlane.f32.xlu0 %v2109_v40  ;;  %2101 = vadd.xlane.f32.xlu1 %v2100_v33  ;;  %v2103_v30 = vsel %vm1189_vm6, %v5670_v32, 0.0 }
 0x6d1   : > { %5118 = vmatpush3.bf16.msra.mxu0 %v2140_v38  ;;  %v5672_v59 = vpop.eup %5671 }
 0x6d2   : > { %v2118_v24 = vsel %vm1189_vm6, %v5672_v59, 0.0 }
 0x6d3   : > { %2104 = vadd.xlane.f32.xlu0 %v2103_v30 }
 0x6d5   : > { %v5674_v31 = vpop.eup %5673 }
 0x6d6   : > { %v2112_v18 = vsel %vm1189_vm6, %v5674_v31, 0.0  ;;  %v5676_v34 = vpop.eup %5675 }
 0x6d7   : > { %2119 = vadd.xlane.f32.xlu0 %v2118_v24  ;;  %2113 = vadd.xlane.f32.xlu1 %v2112_v18  ;;  %v2115_v39 = vsel %vm1189_vm6, %v5676_v34, 0.0 }
 0x6db   : > { %2116 = vadd.xlane.f32.xlu0 %v2115_v39 }
 0x6e8   : > { %2348 = vrot.lane.b32.xlu1 %v6444_v56, %s5915_s27 }
 0x6ec   : > { %2346 = vrot.lane.b32.xlu1 %v6432_v13, %s5915_s27 }
 0x6f0   : > { %2344 = vrot.lane.b32.xlu1 %v6425_v50, %s5915_s27 }
 0x6f1   : > { %2350 = vrot.lane.b32.xlu0 %v6893_v11, %s5915_s27  ;;  %s7871_s27 = sld [smem:[#allocation7_spill]] }
 0x754   : > { %v2108_v5 = vpop.xlane.xlu1 %2107 }
 0x758   : > { %v2111_v3 = vpop.xlane.xlu0 %2110  ;;  %v2102_v47 = vpop.xlane.xlu1 %2101 }
 0x759   : > { %5677 = vrcp.f32 %v2111_v3 }
 0x75a   : > { %5679 = vrcp.f32 %v2102_v47 }
 0x75b   : > { %5681 = vrcp.f32 %v2108_v5 }
 0x75c   : > { %v2105_v6 = vpop.xlane.xlu0 %2104 }
 0x75d   : > { %5683 = vrcp.f32 %v2105_v6 }
 0x760   : > { %v2114_v57 = vpop.xlane.xlu1 %2113  ;;  %v2120_v48 = vpop.xlane.xlu0 %2119 }
 0x761   : > { %5685 = vrcp.f32 %v2120_v48 }
 0x762   : > { %5687 = vrcp.f32 %v2114_v57 }
 0x764   : > { %v2117_v62 = vpop.xlane.xlu0 %2116  ;;  %v2349_v39 = vpop.permute.xlu1 %2348 }
 0x765   : > { %5689 = vrcp.f32 %v2117_v62  ;;  %v2371_v5 = vsel %vm1086_vm3, %v2349_v39, 0 }
 0x766   : > { %v5678_v60 = vpop.eup %5677 }
 0x767   : > { %v5680_v63 = vpop.eup %5679  ;;  %v2131_v14 = vmul.f32 %v5678_v60, %v5668_v41 }
 0x768   : > { %v2351_v58 = vpop.permute.xlu0 %2350  ;;  %v5682_v28 = vpop.eup %5681  ;;  %v2128_v43 = vmul.f32 %v5680_v63, %v5666_v16 }
 0x769   : > { %5383 = vmatprep.subr.msk.bf16.mxu0 %vm1086_vm3, %v2351_v58  ;;  %v2130_v38 = vmul.f32 %v5682_v28, %v5664_v1  ;;  %v2374_v18 = vsel %vm1086_vm3, %v2351_v58, 0  ;;  %v2347_v3 = vpop.permute.xlu1 %2346 }
 0x76a   : > { %v5684_v52 = vpop.eup %5683  ;;  %v2368_v47 = vsel %vm1086_vm3, %v2347_v3, 0 }
 0x76b   : > { %v2129_v51 = vmul.f32 %v5684_v52, %v5670_v32  ;;  %v2136_v33 = vpack.c.bf16 %v2131_v14, %v2130_v38 }
 0x76d   : > { %v2135_v40 = vpack.c.bf16 %v2129_v51, %v2128_v43 }
 0x76e   : > { %v5686_v30 = vpop.eup %5685 }
 0x76f   : > { %5119 = vmatprep.mubr.msk.bf16.mxu0 %vm1189_vm6, %v2135_v40  ;;  %v5688_v24 = vpop.eup %5687  ;;  %v2134_v61 = vmul.f32 %v5686_v30, %v5672_v59  ;;  %v2345_v59 = vpop.permute.xlu1 %2344 }
 0x770   : > { %5120 = vmatmul.mubr.msk.bf16.vlgmr.msra.gmra.mxu0 %vm1189_vm6, %v2136_v33  ;;  %v2132_v41 = vmul.f32 %v5688_v24, %v5674_v31  ;;  %v2365_v31 = vsel %vm1086_vm3, %v2345_v59, 0 }
 0x771   : > { %5128 = vmatpush3.bf16.xpose.msra.mxu0 %v2374_v18  ;;  %v2138_v1 = vpack.c.bf16 %v2134_v61, %v2134_v61 }
 0x772   : > { %v5690_v44 = vpop.eup %5689  ;;  %5384 = vmatprep.subr.msk.bf16.mxu0 %vm1086_vm3, %v2349_v39 }
 0x773   : > { %v2133_v16 = vmul.f32 %v5690_v44, %v5676_v34 }
 0x775   : > { %v2137_v32 = vpack.c.bf16 %v2133_v16, %v2132_v41 }
 0x777   : > { %5123 = vmatprep.mubr.msk.bf16.mxu0 %vm1189_vm6, %v2137_v32 }
 0x778   : > { %5124 = vmatmul.mubr.msk.bf16.gmra.mxu0 %vm1189_vm6, %v2138_v1 }
 0x779   : > { %5130 = vmatpush3.bf16.xpose.msra.mxu0 %v2371_v5  ;;  %5135 = vmatprep.mubr.msk.bf16.mxu0 %vm1086_vm3, %v6425_v50 }
 0x77a   : > { %5385 = vmatprep.subr.msk.bf16.mxu0 %vm1086_vm3, %v2347_v3 }
 0x781   : > { %5132 = vmatpush3.bf16.xpose.msra.mxu0 %v2368_v47 }
 0x782   : > { %5386 = vmatprep.subr.msk.bf16.mxu0 %vm1086_vm3, %v2345_v59 }
 0x789   : > { %5134 = vmatpush3.bf16.xpose.msra.mxu0 %v2365_v31 }
 0x790   : > { %5136 = vmatmul.mubr.msk.bf16.vlgmr.msra.gmra.mxu0 %vm1086_vm3, %v6432_v13 }
 0x791   : > { %5139 = vmatprep.mubr.msk.bf16.mxu0 %vm1086_vm3, %v6444_v56 }
 0x798   : > { %5140 = vmatmul.mubr.msk.bf16.gmra.mxu0 %vm1086_vm3, %v6893_v11 }
 0x830   : > { %v6919_v34 = vpop.f32.mrf.mxu0 }
 0x832   : > { %v6921_v6 = vpop.f32.mrf.mxu0 }
 0x834   : > { %v6923_v57 = vpop.f32.mrf.mxu0 }
 0x836   : > { %v6927_v62 = vpop.f32.mrf.mxu0 }
 0x838   : > { %v6931_v63 = vpop.f32.mrf.mxu0 }
 0x83a   : > { %v6933_v58 = vpop.f32.mrf.mxu0 }
 0x83c   : > { %v5126_v28 = vpop.f32.mrf.mxu0 }
 0x83e   : > { %v6935_v52 = vpop.f32.mrf.mxu0 }
 0x850   : > { %v5137_v43 = vpop.f32.mrf.mxu0 }
 0x851   : > { %v2442_v38 = vmul.f32 0.35355338, %v5137_v43 }
 0x852   : > { %v2410_v51 = vpop.f32.mrf.mxu0 }
 0x853   : > { %v2440_v40 = vmul.f32 0.35355338, %v2410_v51  ;;  %v2449_v39 = vsel %vm1069_vm5, %v2442_v38, -1e+30 }
 0x854   : > { %v5138_v33 = vpop.f32.mrf.mxu0  ;;  %v2460_v1 = vsel %vm1189_vm6, %v2449_v39, -inf }
 0x855   : > { %v2447_v30 = vsel %vm1069_vm5, %v2440_v40, -1e+30  ;;  %v2443_v44 = vmul.f32 0.35355338, %v5138_v33 }
 0x856   : > { %v2413_v24 = vpop.f32.mrf.mxu0  ;;  %v2454_v18 = vsel %vm1189_vm6, %v2447_v30, -inf }
 0x857   : > { %v2441_v61 = vmul.f32 0.35355338, %v2413_v24  ;;  %2455 = vmax.xlane.f32.xlu0 %v2454_v18  ;;  %v2450_v3 = vsel %vm1069_vm5, %v2443_v44, -1e+30 }
 0x858   : > { %v5141_v41 = vpop.f32.mrf.mxu0  ;;  %v2463_v28 = vsel %vm1189_vm6, %v2450_v3, -inf }
 0x859   : > { %v2448_v16 = vsel %vm1069_vm5, %v2441_v61, -1e+30  ;;  %v2446_v47 = vmul.f32 0.35355338, %v5141_v41 }
 0x85a   : > { %v2426_v32 = vpop.f32.mrf.mxu0  ;;  %v2457_v5 = vsel %vm1189_vm6, %v2448_v16, -inf }
 0x85b   : > { %2461 = vmax.xlane.f32.xlu0 %v2460_v1  ;;  %2458 = vmax.xlane.f32.xlu1 %v2457_v5  ;;  %v2453_v43 = vsel %vm1069_vm5, %v2446_v47, -1e+30  ;;  %v2444_v51 = vmul.f32 0.35355338, %v2426_v32 }
 0x85c   : > { %v5142_v59 = vpop.f32.mrf.mxu0  ;;  %v2472_v33 = vsel %vm1189_vm6, %v2453_v43, -inf }
 0x85d   : > { %v2451_v18 = vsel %vm1069_vm5, %v2444_v51, -1e+30 }
 0x85e   : > { %v2429_v31 = vpop.f32.mrf.mxu0  ;;  %v2466_v44 = vsel %vm1189_vm6, %v2451_v18, -inf }
 0x85f   : > { %v2445_v38 = vmul.f32 0.35355338, %v2429_v31  ;;  %2464 = vmax.xlane.f32.xlu0 %v2463_v28 }
 0x861   : > { %v2452_v40 = vsel %vm1069_vm5, %v2445_v38, -1e+30 }
 0x862   : > { %v2469_v24 = vsel %vm1189_vm6, %v2452_v40, -inf }
 0x863   : > { %2473 = vmax.xlane.f32.xlu0 %v2472_v33  ;;  %2470 = vmax.xlane.f32.xlu1 %v2469_v24 }
 0x867   : > { %2467 = vmax.xlane.f32.xlu0 %v2466_v44 }
 0x874   : > { %2541 = vrot.lane.b32.xlu1 %v6893_v11, %s5919_s22 }
 0x878   : > { %2537 = vrot.lane.b32.xlu1 %v6432_v13, %s5919_s22 }
 0x87c   : > { %2535 = vrot.lane.b32.xlu1 %v6425_v50, %s5919_s22 }
 0x87d   : > { %2539 = vrot.lane.b32.xlu0 %v6444_v56, %s5919_s22 }
 0x8e0   : > { %v2456_v61 = vpop.xlane.xlu0 %2455 }
 0x8e1   : > { %v2475_v41 = vsub.f32 %v2447_v30, %v2456_v61 }
 0x8e3   : > { %v2482_v47 = vmul.f32 1.442695, %v2475_v41 }
 0x8e4   : > { %v2462_v32 = vpop.xlane.xlu0 %2461  ;;  %v2459_v1 = vpop.xlane.xlu1 %2458 }
 0x8e5   : > { %v2477_v5 = vsub.f32 %v2449_v39, %v2462_v32  ;;  %v2476_v31 = vsub.f32 %v2448_v16, %v2459_v1 }
 0x8e7   : > { %v2486_v59 = vmul.f32 1.442695, %v2477_v5  ;;  %v2484_v38 = vmul.f32 1.442695, %v2476_v31 }
 0x8e8   : > { %v2465_v28 = vpop.xlane.xlu0 %2464 }
 0x8e9   : > { %5691 = vpow2.f32 %v2486_v59  ;;  %v2478_v51 = vsub.f32 %v2450_v3, %v2465_v28 }
 0x8ea   : > { %5693 = vpow2.f32 %v2482_v47 }
 0x8eb   : > { %v2488_v33 = vmul.f32 1.442695, %v2478_v51 }
 0x8ec   : > { %v2474_v24 = vpop.xlane.xlu0 %2473  ;;  %v2471_v44 = vpop.xlane.xlu1 %2470 }
 0x8ed   : > { %5695 = vpow2.f32 %v2488_v33  ;;  %v2481_v14 = vsub.f32 %v2453_v43, %v2474_v24  ;;  %v2480_v22 = vsub.f32 %v2452_v40, %v2471_v44 }
 0x8ee   : > { %5697 = vpow2.f32 %v2484_v38 }
 0x8ef   : > { %v2494_v27 = vmul.f32 1.442695, %v2481_v14  ;;  %v2492_v16 = vmul.f32 1.442695, %v2480_v22 }
 0x8f0   : > { %v2468_v30 = vpop.xlane.xlu0 %2467  ;;  %v2542_v61 = vpop.permute.xlu1 %2541 }
 0x8f1   : > { %v2479_v26 = vsub.f32 %v2451_v18, %v2468_v30  ;;  %5387 = vmatprep.subr.msk.bf16.mxu1 %vm1294_vm4, %v2542_v61  ;;  %v2559_v39 = vsel %vm1294_vm4, %v2542_v61, 0  ;;  %5699 = vpow2.f32 %v2494_v27 }
 0x8f2   : > { %5144 = vmatpush3.bf16.msra.mxu1 %v2559_v39 }
 0x8f3   : > { %v2490_v3 = vmul.f32 1.442695, %v2479_v26 }
 0x8f4   : > { %v2540_v41 = vpop.permute.xlu0 %2539  ;;  %v2538_v32 = vpop.permute.xlu1 %2537 }
 0x8f5   : > { %5701 = vpow2.f32 %v2490_v3  ;;  %5145 = vmatprep.subr.bf16.mxu1 %v2540_v41 }
 0x8f6   : > { %v5692_v1 = vpop.eup %5691  ;;  %5146 = vmatpush3.bf16.msra.mxu1 %v2540_v41  ;;  %5703 = vpow2.f32 %v2492_v16 }
 0x8f7   : > { %5147 = vmatprep.subr.bf16.mxu1 %v2538_v32  ;;  %v2502_v14 = vsel %vm1189_vm6, %v5692_v1, 0.0  ;;  %v5694_v43 = vpop.eup %5693 }
 0x8f8   : > { %2503 = vadd.xlane.f32.xlu1 %v2502_v14  ;;  %v2536_v18 = vpop.permute.xlu1 %2535  ;;  %v2496_v26 = vsel %vm1189_vm6, %v5694_v43, 0.0 }
 0x8fa   : > { %v5696_v40 = vpop.eup %5695  ;;  %5148 = vmatpush3.bf16.msra.mxu1 %v2538_v32 }
 0x8fb   : > { %5149 = vmatprep.subr.bf16.mxu1 %v2536_v18  ;;  %v2505_v27 = vsel %vm1189_vm6, %v5696_v40, 0.0  ;;  %v5698_v22 = vpop.eup %5697 }
 0x8fc   : > { %2506 = vadd.xlane.f32.xlu0 %v2505_v27  ;;  %2497 = vadd.xlane.f32.xlu1 %v2496_v26  ;;  %v2499_v5 = vsel %vm1189_vm6, %v5698_v22, 0.0 }
 0x8fe   : > { %5150 = vmatpush3.bf16.msra.mxu1 %v2536_v18  ;;  %v5700_v47 = vpop.eup %5699 }
 0x8ff   : > { %v2514_v31 = vsel %vm1189_vm6, %v5700_v47, 0.0 }
 0x900   : > { %2500 = vadd.xlane.f32.xlu0 %v2499_v5 }
 0x902   : > { %v5702_v59 = vpop.eup %5701 }
 0x903   : > { %v2508_v28 = vsel %vm1189_vm6, %v5702_v59, 0.0  ;;  %v5704_v51 = vpop.eup %5703 }
 0x904   : > { %2515 = vadd.xlane.f32.xlu0 %v2514_v31  ;;  %2509 = vadd.xlane.f32.xlu1 %v2508_v28  ;;  %v2511_v38 = vsel %vm1189_vm6, %v5704_v51, 0.0 }
 0x908   : > { %2512 = vadd.xlane.f32.xlu0 %v2511_v38 }
 0x915   : > { %2637 = vrot.lane.b32.xlu1 %v6444_v56, %s5914_s29 }
 0x919   : > { %2635 = vrot.lane.b32.xlu1 %v6432_v13, %s5914_s29 }
 0x91d   : > { %2633 = vrot.lane.b32.xlu1 %v6425_v50, %s5914_s29 }
 0x91e   : > { %2639 = vrot.lane.b32.xlu0 %v6893_v11, %s5914_s29  ;;  %s5927_s29 = smov 24  }
 0x921   : > { %2627 = vrot.lane.b32.xlu1 %v6432_v13, %s5916_s16 }
 0x922   : > { %2625 = vrot.lane.b32.xlu0 %v6425_v50, %s5916_s16 }
 0x925   : > { %2631 = vrot.lane.b32.xlu1 %v6893_v11, %s5916_s16 }
 0x926   : > { %2629 = vrot.lane.b32.xlu0 %v6444_v56, %s5916_s16 }
 0x981   : > { %v2504_v33 = vpop.xlane.xlu1 %2503 }
 0x985   : > { %v2507_v24 = vpop.xlane.xlu0 %2506  ;;  %v2498_v44 = vpop.xlane.xlu1 %2497 }
 0x986   : > { %5705 = vrcp.f32 %v2507_v24 }
 0x987   : > { %5707 = vrcp.f32 %v2498_v44 }
 0x988   : > { %5709 = vrcp.f32 %v2504_v33 }
 0x989   : > { %v2501_v30 = vpop.xlane.xlu0 %2500 }
 0x98a   : > { %5711 = vrcp.f32 %v2501_v30 }
 0x98d   : > { %v2516_v61 = vpop.xlane.xlu0 %2515  ;;  %v2510_v39 = vpop.xlane.xlu1 %2509 }
 0x98e   : > { %5713 = vrcp.f32 %v2516_v61 }
 0x98f   : > { %5715 = vrcp.f32 %v2510_v39 }
 0x991   : > { %v2513_v16 = vpop.xlane.xlu0 %2512  ;;  %v2638_v30 = vpop.permute.xlu1 %2637 }
 0x992   : > { %5717 = vrcp.f32 %v2513_v16 }
 0x993   : > { %v5706_v3 = vpop.eup %5705 }
 0x994   : > { %v5708_v41 = vpop.eup %5707  ;;  %v2527_v27 = vmul.f32 %v5706_v3, %v5696_v40  ;;  %v2660_v3 = vsel %vm1086_vm3, %v2638_v30, 0 }
 0x995   : > { %v2640_v32 = vpop.permute.xlu0 %2639  ;;  %v5710_v14 = vpop.eup %5709  ;;  %v2524_v26 = vmul.f32 %v5708_v41, %v5694_v43 }
 0x996   : > { %5388 = vmatprep.subr.msk.bf16.mxu1 %vm1086_vm3, %v2640_v32  ;;  %v2526_v31 = vmul.f32 %v5710_v14, %v5692_v1  ;;  %v2663_v44 = vsel %vm1086_vm3, %v2640_v32, 0  ;;  %v2636_v41 = vpop.permute.xlu1 %2635 }
 0x997   : > { %v5712_v18 = vpop.eup %5711  ;;  %v2657_v32 = vsel %vm1086_vm3, %v2636_v41, 0 }
 0x998   : > { %v2525_v5 = vmul.f32 %v5712_v18, %v5698_v22  ;;  %v2532_v38 = vpack.c.bf16 %v2527_v27, %v2526_v31 }
 0x999   : > { %v2626_v16 = vpop.permute.xlu0 %2625 }
 0x99a   : > { %v2531_v28 = vpack.c.bf16 %v2525_v5, %v2524_v26 }
 0x99b   : > { %v5714_v33 = vpop.eup %5713 }
 0x99c   : > { %5151 = vmatprep.mubr.msk.bf16.mxu1 %vm1189_vm6, %v2531_v28  ;;  %v5716_v24 = vpop.eup %5715  ;;  %v2530_v39 = vmul.f32 %v5714_v33, %v5700_v47  ;;  %v2634_v47 = vpop.permute.xlu1 %2633 }
 0x99d   : > { %5152 = vmatmul.mubr.msk.bf16.vlgmr.msra.gmra.mxu1 %vm1189_vm6, %v2532_v38  ;;  %v2528_v40 = vmul.f32 %v5716_v24, %v5702_v59  ;;  %v2654_v59 = vsel %vm1086_vm3, %v2634_v47, 0  ;;  %v2630_v14 = vpop.permute.xlu0 %2629 }
 0x99e   : > { %5160 = vmatpush3.bf16.xpose.msra.mxu1 %v2663_v44  ;;  %v2534_v1 = vpack.c.bf16 %v2530_v39, %v2530_v39 }
 0x99f   : > { %v5718_v61 = vpop.eup %5717  ;;  %5389 = vmatprep.subr.msk.bf16.mxu1 %vm1086_vm3, %v2638_v30 }
 0x9a0   : > { %v2529_v43 = vmul.f32 %v5718_v61, %v5704_v51  ;;  %v2628_v51 = vpop.permute.xlu1 %2627 }
 0x9a2   : > { %v2533_v22 = vpack.c.bf16 %v2529_v43, %v2528_v40 }
 0x9a4   : > { %5155 = vmatprep.mubr.msk.bf16.mxu1 %vm1189_vm6, %v2533_v22  ;;  %v2632_v18 = vpop.permute.xlu1 %2631 }
 0x9a5   : > { %5156 = vmatmul.mubr.msk.bf16.gmra.mxu1 %vm1189_vm6, %v2534_v1 }
 0x9a6   : > { %5162 = vmatpush3.bf16.xpose.msra.mxu1 %v2660_v3  ;;  %5167 = vmatprep.mubr.msk.bf16.mxu1 %vm1086_vm3, %v2626_v16 }
 0x9a7   : > { %5390 = vmatprep.subr.msk.bf16.mxu1 %vm1086_vm3, %v2636_v41 }
 0x9ae   : > { %5164 = vmatpush3.bf16.xpose.msra.mxu1 %v2657_v32 }
 0x9af   : > { %5391 = vmatprep.subr.msk.bf16.mxu1 %vm1086_vm3, %v2634_v47 }
 0x9b6   : > { %5166 = vmatpush3.bf16.xpose.msra.mxu1 %v2654_v59 }
 0x9bd   : > { %5168 = vmatmul.mubr.msk.bf16.vlgmr.msra.gmra.mxu1 %vm1086_vm3, %v2628_v51 }
 0x9be   : > { %5171 = vmatprep.mubr.msk.bf16.mxu1 %vm1086_vm3, %v2630_v14 }
 0x9c5   : > { %5172 = vmatmul.mubr.msk.bf16.gmra.mxu1 %vm1086_vm3, %v2632_v18 }
 0xa5d   : > { %v7009_v27 = vpop.f32.mrf.mxu1 }
 0xa5e   : > { %7848 = vst [vmem:[#allocation9_spill] sm:$0xff] %v7009_v27 }
 0xa5f   : > { %v7011_v26 = vpop.f32.mrf.mxu1 }
 0xa60   : > { %7849 = vst [vmem:[#allocation10_spill] sm:$0xff] %v7011_v26 }
 0xa61   : > { %v7013_v5 = vpop.f32.mrf.mxu1 }
 0xa62   : > { %7850 = vst [vmem:[#allocation11_spill] sm:$0xff] %v7013_v5 }
 0xa63   : > { %v7015_v31 = vpop.f32.mrf.mxu1 }
 0xa64   : > { %7851 = vst [vmem:[#allocation12_spill] sm:$0xff] %v7015_v31 }
 0xa65   : > { %v7017_v28 = vpop.f32.mrf.mxu1 }
 0xa66   : > { %7852 = vst [vmem:[#allocation13_spill] sm:$0xff] %v7017_v28 }
 0xa67   : > { %v7019_v38 = vpop.f32.mrf.mxu1 }
 0xa68   : > { %7853 = vst [vmem:[#allocation14_spill] sm:$0xff] %v7019_v38 }
 0xa69   : > { %v5158_v33 = vpop.f32.mrf.mxu1 }
 0xa6b   : > { %v7021_v24 = vpop.f32.mrf.mxu1 }
 0xa6c   : > { %7854 = vst [vmem:[#allocation15_spill] sm:$0xff] %v7021_v24 }
 0xa7d   : > { %v5169_v44 = vpop.f32.mrf.mxu1 }
 0xa7e   : > { %v2731_v61 = vmul.f32 0.35355338, %v5169_v44 }
 0xa7f   : > { %v2699_v30 = vpop.f32.mrf.mxu1 }
 0xa80   : > { %v2729_v39 = vmul.f32 0.35355338, %v2699_v30  ;;  %v2738_v16 = vsel %vm1069_vm5, %v2731_v61, -1e+30 }
 0xa81   : > { %v5170_v40 = vpop.f32.mrf.mxu1  ;;  %v2749_v51 = vsel %vm1189_vm6, %v2738_v16, -inf }
 0xa82   : > { %v2736_v43 = vsel %vm1069_vm5, %v2729_v39, -1e+30  ;;  %v2732_v3 = vmul.f32 0.35355338, %v5170_v40 }
 0xa83   : > { %v2702_v22 = vpop.f32.mrf.mxu1  ;;  %v2743_v1 = vsel %vm1189_vm6, %v2736_v43, -inf }
 0xa84   : > { %v2730_v41 = vmul.f32 0.35355338, %v2702_v22  ;;  %2744 = vmax.xlane.f32.xlu0 %v2743_v1  ;;  %v2739_v18 = vsel %vm1069_vm5, %v2732_v3, -1e+30 }
 0xa85   : > { %v5173_v32 = vpop.f32.mrf.mxu1  ;;  %v2752_v61 = vsel %vm1189_vm6, %v2739_v18, -inf }
 0xa86   : > { %v2737_v47 = vsel %vm1069_vm5, %v2730_v41, -1e+30  ;;  %v2735_v33 = vmul.f32 0.35355338, %v5173_v32 }
 0xa87   : > { %v2715_v59 = vpop.f32.mrf.mxu1  ;;  %v2746_v14 = vsel %vm1189_vm6, %v2737_v47, -inf }
 0xa88   : > { %2750 = vmax.xlane.f32.xlu0 %v2749_v51  ;;  %2747 = vmax.xlane.f32.xlu1 %v2746_v14  ;;  %v2742_v39 = vsel %vm1069_vm5, %v2735_v33, -1e+30  ;;  %v2733_v40 = vmul.f32 0.35355338, %v2715_v59 }
 0xa89   : > { %v5174_v44 = vpop.f32.mrf.mxu1  ;;  %v2761_v41 = vsel %vm1189_vm6, %v2742_v39, -inf }
 0xa8a   : > { %v2740_v32 = vsel %vm1069_vm5, %v2733_v40, -1e+30 }
 0xa8b   : > { %v2718_v30 = vpop.f32.mrf.mxu1  ;;  %v2755_v51 = vsel %vm1189_vm6, %v2740_v32, -inf }
 0xa8c   : > { %v2734_v22 = vmul.f32 0.35355338, %v2718_v30  ;;  %2753 = vmax.xlane.f32.xlu0 %v2752_v61 }
 0xa8e   : > { %v2741_v1 = vsel %vm1069_vm5, %v2734_v22, -1e+30 }
 0xa8f   : > { %v2758_v3 = vsel %vm1189_vm6, %v2741_v1, -inf }
 0xa90   : > { %2762 = vmax.xlane.f32.xlu0 %v2761_v41  ;;  %2759 = vmax.xlane.f32.xlu1 %v2758_v3 }
 0xa94   : > { %2756 = vmax.xlane.f32.xlu0 %v2755_v51 }
 0xaa1   : > { %2830 = vrot.lane.b32.xlu1 %v6893_v11, %s5920_s21 }
 0xaa5   : > { %2826 = vrot.lane.b32.xlu1 %v6432_v13, %s5920_s21 }
 0xaa9   : > { %2824 = vrot.lane.b32.xlu1 %v6425_v50, %s5920_s21 }
 0xaaa   : > { %2828 = vrot.lane.b32.xlu0 %v6444_v56, %s5920_s21 }
 0xb0d   : > { %v2745_v59 = vpop.xlane.xlu0 %2744 }
 0xb0e   : > { %v2764_v14 = vsub.f32 %v2736_v43, %v2745_v59 }
 0xb10   : > { %v2771_v61 = vmul.f32 1.442695, %v2764_v14 }
 0xb11   : > { %v2751_v33 = vpop.xlane.xlu0 %2750  ;;  %v2748_v44 = vpop.xlane.xlu1 %2747 }
 0xb12   : > { %v2766_v30 = vsub.f32 %v2738_v16, %v2751_v33  ;;  %v2765_v22 = vsub.f32 %v2737_v47, %v2748_v44 }
 0xb14   : > { %v2775_v40 = vmul.f32 1.442695, %v2766_v30  ;;  %v2773_v51 = vmul.f32 1.442695, %v2765_v22 }
 0xb15   : > { %v2754_v41 = vpop.xlane.xlu0 %2753 }
 0xb16   : > { %5719 = vpow2.f32 %v2775_v40  ;;  %v2767_v3 = vsub.f32 %v2739_v18, %v2754_v41 }
 0xb17   : > { %5721 = vpow2.f32 %v2771_v61 }
 0xb18   : > { %v2777_v48 = vmul.f32 1.442695, %v2767_v3 }
 0xb19   : > { %v2763_v21 = vpop.xlane.xlu0 %2762  ;;  %v2760_v60 = vpop.xlane.xlu1 %2759 }
 0xb1a   : > { %5723 = vpow2.f32 %v2777_v48  ;;  %v2770_v53 = vsub.f32 %v2742_v39, %v2763_v21  ;;  %v2769_v19 = vsub.f32 %v2741_v1, %v2760_v60 }
 0xb1b   : > { %5725 = vpow2.f32 %v2773_v51 }
 0xb1c   : > { %v2783_v17 = vmul.f32 1.442695, %v2770_v53  ;;  %v2781_v47 = vmul.f32 1.442695, %v2769_v19 }
 0xb1d   : > { %v2757_v43 = vpop.xlane.xlu0 %2756  ;;  %v2831_v59 = vpop.permute.xlu1 %2830 }
 0xb1e   : > { %v2768_v24 = vsub.f32 %v2740_v32, %v2757_v43  ;;  %5392 = vmatprep.subr.msk.bf16.mxu0 %vm1294_vm4, %v2831_v59  ;;  %v2848_v16 = vsel %vm1294_vm4, %v2831_v59, 0  ;;  %5727 = vpow2.f32 %v2783_v17 }
 0xb1f   : > { %5176 = vmatpush3.bf16.msra.mxu0 %v2848_v16 }
 0xb20   : > { %v2779_v18 = vmul.f32 1.442695, %v2768_v24 }
 0xb21   : > { %v2829_v14 = vpop.permute.xlu0 %2828  ;;  %v2827_v33 = vpop.permute.xlu1 %2826 }
 0xb22   : > { %5729 = vpow2.f32 %v2779_v18  ;;  %5177 = vmatprep.subr.bf16.mxu0 %v2829_v14 }
 0xb23   : > { %v5720_v48 = vpop.eup %5719  ;;  %5178 = vmatpush3.bf16.msra.mxu0 %v2829_v14  ;;  %5731 = vpow2.f32 %v2781_v47 }
 0xb24   : > { %5179 = vmatprep.subr.bf16.mxu0 %v2827_v33  ;;  %v2791_v21 = vsel %vm1189_vm6, %v5720_v48, 0.0  ;;  %v5722_v53 = vpop.eup %5721 }
 0xb25   : > { %2792 = vadd.xlane.f32.xlu1 %v2791_v21  ;;  %v2825_v39 = vpop.permute.xlu1 %2824  ;;  %v2785_v19 = vsel %vm1189_vm6, %v5722_v53, 0.0 }
 0xb27   : > { %v5724_v60 = vpop.eup %5723  ;;  %5180 = vmatpush3.bf16.msra.mxu0 %v2827_v33 }
 0xb28   : > { %5181 = vmatprep.subr.bf16.mxu0 %v2825_v39  ;;  %v2794_v17 = vsel %vm1189_vm6, %v5724_v60, 0.0  ;;  %v5726_v24 = vpop.eup %5725 }
 0xb29   : > { %2795 = vadd.xlane.f32.xlu0 %v2794_v17  ;;  %2786 = vadd.xlane.f32.xlu1 %v2785_v19  ;;  %v2788_v1 = vsel %vm1189_vm6, %v5726_v24, 0.0 }
 0xb2b   : > { %5182 = vmatpush3.bf16.msra.mxu0 %v2825_v39  ;;  %v5728_v32 = vpop.eup %5727 }
 0xb2c   : > { %v2803_v61 = vsel %vm1189_vm6, %v5728_v32, 0.0 }
 0xb2d   : > { %2789 = vadd.xlane.f32.xlu0 %v2788_v1 }
 0xb2f   : > { %v5730_v44 = vpop.eup %5729 }
 0xb30   : > { %v2797_v30 = vsel %vm1189_vm6, %v5730_v44, 0.0  ;;  %v5732_v40 = vpop.eup %5731 }
 0xb31   : > { %2798 = vadd.xlane.f32.xlu1 %v2797_v30  ;;  %2804 = vadd.xlane.f32.xlu0 %v2803_v61  ;;  %v2800_v22 = vsel %vm1189_vm6, %v5732_v40, 0.0 }
 0xb35   : > { %2801 = vadd.xlane.f32.xlu0 %v2800_v22 }
 0xb42   : > { %2926 = vrot.lane.b32.xlu1 %v6444_v56, %s5917_s17 }
 0xb46   : > { %2924 = vrot.lane.b32.xlu1 %v6432_v13, %s5917_s17 }
 0xb4a   : > { %2922 = vrot.lane.b32.xlu1 %v6425_v50, %s5917_s17 }
 0xb4b   : > { %2928 = vrot.lane.b32.xlu0 %v6893_v11, %s5917_s17 }
 0xb4e   : > { %2916 = vrot.lane.b32.xlu1 %v6432_v13, %s5918_s18 }
 0xb4f   : > { %2914 = vrot.lane.b32.xlu0 %v6425_v50, %s5918_s18 }
 0xb52   : > { %2920 = vrot.lane.b32.xlu1 %v6893_v11, %s5918_s18 }
 0xb53   : > { %2918 = vrot.lane.b32.xlu0 %v6444_v56, %s5918_s18  ;;  %s7882_s18 = scalar_lea.vmem %s7814_s6, %s6023_s20 }
 0xbae   : > { %v2793_v41 = vpop.xlane.xlu1 %2792 }
 0xbb2   : > { %v2796_v3 = vpop.xlane.xlu0 %2795  ;;  %v2787_v51 = vpop.xlane.xlu1 %2786 }
 0xbb3   : > { %5733 = vrcp.f32 %v2796_v3 }
 0xbb4   : > { %5735 = vrcp.f32 %v2787_v51 }
 0xbb5   : > { %5737 = vrcp.f32 %v2793_v41 }
 0xbb6   : > { %v2790_v43 = vpop.xlane.xlu0 %2789 }
 0xbb7   : > { %5739 = vrcp.f32 %v2790_v43 }
 0xbba   : > { %v2805_v59 = vpop.xlane.xlu0 %2804  ;;  %v2799_v16 = vpop.xlane.xlu1 %2798 }
 0xbbb   : > { %5741 = vrcp.f32 %v2805_v59 }
 0xbbc   : > { %5743 = vrcp.f32 %v2799_v16 }
 0xbbe   : > { %v2802_v47 = vpop.xlane.xlu0 %2801  ;;  %v2927_v43 = vpop.permute.xlu1 %2926 }
 0xbbf   : > { %5745 = vrcp.f32 %v2802_v47 }
 0xbc0   : > { %v5734_v18 = vpop.eup %5733 }
 0xbc1   : > { %v5736_v14 = vpop.eup %5735  ;;  %v2816_v17 = vmul.f32 %v5734_v18, %v5724_v60  ;;  %v2949_v18 = vsel %vm1086_vm3, %v2927_v43, 0 }
 0xbc2   : > { %v2929_v33 = vpop.permute.xlu0 %2928  ;;  %v5738_v21 = vpop.eup %5737  ;;  %v2813_v19 = vmul.f32 %v5736_v14, %v5722_v53 }
 0xbc3   : > { %5393 = vmatprep.subr.msk.bf16.mxu0 %vm1086_vm3, %v2929_v33  ;;  %v2815_v30 = vmul.f32 %v5738_v21, %v5720_v48  ;;  %v2952_v51 = vsel %vm1086_vm3, %v2929_v33, 0  ;;  %v2925_v14 = vpop.permute.xlu1 %2924 }
 0xbc4   : > { %v5740_v39 = vpop.eup %5739  ;;  %v2946_v33 = vsel %vm1086_vm3, %v2925_v14, 0 }
 0xbc5   : > { %v2814_v1 = vmul.f32 %v5740_v39, %v5726_v24  ;;  %v2821_v22 = vpack.c.bf16 %v2816_v17, %v2815_v30 }
 0xbc6   : > { %v2915_v47 = vpop.permute.xlu0 %2914 }
 0xbc7   : > { %v2820_v61 = vpack.c.bf16 %v2814_v1, %v2813_v19 }
 0xbc8   : > { %v5742_v41 = vpop.eup %5741 }
 0xbc9   : > { %5183 = vmatprep.mubr.msk.bf16.mxu0 %vm1189_vm6, %v2820_v61  ;;  %v5744_v3 = vpop.eup %5743  ;;  %v2819_v16 = vmul.f32 %v5742_v41, %v5728_v32  ;;  %v2923_v32 = vpop.permute.xlu1 %2922 }
 0xbca   : > { %5184 = vmatmul.mubr.msk.bf16.vlgmr.msra.gmra.mxu0 %vm1189_vm6, %v2821_v22  ;;  %v2817_v60 = vmul.f32 %v5744_v3, %v5730_v44  ;;  %v2943_v44 = vsel %vm1086_vm3, %v2923_v32, 0  ;;  %v2919_v21 = vpop.permute.xlu0 %2918 }
 0xbcb   : > { %5192 = vmatpush3.bf16.xpose.msra.mxu0 %v2952_v51  ;;  %v2823_v48 = vpack.c.bf16 %v2819_v16, %v2819_v16 }
 0xbcc   : > { %v5746_v59 = vpop.eup %5745  ;;  %5394 = vmatprep.subr.msk.bf16.mxu0 %vm1086_vm3, %v2927_v43 }
 0xbcd   : > { %v2818_v53 = vmul.f32 %v5746_v59, %v5732_v40  ;;  %v2917_v40 = vpop.permute.xlu1 %2916 }
 0xbcf   : > { %v2822_v24 = vpack.c.bf16 %v2818_v53, %v2817_v60 }
 0xbd1   : > { %5187 = vmatprep.mubr.msk.bf16.mxu0 %vm1189_vm6, %v2822_v24  ;;  %v2921_v39 = vpop.permute.xlu1 %2920 }
 0xbd2   : > { %5188 = vmatmul.mubr.msk.bf16.gmra.mxu0 %vm1189_vm6, %v2823_v48 }
 0xbd3   : > { %5194 = vmatpush3.bf16.xpose.msra.mxu0 %v2949_v18  ;;  %5199 = vmatprep.mubr.msk.bf16.mxu0 %vm1086_vm3, %v2915_v47 }
 0xbd4   : > { %5395 = vmatprep.subr.msk.bf16.mxu0 %vm1086_vm3, %v2925_v14 }
 0xbdb   : > { %5196 = vmatpush3.bf16.xpose.msra.mxu0 %v2946_v33 }
 0xbdc   : > { %5396 = vmatprep.subr.msk.bf16.mxu0 %vm1086_vm3, %v2923_v32 }
 0xbe3   : > { %5198 = vmatpush3.bf16.xpose.msra.mxu0 %v2943_v44 }
 0xbea   : > { %5200 = vmatmul.mubr.msk.bf16.vlgmr.msra.gmra.mxu0 %vm1086_vm3, %v2917_v40 }
 0xbeb   : > { %5203 = vmatprep.mubr.msk.bf16.mxu0 %vm1086_vm3, %v2919_v21 }
 0xbf2   : > { %5204 = vmatmul.mubr.msk.bf16.gmra.mxu0 %vm1086_vm3, %v2921_v39 }
 0xc8a   : > { %v7093_v17 = vpop.f32.mrf.mxu0 }
 0xc8c   : > { %v7095_v19 = vpop.f32.mrf.mxu0 }
 0xc8e   : > { %v7097_v1 = vpop.f32.mrf.mxu0 }
 0xc90   : > { %v7099_v30 = vpop.f32.mrf.mxu0 }
 0xc92   : > { %v7103_v22 = vpop.f32.mrf.mxu0 }
 0xc93   : > { %7855 = vst [vmem:[#allocation16_spill] sm:$0xff] %v7103_v22 }
 0xc94   : > { %v7105_v41 = vpop.f32.mrf.mxu0 }
 0xc96   : > { %v5190_v51 = vpop.f32.mrf.mxu0 }
 0xc98   : > { %v7109_v43 = vpop.f32.mrf.mxu0 }
 0xc99   : > { %7856 = vst [vmem:[#allocation17_spill] sm:$0xff] %v7109_v43 }
 0xcaa   : > { %v5201_v16 = vpop.f32.mrf.mxu0 }
 0xcab   : > { %v3020_v53 = vmul.f32 0.35355338, %v5201_v16 }
 0xcac   : > { %v2988_v60 = vpop.f32.mrf.mxu0 }
 0xcad   : > { %v3018_v24 = vmul.f32 0.35355338, %v2988_v60  ;;  %v3027_v33 = vsel %vm1069_vm5, %v3020_v53, -1e+30 }
 0xcae   : > { %v5202_v48 = vpop.f32.mrf.mxu0  ;;  %v3038_v51 = vsel %vm1189_vm6, %v3027_v33, -inf }
 0xcaf   : > { %v3025_v47 = vsel %vm1069_vm5, %v3018_v24, -1e+30  ;;  %v3021_v32 = vmul.f32 0.35355338, %v5202_v48 }
 0xcb0   : > { %v2991_v18 = vpop.f32.mrf.mxu0  ;;  %v3032_v14 = vsel %vm1189_vm6, %v3025_v47, -inf }
 0xcb1   : > { %v3019_v44 = vmul.f32 0.35355338, %v2991_v18  ;;  %3033 = vmax.xlane.f32.xlu0 %v3032_v14  ;;  %v3028_v60 = vsel %vm1069_vm5, %v3021_v32, -1e+30 }
 0xcb2   : > { %v5205_v40 = vpop.f32.mrf.mxu0  ;;  %v3041_v48 = vsel %vm1189_vm6, %v3028_v60, -inf }
 0xcb3   : > { %v3026_v21 = vsel %vm1069_vm5, %v3019_v44, -1e+30  ;;  %v3024_v24 = vmul.f32 0.35355338, %v5205_v40 }
 0xcb4   : > { %v3004_v39 = vpop.f32.mrf.mxu0  ;;  %v3035_v16 = vsel %vm1189_vm6, %v3026_v21, -inf }
 0xcb5   : > { %3039 = vmax.xlane.f32.xlu0 %v3038_v51  ;;  %3036 = vmax.xlane.f32.xlu1 %v3035_v16  ;;  %v3031_v18 = vsel %vm1069_vm5, %v3024_v24, -1e+30  ;;  %v3022_v14 = vmul.f32 0.35355338, %v3004_v39 }
 0xcb6   : > { %v5206_v59 = vpop.f32.mrf.mxu0  ;;  %v3050_v61 = vsel %vm1189_vm6, %v3031_v18, -inf }
 0xcb7   : > { %v3029_v40 = vsel %vm1069_vm5, %v3022_v14, -1e+30 }
 0xcb8   : > { %v3007_v53 = vpop.f32.mrf.mxu0  ;;  %v3044_v59 = vsel %vm1189_vm6, %v3029_v40, -inf }
 0xcb9   : > { %v3023_v44 = vmul.f32 0.35355338, %v3007_v53  ;;  %3042 = vmax.xlane.f32.xlu0 %v3041_v48 }
 0xcbb   : > { %v3030_v3 = vsel %vm1069_vm5, %v3023_v44, -1e+30 }
 0xcbc   : > { %v3047_v32 = vsel %vm1189_vm6, %v3030_v3, -inf }
 0xcbd   : > { %3051 = vmax.xlane.f32.xlu0 %v3050_v61  ;;  %3048 = vmax.xlane.f32.xlu1 %v3047_v32 }
 0xcc1   : > { %3045 = vmax.xlane.f32.xlu0 %v3044_v59 }
 0xcce   : > { %3119 = vrot.lane.b32.xlu1 %v6893_v11, %s5921_s15 }
 0xcd2   : > { %3115 = vrot.lane.b32.xlu1 %v6432_v13, %s5921_s15 }
 0xcd6   : > { %3113 = vrot.lane.b32.xlu1 %v6425_v50, %s5921_s15 }
 0xcd7   : > { %3117 = vrot.lane.b32.xlu0 %v6444_v56, %s5921_s15 }
 0xd3a   : > { %v3034_v39 = vpop.xlane.xlu0 %3033 }
 0xd3b   : > { %v3053_v51 = vsub.f32 %v3025_v47, %v3034_v39 }
 0xd3d   : > { %v3060_v53 = vmul.f32 1.442695, %v3053_v51 }
 0xd3e   : > { %v3040_v16 = vpop.xlane.xlu0 %3039  ;;  %v3037_v61 = vpop.xlane.xlu1 %3036 }
 0xd3f   : > { %v3055_v24 = vsub.f32 %v3027_v33, %v3040_v16  ;;  %v3054_v14 = vsub.f32 %v3026_v21, %v3037_v61 }
 0xd41   : > { %v3064_v48 = vmul.f32 1.442695, %v3055_v24  ;;  %v3062_v59 = vmul.f32 1.442695, %v3054_v14 }
 0xd42   : > { %v3043_v44 = vpop.xlane.xlu0 %3042 }
 0xd43   : > { %5747 = vpow2.f32 %v3064_v48  ;;  %v3056_v32 = vsub.f32 %v3028_v60, %v3043_v44 }
 0xd44   : > { %5749 = vpow2.f32 %v3060_v53 }
 0xd45   : > { %v3066_v28 = vmul.f32 1.442695, %v3056_v32 }
 0xd46   : > { %v3052_v5 = vpop.xlane.xlu0 %3051  ;;  %v3049_v38 = vpop.xlane.xlu1 %3048 }
 0xd47   : > { %5751 = vpow2.f32 %v3066_v28  ;;  %v3059_v31 = vsub.f32 %v3031_v18, %v3052_v5  ;;  %v3058_v54 = vsub.f32 %v3030_v3, %v3049_v38 }
 0xd48   : > { %5753 = vpow2.f32 %v3062_v59 }
 0xd49   : > { %v3072_v27 = vmul.f32 1.442695, %v3059_v31  ;;  %v3070_v21 = vmul.f32 1.442695, %v3058_v54 }
 0xd4a   : > { %v3046_v47 = vpop.xlane.xlu0 %3045  ;;  %v3120_v39 = vpop.permute.xlu1 %3119 }
 0xd4b   : > { %v3057_v26 = vsub.f32 %v3029_v40, %v3046_v47  ;;  %v3137_v33 = vsel %vm1294_vm4, %v3120_v39, 0  ;;  %5397 = vmatprep.subr.msk.bf16.mxu1 %vm1294_vm4, %v3120_v39  ;;  %5755 = vpow2.f32 %v3072_v27 }
 0xd4c   : > { %5208 = vmatpush3.bf16.msra.mxu1 %v3137_v33 }
 0xd4d   : > { %v3068_v60 = vmul.f32 1.442695, %v3057_v26 }
 0xd4e   : > { %v3118_v51 = vpop.permute.xlu0 %3117  ;;  %v3116_v16 = vpop.permute.xlu1 %3115 }
 0xd4f   : > { %5757 = vpow2.f32 %v3068_v60  ;;  %5209 = vmatprep.subr.bf16.mxu1 %v3118_v51 }
 0xd50   : > { %v5748_v28 = vpop.eup %5747  ;;  %5210 = vmatpush3.bf16.msra.mxu1 %v3118_v51  ;;  %5759 = vpow2.f32 %v3070_v21 }
 0xd51   : > { %5211 = vmatprep.subr.bf16.mxu1 %v3116_v16  ;;  %v3080_v5 = vsel %vm1189_vm6, %v5748_v28, 0.0  ;;  %v5750_v31 = vpop.eup %5749 }
 0xd52   : > { %3081 = vadd.xlane.f32.xlu1 %v3080_v5  ;;  %v3114_v3 = vpop.permute.xlu1 %3113  ;;  %v3074_v54 = vsel %vm1189_vm6, %v5750_v31, 0.0 }
 0xd54   : > { %v5752_v38 = vpop.eup %5751  ;;  %5212 = vmatpush3.bf16.msra.mxu1 %v3116_v16 }
 0xd55   : > { %5213 = vmatprep.subr.bf16.mxu1 %v3114_v3  ;;  %v3083_v27 = vsel %vm1189_vm6, %v5752_v38, 0.0  ;;  %v5754_v26 = vpop.eup %5753 }
 0xd56   : > { %3084 = vadd.xlane.f32.xlu0 %v3083_v27  ;;  %3075 = vadd.xlane.f32.xlu1 %v3074_v54  ;;  %v3077_v18 = vsel %vm1189_vm6, %v5754_v26, 0.0 }
 0xd58   : > { %5214 = vmatpush3.bf16.msra.mxu1 %v3114_v3  ;;  %v5756_v40 = vpop.eup %5755 }
 0xd59   : > { %v3092_v53 = vsel %vm1189_vm6, %v5756_v40, 0.0 }
 0xd5a   : > { %3078 = vadd.xlane.f32.xlu0 %v3077_v18 }
 0xd5c   : > { %v5758_v61 = vpop.eup %5757 }
 0xd5d   : > { %v3086_v24 = vsel %vm1189_vm6, %v5758_v61, 0.0  ;;  %v5760_v48 = vpop.eup %5759 }
 0xd5e   : > { %3087 = vadd.xlane.f32.xlu1 %v3086_v24  ;;  %3093 = vadd.xlane.f32.xlu0 %v3092_v53  ;;  %v3089_v14 = vsel %vm1189_vm6, %v5760_v48, 0.0 }
 0xd62   : > { %3090 = vadd.xlane.f32.xlu0 %v3089_v14 }
 0xd6f   : > { %3215 = vrot.lane.b32.xlu1 %v6444_v56, %s5922_s14 }
 0xd73   : > { %3213 = vrot.lane.b32.xlu1 %v6432_v13, %s5922_s14 }
 0xd77   : > { %3211 = vrot.lane.b32.xlu1 %v6425_v50, %s5922_s14 }
 0xd78   : > { %3217 = vrot.lane.b32.xlu0 %v6893_v11, %s5922_s14 }
 0xd7b   : > { %3205 = vrot.lane.b32.xlu1 %v6432_v13, %s5923_s23 }
 0xd7c   : > { %3203 = vrot.lane.b32.xlu0 %v6425_v50, %s5923_s23 }
 0xd7f   : > { %3209 = vrot.lane.b32.xlu1 %v6893_v11, %s5923_s23 }
 0xd80   : > { %3207 = vrot.lane.b32.xlu0 %v6444_v56, %s5923_s23 }
 0xddb   : > { %v3082_v44 = vpop.xlane.xlu1 %3081 }
 0xddf   : > { %v3085_v32 = vpop.xlane.xlu0 %3084  ;;  %v3076_v59 = vpop.xlane.xlu1 %3075 }
 0xde0   : > { %5761 = vrcp.f32 %v3085_v32 }
 0xde1   : > { %5763 = vrcp.f32 %v3076_v59 }
 0xde2   : > { %5765 = vrcp.f32 %v3082_v44 }
 0xde3   : > { %v3079_v47 = vpop.xlane.xlu0 %3078 }
 0xde4   : > { %5767 = vrcp.f32 %v3079_v47 }
 0xde7   : > { %v3094_v39 = vpop.xlane.xlu0 %3093  ;;  %v3088_v33 = vpop.xlane.xlu1 %3087 }
 0xde8   : > { %5769 = vrcp.f32 %v3094_v39 }
 0xde9   : > { %5771 = vrcp.f32 %v3088_v33 }
 0xdeb   : > { %v3091_v21 = vpop.xlane.xlu0 %3090  ;;  %v3216_v47 = vpop.permute.xlu1 %3215 }
 0xdec   : > { %5773 = vrcp.f32 %v3091_v21  ;;  %v3238_v21 = vsel %vm1086_vm3, %v3216_v47, 0 }
 0xded   : > { %v5762_v60 = vpop.eup %5761 }
 0xdee   : > { %v5764_v51 = vpop.eup %5763  ;;  %v3105_v27 = vmul.f32 %v5762_v60, %v5752_v38 }
 0xdef   : > { %v3218_v16 = vpop.permute.xlu0 %3217  ;;  %v5766_v5 = vpop.eup %5765  ;;  %v3102_v54 = vmul.f32 %v5764_v51, %v5750_v31 }
 0xdf0   : > { %5398 = vmatprep.subr.msk.bf16.mxu1 %vm1086_vm3, %v3218_v16  ;;  %v3104_v24 = vmul.f32 %v5766_v5, %v5748_v28  ;;  %v3241_v59 = vsel %vm1086_vm3, %v3218_v16, 0  ;;  %v3214_v51 = vpop.permute.xlu1 %3213 }
 0xdf1   : > { %v5768_v3 = vpop.eup %5767  ;;  %v3235_v16 = vsel %vm1086_vm3, %v3214_v51, 0 }
 0xdf2   : > { %v3103_v18 = vmul.f32 %v5768_v3, %v5754_v26  ;;  %v3110_v14 = vpack.c.bf16 %v3105_v27, %v3104_v24 }
 0xdf3   : > { %v3204_v60 = vpop.permute.xlu0 %3203 }
 0xdf4   : > { %v3109_v53 = vpack.c.bf16 %v3103_v18, %v3102_v54 }
 0xdf5   : > { %v5770_v44 = vpop.eup %5769 }
 0xdf6   : > { %5215 = vmatprep.mubr.msk.bf16.mxu1 %vm1189_vm6, %v3109_v53  ;;  %v5772_v32 = vpop.eup %5771  ;;  %v3108_v33 = vmul.f32 %v5770_v44, %v5756_v40  ;;  %v3212_v40 = vpop.permute.xlu1 %3211 }
 0xdf7   : > { %5216 = vmatmul.mubr.msk.bf16.vlgmr.msra.gmra.mxu1 %vm1189_vm6, %v3110_v14  ;;  %v3106_v38 = vmul.f32 %v5772_v32, %v5758_v61  ;;  %v3232_v61 = vsel %vm1086_vm3, %v3212_v40, 0  ;;  %v3208_v3 = vpop.permute.xlu0 %3207 }
 0xdf8   : > { %5224 = vmatpush3.bf16.xpose.msra.mxu1 %v3241_v59  ;;  %v3112_v28 = vpack.c.bf16 %v3108_v33, %v3108_v33 }
 0xdf9   : > { %v5774_v39 = vpop.eup %5773  ;;  %5399 = vmatprep.subr.msk.bf16.mxu1 %vm1086_vm3, %v3216_v47 }
 0xdfa   : > { %v3107_v31 = vmul.f32 %v5774_v39, %v5760_v48  ;;  %v7857_v48 = vmov 0.0   ;;  %v3206_v5 = vpop.permute.xlu1 %3205 }
 0xdfc   : > { %v3111_v26 = vpack.c.bf16 %v3107_v31, %v3106_v38 }
 0xdfe   : > { %5219 = vmatprep.mubr.msk.bf16.mxu1 %vm1189_vm6, %v3111_v26  ;;  %v3210_v27 = vpop.permute.xlu1 %3209 }
 0xdff   : > { %5220 = vmatmul.mubr.msk.bf16.gmra.mxu1 %vm1189_vm6, %v3112_v28 }
 0xe00   : > { %5226 = vmatpush3.bf16.xpose.msra.mxu1 %v3238_v21  ;;  %5231 = vmatprep.mubr.msk.bf16.mxu1 %vm1086_vm3, %v3204_v60 }
 0xe01   : > { %5400 = vmatprep.subr.msk.bf16.mxu1 %vm1086_vm3, %v3214_v51 }
 0xe08   : > { %5228 = vmatpush3.bf16.xpose.msra.mxu1 %v3235_v16 }
 0xe09   : > { %5401 = vmatprep.subr.msk.bf16.mxu1 %vm1086_vm3, %v3212_v40 }
 0xe10   : > { %5230 = vmatpush3.bf16.xpose.msra.mxu1 %v3232_v61 }
 0xe11   : > { %5287 = vmatprep.subr.bf16.mxu1 %v7857_v48 }
 0xe17   : > { %5232 = vmatmul.mubr.msk.bf16.vlgmr.msra.gmra.mxu1 %vm1086_vm3, %v3206_v5 }
 0xe18   : > { %5235 = vmatprep.mubr.msk.bf16.mxu1 %vm1086_vm3, %v3208_v3 }
 0xe1f   : > { %5236 = vmatmul.mubr.msk.bf16.gmra.mxu1 %vm1086_vm3, %v3210_v27 }
 0xe20   : > { %5291 = vmatprep.mubr.msk.bf16.mxu1 %vm5913_vm2, %v7857_v48 }
 0xeb7   : > { %v7186_v54 = vpop.f32.mrf.mxu1 }
 0xeb9   : > { %v7188_v18 = vpop.f32.mrf.mxu1 }
 0xebb   : > { %v7190_v24 = vpop.f32.mrf.mxu1 }
 0xebc   : > { %7858 = vst [vmem:[#allocation18_spill] sm:$0xff] %v7190_v24 }
 0xebd   : > { %v7192_v53 = vpop.f32.mrf.mxu1 }
 0xebf   : > { %v7196_v44 = vpop.f32.mrf.mxu1 }
 0xec0   : > { %7859 = vst [vmem:[#allocation19_spill] sm:$0xff] %v7196_v44 }
 0xec1   : > { %v7198_v32 = vpop.f32.mrf.mxu1 }
 0xec3   : > { %v5222_v47 = vpop.f32.mrf.mxu1 }
 0xec5   : > { %v7202_v39 = vpop.f32.mrf.mxu1 }
 0xec6   : > { %7860 = vst [vmem:[#allocation20_spill] sm:$0xff] %v7202_v39 }
 0xed7   : > { %v5233_v38 = vpop.f32.mrf.mxu1 }
 0xed8   : > { %v3309_v26 = vmul.f32 0.35355338, %v5233_v38 }
 0xed9   : > { %v3277_v31 = vpop.f32.mrf.mxu1 }
 0xeda   : > { %v3307_v28 = vmul.f32 0.35355338, %v3277_v31  ;;  %v3316_v40 = vsel %vm1069_vm5, %v3309_v26, -1e+30 }
 0xedb   : > { %v5234_v21 = vpop.f32.mrf.mxu1  ;;  %v3327_v38 = vsel %vm1189_vm6, %v3316_v40, -inf }
 0xedc   : > { %v3314_v60 = vsel %vm1069_vm5, %v3307_v28, -1e+30  ;;  %v3310_v61 = vmul.f32 0.35355338, %v5234_v21 }
 0xedd   : > { %v3280_v51 = vpop.f32.mrf.mxu1  ;;  %v3321_v16 = vsel %vm1189_vm6, %v3314_v60, -inf }
 0xede   : > { %v3308_v5 = vmul.f32 0.35355338, %v3280_v51  ;;  %3322 = vmax.xlane.f32.xlu0 %v3321_v16  ;;  %v3317_v28 = vsel %vm1069_vm5, %v3310_v61, -1e+30 }
 0xedf   : > { %v5237_v3 = vpop.f32.mrf.mxu1  ;;  %v3330_v21 = vsel %vm1189_vm6, %v3317_v28, -inf }
 0xee0   : > { %v3315_v27 = vsel %vm1069_vm5, %v3308_v5, -1e+30  ;;  %v3313_v51 = vmul.f32 0.35355338, %v5237_v3 }
 0xee1   : > { %v3293_v47 = vpop.f32.mrf.mxu1  ;;  %v3324_v31 = vsel %vm1189_vm6, %v3315_v27, -inf }
 0xee2   : > { %v3311_v33 = vmul.f32 0.35355338, %v3293_v47  ;;  %3328 = vmax.xlane.f32.xlu0 %v3327_v38  ;;  %3325 = vmax.xlane.f32.xlu1 %v3324_v31  ;;  %v3320_v47 = vsel %vm1069_vm5, %v3313_v51, -1e+30 }
 0xee3   : > { %v5238_v59 = vpop.f32.mrf.mxu1 }
 0xee4   : > { %v3318_v16 = vsel %vm1069_vm5, %v3311_v33, -1e+30  ;;  %v3339_v59 = vsel %vm1189_vm6, %v3320_v47, -inf }
 0xee5   : > { %v3296_v26 = vpop.f32.mrf.mxu1  ;;  %v3333_v39 = vsel %vm1189_vm6, %v3318_v16, -inf }
 0xee6   : > { %v3312_v5 = vmul.f32 0.35355338, %v3296_v26  ;;  %3331 = vmax.xlane.f32.xlu0 %v3330_v21 }
 0xee8   : > { %v3319_v14 = vsel %vm1069_vm5, %v3312_v5, -1e+30 }
 0xee9   : > { %v3336_v61 = vsel %vm1189_vm6, %v3319_v14, -inf }
 0xeea   : > { %3334 = vmax.xlane.f32.xlu0 %v3333_v39  ;;  %3337 = vmax.xlane.f32.xlu1 %v3336_v61 }
 0xeee   : > { %3340 = vmax.xlane.f32.xlu0 %v3339_v59 }
 0xefb   : > { %3408 = vrot.lane.b32.xlu1 %v6893_v11, %s5924_s26 }
 0xf67   : > { %v3323_v33 = vpop.xlane.xlu0 %3322 }
 0xf68   : > { %v3342_v3 = vsub.f32 %v3314_v60, %v3323_v33 }
 0xf6a   : > { %v3349_v21 = vmul.f32 1.442695, %v3342_v3 }
 0xf6b   : > { %v3329_v38 = vpop.xlane.xlu0 %3328  ;;  %v3326_v31 = vpop.xlane.xlu1 %3325 }
 0xf6c   : > { %v3344_v26 = vsub.f32 %v3316_v40, %v3329_v38  ;;  %v3343_v44 = vsub.f32 %v3315_v27, %v3326_v31 }
 0xf6e   : > { %v3353_v5 = vmul.f32 1.442695, %v3344_v26  ;;  %v3351_v39 = vmul.f32 1.442695, %v3343_v44 }
 0xf6f   : > { %v3332_v43 = vpop.xlane.xlu0 %3331 }
 0xf70   : > { %5775 = vpow2.f32 %v3353_v5  ;;  %v3345_v15 = vsub.f32 %v3317_v28, %v3332_v43 }
 0xf71   : > { %5777 = vpow2.f32 %v3349_v21 }
 0xf72   : > { %v3355_v51 = vmul.f32 1.442695, %v3345_v15 }
 0xf73   : > { %v3335_v61 = vpop.xlane.xlu0 %3334  ;;  %v3338_v22 = vpop.xlane.xlu1 %3337 }
 0xf74   : > { %5779 = vpow2.f32 %v3355_v51  ;;  %v3346_v59 = vsub.f32 %v3318_v16, %v3335_v61  ;;  %v3347_v27 = vsub.f32 %v3319_v14, %v3338_v22  ;;  %v7861_v51 = vpack.i.bf16 %v6817_v8, %v6811_v42 }
 0xf75   : > { %5781 = vpow2.f32 %v3351_v39  ;;  %v7862_v61 = vpack.i.bf16 %v6837_v7, %v6831_v9  ;;  %v7865_v42 = vpack.i.bf16 %v6923_v57, %v6919_v34  ;;  %v7866_v8 = vpack.i.bf16 %v6833_v37, %v6829_v4 }
 0xf76   : > { %v3357_v40 = vmul.f32 1.442695, %v3346_v59  ;;  %v3359_v44 = vmul.f32 1.442695, %v3347_v27  ;;  %v7867_v9 = vpack.i.bf16 %v6845_v29, %v6843_v25  ;;  %v5486_v4 = vpack.i.bf16 %v7188_v18, %v6841_v36 }
 0xf77   : > { %v3341_v11 = vpop.xlane.xlu0 %3340  ;;  %v3409_v24 = vpop.permute.xlu1 %3408 }
 0xf78   : > { %v3348_v60 = vsub.f32 %v3320_v47, %v3341_v11  ;;  %v3426_v33 = vsel %vm1294_vm4, %v3409_v24, 0  ;;  %5402 = vmatprep.subr.msk.bf16.mxu0 %vm1294_vm4, %v3409_v24 }
 0xf79   : > { %5240 = vmatpush3.bf16.msra.mxu0 %v3426_v33 }
 0xf7a   : > { %v3361_v3 = vmul.f32 1.442695, %v3348_v60 }
 0xf7c   : > { %5783 = vpow2.f32 %v3361_v3  ;;  %v5543_v3 = vld [vmem:[%s7871_s27 + $0x8] sm:$0xff]  }
 0xf7d   : > { %v7231_v43 = vpop.eup %5775  ;;  %5785 = vpow2.f32 %v3357_v40 }
 0xf7e   : > { %v3369_v28 = vsel %vm1189_vm6, %v7231_v43, 0.0  ;;  %v5778_v16 = vpop.eup %5777  ;;  %5787 = vpow2.f32 %v3359_v44 }
 0xf7f   : > { %3370 = vadd.xlane.f32.xlu1 %v3369_v28  ;;  %v3363_v47 = vsel %vm1189_vm6, %v5778_v16, 0.0 }
 0xf81   : > { %v7235_v38 = vpop.eup %5779 }
 0xf82   : > { %v3372_v24 = vsel %vm1189_vm6, %v7235_v38, 0.0  ;;  %v5782_v22 = vpop.eup %5781 }
 0xf83   : > { %3373 = vadd.xlane.f32.xlu0 %v3372_v24  ;;  %3364 = vadd.xlane.f32.xlu1 %v3363_v47  ;;  %v3366_v14 = vsel %vm1189_vm6, %v5782_v22, 0.0 }
 0xf87   : > { %3367 = vadd.xlane.f32.xlu0 %v3366_v14 }
 0xf89   : > { %v7241_v31 = vpop.eup %5783 }
 0xf8a   : > { %v3381_v26 = vsel %vm1189_vm6, %v7241_v31, 0.0  ;;  %v7245_v21 = vpop.eup %5785 }
 0xf8b   : > { %3382 = vadd.xlane.f32.xlu0 %v3381_v26  ;;  %v3375_v5 = vsel %vm1189_vm6, %v7245_v21, 0.0  ;;  %v7249_v15 = vpop.eup %5787 }
 0xf8c   : > { %v3378_v39 = vsel %vm1189_vm6, %v7249_v15, 0.0 }
 0xf8f   : > { %3376 = vadd.xlane.f32.xlu0 %v3375_v5 }
 0xf93   : > { %3379 = vadd.xlane.f32.xlu0 %v3378_v39 }
 0xf94   : > { %3404 = vrot.lane.b32.xlu1 %v6432_v13, %s5924_s26  ;;  %v7863_v13 = vpack.i.bf16 %v6927_v62, %v6921_v6 }
 0xf98   : > { %3402 = vrot.lane.b32.xlu1 %v6425_v50, %s5924_s26  ;;  %v7864_v50 = vpack.i.bf16 %v6813_v20, %v6809_v10  ;;  %v7868_v10 = vpack.i.bf16 %v6825_v49, %v6823_v55  ;;  %v7869_v20 = vpack.i.bf16 %v6935_v52, %v6933_v58  ;;  %v7870_v55 = vpack.i.bf16 %v7093_v17, %v7099_v30 }
 0xf9c   : > { %5437 = vrot.lane.b32.xlu1 %v7861_v51, %s5925_s30 }
 0xfa0   : > { %5442 = vrot.lane.b32.xlu1 %v7862_v61, %s5926_s25 }
 0xfa4   : > { %5447 = vrot.lane.b32.xlu1 %v7863_v13, %s5927_s29 }
 0xfa8   : > { %5452 = vrot.lane.b32.xlu1 %v7864_v50, %s5925_s30 }
 0xfa9   : > { %3406 = vrot.lane.b32.xlu0 %v6444_v56, %s5924_s26  ;;  %v5481_v56 = vpack.i.bf16 %v7095_v19, %v6821_v12 }
 0xfac   : > { %5462 = vrot.lane.b32.xlu1 %v7865_v42, %s5927_s29 }
 0xfad   : > { %5457 = vrot.lane.b32.xlu0 %v7866_v8, %s5926_s25 }
 0xfb0   : > { %5472 = vrot.lane.b32.xlu1 %v7867_v9, %s5926_s25 }
 0xfb1   : > { %5467 = vrot.lane.b32.xlu0 %v7868_v10, %s5925_s30 }
 0xfb4   : > { %5482 = vrot.lane.b32.xlu1 %v5481_v56, %s5925_s30 }
 0xfb5   : > { %5477 = vrot.lane.b32.xlu0 %v7869_v20, %s5927_s29 }
 0xfb9   : > { %5487 = vrot.lane.b32.xlu0 %v5486_v4, %s5926_s25 }
 0xfbd   : > { %5497 = vrot.lane.b32.xlu0 %v7870_v55, %s5925_s30 }
0x1008   : > { %v3371_v49 = vpop.xlane.xlu1 %3370 }
0x100c   : > { %v3374_v37 = vpop.xlane.xlu0 %3373  ;;  %v3365_v12 = vpop.xlane.xlu1 %3364 }
0x100d   : > { %5789 = vrcp.f32 %v3365_v12 }
0x1010   : > { %v3368_v7 = vpop.xlane.xlu0 %3367  ;;  %v3405_v25 = vpop.permute.xlu1 %3404 }
0x1011   : > { %5791 = vrcp.f32 %v3368_v7 }
0x1012   : > { %5793 = vrcp.f32 %v3374_v37 }
0x1013   : > { %5795 = vrcp.f32 %v3371_v49 }
0x1014   : > { %v3383_v29 = vpop.xlane.xlu0 %3382  ;;  %v3403_v6 = vpop.permute.xlu1 %3402 }
0x1018   : > { %v3377_v34 = vpop.xlane.xlu0 %3376  ;;  %v5438_v17 = vpop.permute.xlu1 %5437 }
0x1019   : > { %5797 = vrcp.f32 %v3377_v34  ;;  %v5439_v26 = vunpack.i.l.bf16 %v5438_v17 }
0x101a   : > { %v5790_v36 = vpop.eup %5789 }
0x101b   : > { %v3391_v58 = vmul.f32 %v5790_v36, %v5778_v16  ;;  %v2313_v50 = vsel %vm1086_vm3, %v6797_v0, %v5439_v26 }
0x101c   : > { %v3380_v57 = vpop.xlane.xlu0 %3379  ;;  %v5443_v11 = vpop.permute.xlu1 %5442 }
0x101d   : > { %5799 = vrcp.f32 %v3380_v57  ;;  %v5445_v39 = vunpack.i.h.bf16 %v5443_v11  ;;  %v5444_v51 = vunpack.i.l.bf16 %v5443_v11 }
0x101e   : > { %v5792_v62 = vpop.eup %5791  ;;  %5801 = vrcp.f32 %v3383_v29 }
0x101f   : > { %v3392_v52 = vmul.f32 %v5792_v62, %v5782_v22  ;;  %v5794_v18 = vpop.eup %5793  ;;  %v5544_v22 = vld [vmem:[%s7871_s27] sm:$0xff]   ;;  %v2321_v42 = vsel %vm2320_vm7, %v2313_v50, %v5444_v51 }
0x1020   : > { %v3407_v19 = vpop.permute.xlu0 %3406  ;;  %v5796_v59 = vpop.eup %5795  ;;  %v3394_v60 = vmul.f32 %v5794_v18, %v7235_v38 }
0x1021   : > { %5241 = vmatprep.subr.bf16.mxu0 %v3407_v19  ;;  %v3398_v30 = vpack.c.bf16 %v3392_v52, %v3391_v58  ;;  %v3393_v40 = vmul.f32 %v5796_v59, %v7231_v43  ;;  %v5448_v16 = vpop.permute.xlu1 %5447  ;;  %v5440_v43 = vunpack.i.h.bf16 %v5438_v17 }
0x1022   : > { %5242 = vmatpush3.bf16.msra.mxu0 %v3407_v19  ;;  %v5449_v61 = vunpack.i.l.bf16 %v5448_v16 }
0x1023   : > { %5243 = vmatprep.subr.bf16.mxu0 %v3405_v25  ;;  %5247 = vmatprep.mubr.msk.bf16.mxu0 %vm1189_vm6, %v3398_v30  ;;  %v3399_v44 = vpack.c.bf16 %v3394_v60, %v3393_v40 }
0x1024   : > { %v5458_v13 = vpop.permute.xlu0 %5457  ;;  %v2329_v9 = vsel %vm2328_vm8, %v2321_v42, %v5449_v61  ;;  %v7880_v61 = vld [vmem:[#allocation20_spill] sm:$0xff] }
0x1025   : > { %v5453_v5 = vpop.permute.xlu1 %5452  ;;  %v5460_v49 = vunpack.i.h.bf16 %v5458_v13 }
0x1026   : > { %5244 = vmatpush3.bf16.msra.mxu0 %v3405_v25  ;;  %v5798_v33 = vpop.eup %5797  ;;  %v5455_v56 = vunpack.i.h.bf16 %v5453_v5  ;;  %v5454_v20 = vunpack.i.l.bf16 %v5453_v5 }
0x1027   : > { %5245 = vmatprep.subr.bf16.mxu0 %v3403_v6  ;;  %v3395_v24 = vmul.f32 %v5798_v33, %v7245_v21 }
0x1028   : > { %v5468_v37 = vpop.permute.xlu0 %5467  ;;  %v2316_v0 = vsel %vm1086_vm3, %v6799_v2, %v5455_v56  ;;  %v2315_v12 = vsel %vm1086_vm3, %v6795_v46, %v5454_v20 }
0x1029   : > { %v5463_v4 = vpop.permute.xlu1 %5462  ;;  %v5470_v36 = vunpack.i.h.bf16 %v5468_v37  ;;  %v5469_v57 = vunpack.i.l.bf16 %v5468_v37 }
0x102a   : > { %v5800_v27 = vpop.eup %5799  ;;  %5246 = vmatpush3.bf16.msra.mxu0 %v3403_v6  ;;  %v5465_v7 = vunpack.i.h.bf16 %v5463_v4  ;;  %v5464_v25 = vunpack.i.l.bf16 %v5463_v4  ;;  %v2324_v6 = vsel %vm2320_vm7, %v2316_v0, %v5460_v49  ;;  %v7384_v4 = vld [vmem:[%s7882_s18] ss:$0 sm:$0xff]  ;;  %v5860_v49 = vld [vmem:[#allocation2 + $0x8] sm:$0xff] }
0x102b   : > { %5255 = vmatprep.subr.bf16.mxu0 %v7857_v48  ;;  %v5802_v28 = vpop.eup %5801  ;;  %v3396_v47 = vmul.f32 %v5800_v27, %v7249_v15  ;;  %v5450_v15 = vunpack.i.h.bf16 %v5448_v16  ;;  %v2318_v19 = vsel %vm1086_vm3, %v6807_v35, %v5470_v36  ;;  %v2317_v30 = vsel %vm1086_vm3, %v6805_v23, %v5469_v57  ;;  %v5863_v57 = vld [vmem:[#allocation2 + $0x18] sm:$0xff] }
0x102c   : > { %v3397_v14 = vmul.f32 %v5802_v28, %v7241_v31  ;;  %v2314_v31 = vsel %vm1086_vm3, %v6801_v45, %v5440_v43  ;;  %v5459_v45 = vunpack.i.l.bf16 %v5458_v13  ;;  %v2332_v2 = vsel %vm2328_vm8, %v2324_v6, %v5465_v7  ;;  %v5478_v58 = vpop.permute.xlu0 %5477 }
0x102d   : > { %5248 = vmatmul.mubr.msk.bf16.vlgmr.msra.gmra.mxu0 %vm1189_vm6, %v3399_v44  ;;  %v3400_v38 = vpack.c.bf16 %v3396_v47, %v3395_v24  ;;  %v2322_v8 = vsel %vm2320_vm7, %v2314_v31, %v5445_v39  ;;  %v5473_v29 = vpop.permute.xlu1 %5472  ;;  %v5480_v18 = vunpack.i.h.bf16 %v5478_v58  ;;  %v5479_v59 = vunpack.i.l.bf16 %v5478_v58 }
0x102e   : > { %5256 = vmatpush3.bf16.msra.mxu0 %v5543_v3  ;;  %v3401_v21 = vpack.c.bf16 %v3397_v14, %v3397_v14  ;;  %v2330_v10 = vsel %vm2328_vm8, %v2322_v8, %v5450_v15  ;;  %v2323_v34 = vsel %vm2320_vm7, %v2315_v12, %v5459_v45  ;;  %v5475_v46 = vunpack.i.h.bf16 %v5473_v29  ;;  %v5861_v12 = vld [vmem:[#allocation2 + $0x10] sm:$0xff] }
0x102f   : > { %5257 = vmatprep.subr.bf16.mxu0 %v7857_v48  ;;  %5251 = vmatprep.mubr.msk.bf16.mxu0 %vm1189_vm6, %v3400_v38  ;;  %v3602_v55 = vpack.c.bf16 %v2330_v10, %v2329_v9  ;;  %v2331_v62 = vsel %vm2328_vm8, %v2323_v34, %v5464_v25  ;;  %v5474_v52 = vunpack.i.l.bf16 %v5473_v29  ;;  %v7872_v47 = vpack.i.bf16 %v7186_v54, %v7192_v53  ;;  %v7876_v54 = vld [vmem:[#allocation16_spill] sm:$0xff]  ;;  %v7877_v53 = vld [vmem:[#allocation17_spill] sm:$0xff] }
0x1030   : > { %v3603_v17 = vpack.c.bf16 %v2332_v2, %v2331_v62  ;;  %v2326_v11 = vsel %vm2320_vm7, %v2318_v19, %v5475_v46  ;;  %v7873_v14 = vpack.i.bf16 %v7105_v41, %v7097_v1  ;;  %v7878_v51 = vpack.i.bf16 %v7876_v54, %v7877_v53  ;;  %v7879_v41 = vld [vmem:[#allocation19_spill] sm:$0xff]  ;;  %v5862_v34 = vld [vmem:[#allocation2] sm:$0xff] }
0x1031   : > { %v2325_v60 = vsel %vm2320_vm7, %v2317_v30, %v5474_v52  ;;  %v2334_v40 = vsel %vm2328_vm8, %v2326_v11, %v5480_v18  ;;  %v7881_v13 = vpack.i.bf16 %v7879_v41, %v7880_v61  ;;  %v5864_v46 = vld [vmem:[#allocation2 + $0x20] sm:$0xff]  ;;  %v5865_v19 = vld [vmem:[#allocation2 + $0x28] sm:$0xff] }
0x1032   : > { %5258 = vmatpush3.bf16.msra.mxu0 %v5544_v22  ;;  %v2333_v33 = vsel %vm2328_vm8, %v2325_v60, %v5479_v59  ;;  %v5483_v60 = vpop.permute.xlu1 %5482  ;;  %v7885_v61 = vld [vmem:[#allocation9_spill] sm:$0xff] }
0x1033   : > { %5319 = vmatprep.subr.bf16.mxu0 %v7857_v48  ;;  %v3604_v27 = vpack.c.bf16 %v2334_v40, %v2333_v33  ;;  %v5488_v33 = vpop.permute.xlu0 %5487  ;;  %v5485_v40 = vunpack.i.h.bf16 %v5483_v60 }
0x1035   : > { %5252 = vmatmul.mubr.msk.bf16.gmra.mxu0 %vm1189_vm6, %v3401_v21 }
0x1036   : > { %5259 = vmatprep.mubr.msk.bf16.mxu0 %vm5913_vm2, %v7857_v48 }
0x103d   : > { %5260 = vmatmul.mubr.msk.bf16.vlgmr.msra.gmra.mxu0 %vm703_vm1, %v3602_v55 }
0x103e   : > { %5263 = vmatprep.mubr.msk.bf16.mxu0 %vm5913_vm2, %v7857_v48 }
0x1045   : > { %5264 = vmatmul.mubr.msk.bf16.gmra.mxu0 %vm703_vm1, %v3603_v17 }
0x1046   : > { %5267 = vmatprep.mubr.msk.bf16.mxu0 %vm5913_vm2, %v7857_v48 }
0x104d   : > { %5268 = vmatmul.mubr.msk.bf16.gmra.mxu0 %vm703_vm1, %v3604_v27  ;;  %v5484_v27 = vunpack.i.l.bf16 %v5483_v60 }
0x104e   : > { %5271 = vmatprep.mubr.msk.bf16.mxu0 %vm5913_vm2, %v7857_v48 }
0x10ed   : > { %v5249_v23 = vpop.f32.mrf.mxu0 }
0x10ef   : > { %v3462_v35 = vpop.f32.mrf.mxu0 }
0x10f0   : > { %v5491_v3 = vpack.i.bf16 %v3462_v35, %v6931_v63  ;;  %v7874_v63 = vld [vmem:[#allocation18_spill] sm:$0xff]  ;;  %v5489_v35 = vunpack.i.l.bf16 %v5488_v33 }
0x10f1   : > { %v5250_v44 = vpop.f32.mrf.mxu0  ;;  %v7875_v43 = vpack.i.bf16 %v7198_v32, %v7874_v63 }
0x10f2   : > { %5492 = vrot.lane.b32.xlu1 %v5491_v3, %s5927_s29  ;;  %v7883_v3 = vld [vmem:[#allocation10_spill] sm:$0xff] }
0x10f3   : > { %v3465_v28 = vpop.f32.mrf.mxu0 }
0x10f4   : > { %v5506_v16 = vpack.i.bf16 %v5249_v23, %v3465_v28  ;;  %v5490_v23 = vunpack.i.h.bf16 %v5488_v33  ;;  %v7884_v28 = vld [vmem:[#allocation8_spill] sm:$0xff] }
0x10f5   : > { %v5253_v24 = vpop.f32.mrf.mxu0 }
0x10f6   : > { %5502 = vrot.lane.b32.xlu1 %v7872_v47, %s5926_s25  ;;  %5507 = vrot.lane.b32.xlu0 %v5506_v16, %s5927_s29  ;;  %v2319_v16 = vsel %vm1086_vm3, %v7884_v28, %v5484_v27 }
0x10f7   : > { %v3478_v38 = vpop.f32.mrf.mxu0 }
0x10f8   : > { %v5521_v5 = vpack.i.bf16 %v3478_v38, %v5250_v44  ;;  %v3576_v44 = vsel %vm1086_vm3, %v7883_v3, %v5485_v40 }
0x10f9   : > { %v5254_v22 = vpop.f32.mrf.mxu0 }
0x10fa   : > { %5512 = vrot.lane.b32.xlu1 %v7873_v14, %s5925_s30  ;;  %5517 = vrot.lane.b32.xlu0 %v7875_v43, %s5926_s25  ;;  %v2327_v43 = vsel %vm2320_vm7, %v2319_v16, %v5489_v35  ;;  %v7889_v35 = vld [vmem:[#allocation13_spill] sm:$0xff] }
0x10fb   : > { %v3481_v26 = vpop.f32.mrf.mxu0 }
0x10fc   : > { %v5536_v15 = vpack.i.bf16 %v5253_v24, %v3481_v26  ;;  %v5498_v24 = vpop.permute.xlu0 %5497  ;;  %v3583_v26 = vsel %vm2320_vm7, %v3576_v44, %v5490_v23  ;;  %v7890_v44 = vld [vmem:[#allocation15_spill] sm:$0xff] }
0x10fd   : > { %v3682_v39 = vpop.f32.mrf.mxu0  ;;  %v5500_v14 = vunpack.i.h.bf16 %v5498_v24  ;;  %v5499_v63 = vunpack.i.l.bf16 %v5498_v24 }
0x10fe   : > { %5527 = vrot.lane.b32.xlu0 %v7878_v51, %s5925_s30  ;;  %5522 = vrot.lane.b32.xlu1 %v5521_v5, %s5927_s29  ;;  %v3683_v0 = vadd.f32 %v7384_v4, %v3682_v39 }
0x10ff   : > { %v5261_v21 = vpop.f32.mrf.mxu0 }
0x1100   : > { %v7396_v6 = vadd.f32 %v5862_v34, %v3683_v0 }
0x1101   : > { %v3685_v1 = vpop.f32.mrf.mxu0 }
0x1102   : > { %5532 = vrot.lane.b32.xlu1 %v7881_v13, %s5926_s25  ;;  %5537 = vrot.lane.b32.xlu0 %v5536_v15, %s5927_s29  ;;  %v3686_v55 = vadd.f32 %v7384_v4, %v3685_v1  ;;  %v3753_v17 = vsel %vm703_vm1, %v7396_v6, 0.0  ;;  %v3578_v13 = vsel %vm1086_vm3, %v7885_v61, %v5500_v14 }
0x1103   : > { %v5262_v32 = vpop.f32.mrf.mxu0 }
0x1104   : > { %v7387_v45 = vadd.f32 %v5860_v49, %v3686_v55  ;;  %v7886_v32 = vld [vmem:[#allocation12_spill] sm:$0xff] }
0x1105   : > { %v3690_v31 = vpop.f32.mrf.mxu0 }
0x1106   : > { %v3691_v37 = vadd.f32 %v7384_v4, %v3690_v31  ;;  %v3756_v29 = vsel %vm703_vm1, %v7387_v45, 0.0  ;;  %v3577_v31 = vsel %vm1086_vm3, %v7886_v32, %v5499_v63 }
0x1107   : > { %v5265_v50 = vpop.f32.mrf.mxu0 }
0x1108   : > { %v7391_v7 = vadd.f32 %v5861_v12, %v3691_v37 }
0x1109   : > { %v3693_v42 = vpop.f32.mrf.mxu0 }
0x110a   : > { %v3694_v25 = vadd.f32 %v7384_v4, %v3693_v42  ;;  %v3759_v58 = vsel %vm703_vm1, %v7391_v7, 0.0 }
0x110b   : > { %v5266_v8 = vpop.f32.mrf.mxu0 }
0x110c   : > { %v7399_v62 = vadd.f32 %v5863_v57, %v3694_v25 }
0x110d   : > { %v3698_v9 = vpop.f32.mrf.mxu0 }
0x110e   : > { %v3699_v36 = vadd.f32 %v7384_v4, %v3698_v9  ;;  %v3762_v18 = vsel %vm703_vm1, %v7399_v62, 0.0 }
0x110f   : > { %v5269_v10 = vpop.f32.mrf.mxu0 }
0x1110   : > { %v7404_v52 = vadd.f32 %v5864_v46, %v3699_v36  ;;  %v7888_v36 = vld [vmem:[#allocation11_spill] sm:$0xff] }
0x1111   : > { %v3701_v56 = vpop.f32.mrf.mxu0 }
0x1112   : > { %v3702_v2 = vadd.f32 %v7384_v4, %v3701_v56  ;;  %v3765_v59 = vsel %vm703_vm1, %v7404_v52, 0.0 }
0x1113   : > { %v5270_v20 = vpop.f32.mrf.mxu0 }
0x1114   : > { %v7408_v30 = vadd.f32 %v5865_v19, %v3702_v2 }
0x1116   : > { %v3768_v11 = vsel %vm703_vm1, %v7408_v30, 0.0 }
0x1121   : > { %3757 = vadd.xlane.f32.xlu0 %v3756_v29  ;;  %v7887_v29 = vld [vmem:[#allocation14_spill] sm:$0xff] }
0x1125   : > { %3760 = vadd.xlane.f32.xlu0 %v3759_v58 }
0x1126   : > { %3754 = vadd.xlane.f32.xlu1 %v3753_v17 }
0x1129   : > { %3763 = vadd.xlane.f32.xlu0 %v3762_v18 }
0x112a   : > { %3766 = vadd.xlane.f32.xlu1 %v3765_v59 }
0x112d   : > { %3769 = vadd.xlane.f32.xlu0 %v3768_v11 }
0x1164   : > { %v5493_v47 = vpop.permute.xlu1 %5492 }
0x1165   : > { %v5495_v38 = vunpack.i.h.bf16 %v5493_v47  ;;  %v5494_v22 = vunpack.i.l.bf16 %v5493_v47 }
0x1167   : > { %v2335_v5 = vsel %vm2328_vm8, %v2327_v43, %v5494_v22  ;;  %v3590_v39 = vsel %vm2328_vm8, %v3583_v26, %v5495_v38 }
0x1168   : > { %v3605_v54 = vpack.c.bf16 %v3590_v39, %v2335_v5  ;;  %v5508_v53 = vpop.permute.xlu0 %5507  ;;  %v5503_v51 = vpop.permute.xlu1 %5502  ;;  %v5866_v39 = vld [vmem:[#allocation2 + $0x30] sm:$0xff] }
0x1169   : > { %v5510_v21 = vunpack.i.h.bf16 %v5508_v53  ;;  %v5509_v15 = vunpack.i.l.bf16 %v5508_v53  ;;  %v5505_v1 = vunpack.i.h.bf16 %v5503_v51  ;;  %v5504_v41 = vunpack.i.l.bf16 %v5503_v51 }
0x116a   : > { %5272 = vmatmul.mubr.msk.bf16.gmra.mxu0 %vm703_vm1, %v3605_v54 }
0x116b   : > { %v3585_v50 = vsel %vm2320_vm7, %v3578_v13, %v5505_v1  ;;  %v3584_v42 = vsel %vm2320_vm7, %v3577_v31, %v5504_v41  ;;  %5275 = vmatprep.mubr.msk.bf16.mxu0 %vm5913_vm2, %v7857_v48  ;;  %v5867_v1 = vld [vmem:[#allocation2 + $0x38] sm:$0xff] }
0x116c   : > { %v5518_v8 = vpop.permute.xlu0 %5517  ;;  %v5513_v9 = vpop.permute.xlu1 %5512  ;;  %v3591_v20 = vsel %vm2328_vm8, %v3584_v42, %v5509_v15  ;;  %v3592_v55 = vsel %vm2328_vm8, %v3585_v50, %v5510_v21  ;;  %v5868_v42 = vld [vmem:[#allocation2 + $0x40] sm:$0xff] }
0x116d   : > { %v5515_v10 = vunpack.i.h.bf16 %v5513_v9  ;;  %v5514_v56 = vunpack.i.l.bf16 %v5513_v9  ;;  %v5520_v49 = vunpack.i.h.bf16 %v5518_v8  ;;  %v5519_v37 = vunpack.i.l.bf16 %v5518_v8 }
0x116e   : > { %v3606_v25 = vpack.c.bf16 %v3592_v55, %v3591_v20  ;;  %v5869_v55 = vld [vmem:[#allocation2 + $0x48] sm:$0xff] }
0x116f   : > { %v3580_v34 = vsel %vm1086_vm3, %v7887_v29, %v5515_v10  ;;  %v3579_v57 = vsel %vm1086_vm3, %v7888_v36, %v5514_v56  ;;  %v5870_v36 = vld [vmem:[#allocation2 + $0x50] sm:$0xff] }
0x1170   : > { %v5528_v0 = vpop.permute.xlu0 %5527  ;;  %v5523_v12 = vpop.permute.xlu1 %5522  ;;  %v3586_v46 = vsel %vm2320_vm7, %v3579_v57, %v5519_v37  ;;  %v3587_v17 = vsel %vm2320_vm7, %v3580_v34, %v5520_v49 }
0x1171   : > { %v5525_v2 = vunpack.i.h.bf16 %v5523_v12  ;;  %v5524_v58 = vunpack.i.l.bf16 %v5523_v12  ;;  %v5530_v18 = vunpack.i.h.bf16 %v5528_v0  ;;  %v5529_v59 = vunpack.i.l.bf16 %v5528_v0 }
0x1172   : > { %5276 = vmatmul.mubr.msk.bf16.gmra.mxu0 %vm703_vm1, %v3606_v25 }
0x1173   : > { %5279 = vmatprep.mubr.msk.bf16.mxu0 %vm5913_vm2, %v7857_v48  ;;  %v3593_v11 = vsel %vm2328_vm8, %v3586_v46, %v5524_v58  ;;  %v3594_v60 = vsel %vm2328_vm8, %v3587_v17, %v5525_v2  ;;  %v3582_v3 = vsel %vm1086_vm3, %v7889_v35, %v5530_v18  ;;  %v3581_v28 = vsel %vm1086_vm3, %v7890_v44, %v5529_v59  ;;  %v5871_v18 = vld [vmem:[#allocation2 + $0x58] sm:$0xff] }
0x1174   : > { %v5533_v19 = vpop.permute.xlu1 %5532  ;;  %v5538_v33 = vpop.permute.xlu0 %5537  ;;  %v3607_v23 = vpack.c.bf16 %v3594_v60, %v3593_v11 }
0x1175   : > { %v5535_v40 = vunpack.i.h.bf16 %v5533_v19  ;;  %v5534_v27 = vunpack.i.l.bf16 %v5533_v19  ;;  %v5540_v16 = vunpack.i.h.bf16 %v5538_v33  ;;  %v5539_v24 = vunpack.i.l.bf16 %v5538_v33 }
0x1177   : > { %v3589_v47 = vsel %vm2320_vm7, %v3582_v3, %v5535_v40  ;;  %v3588_v38 = vsel %vm2320_vm7, %v3581_v28, %v5534_v27  ;;  %v5872_v28 = vld [vmem:[#allocation2 + $0x60] sm:$0xff] }
0x1178   : > { %v3595_v22 = vsel %vm2328_vm8, %v3588_v38, %v5539_v24  ;;  %v3596_v14 = vsel %vm2328_vm8, %v3589_v47, %v5540_v16 }
0x1179   : > { %v3608_v63 = vpack.c.bf16 %v3596_v14, %v3595_v22 }
0x117a   : > { %5280 = vmatmul.mubr.msk.bf16.gmra.mxu0 %vm703_vm1, %v3607_v23 }
0x117b   : > { %5283 = vmatprep.mubr.msk.bf16.mxu0 %vm5913_vm2, %v7857_v48 }
0x1182   : > { %5284 = vmatmul.mubr.msk.bf16.gmra.mxu0 %vm703_vm1, %v3608_v63 }
0x1183   : > { %5327 = vmatprep.mubr.msk.bf16.mxu0 %vm5913_vm2, %v7857_v48 }
0x11aa   : > { %v3758_v50 = vpop.xlane.xlu0 %3757 }
0x11ab   : > { %v3796_v11 = vmul.f32 0.03125, %v3758_v50 }
0x11ad   : > { %v7497_v24 = vsub.f32 %v7387_v45, %v3796_v11 }
0x11ae   : > { %v3761_v0 = vpop.xlane.xlu0 %3760 }
0x11af   : > { %v3755_v29 = vpop.xlane.xlu1 %3754  ;;  %v3797_v60 = vmul.f32 0.03125, %v3761_v0  ;;  %v5545_v0 = vld [vmem:[%s6065_s3 + $0x8] sm:$0xff]  }
0x11b0   : > { %v3795_v58 = vmul.f32 0.03125, %v3755_v29  ;;  %5288 = vmatpush3.bf16.msra.mxu1 %v5545_v0 }
0x11b1   : > { %v7500_v47 = vsub.f32 %v7391_v7, %v3797_v60  ;;  %5289 = vmatprep.subr.bf16.mxu1 %v7857_v48 }
0x11b2   : > { %v3764_v33 = vpop.xlane.xlu0 %3763  ;;  %v7489_v27 = vsub.f32 %v7396_v6, %v3795_v58 }
0x11b3   : > { %v3767_v3 = vpop.xlane.xlu1 %3766  ;;  %v3798_v38 = vmul.f32 0.03125, %v3764_v33 }
0x11b4   : > { %v3799_v14 = vmul.f32 0.03125, %v3767_v3 }
0x122a   : > { %v3706_v43 = vpop.f32.mrf.mxu0 }
0x122b   : > { %v3707_v26 = vadd.f32 %v7384_v4, %v3706_v43 }
0x122c   : > { %v5273_v5 = vpop.f32.mrf.mxu0 }
0x122d   : > { %v7461_v54 = vadd.f32 %v5866_v39, %v3707_v26  ;;  %v3823_v26 = vmul.f32 %v7489_v27, %v7489_v27  ;;  %v3770_v5 = vpop.xlane.xlu0 %3769 }
0x122e   : > { %v3709_v53 = vpop.f32.mrf.mxu0 }
0x122f   : > { %v3710_v51 = vadd.f32 %v7384_v4, %v3709_v53  ;;  %v3771_v21 = vsel %vm703_vm1, %v7461_v54, 0.0  ;;  %v5873_v53 = vld [vmem:[#allocation2 + $0x68] sm:$0xff] }
0x1230   : > { %3772 = vadd.xlane.f32.xlu1 %v3771_v21  ;;  %v5274_v15 = vpop.f32.mrf.mxu0  ;;  %v7510_v21 = vsub.f32 %v7399_v62, %v3798_v38 }
0x1231   : > { %v7466_v41 = vadd.f32 %v5867_v1, %v3710_v51  ;;  %v3825_v15 = vmul.f32 %v7500_v47, %v7500_v47  ;;  %v7517_v1 = vsub.f32 %v7404_v52, %v3799_v14 }
0x1232   : > { %v3714_v61 = vpop.f32.mrf.mxu0 }
0x1233   : > { %v3715_v13 = vadd.f32 %v7384_v4, %v3714_v61  ;;  %v3774_v32 = vsel %vm703_vm1, %v7466_v41, 0.0  ;;  %v3800_v61 = vmul.f32 0.03125, %v3770_v5 }
0x1234   : > { %3775 = vadd.xlane.f32.xlu0 %v3774_v32  ;;  %v5277_v31 = vpop.f32.mrf.mxu0 }
0x1235   : > { %v7471_v8 = vadd.f32 %v5868_v42, %v3715_v13  ;;  %v3837_v13 = vsel %vm703_vm1, %v3823_v26, 0.0  ;;  %v7524_v50 = vsub.f32 %v7408_v30, %v3800_v61  ;;  %v3843_v42 = vsel %vm703_vm1, %v3825_v15, 0.0 }
0x1236   : > { %v3717_v9 = vpop.f32.mrf.mxu0 }
0x1237   : > { %v3718_v10 = vadd.f32 %v7384_v4, %v3717_v9  ;;  %v3777_v56 = vsel %vm703_vm1, %v7471_v8, 0.0  ;;  %v3827_v9 = vmul.f32 %v7517_v1, %v7517_v1 }
0x1238   : > { %3778 = vadd.xlane.f32.xlu1 %v3777_v56  ;;  %v5278_v20 = vpop.f32.mrf.mxu0 }
0x1239   : > { %v7476_v49 = vadd.f32 %v5869_v55, %v3718_v10  ;;  %v3826_v10 = vmul.f32 %v7510_v21, %v7510_v21  ;;  %v3849_v56 = vsel %vm703_vm1, %v3827_v9, 0.0  ;;  %v3828_v55 = vmul.f32 %v7524_v50, %v7524_v50 }
0x123a   : > { %v3722_v37 = vpop.f32.mrf.mxu0 }
0x123b   : > { %v3723_v12 = vadd.f32 %v7384_v4, %v3722_v37  ;;  %v3780_v25 = vsel %vm703_vm1, %v7476_v49, 0.0  ;;  %v3846_v20 = vsel %vm703_vm1, %v3826_v10, 0.0  ;;  %v3852_v37 = vsel %vm703_vm1, %v3828_v55, 0.0 }
0x123c   : > { %3781 = vadd.xlane.f32.xlu0 %v3780_v25  ;;  %v5281_v34 = vpop.f32.mrf.mxu0 }
0x123d   : > { %v7481_v57 = vadd.f32 %v5870_v36, %v3723_v12  ;;  %v5546_v12 = vld [vmem:[%s6065_s3] sm:$0xff]  }
0x123e   : > { %v3725_v2 = vpop.f32.mrf.mxu0  ;;  %5290 = vmatpush3.bf16.msra.mxu1 %v5546_v12 }
0x123f   : > { %v3726_v46 = vadd.f32 %v7384_v4, %v3725_v2  ;;  %v3783_v17 = vsel %vm703_vm1, %v7481_v57, 0.0 }
0x1240   : > { %3784 = vadd.xlane.f32.xlu1 %v3783_v17  ;;  %v5282_v19 = vpop.f32.mrf.mxu0 }
0x1241   : > { %v7486_v59 = vadd.f32 %v5871_v18, %v3726_v46 }
0x1242   : > { %v3730_v40 = vpop.f32.mrf.mxu0 }
0x1243   : > { %v3731_v23 = vadd.f32 %v7384_v4, %v3730_v40  ;;  %v3786_v35 = vsel %vm703_vm1, %v7486_v59, 0.0 }
0x1244   : > { %3787 = vadd.xlane.f32.xlu0 %v3786_v35  ;;  %v5285_v44 = vpop.f32.mrf.mxu0 }
0x1245   : > { %v7494_v16 = vadd.f32 %v5872_v28, %v3731_v23 }
0x1246   : > { %v3733_v22 = vpop.f32.mrf.mxu0 }
0x1247   : > { %v3734_v63 = vadd.f32 %v7384_v4, %v3733_v22  ;;  %v3789_v43 = vsel %vm703_vm1, %v7494_v16, 0.0  ;;  %v3824_v4 = vmul.f32 %v7497_v24, %v7497_v24 }
0x1248   : > { %3790 = vadd.xlane.f32.xlu1 %v3789_v43  ;;  %v5286_v39 = vpop.f32.mrf.mxu0 }
0x1249   : > { %v7507_v51 = vadd.f32 %v5873_v53, %v3734_v63  ;;  %v3840_v31 = vsel %vm703_vm1, %v3824_v4, 0.0 }
0x124b   : > { %v3792_v32 = vsel %vm703_vm1, %v7507_v51, 0.0 }
0x124c   : > { %3838 = vadd.xlane.f32.xlu1 %v3837_v13  ;;  %3793 = vadd.xlane.f32.xlu0 %v3792_v32 }
0x1250   : > { %3844 = vadd.xlane.f32.xlu1 %v3843_v42  ;;  %3841 = vadd.xlane.f32.xlu0 %v3840_v31 }
0x1254   : > { %3850 = vadd.xlane.f32.xlu1 %v3849_v56  ;;  %3847 = vadd.xlane.f32.xlu0 %v3846_v20 }
0x1258   : > { %3853 = vadd.xlane.f32.xlu0 %v3852_v37 }
0x12b9   : > { %v3773_v25 = vpop.xlane.xlu1 %3772 }
0x12ba   : > { %v3801_v29 = vmul.f32 0.03125, %v3773_v25 }
0x12bc   : > { %v7540_v34 = vsub.f32 %v7461_v54, %v3801_v29 }
0x12bd   : > { %v3776_v36 = vpop.xlane.xlu0 %3775 }
0x12be   : > { %v3802_v2 = vmul.f32 0.03125, %v3776_v36  ;;  %v3829_v58 = vmul.f32 %v7540_v34, %v7540_v34 }
0x12c0   : > { %v7545_v46 = vsub.f32 %v7466_v41, %v3802_v2  ;;  %v3855_v17 = vsel %vm703_vm1, %v3829_v58, 0.0 }
0x12c1   : > { %v3779_v19 = vpop.xlane.xlu1 %3778  ;;  %3856 = vadd.xlane.f32.xlu1 %v3855_v17 }
0x12c2   : > { %v3803_v18 = vmul.f32 0.03125, %v3779_v19  ;;  %v3830_v11 = vmul.f32 %v7545_v46, %v7545_v46 }
0x12c4   : > { %v7551_v60 = vsub.f32 %v7471_v8, %v3803_v18  ;;  %v3858_v33 = vsel %vm703_vm1, %v3830_v11, 0.0 }
0x12c5   : > { %v3782_v40 = vpop.xlane.xlu0 %3781  ;;  %3859 = vadd.xlane.f32.xlu0 %v3858_v33 }
0x12c6   : > { %v3804_v23 = vmul.f32 0.03125, %v3782_v40  ;;  %v3831_v35 = vmul.f32 %v7551_v60, %v7551_v60 }
0x12c8   : > { %v7557_v3 = vsub.f32 %v7476_v49, %v3804_v23  ;;  %v3861_v44 = vsel %vm703_vm1, %v3831_v35, 0.0 }
0x12c9   : > { %v3785_v28 = vpop.xlane.xlu1 %3784  ;;  %3862 = vadd.xlane.f32.xlu1 %v3861_v44 }
0x12ca   : > { %v3805_v38 = vmul.f32 0.03125, %v3785_v28  ;;  %v3832_v22 = vmul.f32 %v7557_v3, %v7557_v3 }
0x12cc   : > { %v7563_v14 = vsub.f32 %v7481_v57, %v3805_v38  ;;  %v3864_v63 = vsel %vm703_vm1, %v3832_v22, 0.0 }
0x12cd   : > { %v3788_v43 = vpop.xlane.xlu0 %3787  ;;  %3865 = vadd.xlane.f32.xlu0 %v3864_v63  ;;  %v7593_v63 = vld [vmem:[%s633_s28] ss:$0 sm:$0xff] }
0x12ce   : > { %v3806_v26 = vmul.f32 0.03125, %v3788_v43  ;;  %v3833_v5 = vmul.f32 %v7563_v14, %v7563_v14 }
0x12d0   : > { %v7569_v39 = vsub.f32 %v7486_v59, %v3806_v26  ;;  %v3867_v53 = vsel %vm703_vm1, %v3833_v5, 0.0 }
0x12d1   : > { %3868 = vadd.xlane.f32.xlu1 %v3867_v53  ;;  %v3791_v15 = vpop.xlane.xlu1 %3790 }
0x12d2   : > { %v3807_v4 = vmul.f32 0.03125, %v3791_v15  ;;  %v3834_v61 = vmul.f32 %v7569_v39, %v7569_v39  ;;  %v7602_v15 = vld [vmem:[%s636_s13] ss:$0 sm:$0xff] }
0x12d4   : > { %v7575_v13 = vsub.f32 %v7494_v16, %v3807_v4  ;;  %v3870_v32 = vsel %vm703_vm1, %v3834_v61, 0.0 }
0x12d5   : > { %v3839_v31 = vpop.xlane.xlu1 %3838  ;;  %3871 = vadd.xlane.f32.xlu0 %v3870_v32  ;;  %v3794_v42 = vpop.xlane.xlu0 %3793 }
0x12d6   : > { %v3879_v9 = vmul.f32 0.03125, %v3839_v31  ;;  %v3808_v10 = vmul.f32 0.03125, %v3794_v42  ;;  %v3835_v56 = vmul.f32 %v7575_v13, %v7575_v13 }
0x12d8   : > { %v3893_v20 = vadd.f32 1e-05, %v3879_v9  ;;  %v7581_v55 = vsub.f32 %v7507_v51, %v3808_v10  ;;  %v3873_v37 = vsel %vm703_vm1, %v3835_v56, 0.0 }
0x12d9   : > { %3874 = vadd.xlane.f32.xlu1 %v3873_v37  ;;  %v3845_v0 = vpop.xlane.xlu1 %3844  ;;  %v3842_v12 = vpop.xlane.xlu0 %3841 }
0x12da   : > { %5803 = vrsqrt.f32 %v3893_v20  ;;  %v3881_v25 = vmul.f32 0.03125, %v3845_v0  ;;  %v3880_v29 = vmul.f32 0.03125, %v3842_v12  ;;  %v3836_v36 = vmul.f32 %v7581_v55, %v7581_v55 }
0x12dc   : > { %v3894_v2 = vadd.f32 1e-05, %v3880_v29  ;;  %v3876_v58 = vsel %vm703_vm1, %v3836_v36, 0.0  ;;  %v3895_v17 = vadd.f32 1e-05, %v3881_v25 }
0x12dd   : > { %3877 = vadd.xlane.f32.xlu0 %v3876_v58  ;;  %v3848_v19 = vpop.xlane.xlu0 %3847  ;;  %v3851_v18 = vpop.xlane.xlu1 %3850 }
0x12de   : > { %v3882_v11 = vmul.f32 0.03125, %v3848_v19  ;;  %5805 = vrsqrt.f32 %v3894_v2  ;;  %v3883_v40 = vmul.f32 0.03125, %v3851_v18 }
0x12df   : > { %5807 = vrsqrt.f32 %v3895_v17  ;;  %v5547_v17 = vld [vmem:[%s6075_s24 + $0x18] sm:$0xff]  }
0x12e0   : > { %v3896_v33 = vadd.f32 1e-05, %v3882_v11  ;;  %v3897_v28 = vadd.f32 1e-05, %v3883_v40  ;;  %5320 = vmatpush3.bf16.msra.mxu0 %v5547_v17 }
0x12e1   : > { %v3854_v23 = vpop.xlane.xlu0 %3853  ;;  %5321 = vmatprep.subr.bf16.mxu0 %v7857_v48 }
0x12e2   : > { %v3884_v35 = vmul.f32 0.03125, %v3854_v23  ;;  %5809 = vrsqrt.f32 %v3896_v33  ;;  %v5548_v33 = vld [vmem:[%s6075_s24 + $0x10] sm:$0xff]  }
0x12e4   : > { %v3898_v44 = vadd.f32 1e-05, %v3884_v35  ;;  %5322 = vmatpush3.bf16.msra.mxu0 %v5548_v33 }
0x12e5   : > { %5323 = vmatprep.subr.bf16.mxu0 %v7857_v48 }
0x12e6   : > { %5811 = vrsqrt.f32 %v3898_v44  ;;  %v5549_v44 = vld [vmem:[%s6075_s24 + $0x8] sm:$0xff]  }
0x12e7   : > { %v5804_v38 = vpop.eup %5803  ;;  %5813 = vrsqrt.f32 %v3897_v28 }
0x12e8   : > { %v3921_v22 = vmul.f32 %v5804_v38, %v7489_v27  ;;  %5324 = vmatpush3.bf16.msra.mxu0 %v5549_v44 }
0x12e9   : > { %5325 = vmatprep.subr.bf16.mxu0 %v7857_v48 }
0x12ea   : > { %v3941_v26 = vmul.f32 %v7593_v63, %v3921_v22 }
0x12eb   : > { %v5806_v43 = vpop.eup %5805 }
0x12ec   : > { %v3922_v5 = vmul.f32 %v5806_v43, %v7497_v24  ;;  %v5808_v53 = vpop.eup %5807  ;;  %v3961_v61 = vadd.f32 %v7602_v15, %v3941_v26  ;;  %v5550_v43 = vld [vmem:[%s6075_s24] sm:$0xff]  }
0x12ed   : > { %v3923_v31 = vmul.f32 %v5808_v53, %v7500_v47  ;;  %5326 = vmatpush3.bf16.msra.mxu0 %v5550_v43 }
0x12ee   : > { %v3942_v27 = vmul.f32 %v7593_v63, %v3922_v5 }
0x12ef   : > { %v5810_v4 = vpop.eup %5809  ;;  %v3943_v56 = vmul.f32 %v7593_v63, %v3923_v31 }
0x12f0   : > { %v3962_v32 = vadd.f32 %v7602_v15, %v3942_v27  ;;  %v3924_v42 = vmul.f32 %v5810_v4, %v7510_v21 }
0x12f1   : > { %v3963_v47 = vadd.f32 %v7602_v15, %v3943_v56 }
0x12f2   : > { %v3980_v9 = vpack.c.bf16 %v3962_v32, %v3961_v61  ;;  %v3944_v24 = vmul.f32 %v7593_v63, %v3924_v42 }
0x12f3   : > { %v5812_v10 = vpop.eup %5811 }
0x12f4   : > { %5292 = vmatmul.mubr.msk.bf16.vlgmr.msra.gmra.mxu1 %vm703_vm1, %v3980_v9  ;;  %v5814_v20 = vpop.eup %5813  ;;  %v3964_v37 = vadd.f32 %v7602_v15, %v3944_v24  ;;  %v3926_v0 = vmul.f32 %v5812_v10, %v7524_v50 }
0x12f5   : > { %5295 = vmatprep.mubr.msk.bf16.mxu1 %vm5913_vm2, %v7857_v48  ;;  %v3925_v21 = vmul.f32 %v5814_v20, %v7517_v1 }
0x12f6   : > { %v3981_v12 = vpack.c.bf16 %v3964_v37, %v3963_v47  ;;  %v3946_v25 = vmul.f32 %v7593_v63, %v3926_v0 }
0x12f7   : > { %v3945_v29 = vmul.f32 %v7593_v63, %v3925_v21 }
0x12f8   : > { %v3966_v36 = vadd.f32 %v7602_v15, %v3946_v25 }
0x12f9   : > { %v3965_v2 = vadd.f32 %v7602_v15, %v3945_v29 }
0x12fb   : > { %v3982_v50 = vpack.c.bf16 %v3966_v36, %v3965_v2 }
0x12fc   : > { %5296 = vmatmul.mubr.msk.bf16.gmra.mxu1 %vm703_vm1, %v3981_v12 }
0x12fd   : > { %5299 = vmatprep.mubr.msk.bf16.mxu1 %vm5913_vm2, %v7857_v48 }
0x1304   : > { %5300 = vmatmul.mubr.msk.bf16.gmra.mxu1 %vm703_vm1, %v3982_v50 }
0x1305   : > { %5303 = vmatprep.mubr.msk.bf16.mxu1 %vm5913_vm2, %v7857_v48 }
0x134a   : > { %v3857_v1 = vpop.xlane.xlu1 %3856 }
0x134b   : > { %v3885_v58 = vmul.f32 0.03125, %v3857_v1 }
0x134d   : > { %v3899_v19 = vadd.f32 1e-05, %v3885_v58 }
0x134e   : > { %v3860_v18 = vpop.xlane.xlu0 %3859 }
0x134f   : > { %5815 = vrsqrt.f32 %v3899_v19  ;;  %v3886_v11 = vmul.f32 0.03125, %v3860_v18 }
0x1351   : > { %v3900_v40 = vadd.f32 1e-05, %v3886_v11 }
0x1352   : > { %v3863_v23 = vpop.xlane.xlu1 %3862 }
0x1353   : > { %5817 = vrsqrt.f32 %v3900_v40  ;;  %v3887_v35 = vmul.f32 0.03125, %v3863_v23 }
0x1355   : > { %v3901_v28 = vadd.f32 1e-05, %v3887_v35 }
0x1356   : > { %v3866_v38 = vpop.xlane.xlu0 %3865 }
0x1357   : > { %5819 = vrsqrt.f32 %v3901_v28  ;;  %v3888_v22 = vmul.f32 0.03125, %v3866_v38 }
0x1359   : > { %v3902_v26 = vadd.f32 1e-05, %v3888_v22 }
0x135a   : > { %v3869_v5 = vpop.xlane.xlu1 %3868 }
0x135b   : > { %5821 = vrsqrt.f32 %v3902_v26  ;;  %v3889_v53 = vmul.f32 0.03125, %v3869_v5 }
0x135c   : > { %v5816_v27 = vpop.eup %5815 }
0x135d   : > { %v3927_v4 = vmul.f32 %v5816_v27, %v7540_v34  ;;  %v3903_v61 = vadd.f32 1e-05, %v3889_v53 }
0x135e   : > { %v3872_v32 = vpop.xlane.xlu0 %3871 }
0x135f   : > { %5823 = vrsqrt.f32 %v3903_v61  ;;  %v3890_v31 = vmul.f32 0.03125, %v3872_v32  ;;  %v3947_v10 = vmul.f32 %v7593_v63, %v3927_v4 }
0x1360   : > { %v5818_v42 = vpop.eup %5817 }
0x1361   : > { %v3928_v9 = vmul.f32 %v5818_v42, %v7545_v46  ;;  %v3904_v24 = vadd.f32 1e-05, %v3890_v31  ;;  %v3967_v34 = vadd.f32 %v7602_v15, %v3947_v10 }
0x1362   : > { %v3875_v56 = vpop.xlane.xlu1 %3874 }
0x1363   : > { %5825 = vrsqrt.f32 %v3904_v24  ;;  %v3891_v20 = vmul.f32 0.03125, %v3875_v56  ;;  %v3948_v37 = vmul.f32 %v7593_v63, %v3928_v9 }
0x1364   : > { %v5820_v0 = vpop.eup %5819 }
0x1365   : > { %v3929_v47 = vmul.f32 %v5820_v0, %v7551_v60  ;;  %v3905_v21 = vadd.f32 1e-05, %v3891_v20  ;;  %v3968_v12 = vadd.f32 %v7602_v15, %v3948_v37 }
0x1366   : > { %v3878_v25 = vpop.xlane.xlu0 %3877 }
0x1367   : > { %5827 = vrsqrt.f32 %v3905_v21  ;;  %v3892_v29 = vmul.f32 0.03125, %v3878_v25  ;;  %v3983_v46 = vpack.c.bf16 %v3968_v12, %v3967_v34  ;;  %v3949_v1 = vmul.f32 %v7593_v63, %v3929_v47 }
0x1368   : > { %v5822_v36 = vpop.eup %5821 }
0x1369   : > { %v3930_v2 = vmul.f32 %v5822_v36, %v7557_v3  ;;  %v3906_v50 = vadd.f32 1e-05, %v3892_v29  ;;  %5304 = vmatmul.mubr.msk.bf16.gmra.mxu1 %vm703_vm1, %v3983_v46  ;;  %v3969_v19 = vadd.f32 %v7602_v15, %v3949_v1 }
0x136a   : > { %5307 = vmatprep.mubr.msk.bf16.mxu1 %vm5913_vm2, %v7857_v48 }
0x136b   : > { %5829 = vrsqrt.f32 %v3906_v50  ;;  %v3950_v60 = vmul.f32 %v7593_v63, %v3930_v2 }
0x136c   : > { %v5824_v58 = vpop.eup %5823 }
0x136d   : > { %v3931_v17 = vmul.f32 %v5824_v58, %v7563_v14  ;;  %v3970_v18 = vadd.f32 %v7602_v15, %v3950_v60 }
0x136f   : > { %v3984_v11 = vpack.c.bf16 %v3970_v18, %v3969_v19  ;;  %v3951_v40 = vmul.f32 %v7593_v63, %v3931_v17 }
0x1370   : > { %v5826_v3 = vpop.eup %5825 }
0x1371   : > { %v3932_v33 = vmul.f32 %v5826_v3, %v7569_v39  ;;  %5308 = vmatmul.mubr.msk.bf16.gmra.mxu1 %vm703_vm1, %v3984_v11  ;;  %v3971_v44 = vadd.f32 %v7602_v15, %v3951_v40 }
0x1372   : > { %5311 = vmatprep.mubr.msk.bf16.mxu1 %vm5913_vm2, %v7857_v48 }
0x1373   : > { %v3952_v23 = vmul.f32 %v7593_v63, %v3932_v33 }
0x1374   : > { %v5828_v35 = vpop.eup %5827 }
0x1375   : > { %v3933_v14 = vmul.f32 %v5828_v35, %v7575_v13  ;;  %v3972_v28 = vadd.f32 %v7602_v15, %v3952_v23 }
0x1377   : > { %v3985_v38 = vpack.c.bf16 %v3972_v28, %v3971_v44  ;;  %v3953_v43 = vmul.f32 %v7593_v63, %v3933_v14 }
0x1378   : > { %v5830_v22 = vpop.eup %5829 }
0x1379   : > { %v3934_v39 = vmul.f32 %v5830_v22, %v7581_v55  ;;  %5312 = vmatmul.mubr.msk.bf16.gmra.mxu1 %vm703_vm1, %v3985_v38  ;;  %v3973_v5 = vadd.f32 %v7602_v15, %v3953_v43  ;;  %v7674_v55 = vld [vmem:[%s644_s5] ss:$0 sm:$0xff] }
0x137a   : > { %5315 = vmatprep.mubr.msk.bf16.mxu1 %vm5913_vm2, %v7857_v48 }
0x137b   : > { %v3954_v26 = vmul.f32 %v7593_v63, %v3934_v39 }
0x137d   : > { %v3974_v13 = vadd.f32 %v7602_v15, %v3954_v26 }
0x137f   : > { %v3986_v53 = vpack.c.bf16 %v3974_v13, %v3973_v5 }
0x1381   : > { %5316 = vmatmul.mubr.msk.bf16.gmra.mxu1 %vm703_vm1, %v3986_v53 }
0x13b4   : > { %v4060_v27 = vpop.f32.mrf.mxu1 }
0x13b5   : > { %v4061_v4 = vadd.f32 %v7674_v55, %v4060_v27 }
0x13b6   : > { %v5293_v61 = vpop.f32.mrf.mxu1 }
0x13b7   : > { %v4115_v32 = vmul.f32 %v4061_v4, %v4061_v4 }
0x13b8   : > { %v4063_v31 = vpop.f32.mrf.mxu1 }
0x13b9   : > { %v4129_v63 = vmul.f32 %v4115_v32, %v4061_v4  ;;  %v4064_v42 = vadd.f32 %v7674_v55, %v4063_v31 }
0x13ba   : > { %v5294_v9 = vpop.f32.mrf.mxu1 }
0x13bb   : > { %v4143_v15 = vmul.f32 0.044715, %v4129_v63  ;;  %v4116_v24 = vmul.f32 %v4064_v42, %v4064_v42 }
0x13bc   : > { %v4068_v10 = vpop.f32.mrf.mxu1 }
0x13bd   : > { %v4157_v56 = vadd.f32 %v4143_v15, %v4061_v4  ;;  %v4130_v20 = vmul.f32 %v4116_v24, %v4064_v42  ;;  %v4069_v37 = vadd.f32 %v7674_v55, %v4068_v10 }
0x13be   : > { %v5297_v0 = vpop.f32.mrf.mxu1 }
0x13bf   : > { %v4171_v47 = vmul.f32 0.7978846, %v4157_v56  ;;  %v4144_v21 = vmul.f32 0.044715, %v4130_v20  ;;  %v4117_v34 = vmul.f32 %v4069_v37, %v4069_v37 }
0x13c0   : > { %v4071_v12 = vpop.f32.mrf.mxu1 }
0x13c1   : > { %5831 = vtanh.f32 %v4171_v47  ;;  %v4158_v25 = vadd.f32 %v4144_v21, %v4064_v42  ;;  %v4131_v29 = vmul.f32 %v4117_v34, %v4069_v37  ;;  %v4072_v46 = vadd.f32 %v7674_v55, %v4071_v12 }
0x13c2   : > { %v5298_v36 = vpop.f32.mrf.mxu1 }
0x13c3   : > { %v4172_v2 = vmul.f32 0.7978846, %v4158_v25  ;;  %v4145_v50 = vmul.f32 0.044715, %v4131_v29  ;;  %v4118_v1 = vmul.f32 %v4072_v46, %v4072_v46 }
0x13c4   : > { %v4076_v60 = vpop.f32.mrf.mxu1 }
0x13c5   : > { %5833 = vtanh.f32 %v4172_v2  ;;  %v4159_v58 = vadd.f32 %v4145_v50, %v4069_v37  ;;  %v4132_v17 = vmul.f32 %v4118_v1, %v4072_v46  ;;  %v4077_v19 = vadd.f32 %v7674_v55, %v4076_v60 }
0x13c6   : > { %v5301_v18 = vpop.f32.mrf.mxu1 }
0x13c7   : > { %v4173_v11 = vmul.f32 0.7978846, %v4159_v58  ;;  %v4146_v3 = vmul.f32 0.044715, %v4132_v17  ;;  %v4119_v33 = vmul.f32 %v4077_v19, %v4077_v19 }
0x13c8   : > { %v4079_v40 = vpop.f32.mrf.mxu1 }
0x13c9   : > { %5835 = vtanh.f32 %v4173_v11  ;;  %v4160_v23 = vadd.f32 %v4146_v3, %v4072_v46  ;;  %v4133_v35 = vmul.f32 %v4119_v33, %v4077_v19  ;;  %v4080_v14 = vadd.f32 %v7674_v55, %v4079_v40 }
0x13ca   : > { %v5302_v44 = vpop.f32.mrf.mxu1 }
0x13cb   : > { %v4174_v28 = vmul.f32 0.7978846, %v4160_v23  ;;  %v4147_v38 = vmul.f32 0.044715, %v4133_v35  ;;  %v4120_v22 = vmul.f32 %v4080_v14, %v4080_v14 }
0x13cd   : > { %5837 = vtanh.f32 %v4174_v28  ;;  %v4161_v39 = vadd.f32 %v4147_v38, %v4077_v19  ;;  %v4134_v43 = vmul.f32 %v4120_v22, %v4080_v14 }
0x13ce   : > { %v5832_v26 = vpop.eup %5831 }
0x13cf   : > { %v4199_v5 = vadd.f32 1.0, %v5832_v26  ;;  %v4175_v13 = vmul.f32 0.7978846, %v4161_v39  ;;  %v4148_v53 = vmul.f32 0.044715, %v4134_v43 }
0x13d1   : > { %5839 = vtanh.f32 %v4175_v13  ;;  %v4162_v27 = vadd.f32 %v4148_v53, %v4080_v14  ;;  %v4213_v32 = vmul.f32 0.5, %v4199_v5 }
0x13d2   : > { %v5834_v61 = vpop.eup %5833 }
0x13d3   : > { %v4200_v31 = vadd.f32 1.0, %v5834_v61  ;;  %v4176_v63 = vmul.f32 0.7978846, %v4162_v27  ;;  %v4227_v24 = vmul.f32 %v4213_v32, %v4061_v4 }
0x13d5   : > { %v4214_v9 = vmul.f32 0.5, %v4200_v31  ;;  %5841 = vtanh.f32 %v4176_v63 }
0x13d6   : > { %v5836_v15 = vpop.eup %5835 }
0x13d7   : > { %v4228_v10 = vmul.f32 %v4214_v9, %v4064_v42  ;;  %v4201_v56 = vadd.f32 1.0, %v5836_v15 }
0x13d9   : > { %v4250_v20 = vpack.c.bf16 %v4228_v10, %v4227_v24  ;;  %v4215_v47 = vmul.f32 0.5, %v4201_v56 }
0x13da   : > { %v5838_v0 = vpop.eup %5837 }
0x13db   : > { %v4202_v21 = vadd.f32 1.0, %v5838_v0  ;;  %5328 = vmatmul.mubr.msk.bf16.vlgmr.msra.gmra.mxu0 %vm4287_vm9, %v4250_v20  ;;  %v4229_v25 = vmul.f32 %v4215_v47, %v4069_v37 }
0x13dc   : > { %5331 = vmatprep.mubr.msk.bf16.mxu0 %vm5913_vm2, %v7857_v48 }
0x13dd   : > { %v4216_v34 = vmul.f32 0.5, %v4202_v21 }
0x13de   : > { %v5840_v12 = vpop.eup %5839 }
0x13df   : > { %v4230_v29 = vmul.f32 %v4216_v34, %v4072_v46  ;;  %v4203_v36 = vadd.f32 1.0, %v5840_v12 }
0x13e1   : > { %v4251_v2 = vpack.c.bf16 %v4230_v29, %v4229_v25  ;;  %v4217_v4 = vmul.f32 0.5, %v4203_v36 }
0x13e2   : > { %v5842_v50 = vpop.eup %5841 }
0x13e3   : > { %v4204_v42 = vadd.f32 1.0, %v5842_v50  ;;  %5332 = vmatmul.mubr.msk.bf16.gmra.mxu0 %vm4287_vm9, %v4251_v2  ;;  %v4231_v60 = vmul.f32 %v4217_v4, %v4077_v19 }
0x13e4   : > { %5335 = vmatprep.mubr.msk.bf16.mxu0 %vm5913_vm2, %v7857_v48 }
0x13e5   : > { %v4218_v1 = vmul.f32 0.5, %v4204_v42 }
0x13e7   : > { %v4232_v58 = vmul.f32 %v4218_v1, %v4080_v14 }
0x13e9   : > { %v4252_v17 = vpack.c.bf16 %v4232_v58, %v4231_v60 }
0x13eb   : > { %5336 = vmatmul.mubr.msk.bf16.gmra.mxu0 %vm4287_vm9, %v4252_v17 }
0x13ec   : > { %5339 = vmatprep.mubr.msk.bf16.mxu0 %vm5913_vm2, %v7857_v48 }
0x1429   : > { %v4084_v37 = vpop.f32.mrf.mxu1 }
0x142a   : > { %v7692_v46 = vadd.f32 %v7674_v55, %v4084_v37 }
0x142b   : > { %v5305_v18 = vpop.f32.mrf.mxu1 }
0x142c   : > { %v4121_v11 = vmul.f32 %v7692_v46, %v7692_v46 }
0x142d   : > { %v4087_v3 = vpop.f32.mrf.mxu1 }
0x142e   : > { %v4135_v33 = vmul.f32 %v4121_v11, %v7692_v46  ;;  %v7698_v19 = vadd.f32 %v7674_v55, %v4087_v3 }
0x142f   : > { %v5306_v40 = vpop.f32.mrf.mxu1 }
0x1430   : > { %v4149_v23 = vmul.f32 0.044715, %v4135_v33  ;;  %v4122_v35 = vmul.f32 %v7698_v19, %v7698_v19 }
0x1431   : > { %v4092_v14 = vpop.f32.mrf.mxu1 }
0x1432   : > { %v4163_v44 = vadd.f32 %v4149_v23, %v7692_v46  ;;  %v4136_v28 = vmul.f32 %v4122_v35, %v7698_v19  ;;  %v7705_v38 = vadd.f32 %v7674_v55, %v4092_v14 }
0x1433   : > { %v5309_v22 = vpop.f32.mrf.mxu1 }
0x1434   : > { %v4177_v39 = vmul.f32 0.7978846, %v4163_v44  ;;  %v4150_v43 = vmul.f32 0.044715, %v4136_v28  ;;  %v4123_v26 = vmul.f32 %v7705_v38, %v7705_v38 }
0x1435   : > { %v4095_v5 = vpop.f32.mrf.mxu1 }
0x1436   : > { %5843 = vtanh.f32 %v4177_v39  ;;  %v4164_v13 = vadd.f32 %v4150_v43, %v7698_v19  ;;  %v4137_v53 = vmul.f32 %v4123_v26, %v7705_v38  ;;  %v7712_v27 = vadd.f32 %v7674_v55, %v4095_v5 }
0x1437   : > { %v5310_v61 = vpop.f32.mrf.mxu1 }
0x1438   : > { %v4178_v32 = vmul.f32 0.7978846, %v4164_v13  ;;  %v4151_v31 = vmul.f32 0.044715, %v4137_v53  ;;  %v4124_v63 = vmul.f32 %v7712_v27, %v7712_v27 }
0x1439   : > { %v4100_v9 = vpop.f32.mrf.mxu1 }
0x143a   : > { %5845 = vtanh.f32 %v4178_v32  ;;  %v4165_v15 = vadd.f32 %v4151_v31, %v7705_v38  ;;  %v4138_v24 = vmul.f32 %v4124_v63, %v7712_v27  ;;  %v7719_v10 = vadd.f32 %v7674_v55, %v4100_v9 }
0x143b   : > { %v5313_v56 = vpop.f32.mrf.mxu1 }
0x143c   : > { %v4179_v20 = vmul.f32 0.7978846, %v4165_v15  ;;  %v4152_v0 = vmul.f32 0.044715, %v4138_v24  ;;  %v4125_v47 = vmul.f32 %v7719_v10, %v7719_v10 }
0x143d   : > { %v4103_v21 = vpop.f32.mrf.mxu1 }
0x143e   : > { %5847 = vtanh.f32 %v4179_v20  ;;  %v4166_v34 = vadd.f32 %v4152_v0, %v7712_v27  ;;  %v4139_v12 = vmul.f32 %v4125_v47, %v7719_v10  ;;  %v4104_v25 = vadd.f32 %v7674_v55, %v4103_v21 }
0x143f   : > { %v5314_v29 = vpop.f32.mrf.mxu1 }
0x1440   : > { %v4180_v36 = vmul.f32 0.7978846, %v4166_v34  ;;  %v4153_v2 = vmul.f32 0.044715, %v4139_v12  ;;  %v4126_v50 = vmul.f32 %v4104_v25, %v4104_v25 }
0x1441   : > { %v4108_v4 = vpop.f32.mrf.mxu1 }
0x1442   : > { %5849 = vtanh.f32 %v4180_v36  ;;  %v4167_v42 = vadd.f32 %v4153_v2, %v7719_v10  ;;  %v4140_v1 = vmul.f32 %v4126_v50, %v4104_v25  ;;  %v4109_v60 = vadd.f32 %v7674_v55, %v4108_v4 }
0x1443   : > { %v5844_v58 = vpop.eup %5843  ;;  %v5317_v17 = vpop.f32.mrf.mxu1 }
0x1444   : > { %v4205_v37 = vadd.f32 1.0, %v5844_v58  ;;  %v4181_v18 = vmul.f32 0.7978846, %v4167_v42  ;;  %v4154_v11 = vmul.f32 0.044715, %v4140_v1  ;;  %v4127_v3 = vmul.f32 %v4109_v60, %v4109_v60 }
0x1445   : > { %v4111_v33 = vpop.f32.mrf.mxu1 }
0x1446   : > { %5851 = vtanh.f32 %v4181_v18  ;;  %v4168_v40 = vadd.f32 %v4154_v11, %v4104_v25  ;;  %v4141_v23 = vmul.f32 %v4127_v3, %v4109_v60  ;;  %v4112_v14 = vadd.f32 %v7674_v55, %v4111_v33 }
0x1447   : > { %v5846_v35 = vpop.eup %5845  ;;  %v5318_v44 = vpop.f32.mrf.mxu1  ;;  %v4219_v28 = vmul.f32 0.5, %v4205_v37 }
0x1448   : > { %v4206_v22 = vadd.f32 1.0, %v5846_v35  ;;  %v4182_v39 = vmul.f32 0.7978846, %v4168_v40  ;;  %v4155_v43 = vmul.f32 0.044715, %v4141_v23  ;;  %v4128_v26 = vmul.f32 %v4112_v14, %v4112_v14 }
0x1449   : > { %v4233_v32 = vmul.f32 %v4219_v28, %v7692_v46 }
0x144a   : > { %v4220_v5 = vmul.f32 0.5, %v4206_v22  ;;  %5853 = vtanh.f32 %v4182_v39  ;;  %v4169_v13 = vadd.f32 %v4155_v43, %v4109_v60  ;;  %v4142_v61 = vmul.f32 %v4128_v26, %v4112_v14 }
0x144b   : > { %v5848_v53 = vpop.eup %5847 }
0x144c   : > { %v4234_v31 = vmul.f32 %v4220_v5, %v7698_v19  ;;  %v4207_v63 = vadd.f32 1.0, %v5848_v53  ;;  %v4183_v9 = vmul.f32 0.7978846, %v4169_v13  ;;  %v4156_v15 = vmul.f32 0.044715, %v4142_v61 }
0x144e   : > { %5855 = vtanh.f32 %v4183_v9  ;;  %v4253_v55 = vpack.c.bf16 %v4234_v31, %v4233_v32  ;;  %v4170_v56 = vadd.f32 %v4156_v15, %v4112_v14  ;;  %v4221_v20 = vmul.f32 0.5, %v4207_v63 }
0x144f   : > { %v5850_v24 = vpop.eup %5849 }
0x1450   : > { %v4208_v0 = vadd.f32 1.0, %v5850_v24  ;;  %5340 = vmatmul.mubr.msk.bf16.gmra.mxu0 %vm4287_vm9, %v4253_v55  ;;  %v4184_v47 = vmul.f32 0.7978846, %v4170_v56  ;;  %v4235_v46 = vmul.f32 %v4221_v20, %v7705_v38 }
0x1451   : > { %5343 = vmatprep.mubr.msk.bf16.mxu0 %vm5913_vm2, %v7857_v48 }
0x1452   : > { %v4222_v21 = vmul.f32 0.5, %v4208_v0  ;;  %5857 = vtanh.f32 %v4184_v47 }
0x1453   : > { %v5852_v34 = vpop.eup %5851 }
0x1454   : > { %v4236_v19 = vmul.f32 %v4222_v21, %v7712_v27  ;;  %v4209_v12 = vadd.f32 1.0, %v5852_v34 }
0x1456   : > { %v4254_v29 = vpack.c.bf16 %v4236_v19, %v4235_v46  ;;  %v4223_v2 = vmul.f32 0.5, %v4209_v12 }
0x1457   : > { %v5854_v36 = vpop.eup %5853 }
0x1458   : > { %v4210_v50 = vadd.f32 1.0, %v5854_v36  ;;  %5344 = vmatmul.mubr.msk.bf16.gmra.mxu0 %vm4287_vm9, %v4254_v29  ;;  %v4237_v1 = vmul.f32 %v4223_v2, %v7719_v10  ;;  %v4772_v10 = vld [vmem:[%s652_s4] ss:$0 sm:$0xff] }
0x1459   : > { %5347 = vmatprep.mubr.msk.bf16.mxu0 %vm5913_vm2, %v7857_v48 }
0x145a   : > { %v4224_v4 = vmul.f32 0.5, %v4210_v50 }
0x145b   : > { %v5856_v42 = vpop.eup %5855 }
0x145c   : > { %v4238_v58 = vmul.f32 %v4224_v4, %v4104_v25  ;;  %v4211_v17 = vadd.f32 1.0, %v5856_v42 }
0x145e   : > { %v4255_v38 = vpack.c.bf16 %v4238_v58, %v4237_v1  ;;  %v4225_v27 = vmul.f32 0.5, %v4211_v17 }
0x145f   : > { %v5858_v37 = vpop.eup %5857 }
0x1460   : > { %5348 = vmatmul.mubr.msk.bf16.gmra.mxu0 %vm4287_vm9, %v4255_v38  ;;  %v4212_v18 = vadd.f32 1.0, %v5858_v37  ;;  %v4239_v3 = vmul.f32 %v4225_v27, %v4109_v60 }
0x1461   : > { %5351 = vmatprep.mubr.msk.bf16.mxu0 %vm5913_vm2, %v7857_v48 }
0x1462   : > { %v4226_v11 = vmul.f32 0.5, %v4212_v18 }
0x1464   : > { %v4240_v33 = vmul.f32 %v4226_v11, %v4112_v14 }
0x1466   : > { %v4256_v40 = vpack.c.bf16 %v4240_v33, %v4239_v3 }
0x1468   : > { %5352 = vmatmul.mubr.msk.bf16.gmra.mxu0 %vm4287_vm9, %v4256_v40 }
0x149b   : > { %v4343_v25 = vpop.f32.mrf.mxu0 }
0x149c   : > { %v4344_v23 = vadd.f32 %v4772_v10, %v4343_v25 }
0x149d   : > { %v5329_v35 = vpop.f32.mrf.mxu0 }
0x149e   : > { %v7750_v44 = vadd.f32 %v4344_v23, %v7396_v6 }
0x149f   : > { %v4346_v28 = vpop.f32.mrf.mxu0 }
0x14a0   : > { %v4347_v22 = vadd.f32 %v4772_v10, %v4346_v28 }
0x14a1   : > { %v5330_v48 = vpop.f32.mrf.mxu0 }
0x14a2   : > { %v4399_v60 = vadd.f32 %v4347_v22, %v7387_v45 }
0x14a3   : > { %v4351_v14 = vpop.f32.mrf.mxu0 }
0x14a4   : > { %v4352_v39 = vadd.f32 %v4772_v10, %v4351_v14 }
0x14a5   : > { %v5333_v43 = vpop.f32.mrf.mxu0 }
0x14a6   : > { %v4400_v26 = vadd.f32 %v4352_v39, %v7391_v7 }
0x14a7   : > { %v4354_v5 = vpop.f32.mrf.mxu0 }
0x14a8   : > { %v4355_v13 = vadd.f32 %v4772_v10, %v4354_v5 }
0x14a9   : > { %v5334_v53 = vpop.f32.mrf.mxu0 }
0x14aa   : > { %v4401_v61 = vadd.f32 %v4355_v13, %v7399_v62 }
0x14ab   : > { %v4359_v32 = vpop.f32.mrf.mxu0 }
0x14ac   : > { %v4360_v31 = vadd.f32 %v4772_v10, %v4359_v32 }
0x14ad   : > { %v5337_v63 = vpop.f32.mrf.mxu0 }
0x14ae   : > { %v4402_v6 = vadd.f32 %v4360_v31, %v7404_v52 }
0x14af   : > { %v4362_v9 = vpop.f32.mrf.mxu0 }
0x14b0   : > { %v4363_v15 = vadd.f32 %v4772_v10, %v4362_v9 }
0x14b1   : > { %v5338_v55 = vpop.f32.mrf.mxu0 }
0x14b2   : > { %v4403_v45 = vadd.f32 %v4363_v15, %v7408_v30 }
0x1510   : > { %v4367_v24 = vpop.f32.mrf.mxu0 }
0x1511   : > { %v4368_v56 = vadd.f32 %v4772_v10, %v4367_v24 }
0x1512   : > { %v5341_v20 = vpop.f32.mrf.mxu0 }
0x1513   : > { %v4404_v7 = vadd.f32 %v4368_v56, %v7461_v54 }
0x1514   : > { %v4370_v0 = vpop.f32.mrf.mxu0 }
0x1515   : > { %v4371_v47 = vadd.f32 %v4772_v10, %v4370_v0 }
0x1516   : > { %v5342_v21 = vpop.f32.mrf.mxu0 }
0x1517   : > { %v4405_v62 = vadd.f32 %v4371_v47, %v7466_v41 }
0x1518   : > { %v4375_v34 = vpop.f32.mrf.mxu0 }
0x1519   : > { %v4376_v46 = vadd.f32 %v4772_v10, %v4375_v34 }
0x151a   : > { %v5345_v19 = vpop.f32.mrf.mxu0 }
0x151b   : > { %v4406_v52 = vadd.f32 %v4376_v46, %v7471_v8 }
0x151c   : > { %v4378_v12 = vpop.f32.mrf.mxu0 }
0x151d   : > { %v4379_v29 = vadd.f32 %v4772_v10, %v4378_v12 }
0x151e   : > { %v5346_v36 = vpop.f32.mrf.mxu0 }
0x151f   : > { %v4407_v30 = vadd.f32 %v4379_v29, %v7476_v49 }
0x1520   : > { %v4383_v2 = vpop.f32.mrf.mxu0 }
0x1521   : > { %v4384_v50 = vadd.f32 %v4772_v10, %v4383_v2 }
0x1522   : > { %v5349_v4 = vpop.f32.mrf.mxu0 }
0x1523   : > { %v4408_v54 = vadd.f32 %v4384_v50, %v7481_v57 }
0x1524   : > { %v4386_v42 = vpop.f32.mrf.mxu0 }
0x1525   : > { %v4387_v1 = vadd.f32 %v4772_v10, %v4386_v42 }
0x1526   : > { %v5350_v58 = vpop.f32.mrf.mxu0 }
0x1527   : > { %v4409_v41 = vadd.f32 %v4387_v1, %v7486_v59 }
0x1528   : > { %v4391_v17 = vpop.f32.mrf.mxu0 }
0x1529   : > { %v4392_v38 = vadd.f32 %v4772_v10, %v4391_v17 }
0x152a   : > { %v5353_v37 = vpop.f32.mrf.mxu0 }
0x152b   : > { %v4410_v8 = vadd.f32 %v4392_v38, %v7494_v16  ;;  %4415 = sbr.rel (%p4784_p5) target bundleno = 5431 (0x1537), region = 88 }
0x152c   : > { %v4394_v27 = vpop.f32.mrf.mxu0 }
0x152d   : > { %v4395_v18 = vadd.f32 %v4772_v10, %v4394_v27 }
0x152e   : > { %v5354_v11 = vpop.f32.mrf.mxu0 }
0x152f   : > { %v4411_v49 = vadd.f32 %v4395_v18, %v7507_v51 }
0x1530   : > { %4416 = vst.msk [vmem:[#allocation2] sm:$0xff] %vm703_vm1, %v7750_v44  ;;  %4417 = vst.msk [vmem:[#allocation2 + $0x8] sm:$0xff] %vm703_vm1, %v4399_v60 }
0x1531   : > { %4418 = vst.msk [vmem:[#allocation2 + $0x10] sm:$0xff] %vm703_vm1, %v4400_v26  ;;  %4419 = vst.msk [vmem:[#allocation2 + $0x18] sm:$0xff] %vm703_vm1, %v4401_v61 }
0x1532   : > { %4420 = vst.msk [vmem:[#allocation2 + $0x20] sm:$0xff] %vm703_vm1, %v4402_v6  ;;  %4421 = vst.msk [vmem:[#allocation2 + $0x28] sm:$0xff] %vm703_vm1, %v4403_v45 }
0x1533   : > { %4422 = vst.msk [vmem:[#allocation2 + $0x30] sm:$0xff] %vm703_vm1, %v4404_v7  ;;  %4423 = vst.msk [vmem:[#allocation2 + $0x38] sm:$0xff] %vm703_vm1, %v4405_v62 }
0x1534   : > { %4424 = vst.msk [vmem:[#allocation2 + $0x40] sm:$0xff] %vm703_vm1, %v4406_v52  ;;  %4425 = vst.msk [vmem:[#allocation2 + $0x48] sm:$0xff] %vm703_vm1, %v4407_v30 }
0x1535   : > { %4426 = vst.msk [vmem:[#allocation2 + $0x50] sm:$0xff] %vm703_vm1, %v4408_v54  ;;  %4427 = vst.msk [vmem:[#allocation2 + $0x58] sm:$0xff] %vm703_vm1, %v4409_v41 }
0x1536   : > { %4428 = vst.msk [vmem:[#allocation2 + $0x60] sm:$0xff] %vm703_vm1, %v4410_v8  ;;  %4429 = vst.msk [vmem:[#allocation2 + $0x68] sm:$0xff] %vm703_vm1, %v4411_v49 }
0x1537 PF: > { %p4785_p6 = scmp.ne.s32.totalorder %s6017_s19, 1 }
0x1538   : > { %s7891_s14 = sld [smem:[#allocation24_spill]] (!%p4785_p6) }
0x1539   : > { %4433 = sbr.rel (%p4785_p6) target bundleno = 5646 (0x160e), region = 92  ;;  %s7892_s29 = sld [smem:[#allocation25_spill]] (!%p4785_p6) }
0x153e   : > { %v5874_v57 = vld [vmem:[%s7891_s14 + $0x8] sm:$0xff]   ;;  %v5928_v59 = vmov 0.0   ;;  %v5875_v16 = vld [vmem:[%s7891_s14] sm:$0xff]   ;;  %vm5929_vm10 = vmmov 0   ;;  %v4435_v51 = vrot.slane %v4405_v62, 7  ;;  %vm4437_vm11 = vcmask 1040384  }
0x153f   : > { %5355 = vmatprep.subr.bf16.mxu0 %v5928_v59  ;;  %5359 = vmatprep.mubr.msk.bf16.mxu0 %vm5929_vm10, %v5928_v59  ;;  %v4786_v40 = vld [vmem:[%s7892_s29] ss:$0 sm:$0xff] }
0x1540   : > { %5356 = vmatpush3.bf16.msra.mxu0 %v5874_v57  ;;  %v4438_v3 = vsel %vm4437_vm11, %v7750_v44, %v4435_v51 }
0x1541   : > { %5357 = vmatprep.subr.bf16.mxu0 %v5928_v59  ;;  %v4444_v33 = vpack.c.bf16 %v4438_v3, %v4438_v3 }
0x1544   : > { %5358 = vmatpush3.bf16.msra.mxu0 %v5875_v16 }
0x1547   : > { %5360 = vmatmul.mubr.msk.bf16.vlgmr.msra.gmra.mxu0 %vm703_vm1, %v4444_v33 }
0x1607   : > { %v4500_v10 = vpop.f32.mrf.mxu0 }
0x1608   : > { %v4501_v25 = vadd.f32 %v4786_v40, %v4500_v10 }
0x1609   : > { %v5361_v23 = vpop.f32.mrf.mxu0 }
0x160a   : > { %4506 = vst [vmem:[#allocation3] sm:$0x3] %v4501_v25 }
0x160b   : > { %v4503_v35 = vpop.f32.mrf.mxu0 }
0x160d   : > { %v5362_v28 = vpop.f32.mrf.mxu0 }
0x160e PF: > { %p5407_p7 = scmp.eq.s32.totalorder %s6017_s19, 1  ;;  %s5930_s27 = smov [#allocation3]  }
0x160f   : > { %s4514_s16 = sshll.u32 %s5930_s27, 4  ;;  %s4515_s16 = int_to_ptr.vmem [resolvable:$true] %s4514_s16 }
0x1610   : > { %s5876_s17 = scalar_lea.vmem %s4515_s16, 32  ;;  %p5883_p11 = scmp.lt.s32.totalorder %s4515_s16, %s4515_s16 }
0x1611   : > { %p5877_p8 = scmp.ne.s32.totalorder %s4515_s16, %s5876_s17  ;;  %p5884_p12 = scmp.lt.s32.totalorder %s5876_s17, %s5876_s17 }
0x1613   : > { %p5878_p9 = pnand %p5877_p8, %p5407_p7  ;;  %p5885_p13 = por %p5884_p12, %p5883_p11 }
0x1615   : > { %p5879_p10 = pneg %p5878_p9 }
0x1617   : > { %p5886_p0 = pnand %p5885_p13, %p5879_p10 }
0x1619   : > { %5889 = shalt.err (!%p5886_p0)
}
0x161a   : > { %s7893_s22 = sld [smem:[#allocation26_spill]] }
0x1620   : > { %5404 = dma.vmem_to_hbm [thread:$0]  (%p5407_p7), %s4515_s16, 32, %s7893_s22, [#allocation4]  }
0x1621   : > { %5905 = dma.done.wait (%p5407_p7), [#allocation4], 32  }
0x1622   : > { %5907 = vsyncadd (%p5407_p7), [#allocation4], 4294967264 }
0x1623 PF: > { %s7894_s21 = sld [smem:[#allocation6_spill]] }
0x1629   : > { %s26_s18 = sadd.s32 1, %s7894_s21  }
0x162a   : > { %p23_p1 = scmp.ge.s32.totalorder %s26_s18, 4  }
0x162c   :  { %25 = sbr.rel (!%p23_p1) target bundleno = 8 (0x8), region = 152 }
0x1631   :  { %4527 = vsyncpa [#allocation4], 1 }
0x1632   :  { %4529 = vsyncpa [#allocation4 + $0x1], 1 }

</bundles_post_ra>
